<compile_context>
chip_gen: v6e
topology: v6e:2x2x1
jax: 0.10.0
libtpu: 0.0.40
codegen_flags: <defaults>
</compile_context>

<pallas_src>
import jax
import jax.numpy as jnp
from jax.experimental import pallas as pl
from jax.experimental.pallas import tpu as pltpu


# ----------------------------- small helpers --------------------------------

def _round_up(x, m):
    return (x + m - 1) // m * m


def _layernorm(x, g, b, eps=1e-5):
    # PyTorch nn.LayerNorm: biased variance over last dim, eps=1e-5 (f32 math).
    mu = jnp.mean(x, axis=-1, keepdims=True)
    var = jnp.mean((x - mu) ** 2, axis=-1, keepdims=True)
    return (x - mu) * jax.lax.rsqrt(var + eps) * g + b


def _default_num_tiles():
    # v7x has 2 TensorCores/chip -> split batch across them (balanced tiles,
    # minimal padding).  v5e/v6e are 1 TC -> a single grid step avoids the
    # ~0.35us/step pipeline overhead that rivals the whole compute here.
    try:
        kind = jax.devices()[0].device_kind.lower()
        if "v7" in kind or "7x" in kind:
            return 2
    except Exception:
        pass
    return 1


# Packed-vector row layout (each row padded to 128 lanes, f32):
#  0 fn_gamma(D)  1 fn_beta(D)  2 b1(H)  3 g1(H)  4 be1(H)  5 b2(H)  6 g2(H)
#  7 be2(H)  8 [b_r|b_z](2H)  9 [b_in|b_hn](2H)  10 gru_ln_g(H)  11 gru_ln_b(H)
# 12 ba(A)   13..15 pad rows
#
# Input slab lane layout (width 128, f32): [obs(0:D) | h(D:D+H) | mask | avail(A)]
# Output slab lane layout (width 128, f32): [h_new(0:H) | pi(A) | act | logp | pad]


# ------------------------------ Pallas kernel -------------------------------

def r_actor_kernel(in_ref, vec_ref, w1_ref, w2_ref, wxg_ref, whg_ref, wa_ref,
                   out_ref):
    D, H = w1_ref.shape
    A = wa_ref.shape[1]
    TB = in_ref.shape[0]
    SLAB = out_ref.shape[1]
    bf = jnp.bfloat16

    v = vec_ref[...]                                  # [16, 128] f32, one load

    def vec(row, width):
        return v[row:row + 1, :width]                 # (1, width) broadcast row

    # ---- unpack the lane-dense input slab (one 128-lane DMA per tile) ----
    slab = in_ref[...]                                # [TB, 128] f32
    obs = slab[:, :D]
    h = slab[:, D:D + H] * slab[:, D + H:D + H + 1]   # masked hidden state
    avail = slab[:, D + H + 1:D + H + 1 + A]

    # ---- MLPBase (bf16 MXU matmuls, f32 VPU elementwise) ----
    x = _layernorm(obs, vec(0, D), vec(1, D))                     # feature_norm
    x = jnp.dot(x.astype(bf), w1_ref[...],
                preferred_element_type=jnp.float32) + vec(2, H)
    x = jnp.maximum(x, 0.0)
    x = _layernorm(x, vec(3, H), vec(4, H))
    x = jnp.dot(x.astype(bf), w2_ref[...],
                preferred_element_type=jnp.float32) + vec(5, H)
    x = jnp.maximum(x, 0.0)
    x = _layernorm(x, vec(6, H), vec(7, H))

    # ---- RNNLayer: masked single-step GRU, fused gate matmul pair ----
    # gru = [r_pre | z_pre | i_n | h_n]  (lane-dense [TB, 4H])
    gru = (jnp.dot(x.astype(bf), wxg_ref[...],
                   preferred_element_type=jnp.float32)
           + jnp.dot(h.astype(bf), whg_ref[...],
                     preferred_element_type=jnp.float32))
    gates = jax.nn.sigmoid(gru[:, :2 * H] + v[8:9, :2 * H])       # [TB,2H]=[r|z]
    nh = gru[:, 2 * H:] + v[9:10, :2 * H]                         # [TB,2H]=[i_n|h_n]
    n = jnp.tanh(nh[:, :H] + gates[:, :H] * nh[:, H:])
    h_new = n + gates[:, H:] * (h - n)                # == (1-z)*n + z*h
    xr = _layernorm(h_new, vec(10, H), vec(11, H))                # rnn output norm

    # ---- ACTLayer (Categorical, deterministic) ----
    logits = jnp.dot(xr.astype(bf), wa_ref[...],
                     preferred_element_type=jnp.float32) + vec(12, A)
    logits = jnp.where(avail > 0, logits, -1e10)

    m = jnp.max(logits, axis=-1, keepdims=True)
    e = jnp.exp(logits - m)
    s = jnp.sum(e, axis=-1, keepdims=True)
    probs = e * pl.reciprocal(s, approx=True)                     # EUP, not VALU
    # log_softmax(logits)[argmax] == -log(s) exactly (logits[argmax] == m)
    logp = -jnp.log(s)

    idx = jax.lax.broadcasted_iota(jnp.int32, logits.shape, 1)
    act = jnp.min(jnp.where(logits >= m, idx, A),
                  axis=-1, keepdims=True).astype(jnp.float32)     # first argmax

    pi = jnp.clip(probs, 0.0001, 0.9999)
    pi = pi / jnp.sum(pi, axis=-1, keepdims=True)     # exact final renorm (A lanes)

    # ---- lane-dense output slab via direct ref stores (no concat) ----
    out_ref[:, :H] = h_new
    out_ref[:, H:H + A] = pi
    out_ref[:, H + A:H + A + 1] = act
    out_ref[:, H + A + 1:H + A + 2] = logp
    out_ref[:, H + A + 2:] = jnp.zeros((TB, SLAB - (H + A + 2)), jnp.float32)


# ------------------------------ JAX wrapper ---------------------------------

def r_actor_forward(obs, rnn_states, masks, available_actions, packed,
                    *, num_tiles=None):
    """obs:[B,D]  rnn_states:[B,1,H]  masks:[B,1]  available_actions:[B,A]"""
    vecs, w1, w2, wxg, whg, wa = packed
    B, D = obs.shape
    H = rnn_states.shape[-1]
    A = available_actions.shape[-1]
    IN_W = _round_up(D + H + 1 + A, 128)
    SLAB = _round_up(H + A + 2, 128)

    if num_tiles is None:
        num_tiles = _default_num_tiles()
    TB = _round_up(pl.cdiv(B, num_tiles), 8)
    Bp = TB * num_tiles

    # One lane-dense input slab: [obs | h | mask | avail], zero-padded lanes/rows.
    h0 = rnn_states.reshape(B, H)                      # recurrent_N == 1
    in_slab = jnp.concatenate([obs, h0, masks, available_actions], axis=-1)
    in_slab = jnp.pad(in_slab,
                      ((0, Bp - B), (0, IN_W - in_slab.shape[1])))

    def full_spec(arr):
        return pl.BlockSpec(arr.shape, lambda i: (0, 0))

    weight_elems = w1.size + w2.size + wxg.size + whg.size + wa.size
    cost = pl.CostEstimate(
        flops=2 * Bp * (D * H + H * H + 2 * (H * 4 * H) + H * A),
        transcendentals=Bp * (4 * H + H + A + 8),
        bytes_accessed=Bp * IN_W * 4 + Bp * SLAB * 4 + vecs.size * 4
        + weight_elems * 2,
    )

    slab = pl.pallas_call(
        r_actor_kernel,
        out_shape=jax.ShapeDtypeStruct((Bp, SLAB), jnp.float32),
        grid=(num_tiles,),
        in_specs=[
            pl.BlockSpec((TB, IN_W), lambda i: (i, 0)),
            full_spec(vecs), full_spec(w1), full_spec(w2),
            full_spec(wxg), full_spec(whg), full_spec(wa),
        ],
        out_specs=pl.BlockSpec((TB, SLAB), lambda i: (i, 0)),
        compiler_params=pltpu.CompilerParams(
            dimension_semantics=("parallel",)),       # megacore sharding on v7x
        cost_estimate=cost,
    )(in_slab, vecs, w1, w2, wxg, whg, wa)

    h_out = slab[:B, :H].reshape(B, 1, H)
    pi = slab[:B, H:H + A]
    actions = slab[:B, H + A:H + A + 1].astype(jnp.int32)
    action_log_probs = slab[:B, H + A + 1:H + A + 2]
    return actions, action_log_probs, h_out, pi


# ----------------------- parameter init & packing ---------------------------

def init_params(key, obs_dim, hidden, n_actions):
    """Deterministic synthetic parameters (shapes mirror the PyTorch module;
    Linear weights stored pre-transposed as [in, out], biases as [out]."""
    ks = jax.random.split(key, 8)

    def lin(k, din, dout, scale=0.1):
        kw, kb = jax.random.split(k)
        w = scale * jax.random.normal(kw, (din, dout), jnp.float32)
        b = 0.01 * jax.random.normal(kb, (dout,), jnp.float32)
        return w, b

    fng = jnp.ones((obs_dim,), jnp.float32)
    fnb = jnp.zeros((obs_dim,), jnp.float32)
    w1, b1 = lin(ks[0], obs_dim, hidden)
    g1, be1 = jnp.ones((hidden,), jnp.float32), jnp.zeros((hidden,), jnp.float32)
    w2, b2 = lin(ks[1], hidden, hidden)
    g2, be2 = jnp.ones((hidden,), jnp.float32), jnp.zeros((hidden,), jnp.float32)
    # GRU (gate order r, z, n along the 3H axis)
    wih, bih = lin(ks[2], hidden, 3 * hidden)
    whh, bhh = lin(ks[3], hidden, 3 * hidden)
    gr, br = jnp.ones((hidden,), jnp.float32), jnp.zeros((hidden,), jnp.float32)
    wa, ba = lin(ks[4], hidden, n_actions)

    return (fng, fnb, w1, b1, g1, be1, w2, b2, g2, be2,
            wih, whh, bih, bhh, gr, br, wa, ba)


def pack_params(raw, obs_dim, hidden, n_actions):
    """Repack for the kernel: bf16 matmul weights, block-structured fused GRU
    weights, lane-packed gate biases, one [16,128] f32 vector-parameter slab."""
    (fng, fnb, w1, b1, g1, be1, w2, b2, g2, be2,
     wih, whh, bih, bhh, gr, br, wa, ba) = raw
    H = hidden
    assert 2 * H <= 128 and obs_dim <= 128 and n_actions <= 128

    wih_r, wih_z, wih_n = wih[:, :H], wih[:, H:2 * H], wih[:, 2 * H:]
    whh_r, whh_z, whh_n = whh[:, :H], whh[:, H:2 * H], whh[:, 2 * H:]
    zer = jnp.zeros((H, H), jnp.float32)
    # gru = x @ wxg + h @ whg produces the lane-dense [r_pre|z_pre|i_n|h_n].
    wxg = jnp.concatenate([wih_r, wih_z, wih_n, zer], axis=1)     # [H, 4H]
    whg = jnp.concatenate([whh_r, whh_z, zer, whh_n], axis=1)     # [H, 4H]
    b_rz = jnp.concatenate([bih[:H] + bhh[:H], bih[H:2 * H] + bhh[H:2 * H]])
    b_nh = jnp.concatenate([bih[2 * H:], bhh[2 * H:]])

    rows = [fng, fnb, b1, g1, be1, b2, g2, be2, b_rz, b_nh, gr, br, ba]
    vw = _round_up(max(r.shape[-1] for r in rows), 128)
    padded = [jnp.pad(r.reshape(-1), (0, vw - r.shape[-1])) for r in rows]
    nv = _round_up(len(padded), 8)
    padded += [jnp.zeros((vw,), jnp.float32)] * (nv - len(padded))
    vecs = jnp.stack(padded).astype(jnp.float32)                   # [16, 128]

    def bf(w):
        return w.astype(jnp.bfloat16)

    return vecs, bf(w1), bf(w2), bf(wxg), bf(whg), bf(wa)


# ------------------------- pure-JAX reference -------------------------------

def r_actor_reference(obs, rnn_states, masks, avail, packed):
    """Mirrors the kernel math (bf16 matmuls, f32 elementwise) with exact divides."""
    vecs, w1, w2, wxg, whg, wa = packed
    B, D = obs.shape
    H = rnn_states.shape[-1]
    A = avail.shape[-1]
    bf = jnp.bfloat16

    def v(row, width):
        return vecs[row:row + 1, :width]

    x = _layernorm(obs, v(0, D), v(1, D))
    x = jnp.dot(x.astype(bf), w1, preferred_element_type=jnp.float32) + v(2, H)
    x = jnp.maximum(x, 0.0)
    x = _layernorm(x, v(3, H), v(4, H))
    x = jnp.dot(x.astype(bf), w2, preferred_element_type=jnp.float32) + v(5, H)
    x = jnp.maximum(x, 0.0)
    x = _layernorm(x, v(6, H), v(7, H))

    h = rnn_states.reshape(B, H) * masks
    gru = (jnp.dot(x.astype(bf), wxg, preferred_element_type=jnp.float32)
           + jnp.dot(h.astype(bf), whg, preferred_element_type=jnp.float32))
    r = jax.nn.sigmoid(gru[:, :H] + v(8, 2 * H)[:, :H])
    z = jax.nn.sigmoid(gru[:, H:2 * H] + v(8, 2 * H)[:, H:])
    i_n = gru[:, 2 * H:3 * H] + v(9, 2 * H)[:, :H]
    h_n = gru[:, 3 * H:] + v(9, 2 * H)[:, H:]
    n = jnp.tanh(i_n + r * h_n)
    h_new = (1.0 - z) * n + z * h
    xr = _layernorm(h_new, v(10, H), v(11, H))

    logits = jnp.dot(xr.astype(bf), wa,
                     preferred_element_type=jnp.float32) + v(12, A)
    logits = jnp.where(avail > 0, logits, -1e10)
    m = jnp.max(logits, axis=-1, keepdims=True)
    e = jnp.exp(logits - m)
    s = jnp.sum(e, axis=-1, keepdims=True)
    probs = e / s
    act = jnp.argmax(logits, axis=-1, keepdims=True).astype(jnp.int32)
    logp = -jnp.log(s)
    pi = jnp.clip(probs, 0.0001, 0.9999)
    pi = pi / jnp.sum(pi, axis=-1, keepdims=True)
    return act, logp, h_new.reshape(B, 1, H), pi


# ---------------------------------- main -------------------------------------

if __name__ == "__main__":
    B, OBS_DIM, HIDDEN, N_ACTIONS = 200, 24, 64, 6

    key = jax.random.PRNGKey(0)
    k_obs, k_h, k_m, k_p = jax.random.split(key, 4)

    obs = jax.random.normal(k_obs, (B, OBS_DIM), jnp.float32)
    rnn_states = jax.random.normal(k_h, (B, 1, HIDDEN), jnp.float32)  # recurrent_N=1
    masks = (jax.random.uniform(k_m, (B, 1)) > 0.2).astype(jnp.float32)
    available_actions = jnp.ones((B, N_ACTIONS), jnp.float32)
    available_actions = available_actions.at[::7, 0].set(0.0)

    raw = init_params(k_p, OBS_DIM, HIDDEN, N_ACTIONS)
    packed = pack_params(raw, OBS_DIM, HIDDEN, N_ACTIONS)

    actions, action_log_probs, new_rnn_states, pi = jax.block_until_ready(
        r_actor_forward(obs, rnn_states, masks, available_actions, packed)
    )

    ref_a, ref_lp, ref_h, ref_pi = r_actor_reference(
        obs, rnn_states, masks, available_actions, packed)

    assert actions.shape == (B, 1) and actions.dtype == jnp.int32
    assert action_log_probs.shape == (B, 1)
    assert new_rnn_states.shape == (B, 1, HIDDEN)
    assert pi.shape == (B, N_ACTIONS)
    assert bool(jnp.all(actions == ref_a))
    assert bool(jnp.max(jnp.abs(new_rnn_states - ref_h)) < 1e-3)
    assert bool(jnp.max(jnp.abs(action_log_probs - ref_lp)) < 1e-3)
    assert bool(jnp.max(jnp.abs(pi - ref_pi)) < 1e-2)
    assert bool(jnp.max(jnp.abs(jnp.sum(pi, axis=-1) - 1.0)) < 1e-4)

    # TODO(synk): stochastic sampling (deterministic=False) and
    # evaluate_actions()/entropy are not implemented in the kernel.
    print("KERNEL_OK")
</pallas_src>

<mosaic_0001>
module attributes {stable_mosaic.version = 11 : i64} {
  func.func @r_actor_kernel(%arg0: i32, %arg1: memref<200x128xf32, #tpu.memory_space<vmem>>, %arg2: memref<16x128xf32, #tpu.memory_space<vmem>>, %arg3: memref<24x64xbf16, #tpu.memory_space<vmem>>, %arg4: memref<64x64xbf16, #tpu.memory_space<vmem>>, %arg5: memref<64x256xbf16, #tpu.memory_space<vmem>>, %arg6: memref<64x256xbf16, #tpu.memory_space<vmem>>, %arg7: memref<64x6xbf16, #tpu.memory_space<vmem>>, %arg8: memref<200x128xf32, #tpu.memory_space<vmem>>) attributes {dimension_semantics = [#tpu.dimension_semantics<parallel>], iteration_bounds = array<i64: 1>, scalar_prefetch = 0 : i64, scratch_operands = 0 : i64, tpu.core_type = #tpu.core_type<tc>, window_params = [{transform_indices = @transform_0, window_bounds = array<i64: 200, 128>}, {pipeline_mode = #tpu.pipeline_mode<synchronous>, transform_indices = @transform_1, window_bounds = array<i64: 16, 128>}, {pipeline_mode = #tpu.pipeline_mode<synchronous>, transform_indices = @transform_2, window_bounds = array<i64: 24, 64>}, {pipeline_mode = #tpu.pipeline_mode<synchronous>, transform_indices = @transform_3, window_bounds = array<i64: 64, 64>}, {pipeline_mode = #tpu.pipeline_mode<synchronous>, transform_indices = @transform_4, window_bounds = array<i64: 64, 256>}, {pipeline_mode = #tpu.pipeline_mode<synchronous>, transform_indices = @transform_5, window_bounds = array<i64: 64, 256>}, {pipeline_mode = #tpu.pipeline_mode<synchronous>, transform_indices = @transform_6, window_bounds = array<i64: 64, 6>}, {transform_indices = @transform_7, window_bounds = array<i64: 200, 128>}]} {
    %c0 = arith.constant 0 : index
    %c0_0 = arith.constant 0 : index
    %0 = vector.load %arg2[%c0, %c0_0] : memref<16x128xf32, #tpu.memory_space<vmem>>, vector<16x128xf32>
    %c0_1 = arith.constant 0 : index
    %c0_2 = arith.constant 0 : index
    %1 = vector.load %arg1[%c0_1, %c0_2] : memref<200x128xf32, #tpu.memory_space<vmem>>, vector<200x128xf32>
    %2 = vector.extract_strided_slice %1 {offsets = [0, 0], sizes = [200, 24], strides = [1, 1]} : vector<200x128xf32> to vector<200x24xf32>
    %3 = vector.extract_strided_slice %1 {offsets = [0, 24], sizes = [200, 64], strides = [1, 1]} : vector<200x128xf32> to vector<200x64xf32>
    %4 = vector.extract_strided_slice %1 {offsets = [0, 88], sizes = [200, 1], strides = [1, 1]} : vector<200x128xf32> to vector<200x1xf32>
    %5 = vector.broadcast %4 : vector<200x1xf32> to vector<200x64xf32>
    %6 = arith.mulf %3, %5 : vector<200x64xf32>
    %7 = vector.extract_strided_slice %1 {offsets = [0, 89], sizes = [200, 6], strides = [1, 1]} : vector<200x128xf32> to vector<200x6xf32>
    %8 = vector.extract_strided_slice %0 {offsets = [0, 0], sizes = [1, 24], strides = [1, 1]} : vector<16x128xf32> to vector<1x24xf32>
    %9 = vector.extract_strided_slice %0 {offsets = [1, 0], sizes = [1, 24], strides = [1, 1]} : vector<16x128xf32> to vector<1x24xf32>
    %cst = arith.constant dense<0.000000e+00> : vector<200xf32>
    %10 = vector.multi_reduction <add>, %2, %cst [1] : vector<200x24xf32> to vector<200xf32>
    %11 = vector.shape_cast %10 : vector<200xf32> to vector<200x1xf32>
    %cst_3 = arith.constant 2.400000e+01 : f32
    %12 = vector.broadcast %cst_3 : f32 to vector<200x1xf32>
    %13 = arith.divf %11, %12 : vector<200x1xf32>
    %14 = vector.broadcast %13 : vector<200x1xf32> to vector<200x24xf32>
    %15 = arith.subf %2, %14 : vector<200x24xf32>
    %16 = arith.mulf %15, %15 : vector<200x24xf32>
    %cst_4 = arith.constant dense<0.000000e+00> : vector<200xf32>
    %17 = vector.multi_reduction <add>, %16, %cst_4 [1] : vector<200x24xf32> to vector<200xf32>
    %18 = vector.shape_cast %17 : vector<200xf32> to vector<200x1xf32>
    %cst_5 = arith.constant 2.400000e+01 : f32
    %19 = vector.broadcast %cst_5 : f32 to vector<200x1xf32>
    %20 = arith.divf %18, %19 : vector<200x1xf32>
    %21 = vector.broadcast %13 : vector<200x1xf32> to vector<200x24xf32>
    %22 = arith.subf %2, %21 : vector<200x24xf32>
    %cst_6 = arith.constant 9.99999974E-6 : f32
    %23 = vector.broadcast %cst_6 : f32 to vector<200x1xf32>
    %24 = arith.addf %20, %23 : vector<200x1xf32>
    %25 = math.rsqrt %24 : vector<200x1xf32>
    %26 = vector.broadcast %25 : vector<200x1xf32> to vector<200x24xf32>
    %27 = arith.mulf %22, %26 : vector<200x24xf32>
    %28 = vector.broadcast %8 : vector<1x24xf32> to vector<200x24xf32>
    %29 = arith.mulf %27, %28 : vector<200x24xf32>
    %30 = vector.broadcast %9 : vector<1x24xf32> to vector<200x24xf32>
    %31 = arith.addf %29, %30 : vector<200x24xf32>
    %32 = arith.truncf %31 : vector<200x24xf32> to vector<200x24xbf16>
    %c0_7 = arith.constant 0 : index
    %c0_8 = arith.constant 0 : index
    %33 = vector.load %arg3[%c0_7, %c0_8] : memref<24x64xbf16, #tpu.memory_space<vmem>>, vector<24x64xbf16>
    %cst_9 = arith.constant dense<0.000000e+00> : vector<200x64xf32>
    %34 = tpu.matmul %32, %33, %cst_9 {dimension_numbers = #tpu.dot_dimension_numbers<[1], [0], [0], [1], [0, 0, 1, 1], [], []>} : vector<200x24xbf16>, vector<24x64xbf16>, vector<200x64xf32> -> vector<200x64xf32>
    %35 = vector.extract_strided_slice %0 {offsets = [2, 0], sizes = [1, 64], strides = [1, 1]} : vector<16x128xf32> to vector<1x64xf32>
    %36 = vector.broadcast %35 : vector<1x64xf32> to vector<200x64xf32>
    %37 = arith.addf %34, %36 : vector<200x64xf32>
    %cst_10 = arith.constant 0.000000e+00 : f32
    %38 = vector.broadcast %cst_10 : f32 to vector<200x64xf32>
    %39 = arith.maximumf %37, %38 : vector<200x64xf32>
    %40 = vector.extract_strided_slice %0 {offsets = [3, 0], sizes = [1, 64], strides = [1, 1]} : vector<16x128xf32> to vector<1x64xf32>
    %41 = vector.extract_strided_slice %0 {offsets = [4, 0], sizes = [1, 64], strides = [1, 1]} : vector<16x128xf32> to vector<1x64xf32>
    %cst_11 = arith.constant dense<0.000000e+00> : vector<200xf32>
    %42 = vector.multi_reduction <add>, %39, %cst_11 [1] : vector<200x64xf32> to vector<200xf32>
    %43 = vector.shape_cast %42 : vector<200xf32> to vector<200x1xf32>
    %cst_12 = arith.constant 6.400000e+01 : f32
    %44 = vector.broadcast %cst_12 : f32 to vector<200x1xf32>
    %45 = arith.divf %43, %44 : vector<200x1xf32>
    %46 = vector.broadcast %45 : vector<200x1xf32> to vector<200x64xf32>
    %47 = arith.subf %39, %46 : vector<200x64xf32>
    %48 = arith.mulf %47, %47 : vector<200x64xf32>
    %cst_13 = arith.constant dense<0.000000e+00> : vector<200xf32>
    %49 = vector.multi_reduction <add>, %48, %cst_13 [1] : vector<200x64xf32> to vector<200xf32>
    %50 = vector.shape_cast %49 : vector<200xf32> to vector<200x1xf32>
    %cst_14 = arith.constant 6.400000e+01 : f32
    %51 = vector.broadcast %cst_14 : f32 to vector<200x1xf32>
    %52 = arith.divf %50, %51 : vector<200x1xf32>
    %53 = vector.broadcast %45 : vector<200x1xf32> to vector<200x64xf32>
    %54 = arith.subf %39, %53 : vector<200x64xf32>
    %cst_15 = arith.constant 9.99999974E-6 : f32
    %55 = vector.broadcast %cst_15 : f32 to vector<200x1xf32>
    %56 = arith.addf %52, %55 : vector<200x1xf32>
    %57 = math.rsqrt %56 : vector<200x1xf32>
    %58 = vector.broadcast %57 : vector<200x1xf32> to vector<200x64xf32>
    %59 = arith.mulf %54, %58 : vector<200x64xf32>
    %60 = vector.broadcast %40 : vector<1x64xf32> to vector<200x64xf32>
    %61 = arith.mulf %59, %60 : vector<200x64xf32>
    %62 = vector.broadcast %41 : vector<1x64xf32> to vector<200x64xf32>
    %63 = arith.addf %61, %62 : vector<200x64xf32>
    %64 = arith.truncf %63 : vector<200x64xf32> to vector<200x64xbf16>
    %c0_16 = arith.constant 0 : index
    %c0_17 = arith.constant 0 : index
    %65 = vector.load %arg4[%c0_16, %c0_17] : memref<64x64xbf16, #tpu.memory_space<vmem>>, vector<64x64xbf16>
    %cst_18 = arith.constant dense<0.000000e+00> : vector<200x64xf32>
    %66 = tpu.matmul %64, %65, %cst_18 {dimension_numbers = #tpu.dot_dimension_numbers<[1], [0], [0], [1], [0, 0, 1, 1], [], []>} : vector<200x64xbf16>, vector<64x64xbf16>, vector<200x64xf32> -> vector<200x64xf32>
    %67 = vector.extract_strided_slice %0 {offsets = [5, 0], sizes = [1, 64], strides = [1, 1]} : vector<16x128xf32> to vector<1x64xf32>
    %68 = vector.broadcast %67 : vector<1x64xf32> to vector<200x64xf32>
    %69 = arith.addf %66, %68 : vector<200x64xf32>
    %cst_19 = arith.constant 0.000000e+00 : f32
    %70 = vector.broadcast %cst_19 : f32 to vector<200x64xf32>
    %71 = arith.maximumf %69, %70 : vector<200x64xf32>
    %72 = vector.extract_strided_slice %0 {offsets = [6, 0], sizes = [1, 64], strides = [1, 1]} : vector<16x128xf32> to vector<1x64xf32>
    %73 = vector.extract_strided_slice %0 {offsets = [7, 0], sizes = [1, 64], strides = [1, 1]} : vector<16x128xf32> to vector<1x64xf32>
    %cst_20 = arith.constant dense<0.000000e+00> : vector<200xf32>
    %74 = vector.multi_reduction <add>, %71, %cst_20 [1] : vector<200x64xf32> to vector<200xf32>
    %75 = vector.shape_cast %74 : vector<200xf32> to vector<200x1xf32>
    %cst_21 = arith.constant 6.400000e+01 : f32
    %76 = vector.broadcast %cst_21 : f32 to vector<200x1xf32>
    %77 = arith.divf %75, %76 : vector<200x1xf32>
    %78 = vector.broadcast %77 : vector<200x1xf32> to vector<200x64xf32>
    %79 = arith.subf %71, %78 : vector<200x64xf32>
    %80 = arith.mulf %79, %79 : vector<200x64xf32>
    %cst_22 = arith.constant dense<0.000000e+00> : vector<200xf32>
    %81 = vector.multi_reduction <add>, %80, %cst_22 [1] : vector<200x64xf32> to vector<200xf32>
    %82 = vector.shape_cast %81 : vector<200xf32> to vector<200x1xf32>
    %cst_23 = arith.constant 6.400000e+01 : f32
    %83 = vector.broadcast %cst_23 : f32 to vector<200x1xf32>
    %84 = arith.divf %82, %83 : vector<200x1xf32>
    %85 = vector.broadcast %77 : vector<200x1xf32> to vector<200x64xf32>
    %86 = arith.subf %71, %85 : vector<200x64xf32>
    %cst_24 = arith.constant 9.99999974E-6 : f32
    %87 = vector.broadcast %cst_24 : f32 to vector<200x1xf32>
    %88 = arith.addf %84, %87 : vector<200x1xf32>
    %89 = math.rsqrt %88 : vector<200x1xf32>
    %90 = vector.broadcast %89 : vector<200x1xf32> to vector<200x64xf32>
    %91 = arith.mulf %86, %90 : vector<200x64xf32>
    %92 = vector.broadcast %72 : vector<1x64xf32> to vector<200x64xf32>
    %93 = arith.mulf %91, %92 : vector<200x64xf32>
    %94 = vector.broadcast %73 : vector<1x64xf32> to vector<200x64xf32>
    %95 = arith.addf %93, %94 : vector<200x64xf32>
    %96 = arith.truncf %95 : vector<200x64xf32> to vector<200x64xbf16>
    %c0_25 = arith.constant 0 : index
    %c0_26 = arith.constant 0 : index
    %97 = vector.load %arg5[%c0_25, %c0_26] : memref<64x256xbf16, #tpu.memory_space<vmem>>, vector<64x256xbf16>
    %cst_27 = arith.constant dense<0.000000e+00> : vector<200x256xf32>
    %98 = tpu.matmul %96, %97, %cst_27 {dimension_numbers = #tpu.dot_dimension_numbers<[1], [0], [0], [1], [0, 0, 1, 1], [], []>} : vector<200x64xbf16>, vector<64x256xbf16>, vector<200x256xf32> -> vector<200x256xf32>
    %99 = arith.truncf %6 : vector<200x64xf32> to vector<200x64xbf16>
    %c0_28 = arith.constant 0 : index
    %c0_29 = arith.constant 0 : index
    %100 = vector.load %arg6[%c0_28, %c0_29] : memref<64x256xbf16, #tpu.memory_space<vmem>>, vector<64x256xbf16>
    %cst_30 = arith.constant dense<0.000000e+00> : vector<200x256xf32>
    %101 = tpu.matmul %99, %100, %cst_30 {dimension_numbers = #tpu.dot_dimension_numbers<[1], [0], [0], [1], [0, 0, 1, 1], [], []>} : vector<200x64xbf16>, vector<64x256xbf16>, vector<200x256xf32> -> vector<200x256xf32>
    %102 = arith.addf %98, %101 : vector<200x256xf32>
    %103 = vector.extract_strided_slice %102 {offsets = [0, 0], sizes = [200, 128], strides = [1, 1]} : vector<200x256xf32> to vector<200x128xf32>
    %104 = vector.extract_strided_slice %0 {offsets = [8, 0], sizes = [1, 128], strides = [1, 1]} : vector<16x128xf32> to vector<1x128xf32>
    %105 = vector.broadcast %104 : vector<1x128xf32> to vector<200x128xf32>
    %106 = arith.addf %103, %105 : vector<200x128xf32>
    %107 = arith.negf %106 : vector<200x128xf32>
    %108 = math.exp %107 : vector<200x128xf32>
    %cst_31 = arith.constant 1.000000e+00 : f32
    %109 = vector.broadcast %cst_31 : f32 to vector<200x128xf32>
    %110 = arith.addf %109, %108 : vector<200x128xf32>
    %111 = arith.divf %109, %110 : vector<200x128xf32>
    %112 = vector.extract_strided_slice %102 {offsets = [0, 128], sizes = [200, 128], strides = [1, 1]} : vector<200x256xf32> to vector<200x128xf32>
    %113 = vector.extract_strided_slice %0 {offsets = [9, 0], sizes = [1, 128], strides = [1, 1]} : vector<16x128xf32> to vector<1x128xf32>
    %114 = vector.broadcast %113 : vector<1x128xf32> to vector<200x128xf32>
    %115 = arith.addf %112, %114 : vector<200x128xf32>
    %116 = vector.extract_strided_slice %115 {offsets = [0, 0], sizes = [200, 64], strides = [1, 1]} : vector<200x128xf32> to vector<200x64xf32>
    %117 = vector.extract_strided_slice %111 {offsets = [0, 0], sizes = [200, 64], strides = [1, 1]} : vector<200x128xf32> to vector<200x64xf32>
    %118 = vector.extract_strided_slice %115 {offsets = [0, 64], sizes = [200, 64], strides = [1, 1]} : vector<200x128xf32> to vector<200x64xf32>
    %119 = arith.mulf %117, %118 : vector<200x64xf32>
    %120 = arith.addf %116, %119 : vector<200x64xf32>
    %121 = math.tanh %120 : vector<200x64xf32>
    %122 = vector.extract_strided_slice %111 {offsets = [0, 64], sizes = [200, 64], strides = [1, 1]} : vector<200x128xf32> to vector<200x64xf32>
    %123 = arith.subf %6, %121 : vector<200x64xf32>
    %124 = arith.mulf %122, %123 : vector<200x64xf32>
    %125 = arith.addf %121, %124 : vector<200x64xf32>
    %126 = vector.extract_strided_slice %0 {offsets = [10, 0], sizes = [1, 64], strides = [1, 1]} : vector<16x128xf32> to vector<1x64xf32>
    %127 = vector.extract_strided_slice %0 {offsets = [11, 0], sizes = [1, 64], strides = [1, 1]} : vector<16x128xf32> to vector<1x64xf32>
    %cst_32 = arith.constant dense<0.000000e+00> : vector<200xf32>
    %128 = vector.multi_reduction <add>, %125, %cst_32 [1] : vector<200x64xf32> to vector<200xf32>
    %129 = vector.shape_cast %128 : vector<200xf32> to vector<200x1xf32>
    %cst_33 = arith.constant 6.400000e+01 : f32
    %130 = vector.broadcast %cst_33 : f32 to vector<200x1xf32>
    %131 = arith.divf %129, %130 : vector<200x1xf32>
    %132 = vector.broadcast %131 : vector<200x1xf32> to vector<200x64xf32>
    %133 = arith.subf %125, %132 : vector<200x64xf32>
    %134 = arith.mulf %133, %133 : vector<200x64xf32>
    %cst_34 = arith.constant dense<0.000000e+00> : vector<200xf32>
    %135 = vector.multi_reduction <add>, %134, %cst_34 [1] : vector<200x64xf32> to vector<200xf32>
    %136 = vector.shape_cast %135 : vector<200xf32> to vector<200x1xf32>
    %cst_35 = arith.constant 6.400000e+01 : f32
    %137 = vector.broadcast %cst_35 : f32 to vector<200x1xf32>
    %138 = arith.divf %136, %137 : vector<200x1xf32>
    %139 = vector.broadcast %131 : vector<200x1xf32> to vector<200x64xf32>
    %140 = arith.subf %125, %139 : vector<200x64xf32>
    %cst_36 = arith.constant 9.99999974E-6 : f32
    %141 = vector.broadcast %cst_36 : f32 to vector<200x1xf32>
    %142 = arith.addf %138, %141 : vector<200x1xf32>
    %143 = math.rsqrt %142 : vector<200x1xf32>
    %144 = vector.broadcast %143 : vector<200x1xf32> to vector<200x64xf32>
    %145 = arith.mulf %140, %144 : vector<200x64xf32>
    %146 = vector.broadcast %126 : vector<1x64xf32> to vector<200x64xf32>
    %147 = arith.mulf %145, %146 : vector<200x64xf32>
    %148 = vector.broadcast %127 : vector<1x64xf32> to vector<200x64xf32>
    %149 = arith.addf %147, %148 : vector<200x64xf32>
    %150 = arith.truncf %149 : vector<200x64xf32> to vector<200x64xbf16>
    %c0_37 = arith.constant 0 : index
    %c0_38 = arith.constant 0 : index
    %151 = vector.load %arg7[%c0_37, %c0_38] : memref<64x6xbf16, #tpu.memory_space<vmem>>, vector<64x6xbf16>
    %cst_39 = arith.constant dense<0.000000e+00> : vector<200x6xf32>
    %152 = tpu.matmul %150, %151, %cst_39 {dimension_numbers = #tpu.dot_dimension_numbers<[1], [0], [0], [1], [0, 0, 1, 1], [], []>} : vector<200x64xbf16>, vector<64x6xbf16>, vector<200x6xf32> -> vector<200x6xf32>
    %153 = vector.extract_strided_slice %0 {offsets = [12, 0], sizes = [1, 6], strides = [1, 1]} : vector<16x128xf32> to vector<1x6xf32>
    %154 = vector.broadcast %153 : vector<1x6xf32> to vector<200x6xf32>
    %155 = arith.addf %152, %154 : vector<200x6xf32>
    %cst_40 = arith.constant 0.000000e+00 : f32
    %156 = vector.broadcast %cst_40 : f32 to vector<200x6xf32>
    %157 = arith.cmpf ogt, %7, %156 : vector<200x6xf32>
    %cst_41 = arith.constant -1.000000e+10 : f32
    %158 = vector.broadcast %cst_41 : f32 to vector<200x6xf32>
    %159 = arith.select %157, %155, %158 : vector<200x6xi1>, vector<200x6xf32>
    %cst_42 = arith.constant dense<0xFF800000> : vector<200xf32>
    %160 = vector.multi_reduction <maximumf>, %159, %cst_42 [1] : vector<200x6xf32> to vector<200xf32>
    %161 = vector.shape_cast %160 : vector<200xf32> to vector<200x1xf32>
    %162 = vector.broadcast %161 : vector<200x1xf32> to vector<200x6xf32>
    %163 = arith.subf %159, %162 : vector<200x6xf32>
    %164 = math.exp %163 : vector<200x6xf32>
    %cst_43 = arith.constant dense<0.000000e+00> : vector<200xf32>
    %165 = vector.multi_reduction <add>, %164, %cst_43 [1] : vector<200x6xf32> to vector<200xf32>
    %166 = vector.shape_cast %165 : vector<200xf32> to vector<200x1xf32>
    %167 = tpu.reciprocal %166 {approx = true} : vector<200x1xf32> -> vector<200x1xf32>
    %168 = vector.broadcast %167 : vector<200x1xf32> to vector<200x6xf32>
    %169 = arith.mulf %164, %168 : vector<200x6xf32>
    %170 = math.log %166 : vector<200x1xf32>
    %cst_44 = arith.constant 0.000000e+00 : f32
    %171 = vector.broadcast %cst_44 : f32 to vector<200x1xf32>
    %172 = arith.subf %171, %170 : vector<200x1xf32>
    %173 = tpu.iota {dimensions = array<i32: 1>} : vector<200x6xi32>
    %174 = vector.broadcast %161 : vector<200x1xf32> to vector<200x6xf32>
    %175 = arith.cmpf oge, %159, %174 : vector<200x6xf32>
    %c6_i32 = arith.constant 6 : i32
    %176 = vector.broadcast %c6_i32 : i32 to vector<200x6xi32>
    %177 = arith.select %175, %173, %176 : vector<200x6xi1>, vector<200x6xi32>
    %cst_45 = arith.constant dense<2147483647> : vector<200xi32>
    %178 = vector.multi_reduction <minsi>, %177, %cst_45 [1] : vector<200x6xi32> to vector<200xi32>
    %179 = vector.shape_cast %178 : vector<200xi32> to vector<200x1xi32>
    %180 = arith.sitofp %179 : vector<200x1xi32> to vector<200x1xf32>
    %cst_46 = arith.constant 9.99999974E-5 : f32
    %cst_47 = arith.constant 0.999899983 : f32
    %181 = vector.broadcast %cst_46 : f32 to vector<200x6xf32>
    %182 = arith.maximumf %181, %169 : vector<200x6xf32>
    %183 = vector.broadcast %cst_47 : f32 to vector<200x6xf32>
    %184 = arith.minimumf %183, %182 : vector<200x6xf32>
    %cst_48 = arith.constant dense<0.000000e+00> : vector<200xf32>
    %185 = vector.multi_reduction <add>, %184, %cst_48 [1] : vector<200x6xf32> to vector<200xf32>
    %186 = vector.shape_cast %185 : vector<200xf32> to vector<200x1xf32>
    %187 = vector.broadcast %186 : vector<200x1xf32> to vector<200x6xf32>
    %188 = arith.divf %184, %187 : vector<200x6xf32>
    %c0_49 = arith.constant 0 : index
    %c0_50 = arith.constant 0 : index
    %189 = vector.load %arg8[%c0_49, %c0_50] : memref<200x128xf32, #tpu.memory_space<vmem>>, vector<200x64xf32>
    tpu.vector_store %arg8[%c0_49, %c0_50], %125 {strides = array<i32>} : memref<200x128xf32, #tpu.memory_space<vmem>>, vector<200x64xf32>,
    %c0_51 = arith.constant 0 : index
    %c64 = arith.constant 64 : index
    %190 = vector.load %arg8[%c0_51, %c64] : memref<200x128xf32, #tpu.memory_space<vmem>>, vector<200x6xf32>
    tpu.vector_store %arg8[%c0_51, %c64], %188 {strides = array<i32>} : memref<200x128xf32, #tpu.memory_space<vmem>>, vector<200x6xf32>,
    %c0_52 = arith.constant 0 : index
    %c70 = arith.constant 70 : index
    %191 = vector.load %arg8[%c0_52, %c70] : memref<200x128xf32, #tpu.memory_space<vmem>>, vector<200x1xf32>
    tpu.vector_store %arg8[%c0_52, %c70], %180 {strides = array<i32>} : memref<200x128xf32, #tpu.memory_space<vmem>>, vector<200x1xf32>,
    %c0_53 = arith.constant 0 : index
    %c71 = arith.constant 71 : index
    %192 = vector.load %arg8[%c0_53, %c71] : memref<200x128xf32, #tpu.memory_space<vmem>>, vector<200x1xf32>
    tpu.vector_store %arg8[%c0_53, %c71], %172 {strides = array<i32>} : memref<200x128xf32, #tpu.memory_space<vmem>>, vector<200x1xf32>,
    %cst_54 = arith.constant 0.000000e+00 : f32
    %193 = vector.broadcast %cst_54 : f32 to vector<200x56xf32>
    %c0_55 = arith.constant 0 : index
    %c72 = arith.constant 72 : index
    %194 = vector.load %arg8[%c0_55, %c72] : memref<200x128xf32, #tpu.memory_space<vmem>>, vector<200x56xf32>
    tpu.vector_store %arg8[%c0_55, %c72], %193 {strides = array<i32>} : memref<200x128xf32, #tpu.memory_space<vmem>>, vector<200x56xf32>,
    return
  }
  func.func @transform_0(%arg0: i32) -> (i32, i32) {
    %c0_i32 = arith.constant 0 : i32
    %c0_i32_0 = arith.constant 0 : i32
    return %arg0, %c0_i32 : i32, i32
  }
  func.func @transform_1(%arg0: i32) -> (i32, i32) {
    %c0_i32 = arith.constant 0 : i32
    %c0_i32_0 = arith.constant 0 : i32
    %c0_i32_1 = arith.constant 0 : i32
    return %c0_i32, %c0_i32_0 : i32, i32
  }
  func.func @transform_2(%arg0: i32) -> (i32, i32) {
    %c0_i32 = arith.constant 0 : i32
    %c0_i32_0 = arith.constant 0 : i32
    %c0_i32_1 = arith.constant 0 : i32
    return %c0_i32, %c0_i32_0 : i32, i32
  }
  func.func @transform_3(%arg0: i32) -> (i32, i32) {
    %c0_i32 = arith.constant 0 : i32
    %c0_i32_0 = arith.constant 0 : i32
    %c0_i32_1 = arith.constant 0 : i32
    return %c0_i32, %c0_i32_0 : i32, i32
  }
  func.func @transform_4(%arg0: i32) -> (i32, i32) {
    %c0_i32 = arith.constant 0 : i32
    %c0_i32_0 = arith.constant 0 : i32
    %c0_i32_1 = arith.constant 0 : i32
    return %c0_i32, %c0_i32_0 : i32, i32
  }
  func.func @transform_5(%arg0: i32) -> (i32, i32) {
    %c0_i32 = arith.constant 0 : i32
    %c0_i32_0 = arith.constant 0 : i32
    %c0_i32_1 = arith.constant 0 : i32
    return %c0_i32, %c0_i32_0 : i32, i32
  }
  func.func @transform_6(%arg0: i32) -> (i32, i32) {
    %c0_i32 = arith.constant 0 : i32
    %c0_i32_0 = arith.constant 0 : i32
    %c0_i32_1 = arith.constant 0 : i32
    return %c0_i32, %c0_i32_0 : i32, i32
  }
  func.func @transform_7(%arg0: i32) -> (i32, i32) {
    %c0_i32 = arith.constant 0 : i32
    %c0_i32_0 = arith.constant 0 : i32
    return %arg0, %c0_i32 : i32, i32
  }
}

</mosaic_0001>

<bundles_post_ra>
// kernel: tpu_custom_call.1
= control target key start
LH: loop header
LB: loop body
LE: loop exit
PB: predicated region body
PF: predicated region fallthrough
CT: control target
= control target key end

     0   :  { %12 = vsyncpa [#allocation3], 0  ;;  %s10574_s0 = inlined_call_operand.hbm [shape: f32[200,128], index: 0, kind: input, shape index: {}]   ;;  %s10575_s1 = inlined_call_operand.hbm [shape: f32[16,128], index: 1, kind: input, shape index: {}]   ;;  %s10576_s2 = inlined_call_operand.hbm [shape: bf16[24,64], index: 2, kind: input, shape index: {}]   ;;  %s10577_s3 = inlined_call_operand.vmem [shape: bf16[64,64], index: 3, kind: input, shape index: {}]   ;;  %s10578_s4 = inlined_call_operand.hbm [shape: bf16[64,256], index: 4, kind: input, shape index: {}]   ;;  %s10579_s5 = inlined_call_operand.hbm [shape: bf16[64,256], index: 5, kind: input, shape index: {}]   ;;  %s10580_s6 = inlined_call_operand.vmem [shape: bf16[64,6], index: 6, kind: input, shape index: {}]   ;;  %s10581_s7 = inlined_call_operand.hbm [shape: f32[200,128], index: 7, kind: output, shape index: {}]  }
   0x1   :  { %13 = vsyncpa [#allocation6], 0 }
   0x2   :  { %14 = vsyncpa [#allocation9], 0 }
   0x3   :  { %15 = vsyncpa [#allocation4], 0  ;;  %s6545_s24 = smov [#allocation5]   ;;  %s6546_s26 = smov [#allocation8]  }
   0x4   :  { %s33_s25 = sshll.u32 %s6545_s24, 4  ;;  %s59_s27 = sshll.u32 %s6546_s26, 4  ;;  %s34_s25 = int_to_ptr.vmem [resolvable:$true] %s33_s25  ;;  %s60_s27 = int_to_ptr.vmem [resolvable:$true] %s59_s27 }
   0x5   :  { %s6425_s28 = scalar_lea.vmem %s34_s25, 256  ;;  %p6430_p1 = scmp.lt.s32.totalorder %s34_s25, %s34_s25 }
   0x6   :  { %p6426_p0 = scmp.ne.s32.totalorder %s34_s25, %s6425_s28  ;;  %p6431_p2 = scmp.lt.s32.totalorder %s6425_s28, %s6425_s28 }
   0x8   :  { %p6432_p3 = por %p6431_p2, %p6430_p1 }
   0xa   :  { %p6433_p4 = pnand %p6432_p3, %p6426_p0 }
   0xc   :  { %6436 = shalt.err (!%p6433_p4)
}
   0xd   :  { %s6547_s29 = smov 128   ;;  %s6548_s30 = smov 8  }
   0xe   :  { %39 = dma.hbm_to_vmem [thread:$0]  %s10575_s1, 256, %s34_s25, [#allocation6], %s6547_s29, %s6547_s29, %s6548_s30  }
   0xf   :  { %s6445_s10 = scalar_lea.vmem %s60_s27, 1024  ;;  %p6450_p6 = scmp.lt.s32.totalorder %s60_s27, %s60_s27 }
  0x10   :  { %p6446_p5 = scmp.ne.s32.totalorder %s60_s27, %s6445_s10  ;;  %p6451_p7 = scmp.lt.s32.totalorder %s6445_s10, %s6445_s10 }
  0x12   :  { %p6452_p8 = por %p6451_p7, %p6450_p6 }
  0x14   :  { %p6453_p9 = pnand %p6452_p8, %p6446_p5 }
  0x16   :  { %6456 = shalt.err (!%p6453_p9)
}
  0x17   :  { %65 = dma.hbm_to_vmem [thread:$0]  %s10578_s4, 1024, %s60_s27, [#allocation9], %s6547_s29, %s6547_s29, %s6548_s30  }
  0x18   :  { %s6549_s13 = smov [#allocation2]   ;;  %s6550_s15 = smov [#allocation7]  }
  0x19   :  { %s21_s14 = sshll.u32 %s6549_s13, 4  ;;  %s45_s16 = sshll.u32 %s6550_s15, 4  ;;  %s22_s14 = int_to_ptr.vmem [resolvable:$true] %s21_s14  ;;  %s46_s16 = int_to_ptr.vmem [resolvable:$true] %s45_s16 }
  0x1a   :  { %s6465_s1 = scalar_lea.vmem %s22_s14, 3200  ;;  %p6470_p11 = scmp.lt.s32.totalorder %s22_s14, %s22_s14 }
  0x1b   :  { %p6466_p10 = scmp.ne.s32.totalorder %s22_s14, %s6465_s1  ;;  %p6471_p12 = scmp.lt.s32.totalorder %s6465_s1, %s6465_s1 }
  0x1d   :  { %p6472_p13 = por %p6471_p12, %p6470_p11 }
  0x1f   :  { %p6473_p0 = pnand %p6472_p13, %p6466_p10 }
  0x21   :  { %6476 = shalt.err (!%p6473_p0)
}
  0x22   :  { %27 = dma.hbm_to_vmem [thread:$0]  %s10574_s0, 3200, %s22_s14, [#allocation3], %s6547_s29, %s6547_s29, %s6548_s30  }
  0x23   :  { %s6485_s4 = scalar_lea.vmem %s46_s16, 192  ;;  %p6490_p2 = scmp.lt.s32.totalorder %s46_s16, %s46_s16 }
  0x24   :  { %p6486_p1 = scmp.ne.s32.totalorder %s46_s16, %s6485_s4  ;;  %p6491_p3 = scmp.lt.s32.totalorder %s6485_s4, %s6485_s4 }
  0x26   :  { %p6492_p4 = por %p6491_p3, %p6490_p2 }
  0x28   :  { %p6493_p5 = pnand %p6492_p4, %p6486_p1 }
  0x2a   :  { %6496 = shalt.err (!%p6493_p5)
}
  0x2b   :  { %s6551_s19 = smov 64   ;;  %s6552_s20 = smov 4  }
  0x2c   :  { %51 = dma.hbm_to_vmem [thread:$0]  %s10576_s2, 192, %s46_s16, [#allocation6], %s6551_s19, %s6551_s19, %s6552_s20  }
  0x2d   :  { %s6553_s23 = smov [#allocation10]  }
  0x2e   :  { %s71_s24 = sshll.u32 %s6553_s23, 4  ;;  %s72_s24 = int_to_ptr.vmem [resolvable:$true] %s71_s24 }
  0x2f   :  { %s6505_s25 = scalar_lea.vmem %s72_s24, 1024  ;;  %p6510_p7 = scmp.lt.s32.totalorder %s72_s24, %s72_s24 }
  0x30   :  { %p6506_p6 = scmp.ne.s32.totalorder %s72_s24, %s6505_s25  ;;  %p6511_p8 = scmp.lt.s32.totalorder %s6505_s25, %s6505_s25 }
  0x32   :  { %p6512_p9 = por %p6511_p8, %p6510_p7 }
  0x34   :  { %p6513_p10 = pnand %p6512_p9, %p6506_p6 }
  0x36   :  { %6516 = shalt.err (!%p6513_p10)
}
  0x37   :  { %77 = dma.hbm_to_vmem [thread:$0]  %s10579_s5, 1024, %s72_s24, [#allocation9], %s6547_s29, %s6547_s29, %s6548_s30  }
  0x38   :  { %6537 = dma.done.wait [#allocation3], 3200  }
  0x39   :  { %6538 = vsyncadd [#allocation3], 4294964096 }
  0x3a   :  { %6539 = dma.done.wait [#allocation6], 448  }
  0x3b   :  { %6540 = vsyncadd [#allocation6], 4294966848 }
  0x3c   :  { %6541 = dma.done.wait [#allocation9], 2048  }
  0x3d   :  { %6542 = vsyncadd [#allocation9], 4294965248  ;;  %vm273_vm0 = vcmask 195584   ;;  %v6634_v0 = vld [vmem:[#allocation2] sm:$0xff]  ;;  %v6636_v1 = vld [vmem:[#allocation2 + $0x8] sm:$0xff]  ;;  %vm726_vm1 = vcmask 1043456  }
  0x3e   :  { %v6638_v2 = vld [vmem:[#allocation2 + $0x10] sm:$0xff]  ;;  %v274_v3 = vsel %vm273_vm0, %v6634_v0, 0.0  ;;  %v6644_v5 = vld [vmem:[#allocation2 + $0x18] sm:$0xff]  ;;  %v277_v6 = vsel %vm273_vm0, %v6636_v1, 0.0  ;;  %v6650_v8 = vld [vmem:[#allocation2 + $0x20] sm:$0xff]  ;;  %vm6555_vm2 = vmmov 0  }
  0x3f   :  { %v280_v4 = vsel %vm273_vm0, %v6638_v2, 0.0  ;;  %275 = vadd.xlane.f32.xlu0 %v274_v3  ;;  %v283_v7 = vsel %vm273_vm0, %v6644_v5, 0.0  ;;  %v6652_v9 = vld [vmem:[#allocation2 + $0x28] sm:$0xff]  ;;  %v286_v10 = vsel %vm273_vm0, %v6650_v8, 0.0  ;;  %v6656_v11 = vld [vmem:[#allocation2 + $0x30] sm:$0xff]  ;;  %v6660_v13 = vld [vmem:[#allocation2 + $0x38] sm:$0xff] }
  0x40   :  { %281 = vadd.xlane.f32.xlu1 %v280_v4  ;;  %v289_v12 = vsel %vm273_vm0, %v6652_v9, 0.0  ;;  %v6662_v14 = vld [vmem:[#allocation2 + $0x48] sm:$0xff]  ;;  %v6664_v15 = vld [vmem:[#allocation2 + $0x40] sm:$0xff]  ;;  %v292_v16 = vsel %vm273_vm0, %v6656_v11, 0.0  ;;  %v295_v17 = vsel %vm273_vm0, %v6660_v13, 0.0  ;;  %v6670_v18 = vld [vmem:[#allocation2 + $0x58] sm:$0xff] }
  0x41   :  { %v6672_v19 = vld [vmem:[#allocation2 + $0x50] sm:$0xff]  ;;  %v301_v20 = vsel %vm273_vm0, %v6662_v14, 0.0  ;;  %v298_v21 = vsel %vm273_vm0, %v6664_v15, 0.0  ;;  %v307_v22 = vsel %vm273_vm0, %v6670_v18, 0.0  ;;  %v6682_v24 = vld [vmem:[#allocation2 + $0x68] sm:$0xff]  ;;  %v6684_v25 = vld [vmem:[#allocation2 + $0x60] sm:$0xff] }
  0x42   :  { %v304_v23 = vsel %vm273_vm0, %v6672_v19, 0.0  ;;  %v313_v26 = vsel %vm273_vm0, %v6682_v24, 0.0  ;;  %v310_v27 = vsel %vm273_vm0, %v6684_v25, 0.0  ;;  %v6690_v28 = vld [vmem:[#allocation2 + $0x78] sm:$0xff]  ;;  %v6692_v29 = vld [vmem:[#allocation2 + $0x70] sm:$0xff]  ;;  %v6698_v32 = vld [vmem:[#allocation2 + $0x88] sm:$0xff] }
  0x43   :  { %278 = vadd.xlane.f32.xlu0 %v277_v6  ;;  %v319_v30 = vsel %vm273_vm0, %v6690_v28, 0.0  ;;  %v316_v31 = vsel %vm273_vm0, %v6692_v29, 0.0  ;;  %v6700_v33 = vld [vmem:[#allocation2 + $0x80] sm:$0xff]  ;;  %v325_v34 = vsel %vm273_vm0, %v6698_v32, 0.0  ;;  %v6706_v36 = vld [vmem:[#allocation2 + $0x98] sm:$0xff]  ;;  %v6708_v37 = vld [vmem:[#allocation2 + $0x90] sm:$0xff] }
  0x44   :  { %284 = vadd.xlane.f32.xlu1 %v283_v7  ;;  %v322_v35 = vsel %vm273_vm0, %v6700_v33, 0.0  ;;  %v331_v38 = vsel %vm273_vm0, %v6706_v36, 0.0  ;;  %v328_v39 = vsel %vm273_vm0, %v6708_v37, 0.0  ;;  %v6722_v51 = vld [vmem:[#allocation2 + $0xa0] sm:$0xff]  ;;  %v6737_v60 = vld [vmem:[#allocation2 + $0xa8] sm:$0xff]  ;;  %v6748_v7 = vld [vmem:[#allocation2 + $0xb0] sm:$0xff] }
  0x45   :  { %v334_v54 = vsel %vm273_vm0, %v6722_v51, 0.0  ;;  %v337_v63 = vsel %vm273_vm0, %v6737_v60, 0.0  ;;  %vm891_vm3 = vcmask 523264   ;;  %s6559_s12 = smov 89   ;;  %s6560_s13 = smov 24   ;;  %vm3984_vm5 = vcmask 777928  }
  0x46   :  { %s6561_s14 = smov 40   ;;  %s6563_s21 = smov 103  }
  0x47   :  { %287 = vadd.xlane.f32.xlu0 %v286_v10  ;;  %s6564_s22 = smov [#allocation11]  }
  0x48   :  { %290 = vadd.xlane.f32.xlu1 %v289_v12  ;;  %s5399_s23 = sshll.u32 %s6564_s22, 4  ;;  %s5400_s23 = int_to_ptr.vmem [resolvable:$true] %s5399_s23 }
  0x49   :  { %s6517_s24 = scalar_lea.vmem %s5400_s23, 3200  ;;  %p6522_p12 = scmp.lt.s32.totalorder %s5400_s23, %s5400_s23 }
  0x4a   :  { %p6518_p11 = scmp.ne.s32.totalorder %s5400_s23, %s6517_s24  ;;  %p6523_p13 = scmp.lt.s32.totalorder %s6517_s24, %s6517_s24 }
  0x4b   :  { %293 = vadd.xlane.f32.xlu0 %v292_v16 }
  0x4c   :  { %296 = vadd.xlane.f32.xlu1 %v295_v17  ;;  %p6524_p0 = por %p6523_p13, %p6522_p12 }
  0x4e   :  { %p6525_p1 = pnand %p6524_p0, %p6518_p11 }
  0x4f   :  { %299 = vadd.xlane.f32.xlu0 %v298_v21 }
  0x50   :  { %302 = vadd.xlane.f32.xlu1 %v301_v20  ;;  %v340_v20 = vsel %vm273_vm0, %v6748_v7, 0.0 }
  0x53   :  { %305 = vadd.xlane.f32.xlu0 %v304_v23  ;;  %v6761_v23 = vld [vmem:[#allocation2 + $0xb8] sm:$0xff] }
  0x54   :  { %308 = vadd.xlane.f32.xlu1 %v307_v22 }
  0x57   :  { %311 = vadd.xlane.f32.xlu0 %v310_v27 }
  0x58   :  { %314 = vadd.xlane.f32.xlu1 %v313_v26 }
  0x5b   :  { %317 = vadd.xlane.f32.xlu0 %v316_v31 }
  0x5c   :  { %320 = vadd.xlane.f32.xlu1 %v319_v30 }
  0x5f   :  { %323 = vadd.xlane.f32.xlu0 %v322_v35 }
  0x60   :  { %326 = vadd.xlane.f32.xlu1 %v325_v34 }
  0x63   :  { %329 = vadd.xlane.f32.xlu0 %v328_v39 }
  0x64   :  { %332 = vadd.xlane.f32.xlu1 %v331_v38 }
  0xc8   :  { %v276_v40 = vpop.xlane.xlu0 %275 }
  0xc9   :  { %v282_v41 = vpop.xlane.xlu1 %281  ;;  %v350_v42 = vmul.f32 0.041666668, %v276_v40 }
  0xca   :  { %v352_v43 = vmul.f32 0.041666668, %v282_v41 }
  0xcb   :  { %v6715_v44 = vsub.f32 %v6634_v0, %v350_v42 }
  0xcc   :  { %v279_v45 = vpop.xlane.xlu0 %278  ;;  %v6718_v48 = vsub.f32 %v6638_v2, %v352_v43 }
  0xcd   :  { %v285_v46 = vpop.xlane.xlu1 %284  ;;  %v351_v47 = vmul.f32 0.041666668, %v279_v45  ;;  %v400_v49 = vmul.f32 %v6715_v44, %v6715_v44 }
  0xce   :  { %v353_v50 = vmul.f32 0.041666668, %v285_v46  ;;  %v402_v59 = vmul.f32 %v6718_v48, %v6718_v48 }
  0xcf   :  { %v6725_v52 = vsub.f32 %v6636_v1, %v351_v47  ;;  %v425_v53 = vsel %vm273_vm0, %v400_v49, 0.0  ;;  %v6783_v47 = vld [vmem:[#allocation2 + $0xc0] sm:$0xff] }
  0xd0   :  { %426 = vadd.xlane.f32.xlu0 %v425_v53  ;;  %v288_v55 = vpop.xlane.xlu0 %287  ;;  %v6731_v57 = vsub.f32 %v6644_v5, %v353_v50  ;;  %v431_v3 = vsel %vm273_vm0, %v402_v59, 0.0 }
  0xd1   :  { %v291_v56 = vpop.xlane.xlu1 %290  ;;  %v401_v58 = vmul.f32 %v6725_v52, %v6725_v52  ;;  %v354_v61 = vmul.f32 0.041666668, %v288_v55 }
  0xd2   :  { %v355_v0 = vmul.f32 0.041666668, %v291_v56  ;;  %v403_v5 = vmul.f32 %v6731_v57, %v6731_v57 }
  0xd3   :  { %v428_v62 = vsel %vm273_vm0, %v401_v58, 0.0  ;;  %v6744_v4 = vsub.f32 %v6650_v8, %v354_v61 }
  0xd4   :  { %335 = vadd.xlane.f32.xlu0 %v334_v54  ;;  %429 = vadd.xlane.f32.xlu1 %v428_v62  ;;  %v294_v1 = vpop.xlane.xlu0 %293  ;;  %v6751_v10 = vsub.f32 %v6652_v9, %v355_v0  ;;  %v434_v8 = vsel %vm273_vm0, %v403_v5, 0.0  ;;  %v346_v54 = vsel %vm273_vm0, %v6783_v47, 0.0 }
  0xd5   :  { %v297_v2 = vpop.xlane.xlu1 %296  ;;  %v356_v6 = vmul.f32 0.041666668, %v294_v1  ;;  %v404_v22 = vmul.f32 %v6744_v4, %v6744_v4 }
  0xd6   :  { %v357_v12 = vmul.f32 0.041666668, %v297_v2  ;;  %v405_v27 = vmul.f32 %v6751_v10, %v6751_v10 }
  0xd7   :  { %v6757_v21 = vsub.f32 %v6656_v11, %v356_v6  ;;  %v343_v11 = vsel %vm273_vm0, %v6761_v23, 0.0  ;;  %v437_v34 = vsel %vm273_vm0, %v404_v22, 0.0 }
  0xd8   :  { %432 = vadd.xlane.f32.xlu0 %v431_v3  ;;  %338 = vadd.xlane.f32.xlu1 %v337_v63  ;;  %v300_v17 = vpop.xlane.xlu0 %299  ;;  %v6764_v9 = vsub.f32 %v6660_v13, %v357_v12  ;;  %v440_v39 = vsel %vm273_vm0, %v405_v27, 0.0 }
  0xd9   :  { %v303_v16 = vpop.xlane.xlu1 %302  ;;  %v406_v35 = vmul.f32 %v6757_v21, %v6757_v21  ;;  %v358_v38 = vmul.f32 0.041666668, %v300_v17 }
  0xda   :  { %v359_v26 = vmul.f32 0.041666668, %v303_v16  ;;  %v407_v40 = vmul.f32 %v6764_v9, %v6764_v9 }
  0xdb   :  { %v443_v43 = vsel %vm273_vm0, %v406_v35, 0.0  ;;  %v6781_v45 = vsub.f32 %v6664_v15, %v358_v38 }
  0xdc   :  { %341 = vadd.xlane.f32.xlu0 %v340_v20  ;;  %435 = vadd.xlane.f32.xlu1 %v434_v8  ;;  %v306_v31 = vpop.xlane.xlu0 %305  ;;  %v6774_v13 = vsub.f32 %v6662_v14, %v359_v26  ;;  %v446_v14 = vsel %vm273_vm0, %v407_v40, 0.0  ;;  %v10587_v40 = vmov 0.0  }
  0xdd   :  { %v309_v30 = vpop.xlane.xlu1 %308  ;;  %v360_v49 = vmul.f32 0.041666668, %v306_v31  ;;  %v408_v61 = vmul.f32 %v6781_v45, %v6781_v45  ;;  %5578 = vmatprep.subr.bf16.mxu0 %v10587_v40  ;;  %5754 = vmatprep.subr.bf16.mxu1 %v10587_v40 }
  0xde   :  { %v361_v46 = vmul.f32 0.041666668, %v309_v30  ;;  %v409_v59 = vmul.f32 %v6774_v13, %v6774_v13  ;;  %5582 = vmatprep.mubr.msk.bf16.mxu0 %vm6555_vm2, %v10587_v40  ;;  %5610 = vmatprep.mubr.msk.bf16.mxu1 %vm6555_vm2, %v10587_v40 }
  0xdf   :  { %v6792_v15 = vsub.f32 %v6672_v19, %v360_v49  ;;  %v449_v3 = vsel %vm273_vm0, %v408_v61, 0.0 }
  0xe0   :  { %344 = vadd.xlane.f32.xlu1 %v343_v11  ;;  %438 = vadd.xlane.f32.xlu0 %v437_v34  ;;  %v312_v42 = vpop.xlane.xlu0 %311  ;;  %v6789_v58 = vsub.f32 %v6670_v18, %v361_v46  ;;  %v452_v19 = vsel %vm273_vm0, %v409_v59, 0.0  ;;  %v5780_v11 = vld [vmem:[#allocation7 + $0x8] ss:$0 sps:$4 sm:$0xff]  }
  0xe1   :  { %v315_v41 = vpop.xlane.xlu1 %314  ;;  %v362_v53 = vmul.f32 0.041666668, %v312_v42  ;;  %v5781_v42 = vld [vmem:[#allocation7] sm:$0xff]  }
  0xe2   :  { %v363_v50 = vmul.f32 0.041666668, %v315_v41  ;;  %v411_v5 = vmul.f32 %v6789_v58, %v6789_v58  ;;  %v728_v41 = vsel %vm726_vm1, %v5780_v11, 0 }
  0xe3   :  { %v6802_v63 = vsub.f32 %v6684_v25, %v362_v53  ;;  %5579 = vmatpush3.bf16.msra.mxu0 %v728_v41  ;;  %5756 = vmatpush3.bf16.msra.mxu1 %v728_v41  ;;  %v6882_v41 = vld [vmem:[#allocation5] sm:$0xff] }
  0xe4   :  { %441 = vadd.xlane.f32.xlu1 %v440_v39  ;;  %444 = vadd.xlane.f32.xlu0 %v443_v43  ;;  %v318_v56 = vpop.xlane.xlu0 %317  ;;  %v6799_v62 = vsub.f32 %v6682_v24, %v363_v50  ;;  %v410_v24 = vmul.f32 %v6792_v15, %v6792_v15  ;;  %v458_v20 = vsel %vm273_vm0, %v411_v5, 0.0 }
  0xe5   :  { %v321_v55 = vpop.xlane.xlu1 %320  ;;  %v364_v18 = vmul.f32 0.041666668, %v318_v56  ;;  %v412_v12 = vmul.f32 %v6802_v63, %v6802_v63  ;;  %5580 = vmatprep.subr.bf16.mxu0 %v10587_v40  ;;  %5755 = vmatprep.subr.bf16.mxu1 %v10587_v40 }
  0xe6   :  { %v365_v0 = vmul.f32 0.041666668, %v321_v55  ;;  %v413_v25 = vmul.f32 %v6799_v62, %v6799_v62  ;;  %v455_v8 = vsel %vm273_vm0, %v410_v24, 0.0 }
  0xe7   :  { %v6818_v16 = vsub.f32 %v6692_v29, %v364_v18  ;;  %v461_v30 = vsel %vm273_vm0, %v412_v12, 0.0  ;;  %5581 = vmatpush3.bf16.msra.mxu0 %v5781_v42  ;;  %5757 = vmatpush3.bf16.msra.mxu1 %v5781_v42 }
  0xe8   :  { %447 = vadd.xlane.f32.xlu1 %v446_v14  ;;  %347 = vadd.xlane.f32.xlu0 %v346_v54  ;;  %v324_v2 = vpop.xlane.xlu0 %323  ;;  %v6811_v6 = vsub.f32 %v6690_v28, %v365_v0  ;;  %v464_v27 = vsel %vm273_vm0, %v413_v25, 0.0 }
  0xe9   :  { %v327_v1 = vpop.xlane.xlu1 %326  ;;  %v366_v22 = vmul.f32 0.041666668, %v324_v2  ;;  %v414_v34 = vmul.f32 %v6818_v16, %v6818_v16  ;;  %5634 = vmatprep.subr.bf16.mxu1 %v10587_v40 }
  0xea   :  { %v367_v17 = vmul.f32 0.041666668, %v327_v1  ;;  %v415_v31 = vmul.f32 %v6811_v6, %v6811_v6 }
  0xeb   :  { %v6832_v35 = vsub.f32 %v6700_v33, %v366_v22  ;;  %v467_v33 = vsel %vm273_vm0, %v414_v34, 0.0 }
  0xec   :  { %453 = vadd.xlane.f32.xlu0 %v452_v19  ;;  %450 = vadd.xlane.f32.xlu1 %v449_v3  ;;  %v330_v28 = vpop.xlane.xlu0 %329  ;;  %v6827_v29 = vsub.f32 %v6698_v32, %v367_v17  ;;  %v470_v32 = vsel %vm273_vm0, %v415_v31, 0.0  ;;  %v600_v19 = vlaneseq }
  0xed   :  { %v333_v26 = vpop.xlane.xlu1 %332  ;;  %v368_v39 = vmul.f32 0.041666668, %v330_v28  ;;  %v416_v50 = vmul.f32 %v6832_v35, %v6832_v35 }
  0xee   :  { %v369_v38 = vmul.f32 0.041666668, %v333_v26  ;;  %v417_v49 = vmul.f32 %v6827_v29, %v6827_v29 }
  0xef   :  { %v6844_v46 = vsub.f32 %v6708_v37, %v368_v39 }
  0xf0   :  { %459 = vadd.xlane.f32.xlu0 %v458_v20  ;;  %456 = vadd.xlane.f32.xlu1 %v455_v8  ;;  %v6841_v43 = vsub.f32 %v6706_v36, %v369_v38  ;;  %v476_v53 = vsel %vm273_vm0, %v417_v49, 0.0  ;;  %v473_v36 = vsel %vm273_vm0, %v416_v50, 0.0  ;;  %v6869_v8 = vshrl.u32 %v600_v19, 7 }
  0xf1   :  { %v418_v14 = vmul.f32 %v6844_v46, %v6844_v46 }
  0xf2   :  { %v419_v37 = vmul.f32 %v6841_v43, %v6841_v43  ;;  %10705 = vst [vmem:[#allocation16_spill] sm:$0xff] %v6869_v8  ;;  %v10585_v34 = vsub.s32 0, %v6869_v8 }
  0xf3   :  { %v479_v55 = vsel %vm273_vm0, %v418_v14, 0.0 }
  0xf4   :  { %465 = vadd.xlane.f32.xlu0 %v464_v27  ;;  %462 = vadd.xlane.f32.xlu1 %v461_v30  ;;  %v482_v54 = vsel %vm273_vm0, %v419_v37, 0.0 }
  0xf8   :  { %471 = vadd.xlane.f32.xlu0 %v470_v32  ;;  %468 = vadd.xlane.f32.xlu1 %v467_v33 }
  0xfc   :  { %477 = vadd.xlane.f32.xlu0 %v476_v53  ;;  %474 = vadd.xlane.f32.xlu1 %v473_v36  ;;  %v6889_v36 = vrot.slane %v6882_v41, %v10585_v34 }
 0x100   :  { %483 = vadd.xlane.f32.xlu0 %v482_v54  ;;  %480 = vadd.xlane.f32.xlu1 %v479_v55 }
 0x159   :  { %v427_v56 = vpop.xlane.xlu0 %426 }
 0x15a   :  { %v500_v59 = vmul.f32 0.041666668, %v427_v56 }
 0x15c   :  { %v525_v61 = vadd.f32 1e-05, %v500_v59 }
 0x15d   :  { %v430_v0 = vpop.xlane.xlu1 %429  ;;  %v336_v18 = vpop.xlane.xlu0 %335 }
 0x15e   :  { %5814 = vrsqrt.f32 %v525_v61  ;;  %v501_v1 = vmul.f32 0.041666668, %v430_v0  ;;  %v370_v2 = vmul.f32 0.041666668, %v336_v18 }
 0x160   :  { %v526_v3 = vadd.f32 1e-05, %v501_v1  ;;  %v6864_v5 = vsub.f32 %v6722_v51, %v370_v2 }
 0x161   :  { %v339_v24 = vpop.xlane.xlu1 %338  ;;  %v433_v25 = vpop.xlane.xlu0 %432 }
 0x162   :  { %5816 = vrsqrt.f32 %v526_v3  ;;  %v371_v12 = vmul.f32 0.041666668, %v339_v24  ;;  %v502_v17 = vmul.f32 0.041666668, %v433_v25  ;;  %v420_v20 = vmul.f32 %v6864_v5, %v6864_v5 }
 0x164   :  { %v6872_v22 = vsub.f32 %v6737_v60, %v371_v12  ;;  %v527_v26 = vadd.f32 1e-05, %v502_v17  ;;  %v485_v28 = vsel %vm273_vm0, %v420_v20, 0.0 }
 0x165   :  { %v436_v27 = vpop.xlane.xlu1 %435  ;;  %486 = vadd.xlane.f32.xlu1 %v485_v28  ;;  %v342_v51 = vpop.xlane.xlu0 %341 }
 0x166   :  { %5818 = vrsqrt.f32 %v527_v26  ;;  %v503_v30 = vmul.f32 0.041666668, %v436_v27  ;;  %v372_v31 = vmul.f32 0.041666668, %v342_v51  ;;  %v421_v11 = vmul.f32 %v6872_v22, %v6872_v22 }
 0x168   :  { %v528_v38 = vadd.f32 1e-05, %v503_v30  ;;  %v6879_v39 = vsub.f32 %v6748_v7, %v372_v31  ;;  %v488_v60 = vsel %vm273_vm0, %v421_v11, 0.0  ;;  %v10586_v7 = vsub.s32 1, %v6869_v8 }
 0x169   :  { %v345_v32 = vpop.xlane.xlu1 %344  ;;  %489 = vadd.xlane.f32.xlu0 %v488_v60  ;;  %v439_v33 = vpop.xlane.xlu0 %438 }
 0x16a   :  { %5820 = vrsqrt.f32 %v528_v38  ;;  %v373_v42 = vmul.f32 0.041666668, %v345_v32  ;;  %v504_v49 = vmul.f32 0.041666668, %v439_v33  ;;  %v422_v50 = vmul.f32 %v6879_v39, %v6879_v39 }
 0x16b   :  { %v5815_v53 = vpop.eup %5814 }
 0x16c   :  { %v6893_v37 = vsub.f32 %v6761_v23, %v373_v42  ;;  %v529_v14 = vadd.f32 1e-05, %v504_v49  ;;  %v491_v54 = vsel %vm273_vm0, %v422_v50, 0.0  ;;  %v575_v55 = vmul.f32 %v5815_v53, %v6715_v44 }
 0x16d   :  { %v442_v56 = vpop.xlane.xlu1 %441  ;;  %492 = vadd.xlane.f32.xlu1 %v491_v54  ;;  %v445_v59 = vpop.xlane.xlu0 %444  ;;  %v6903_v23 = vrot.slane %v6882_v41, %v10586_v7 }
 0x16e   :  { %5822 = vrsqrt.f32 %v529_v14  ;;  %v505_v61 = vmul.f32 0.041666668, %v442_v56  ;;  %v506_v0 = vmul.f32 0.041666668, %v445_v59  ;;  %v423_v18 = vmul.f32 %v6893_v37, %v6893_v37 }
 0x16f   :  { %v5817_v1 = vpop.eup %5816  ;;  %v604_v2 = vmul.f32 %v6889_v36, %v575_v55 }
 0x170   :  { %v530_v3 = vadd.f32 1e-05, %v505_v61  ;;  %v531_v24 = vadd.f32 1e-05, %v506_v0  ;;  %v494_v44 = vsel %vm273_vm0, %v423_v18, 0.0  ;;  %v576_v25 = vmul.f32 %v5817_v1, %v6725_v52 }
 0x171   :  { %v448_v12 = vpop.xlane.xlu1 %447  ;;  %495 = vadd.xlane.f32.xlu0 %v494_v44  ;;  %v348_v17 = vpop.xlane.xlu0 %347  ;;  %v633_v51 = vadd.f32 %v6903_v23, %v604_v2 }
 0x172   :  { %5824 = vrsqrt.f32 %v530_v3  ;;  %v507_v20 = vmul.f32 0.041666668, %v448_v12  ;;  %v374_v26 = vmul.f32 0.041666668, %v348_v17  ;;  %v605_v28 = vmul.f32 %v6889_v36, %v576_v25 }
 0x173   :  { %v5819_v27 = vpop.eup %5818  ;;  %5826 = vrsqrt.f32 %v531_v24 }
 0x174   :  { %v532_v30 = vadd.f32 1e-05, %v507_v20  ;;  %v6910_v31 = vsub.f32 %v6783_v47, %v374_v26  ;;  %v634_v11 = vadd.f32 %v6903_v23, %v605_v28  ;;  %v577_v52 = vmul.f32 %v5819_v27, %v6718_v48 }
 0x175   :  { %v451_v38 = vpop.xlane.xlu1 %450  ;;  %v454_v60 = vpop.xlane.xlu0 %453 }
 0x176   :  { %5828 = vrsqrt.f32 %v532_v30  ;;  %v508_v32 = vmul.f32 0.041666668, %v451_v38  ;;  %v509_v33 = vmul.f32 0.041666668, %v454_v60  ;;  %v658_v42 = vpack.c.bf16 %v634_v11, %v633_v51 }
 0x177   :  { %v5821_v49 = vpop.eup %5820  ;;  %v424_v50 = vmul.f32 %v6910_v31, %v6910_v31  ;;  %v606_v54 = vmul.f32 %v6889_v36, %v577_v52 }
 0x178   :  { %v533_v53 = vadd.f32 1e-05, %v508_v32  ;;  %v534_v14 = vadd.f32 1e-05, %v509_v33  ;;  %5583 = vmatmul.mubr.msk.bf16.vlgmr.msra.gmra.mxu0 %vm273_vm0, %v658_v42  ;;  %v578_v47 = vmul.f32 %v5821_v49, %v6731_v57 }
 0x179   :  { %v457_v55 = vpop.xlane.xlu1 %456  ;;  %v497_v48 = vsel %vm273_vm0, %v424_v50, 0.0  ;;  %v460_v56 = vpop.xlane.xlu0 %459  ;;  %5586 = vmatprep.mubr.msk.bf16.mxu0 %vm6555_vm2, %v10587_v40  ;;  %v635_v1 = vadd.f32 %v6903_v23, %v606_v54 }
 0x17a   :  { %5830 = vrsqrt.f32 %v533_v53  ;;  %v510_v59 = vmul.f32 0.041666668, %v457_v55  ;;  %498 = vadd.xlane.f32.xlu1 %v497_v48  ;;  %v511_v61 = vmul.f32 0.041666668, %v460_v56  ;;  %v607_v0 = vmul.f32 %v6889_v36, %v578_v47 }
 0x17b   :  { %v5823_v18 = vpop.eup %5822  ;;  %5832 = vrsqrt.f32 %v534_v14 }
 0x17c   :  { %v636_v57 = vadd.f32 %v6903_v23, %v607_v0  ;;  %v579_v2 = vmul.f32 %v5823_v18, %v6744_v4  ;;  %v535_v3 = vadd.f32 1e-05, %v510_v59  ;;  %v536_v25 = vadd.f32 1e-05, %v511_v61 }
 0x17d   :  { %v463_v24 = vpop.xlane.xlu1 %462  ;;  %v466_v44 = vpop.xlane.xlu0 %465 }
 0x17e   :  { %v659_v12 = vpack.c.bf16 %v636_v57, %v635_v1  ;;  %v512_v20 = vmul.f32 0.041666668, %v463_v24  ;;  %v608_v26 = vmul.f32 %v6889_v36, %v579_v2  ;;  %5834 = vrsqrt.f32 %v535_v3 }
 0x17f   :  { %v5825_v17 = vpop.eup %5824  ;;  %v513_v51 = vmul.f32 0.041666668, %v466_v44  ;;  %5836 = vrsqrt.f32 %v536_v25 }
 0x180   :  { %v5827_v28 = vpop.eup %5826  ;;  %5587 = vmatmul.mubr.msk.bf16.gmra.mxu0 %vm273_vm0, %v659_v12  ;;  %v580_v27 = vmul.f32 %v5825_v17, %v6751_v10  ;;  %v537_v32 = vadd.f32 1e-05, %v512_v20  ;;  %v637_v33 = vadd.f32 %v6903_v23, %v608_v26 }
 0x181   :  { %v469_v30 = vpop.xlane.xlu1 %468  ;;  %v472_v11 = vpop.xlane.xlu0 %471  ;;  %5590 = vmatprep.mubr.msk.bf16.mxu0 %vm6555_vm2, %v10587_v40  ;;  %v581_v42 = vmul.f32 %v5827_v28, %v6757_v21  ;;  %v538_v14 = vadd.f32 1e-05, %v513_v51 }
 0x182   :  { %v514_v4 = vmul.f32 0.041666668, %v469_v30  ;;  %v515_v52 = vmul.f32 0.041666668, %v472_v11  ;;  %v609_v38 = vmul.f32 %v6889_v36, %v580_v27 }
 0x183   :  { %v5829_v60 = vpop.eup %5828  ;;  %v610_v1 = vmul.f32 %v6889_v36, %v581_v42 }
 0x184   :  { %v539_v49 = vadd.f32 1e-05, %v514_v4  ;;  %v540_v10 = vadd.f32 1e-05, %v515_v52  ;;  %v638_v50 = vadd.f32 %v6903_v23, %v609_v38  ;;  %v582_v53 = vmul.f32 %v5829_v60, %v6764_v9 }
 0x185   :  { %v475_v47 = vpop.xlane.xlu1 %474  ;;  %v478_v54 = vpop.xlane.xlu0 %477  ;;  %v639_v20 = vadd.f32 %v6903_v23, %v610_v1 }
 0x186   :  { %5838 = vrsqrt.f32 %v539_v49  ;;  %v516_v55 = vmul.f32 0.041666668, %v475_v47  ;;  %v517_v48 = vmul.f32 0.041666668, %v478_v54  ;;  %v660_v56 = vpack.c.bf16 %v638_v50, %v637_v33 }
 0x187   :  { %v5831_v59 = vpop.eup %5830  ;;  %5840 = vrsqrt.f32 %v540_v10  ;;  %v611_v61 = vmul.f32 %v6889_v36, %v582_v53 }
 0x188   :  { %v5833_v0 = vpop.eup %5832  ;;  %5842 = vrsqrt.f32 %v537_v32  ;;  %v541_v21 = vadd.f32 1e-05, %v516_v55  ;;  %v542_v18 = vadd.f32 1e-05, %v517_v48  ;;  %5591 = vmatmul.mubr.msk.bf16.gmra.mxu0 %vm273_vm0, %v660_v56  ;;  %v583_v3 = vmul.f32 %v5831_v59, %v6781_v45 }
 0x189   :  { %5844 = vrsqrt.f32 %v538_v14  ;;  %v481_v9 = vpop.xlane.xlu1 %480  ;;  %v484_v57 = vpop.xlane.xlu0 %483  ;;  %5594 = vmatprep.mubr.msk.bf16.mxu0 %vm6555_vm2, %v10587_v40  ;;  %v640_v2 = vadd.f32 %v6903_v23, %v611_v61  ;;  %v584_v25 = vmul.f32 %v5833_v0, %v6774_v13 }
 0x18a   :  { %5846 = vrsqrt.f32 %v541_v21  ;;  %v518_v24 = vmul.f32 0.041666668, %v481_v9  ;;  %v519_v44 = vmul.f32 0.041666668, %v484_v57  ;;  %v612_v27 = vmul.f32 %v6889_v36, %v583_v3 }
 0x18b   :  { %5848 = vrsqrt.f32 %v542_v18  ;;  %v5835_v26 = vpop.eup %5834  ;;  %v661_v28 = vpack.c.bf16 %v640_v2, %v639_v20  ;;  %v613_v51 = vmul.f32 %v6889_v36, %v584_v25 }
 0x18c   :  { %v543_v12 = vadd.f32 1e-05, %v518_v24  ;;  %v544_v17 = vadd.f32 1e-05, %v519_v44  ;;  %v5837_v30 = vpop.eup %5836  ;;  %v641_v13 = vadd.f32 %v6903_v23, %v612_v27  ;;  %v585_v11 = vmul.f32 %v5835_v26, %v6792_v15 }
 0x18d   :  { %v642_v45 = vadd.f32 %v6903_v23, %v613_v51  ;;  %v586_v4 = vmul.f32 %v5837_v30, %v6789_v58 }
 0x18e   :  { %5850 = vrsqrt.f32 %v543_v12  ;;  %v614_v50 = vmul.f32 %v6889_v36, %v585_v11 }
 0x18f   :  { %5852 = vrsqrt.f32 %v544_v17  ;;  %v662_v49 = vpack.c.bf16 %v642_v45, %v641_v13  ;;  %v615_v53 = vmul.f32 %v6889_v36, %v586_v4 }
 0x190   :  { %5595 = vmatmul.mubr.msk.bf16.gmra.mxu0 %vm273_vm0, %v661_v28  ;;  %v643_v55 = vadd.f32 %v6903_v23, %v614_v50 }
 0x191   :  { %5598 = vmatprep.mubr.msk.bf16.mxu0 %vm6555_vm2, %v10587_v40  ;;  %v644_v48 = vadd.f32 %v6903_v23, %v615_v53 }
 0x193   :  { %v5839_v52 = vpop.eup %5838  ;;  %v663_v1 = vpack.c.bf16 %v644_v48, %v643_v55 }
 0x194   :  { %v5841_v38 = vpop.eup %5840  ;;  %v589_v60 = vmul.f32 %v5839_v52, %v6818_v16 }
 0x195   :  { %v5843_v32 = vpop.eup %5842  ;;  %v590_v33 = vmul.f32 %v5841_v38, %v6811_v6 }
 0x196   :  { %v5845_v42 = vpop.eup %5844  ;;  %v618_v10 = vmul.f32 %v6889_v36, %v589_v60  ;;  %v587_v56 = vmul.f32 %v5843_v32, %v6802_v63 }
 0x197   :  { %v5847_v14 = vpop.eup %5846  ;;  %v619_v15 = vmul.f32 %v6889_v36, %v590_v33  ;;  %v588_v59 = vmul.f32 %v5845_v42, %v6799_v62 }
 0x198   :  { %v5849_v47 = vpop.eup %5848  ;;  %5599 = vmatmul.mubr.msk.bf16.gmra.mxu0 %vm273_vm0, %v662_v49  ;;  %v647_v58 = vadd.f32 %v6903_v23, %v618_v10  ;;  %v591_v16 = vmul.f32 %v5847_v14, %v6832_v35 }
 0x199   :  { %v648_v6 = vadd.f32 %v6903_v23, %v619_v15  ;;  %5602 = vmatprep.mubr.msk.bf16.mxu0 %vm6555_vm2, %v10587_v40  ;;  %v592_v54 = vmul.f32 %v5849_v47, %v6827_v29  ;;  %v616_v29 = vmul.f32 %v6889_v36, %v587_v56  ;;  %v617_v9 = vmul.f32 %v6889_v36, %v588_v59 }
 0x19a   :  { %v620_v21 = vmul.f32 %v6889_v36, %v591_v16 }
 0x19b   :  { %v5851_v61 = vpop.eup %5850  ;;  %v665_v0 = vpack.c.bf16 %v648_v6, %v647_v58  ;;  %v621_v35 = vmul.f32 %v6889_v36, %v592_v54  ;;  %v645_v3 = vadd.f32 %v6903_v23, %v616_v29  ;;  %v646_v24 = vadd.f32 %v6903_v23, %v617_v9 }
 0x19c   :  { %v5853_v18 = vpop.eup %5852  ;;  %v649_v63 = vadd.f32 %v6903_v23, %v620_v21  ;;  %v593_v57 = vmul.f32 %v5851_v61, %v6844_v46 }
 0x19d   :  { %5611 = vmatmul.mubr.msk.bf16.vlgmr.msra.gmra.mxu1 %vm273_vm0, %v665_v0  ;;  %v650_v62 = vadd.f32 %v6903_v23, %v621_v35  ;;  %v594_v2 = vmul.f32 %v5853_v18, %v6841_v43  ;;  %v664_v17 = vpack.c.bf16 %v646_v24, %v645_v3  ;;  %v10584_v18 = vsub.s32 2, %v6869_v8 }
 0x19e   :  { %5614 = vmatprep.mubr.msk.bf16.mxu1 %vm6555_vm2, %v10587_v40  ;;  %v622_v25 = vmul.f32 %v6889_v36, %v593_v57 }
 0x19f   :  { %v666_v44 = vpack.c.bf16 %v650_v62, %v649_v63  ;;  %v623_v12 = vmul.f32 %v6889_v36, %v594_v2 }
 0x1a0   :  { %5603 = vmatmul.mubr.msk.bf16.gmra.mxu0 %vm273_vm0, %v663_v1  ;;  %v651_v43 = vadd.f32 %v6903_v23, %v622_v25  ;;  %v7026_v1 = vrot.slane %v6882_v41, %v10584_v18 }
 0x1a1   :  { %5606 = vmatprep.mubr.msk.bf16.mxu0 %vm6555_vm2, %v10587_v40  ;;  %v652_v46 = vadd.f32 %v6903_v23, %v623_v12 }
 0x1a3   :  { %v667_v20 = vpack.c.bf16 %v652_v46, %v651_v43 }
 0x1a5   :  { %5615 = vmatmul.mubr.msk.bf16.gmra.mxu1 %vm273_vm0, %v666_v44 }
 0x1a6   :  { %5618 = vmatprep.mubr.msk.bf16.mxu1 %vm6555_vm2, %v10587_v40 }
 0x1a8   :  { %5607 = vmatmul.mubr.msk.bf16.gmra.mxu0 %vm273_vm0, %v664_v17 }
 0x1ad   :  { %5619 = vmatmul.mubr.msk.bf16.gmra.mxu1 %vm273_vm0, %v667_v20 }
 0x1ae   :  { %5622 = vmatprep.mubr.msk.bf16.mxu1 %vm6555_vm2, %v10587_v40 }
 0x1ee   :  { %v487_v26 = vpop.xlane.xlu1 %486 }
 0x1ef   :  { %v520_v28 = vmul.f32 0.041666668, %v487_v26 }
 0x1f1   :  { %v545_v27 = vadd.f32 1e-05, %v520_v28 }
 0x1f2   :  { %v490_v51 = vpop.xlane.xlu0 %489 }
 0x1f3   :  { %5854 = vrsqrt.f32 %v545_v27  ;;  %v521_v30 = vmul.f32 0.041666668, %v490_v51 }
 0x1f5   :  { %v546_v13 = vadd.f32 1e-05, %v521_v30 }
 0x1f6   :  { %v493_v45 = vpop.xlane.xlu1 %492 }
 0x1f7   :  { %5856 = vrsqrt.f32 %v546_v13  ;;  %v522_v11 = vmul.f32 0.041666668, %v493_v45 }
 0x1f9   :  { %v547_v4 = vadd.f32 1e-05, %v522_v11 }
 0x1fa   :  { %v496_v52 = vpop.xlane.xlu0 %495 }
 0x1fb   :  { %5858 = vrsqrt.f32 %v547_v4  ;;  %v523_v38 = vmul.f32 0.041666668, %v496_v52 }
 0x1fd   :  { %v548_v60 = vadd.f32 1e-05, %v523_v38 }
 0x1ff   :  { %5860 = vrsqrt.f32 %v548_v60 }
 0x200   :  { %v5855_v32 = vpop.eup %5854 }
 0x201   :  { %v595_v33 = vmul.f32 %v5855_v32, %v6864_v5 }
 0x203   :  { %v499_v42 = vpop.xlane.xlu1 %498  ;;  %v624_v53 = vmul.f32 %v6889_v36, %v595_v33 }
 0x204   :  { %v5857_v49 = vpop.eup %5856  ;;  %v524_v10 = vmul.f32 0.041666668, %v499_v42 }
 0x205   :  { %v596_v50 = vmul.f32 %v5857_v49, %v6872_v22  ;;  %v653_v58 = vadd.f32 %v6903_v23, %v624_v53 }
 0x206   :  { %v549_v14 = vadd.f32 1e-05, %v524_v10 }
 0x207   :  { %v625_v15 = vmul.f32 %v6889_v36, %v596_v50 }
 0x208   :  { %v5859_v47 = vpop.eup %5858  ;;  %5862 = vrsqrt.f32 %v549_v14 }
 0x209   :  { %v654_v16 = vadd.f32 %v6903_v23, %v625_v15  ;;  %v597_v6 = vmul.f32 %v5859_v47, %v6879_v39 }
 0x20b   :  { %v668_v54 = vpack.c.bf16 %v654_v16, %v653_v58  ;;  %v626_v22 = vmul.f32 %v6889_v36, %v597_v6 }
 0x20c   :  { %v5861_v5 = vpop.eup %5860 }
 0x20d   :  { %5623 = vmatmul.mubr.msk.bf16.gmra.mxu1 %vm273_vm0, %v668_v54  ;;  %v598_v55 = vmul.f32 %v5861_v5, %v6893_v37  ;;  %v655_v56 = vadd.f32 %v6903_v23, %v626_v22 }
 0x20e   :  { %5626 = vmatprep.mubr.msk.bf16.mxu1 %vm6555_vm2, %v10587_v40 }
 0x20f   :  { %v627_v48 = vmul.f32 %v6889_v36, %v598_v55 }
 0x211   :  { %v656_v59 = vadd.f32 %v6903_v23, %v627_v48 }
 0x213   :  { %v669_v61 = vpack.c.bf16 %v656_v59, %v655_v56 }
 0x215   :  { %v5863_v0 = vpop.eup %5862  ;;  %5627 = vmatmul.mubr.msk.bf16.gmra.mxu1 %vm273_vm0, %v669_v61 }
 0x216   :  { %5630 = vmatprep.mubr.msk.bf16.mxu1 %vm6555_vm2, %v10587_v40  ;;  %v599_v39 = vmul.f32 %v5863_v0, %v6910_v31 }
 0x218   :  { %v628_v37 = vmul.f32 %v6889_v36, %v599_v39 }
 0x21a   :  { %v657_v21 = vadd.f32 %v6903_v23, %v628_v37 }
 0x21c   :  { %v670_v35 = vpack.c.bf16 %v657_v21, %v657_v21 }
 0x21e   :  { %5631 = vmatmul.mubr.msk.bf16.gmra.mxu1 %vm273_vm0, %v670_v35 }
 0x21f   :  { %5642 = vmatprep.mubr.msk.bf16.mxu1 %vm6555_vm2, %v10587_v40 }
 0x238   :  { %v764_v29 = vpop.f32.mrf.mxu0 }
 0x239   :  { %v7029_v31 = vadd.f32 %v764_v29, %v7026_v1 }
 0x23a   :  { %v5584_v36 = vpop.f32.mrf.mxu0 }
 0x23b   :  { %v866_v23 = vmax.f32 %v7029_v31, 0.0 }
 0x23c   :  { %v767_v9 = vpop.f32.mrf.mxu0 }
 0x23d   :  { %v7033_v63 = vadd.f32 %v767_v9, %v7026_v1  ;;  %v892_v62 = vsel %vm891_vm3, %v866_v23, 0.0 }
 0x23e   :  { %893 = vadd.xlane.f32.xlu0 %v892_v62  ;;  %v5585_v57 = vpop.f32.mrf.mxu0 }
 0x23f   :  { %v867_v41 = vmax.f32 %v7033_v63, 0.0 }
 0x240   :  { %v772_v2 = vpop.f32.mrf.mxu0 }
 0x241   :  { %v7040_v3 = vadd.f32 %v772_v2, %v7026_v1  ;;  %v895_v24 = vsel %vm891_vm3, %v867_v41, 0.0 }
 0x242   :  { %896 = vadd.xlane.f32.xlu1 %v895_v24  ;;  %v5588_v44 = vpop.f32.mrf.mxu0 }
 0x243   :  { %v868_v25 = vmax.f32 %v7040_v3, 0.0 }
 0x244   :  { %v775_v12 = vpop.f32.mrf.mxu0 }
 0x245   :  { %v7047_v17 = vadd.f32 %v775_v12, %v7026_v1  ;;  %v898_v43 = vsel %vm891_vm3, %v868_v25, 0.0 }
 0x246   :  { %899 = vadd.xlane.f32.xlu0 %v898_v43  ;;  %v5589_v46 = vpop.f32.mrf.mxu0 }
 0x247   :  { %v869_v20 = vmax.f32 %v7047_v17, 0.0 }
 0x248   :  { %v780_v26 = vpop.f32.mrf.mxu0 }
 0x249   :  { %v7054_v28 = vadd.f32 %v780_v26, %v7026_v1  ;;  %v901_v27 = vsel %vm891_vm3, %v869_v20, 0.0 }
 0x24a   :  { %902 = vadd.xlane.f32.xlu1 %v901_v27  ;;  %v5592_v51 = vpop.f32.mrf.mxu0 }
 0x24b   :  { %v870_v30 = vmax.f32 %v7054_v28, 0.0 }
 0x24c   :  { %v783_v13 = vpop.f32.mrf.mxu0 }
 0x24d   :  { %v7061_v45 = vadd.f32 %v783_v13, %v7026_v1  ;;  %v904_v11 = vsel %vm891_vm3, %v870_v30, 0.0 }
 0x24e   :  { %905 = vadd.xlane.f32.xlu0 %v904_v11  ;;  %v5593_v4 = vpop.f32.mrf.mxu0 }
 0x24f   :  { %v871_v52 = vmax.f32 %v7061_v45, 0.0 }
 0x250   :  { %v788_v38 = vpop.f32.mrf.mxu0 }
 0x251   :  { %v7068_v60 = vadd.f32 %v788_v38, %v7026_v1  ;;  %v907_v32 = vsel %vm891_vm3, %v871_v52, 0.0 }
 0x252   :  { %908 = vadd.xlane.f32.xlu1 %v907_v32  ;;  %v5596_v33 = vpop.f32.mrf.mxu0 }
 0x253   :  { %v872_v42 = vmax.f32 %v7068_v60, 0.0 }
 0x254   :  { %v791_v49 = vpop.f32.mrf.mxu0 }
 0x255   :  { %v7075_v10 = vadd.f32 %v791_v49, %v7026_v1  ;;  %v910_v50 = vsel %vm891_vm3, %v872_v42, 0.0 }
 0x256   :  { %911 = vadd.xlane.f32.xlu0 %v910_v50  ;;  %v5597_v53 = vpop.f32.mrf.mxu0 }
 0x257   :  { %v873_v14 = vmax.f32 %v7075_v10, 0.0 }
 0x258   :  { %v796_v15 = vpop.f32.mrf.mxu0 }
 0x259   :  { %v7082_v47 = vadd.f32 %v796_v15, %v7026_v1  ;;  %v913_v58 = vsel %vm891_vm3, %v873_v14, 0.0 }
 0x25a   :  { %914 = vadd.xlane.f32.xlu1 %v913_v58  ;;  %v5600_v16 = vpop.f32.mrf.mxu0 }
 0x25b   :  { %v874_v6 = vmax.f32 %v7082_v47, 0.0 }
 0x25c   :  { %v799_v54 = vpop.f32.mrf.mxu0 }
 0x25d   :  { %v7089_v5 = vadd.f32 %v799_v54, %v7026_v1  ;;  %v820_v55 = vpop.f32.mrf.mxu1  ;;  %v916_v22 = vsel %vm891_vm3, %v874_v6, 0.0 }
 0x25e   :  { %917 = vadd.xlane.f32.xlu0 %v916_v22  ;;  %v5601_v48 = vpop.f32.mrf.mxu0  ;;  %v7110_v12 = vadd.f32 %v820_v55, %v7026_v1 }
 0x25f   :  { %v875_v56 = vmax.f32 %v7089_v5, 0.0  ;;  %v5612_v59 = vpop.f32.mrf.mxu1 }
 0x260   :  { %v804_v61 = vpop.f32.mrf.mxu0  ;;  %v880_v4 = vmax.f32 %v7110_v12, 0.0 }
 0x261   :  { %v7096_v0 = vadd.f32 %v804_v61, %v7026_v1  ;;  %v823_v39 = vpop.f32.mrf.mxu1  ;;  %v919_v37 = vsel %vm891_vm3, %v875_v56, 0.0 }
 0x262   :  { %920 = vadd.xlane.f32.xlu1 %v919_v37  ;;  %v5604_v21 = vpop.f32.mrf.mxu0  ;;  %v7121_v38 = vadd.f32 %v823_v39, %v7026_v1  ;;  %v934_v55 = vsel %vm891_vm3, %v880_v4, 0.0 }
 0x263   :  { %v876_v35 = vmax.f32 %v7096_v0, 0.0  ;;  %v5613_v29 = vpop.f32.mrf.mxu1 }
 0x264   :  { %v807_v36 = vpop.f32.mrf.mxu0  ;;  %v881_v54 = vmax.f32 %v7121_v38, 0.0 }
 0x265   :  { %v7103_v9 = vadd.f32 %v807_v36, %v7026_v1  ;;  %v828_v62 = vpop.f32.mrf.mxu1  ;;  %v922_v57 = vsel %vm891_vm3, %v876_v35, 0.0 }
 0x266   :  { %923 = vadd.xlane.f32.xlu0 %v922_v57  ;;  %v5605_v2 = vpop.f32.mrf.mxu0  ;;  %v7124_v33 = vadd.f32 %v828_v62, %v7026_v1  ;;  %v937_v21 = vsel %vm891_vm3, %v881_v54, 0.0 }
 0x267   :  { %v877_v24 = vmax.f32 %v7103_v9, 0.0  ;;  %v5616_v44 = vpop.f32.mrf.mxu1 }
 0x268   :  { %v812_v43 = vpop.f32.mrf.mxu0  ;;  %v882_v22 = vmax.f32 %v7124_v33, 0.0 }
 0x269   :  { %v7113_v46 = vadd.f32 %v812_v43, %v7026_v1  ;;  %v831_v26 = vpop.f32.mrf.mxu1  ;;  %v925_v27 = vsel %vm891_vm3, %v877_v24, 0.0 }
 0x26a   :  { %926 = vadd.xlane.f32.xlu1 %v925_v27  ;;  %v5608_v51 = vpop.f32.mrf.mxu0  ;;  %v7139_v48 = vadd.f32 %v831_v26, %v7026_v1  ;;  %v940_v57 = vsel %vm891_vm3, %v882_v22, 0.0 }
 0x26b   :  { %v878_v13 = vmax.f32 %v7113_v46, 0.0  ;;  %v5617_v11 = vpop.f32.mrf.mxu1 }
 0x26c   :  { %v815_v32 = vpop.f32.mrf.mxu0  ;;  %v883_v29 = vmax.f32 %v7139_v48, 0.0 }
 0x26d   :  { %v7127_v49 = vadd.f32 %v815_v32, %v7026_v1  ;;  %v836_v50 = vpop.f32.mrf.mxu1  ;;  %v928_v53 = vsel %vm891_vm3, %v878_v13, 0.0 }
 0x26e   :  { %929 = vadd.xlane.f32.xlu0 %v928_v53  ;;  %v5609_v15 = vpop.f32.mrf.mxu0  ;;  %v7142_v59 = vadd.f32 %v836_v50, %v7026_v1  ;;  %v943_v43 = vsel %vm891_vm3, %v883_v29, 0.0 }
 0x26f   :  { %v879_v58 = vmax.f32 %v7127_v49, 0.0  ;;  %v5620_v16 = vpop.f32.mrf.mxu1 }
 0x270   :  { %v884_v36 = vmax.f32 %v7142_v59, 0.0 }
 0x271   :  { %v839_v61 = vpop.f32.mrf.mxu1  ;;  %v931_v39 = vsel %vm891_vm3, %v879_v58, 0.0 }
 0x272   :  { %935 = vadd.xlane.f32.xlu0 %v934_v55  ;;  %932 = vadd.xlane.f32.xlu1 %v931_v39  ;;  %v7153_v62 = vadd.f32 %v839_v61, %v7026_v1  ;;  %v946_v44 = vsel %vm891_vm3, %v884_v36, 0.0 }
 0x273   :  { %v5621_v37 = vpop.f32.mrf.mxu1 }
 0x274   :  { %v885_v2 = vmax.f32 %v7153_v62, 0.0 }
 0x276   :  { %941 = vadd.xlane.f32.xlu0 %v940_v57  ;;  %938 = vadd.xlane.f32.xlu1 %v937_v21  ;;  %v949_v26 = vsel %vm891_vm3, %v885_v2, 0.0 }
 0x27a   :  { %947 = vadd.xlane.f32.xlu0 %v946_v44  ;;  %944 = vadd.xlane.f32.xlu1 %v943_v43 }
 0x27e   :  { %950 = vadd.xlane.f32.xlu1 %v949_v26 }
 0x2c7   :  { %v894_v27 = vpop.xlane.xlu0 %893 }
 0x2c8   :  { %v968_v51 = vmul.f32 0.015625, %v894_v27 }
 0x2ca   :  { %v7170_v11 = vsub.f32 %v866_v23, %v968_v51 }
 0x2cb   :  { %v897_v32 = vpop.xlane.xlu1 %896 }
 0x2cc   :  { %v969_v50 = vmul.f32 0.015625, %v897_v32  ;;  %v1018_v53 = vmul.f32 %v7170_v11, %v7170_v11 }
 0x2cd   :  { %v844_v15 = vpop.f32.mrf.mxu1 }
 0x2ce   :  { %v7176_v16 = vsub.f32 %v867_v41, %v969_v50  ;;  %v7179_v55 = vadd.f32 %v844_v15, %v7026_v1  ;;  %v1043_v61 = vsel %vm891_vm3, %v1018_v53, 0.0 }
 0x2cf   :  { %v5624_v39 = vpop.f32.mrf.mxu1  ;;  %v900_v37 = vpop.xlane.xlu0 %899  ;;  %1044 = vadd.xlane.f32.xlu0 %v1043_v61 }
 0x2d0   :  { %v886_v31 = vmax.f32 %v7179_v55, 0.0  ;;  %v970_v23 = vmul.f32 0.015625, %v900_v37  ;;  %v1019_v21 = vmul.f32 %v7176_v16, %v7176_v16 }
 0x2d1   :  { %v847_v57 = vpop.f32.mrf.mxu1 }
 0x2d2   :  { %v7187_v63 = vsub.f32 %v868_v25, %v970_v23  ;;  %v7190_v41 = vadd.f32 %v847_v57, %v7026_v1  ;;  %v952_v44 = vsel %vm891_vm3, %v886_v31, 0.0  ;;  %v1046_v43 = vsel %vm891_vm3, %v1019_v21, 0.0 }
 0x2d3   :  { %v5625_v26 = vpop.f32.mrf.mxu1  ;;  %v903_v27 = vpop.xlane.xlu1 %902  ;;  %953 = vadd.xlane.f32.xlu0 %v952_v44  ;;  %1047 = vadd.xlane.f32.xlu1 %v1046_v43 }
 0x2d4   :  { %v887_v51 = vmax.f32 %v7190_v41, 0.0  ;;  %v971_v32 = vmul.f32 0.015625, %v903_v27  ;;  %v1020_v3 = vmul.f32 %v7187_v63, %v7187_v63 }
 0x2d5   :  { %v852_v25 = vpop.f32.mrf.mxu1 }
 0x2d6   :  { %v7201_v50 = vsub.f32 %v869_v20, %v971_v32  ;;  %v7204_v53 = vadd.f32 %v852_v25, %v7026_v1  ;;  %v1049_v15 = vsel %vm891_vm3, %v1020_v3, 0.0  ;;  %v955_v61 = vsel %vm891_vm3, %v887_v51, 0.0 }
 0x2d7   :  { %v5628_v39 = vpop.f32.mrf.mxu1  ;;  %v906_v37 = vpop.xlane.xlu0 %905  ;;  %1050 = vadd.xlane.f32.xlu0 %v1049_v15  ;;  %956 = vadd.xlane.f32.xlu1 %v955_v61 }
 0x2d8   :  { %v888_v23 = vmax.f32 %v7204_v53, 0.0  ;;  %v972_v21 = vmul.f32 0.015625, %v906_v37  ;;  %v1021_v17 = vmul.f32 %v7201_v50, %v7201_v50 }
 0x2d9   :  { %v855_v20 = vpop.f32.mrf.mxu1 }
 0x2da   :  { %v7215_v57 = vsub.f32 %v870_v30, %v972_v21  ;;  %v7218_v44 = vadd.f32 %v855_v20, %v7026_v1  ;;  %v958_v43 = vsel %vm891_vm3, %v888_v23, 0.0  ;;  %v1052_v26 = vsel %vm891_vm3, %v1021_v17, 0.0 }
 0x2db   :  { %v5629_v27 = vpop.f32.mrf.mxu1  ;;  %v909_v32 = vpop.xlane.xlu1 %908  ;;  %959 = vadd.xlane.f32.xlu0 %v958_v43  ;;  %1053 = vadd.xlane.f32.xlu1 %v1052_v26 }
 0x2dc   :  { %v889_v3 = vmax.f32 %v7218_v44, 0.0  ;;  %v973_v25 = vmul.f32 0.015625, %v909_v32  ;;  %v1022_v28 = vmul.f32 %v7215_v57, %v7215_v57 }
 0x2de   :  { %v7229_v30 = vsub.f32 %v871_v52, %v973_v25  ;;  %v860_v15 = vpop.f32.mrf.mxu1  ;;  %v1055_v61 = vsel %vm891_vm3, %v1022_v28, 0.0  ;;  %v961_v39 = vsel %vm891_vm3, %v889_v3, 0.0 }
 0x2df   :  { %v912_v37 = vpop.xlane.xlu0 %911  ;;  %1056 = vadd.xlane.f32.xlu0 %v1055_v61  ;;  %962 = vadd.xlane.f32.xlu1 %v961_v39  ;;  %v7238_v43 = vadd.f32 %v860_v15, %v7026_v1  ;;  %v5782_v15 = vld [vmem:[%s10577_s3 + $0x18] sm:$0xff]  }
 0x2e0   :  { %v5632_v21 = vpop.f32.mrf.mxu1  ;;  %v974_v17 = vmul.f32 0.015625, %v912_v37  ;;  %v1023_v20 = vmul.f32 %v7229_v30, %v7229_v30  ;;  %5635 = vmatpush3.bf16.msra.mxu1 %v5782_v15 }
 0x2e1   :  { %v890_v61 = vmax.f32 %v7238_v43, 0.0  ;;  %5636 = vmatprep.subr.bf16.mxu1 %v10587_v40 }
 0x2e2   :  { %v7242_v45 = vsub.f32 %v872_v42, %v974_v17  ;;  %v863_v52 = vpop.f32.mrf.mxu1  ;;  %v1058_v26 = vsel %vm891_vm3, %v1023_v20, 0.0  ;;  %v5783_v20 = vld [vmem:[%s10577_s3 + $0x10] sm:$0xff]  }
 0x2e3   :  { %v915_v27 = vpop.xlane.xlu1 %914  ;;  %1059 = vadd.xlane.f32.xlu1 %v1058_v26  ;;  %v964_v10 = vsel %vm891_vm3, %v890_v61, 0.0 }
 0x2e4   :  { %v5633_v32 = vpop.f32.mrf.mxu1  ;;  %v975_v25 = vmul.f32 0.015625, %v915_v27  ;;  %v1024_v28 = vmul.f32 %v7242_v45, %v7242_v45  ;;  %5637 = vmatpush3.bf16.msra.mxu1 %v5783_v20 }
 0x2e5   :  { %5638 = vmatprep.subr.bf16.mxu1 %v10587_v40  ;;  %v5784_v32 = vld [vmem:[%s10577_s3 + $0x8] sm:$0xff]  }
 0x2e6   :  { %v7250_v1 = vsub.f32 %v873_v14, %v975_v25  ;;  %v1061_v60 = vsel %vm891_vm3, %v1024_v28, 0.0 }
 0x2e7   :  { %v918_v42 = vpop.xlane.xlu0 %917  ;;  %1062 = vadd.xlane.f32.xlu0 %v1061_v60 }
 0x2e8   :  { %v976_v39 = vmul.f32 0.015625, %v918_v42  ;;  %v1025_v37 = vmul.f32 %v7250_v1, %v7250_v1  ;;  %5639 = vmatpush3.bf16.msra.mxu1 %v5784_v32  ;;  %v5785_v42 = vld [vmem:[%s10577_s3] sm:$0xff]   ;;  %s6558_s3 = smov 104  }
 0x2e9   :  { %5640 = vmatprep.subr.bf16.mxu1 %v10587_v40 }
 0x2ea   :  { %v7260_v21 = vsub.f32 %v874_v6, %v976_v39  ;;  %v1064_v14 = vsel %vm891_vm3, %v1025_v37, 0.0 }
 0x2eb   :  { %v921_v17 = vpop.xlane.xlu1 %920  ;;  %965 = vadd.xlane.f32.xlu0 %v964_v10  ;;  %1065 = vadd.xlane.f32.xlu1 %v1064_v14 }
 0x2ec   :  { %v977_v52 = vmul.f32 0.015625, %v921_v17  ;;  %v1026_v47 = vmul.f32 %v7260_v21, %v7260_v21  ;;  %5641 = vmatpush3.bf16.msra.mxu1 %v5785_v42 }
 0x2ee   :  { %v7274_v6 = vsub.f32 %v875_v56, %v977_v52  ;;  %v1067_v26 = vsel %vm891_vm3, %v1026_v47, 0.0 }
 0x2ef   :  { %v924_v27 = vpop.xlane.xlu0 %923  ;;  %1068 = vadd.xlane.f32.xlu1 %v1067_v26 }
 0x2f0   :  { %v978_v25 = vmul.f32 0.015625, %v924_v27  ;;  %v1027_v28 = vmul.f32 %v7274_v6, %v7274_v6 }
 0x2f2   :  { %v7285_v5 = vsub.f32 %v876_v35, %v978_v25  ;;  %v1070_v56 = vsel %vm891_vm3, %v1027_v28, 0.0 }
 0x2f3   :  { %v927_v60 = vpop.xlane.xlu1 %926  ;;  %1071 = vadd.xlane.f32.xlu0 %v1070_v56 }
 0x2f4   :  { %v979_v15 = vmul.f32 0.015625, %v927_v60  ;;  %v1028_v39 = vmul.f32 %v7285_v5, %v7285_v5 }
 0x2f6   :  { %v7296_v0 = vsub.f32 %v877_v24, %v979_v15  ;;  %v1073_v35 = vsel %vm891_vm3, %v1028_v39, 0.0 }
 0x2f7   :  { %v930_v37 = vpop.xlane.xlu0 %929  ;;  %1074 = vadd.xlane.f32.xlu1 %v1073_v35 }
 0x2f8   :  { %v980_v10 = vmul.f32 0.015625, %v930_v37  ;;  %v1029_v14 = vmul.f32 %v7296_v0, %v7296_v0 }
 0x2fa   :  { %v7303_v17 = vsub.f32 %v878_v13, %v980_v10  ;;  %v1076_v20 = vsel %vm891_vm3, %v1029_v14, 0.0 }
 0x2fb   :  { %1077 = vadd.xlane.f32.xlu0 %v1076_v20  ;;  %v936_v52 = vpop.xlane.xlu0 %935  ;;  %v933_v47 = vpop.xlane.xlu1 %932  ;;  %v6556_v20 = vmov 88  }
 0x2fc   :  { %v982_v9 = vmul.f32 0.015625, %v936_v52  ;;  %v981_v24 = vmul.f32 0.015625, %v933_v47  ;;  %v1030_v26 = vmul.f32 %v7303_v17, %v7303_v17  ;;  %5778 = vset.pattern.permute.xlu0 %v6556_v20  ;;  %5779 = vset.pattern.permute.xlu1 %v6556_v20 }
 0x2fe   :  { %v7310_v27 = vsub.f32 %v880_v4, %v982_v9  ;;  %v7314_v32 = vsub.f32 %v879_v58, %v981_v24  ;;  %v1079_v46 = vsel %vm891_vm3, %v1030_v26, 0.0 }
 0x2ff   :  { %v942_v13 = vpop.xlane.xlu0 %941  ;;  %1080 = vadd.xlane.f32.xlu1 %v1079_v46  ;;  %v939_v25 = vpop.xlane.xlu1 %938 }
 0x300   :  { %v984_v28 = vmul.f32 0.015625, %v942_v13  ;;  %v983_v56 = vmul.f32 0.015625, %v939_v25  ;;  %v1032_v60 = vmul.f32 %v7310_v27, %v7310_v27  ;;  %v1031_v42 = vmul.f32 %v7314_v32, %v7314_v32 }
 0x302   :  { %v7323_v12 = vsub.f32 %v882_v22, %v984_v28  ;;  %v7327_v4 = vsub.f32 %v881_v54, %v983_v56  ;;  %v1085_v49 = vsel %vm891_vm3, %v1032_v60, 0.0  ;;  %v1082_v58 = vsel %vm891_vm3, %v1031_v42, 0.0 }
 0x303   :  { %v948_v15 = vpop.xlane.xlu0 %947  ;;  %1086 = vadd.xlane.f32.xlu1 %v1085_v49  ;;  %1083 = vadd.xlane.f32.xlu0 %v1082_v58  ;;  %v945_v39 = vpop.xlane.xlu1 %944 }
 0x304   :  { %v986_v35 = vmul.f32 0.015625, %v948_v15  ;;  %v985_v37 = vmul.f32 0.015625, %v945_v39  ;;  %v1034_v10 = vmul.f32 %v7323_v12, %v7323_v12  ;;  %v1033_v33 = vmul.f32 %v7327_v4, %v7327_v4 }
 0x306   :  { %v7337_v38 = vsub.f32 %v884_v36, %v986_v35  ;;  %v7341_v54 = vsub.f32 %v883_v29, %v985_v37  ;;  %v1091_v22 = vsel %vm891_vm3, %v1034_v10, 0.0  ;;  %v1088_v14 = vsel %vm891_vm3, %v1033_v33, 0.0 }
 0x307   :  { %1092 = vadd.xlane.f32.xlu1 %v1091_v22  ;;  %1089 = vadd.xlane.f32.xlu0 %v1088_v14  ;;  %v951_v52 = vpop.xlane.xlu1 %950 }
 0x308   :  { %v987_v47 = vmul.f32 0.015625, %v951_v52  ;;  %v1036_v59 = vmul.f32 %v7337_v38, %v7337_v38  ;;  %v1035_v36 = vmul.f32 %v7341_v54, %v7341_v54  ;;  %v10583_v52 = vsub.s32 3, %v6869_v8 }
 0x30a   :  { %v7351_v48 = vsub.f32 %v885_v2, %v987_v47  ;;  %v1097_v29 = vsel %vm891_vm3, %v1036_v59, 0.0  ;;  %v1094_v9 = vsel %vm891_vm3, %v1035_v36, 0.0 }
 0x30b   :  { %1098 = vadd.xlane.f32.xlu1 %v1097_v29  ;;  %1095 = vadd.xlane.f32.xlu0 %v1094_v9 }
 0x30c   :  { %v1037_v24 = vmul.f32 %v7351_v48, %v7351_v48 }
 0x30e   :  { %v1100_v26 = vsel %vm891_vm3, %v1037_v24, 0.0 }
 0x30f   :  { %1101 = vadd.xlane.f32.xlu0 %v1100_v26 }
 0x358   :  { %v1045_v46 = vpop.xlane.xlu0 %1044 }
 0x359   :  { %v1118_v13 = vmul.f32 0.015625, %v1045_v46  ;;  %v7379_v46 = vld [vmem:[#allocation5] sm:$0xff] }
 0x35a   :  { %v7384_v53 = vrot.slane %v7379_v46, %v10583_v52 }
 0x35b   :  { %v1143_v25 = vadd.f32 1e-05, %v1118_v13 }
 0x35c   :  { %v954_v28 = vpop.xlane.xlu0 %953  ;;  %v1048_v56 = vpop.xlane.xlu1 %1047 }
 0x35d   :  { %5864 = vrsqrt.f32 %v1143_v25  ;;  %v988_v62 = vmul.f32 0.015625, %v954_v28  ;;  %v1119_v2 = vmul.f32 0.015625, %v1048_v56 }
 0x35f   :  { %v7360_v60 = vsub.f32 %v886_v31, %v988_v62  ;;  %v1144_v42 = vadd.f32 1e-05, %v1119_v2 }
 0x360   :  { %v1051_v49 = vpop.xlane.xlu0 %1050  ;;  %v957_v58 = vpop.xlane.xlu1 %956 }
 0x361   :  { %5866 = vrsqrt.f32 %v1144_v42  ;;  %v1120_v15 = vmul.f32 0.015625, %v1051_v49  ;;  %v989_v39 = vmul.f32 0.015625, %v957_v58  ;;  %v1038_v35 = vmul.f32 %v7360_v60, %v7360_v60 }
 0x363   :  { %v1145_v37 = vadd.f32 1e-05, %v1120_v15  ;;  %v7366_v10 = vsub.f32 %v887_v51, %v989_v39  ;;  %v1103_v33 = vsel %vm891_vm3, %v1038_v35, 0.0 }
 0x364   :  { %v960_v22 = vpop.xlane.xlu0 %959  ;;  %1104 = vadd.xlane.f32.xlu1 %v1103_v33  ;;  %v1054_v55 = vpop.xlane.xlu1 %1053 }
 0x365   :  { %5868 = vrsqrt.f32 %v1145_v37  ;;  %v990_v31 = vmul.f32 0.015625, %v960_v22  ;;  %v1121_v14 = vmul.f32 0.015625, %v1054_v55  ;;  %v1039_v20 = vmul.f32 %v7366_v10, %v7366_v10 }
 0x367   :  { %v7374_v47 = vsub.f32 %v888_v23, %v990_v31  ;;  %v1146_v41 = vadd.f32 1e-05, %v1121_v14  ;;  %v1106_v51 = vsel %vm891_vm3, %v1039_v20, 0.0  ;;  %v10582_v23 = vsub.s32 4, %v6869_v8 }
 0x368   :  { %v1057_v59 = vpop.xlane.xlu0 %1056  ;;  %1107 = vadd.xlane.f32.xlu0 %v1106_v51  ;;  %v963_v36 = vpop.xlane.xlu1 %962 }
 0x369   :  { %5870 = vrsqrt.f32 %v1146_v41  ;;  %v1122_v29 = vmul.f32 0.015625, %v1057_v59  ;;  %v991_v9 = vmul.f32 0.015625, %v963_v36  ;;  %v1040_v24 = vmul.f32 %v7374_v47, %v7374_v47 }
 0x36a   :  { %v5865_v26 = vpop.eup %5864  ;;  %v7398_v58 = vrot.slane %v7379_v46, %v10582_v23 }
 0x36b   :  { %v1193_v13 = vmul.f32 %v5865_v26, %v7170_v11  ;;  %v1147_v25 = vadd.f32 1e-05, %v1122_v29  ;;  %v7390_v28 = vsub.f32 %v889_v3, %v991_v9  ;;  %v1109_v56 = vsel %vm891_vm3, %v1040_v24, 0.0 }
 0x36c   :  { %1110 = vadd.xlane.f32.xlu1 %v1109_v56  ;;  %v1060_v62 = vpop.xlane.xlu1 %1059 }
 0x36d   :  { %5872 = vrsqrt.f32 %v1147_v25  ;;  %v1123_v2 = vmul.f32 0.015625, %v1060_v62  ;;  %v1041_v42 = vmul.f32 %v7390_v28, %v7390_v28  ;;  %v1222_v11 = vmul.f32 %v7384_v53, %v1193_v13 }
 0x36e   :  { %v5867_v49 = vpop.eup %5866 }
 0x36f   :  { %v1194_v44 = vmul.f32 %v5867_v49, %v7176_v16  ;;  %v1148_v3 = vadd.f32 1e-05, %v1123_v2  ;;  %v1112_v15 = vsel %vm891_vm3, %v1041_v42, 0.0  ;;  %v1251_v55 = vadd.f32 %v7398_v58, %v1222_v11 }
 0x370   :  { %v1063_v39 = vpop.xlane.xlu0 %1062  ;;  %1113 = vadd.xlane.f32.xlu0 %v1112_v15 }
 0x371   :  { %v1223_v35 = vmul.f32 %v7384_v53, %v1194_v44  ;;  %5874 = vrsqrt.f32 %v1148_v3  ;;  %v1124_v37 = vmul.f32 0.015625, %v1063_v39 }
 0x372   :  { %v5869_v33 = vpop.eup %5868 }
 0x373   :  { %v1149_v22 = vadd.f32 1e-05, %v1124_v37  ;;  %v1252_v31 = vadd.f32 %v7398_v58, %v1223_v35  ;;  %v1195_v14 = vmul.f32 %v5869_v33, %v7187_v63 }
 0x374   :  { %v966_v20 = vpop.xlane.xlu0 %965  ;;  %v1066_v41 = vpop.xlane.xlu1 %1065 }
 0x375   :  { %5876 = vrsqrt.f32 %v1149_v22  ;;  %v992_v16 = vmul.f32 0.015625, %v966_v20  ;;  %v1125_v51 = vmul.f32 0.015625, %v1066_v41  ;;  %v1276_v59 = vpack.c.bf16 %v1252_v31, %v1251_v55 }
 0x376   :  { %v5871_v36 = vpop.eup %5870  ;;  %v1224_v29 = vmul.f32 %v7384_v53, %v1195_v14 }
 0x377   :  { %v7410_v9 = vsub.f32 %v890_v61, %v992_v16  ;;  %v1150_v24 = vadd.f32 1e-05, %v1125_v51  ;;  %5643 = vmatmul.mubr.msk.bf16.vlgmr.msra.gmra.mxu1 %vm891_vm3, %v1276_v59  ;;  %v1196_v26 = vmul.f32 %v5871_v36, %v7201_v50  ;;  %v7432_v59 = vld [vmem:[#allocation2] sm:$0xff] }
 0x378   :  { %v1069_v13 = vpop.xlane.xlu1 %1068  ;;  %5646 = vmatprep.mubr.msk.bf16.mxu1 %vm6555_vm2, %v10587_v40  ;;  %v1253_v43 = vadd.f32 %v7398_v58, %v1224_v29 }
 0x379   :  { %5878 = vrsqrt.f32 %v1150_v24  ;;  %v1126_v63 = vmul.f32 0.015625, %v1069_v13  ;;  %v1042_v25 = vmul.f32 %v7410_v9, %v7410_v9  ;;  %v1225_v56 = vmul.f32 %v7384_v53, %v1196_v26 }
 0x37a   :  { %v5873_v62 = vpop.eup %5872 }
 0x37b   :  { %v1151_v61 = vadd.f32 1e-05, %v1126_v63  ;;  %v1115_v2 = vsel %vm891_vm3, %v1042_v25, 0.0  ;;  %v1254_v42 = vadd.f32 %v7398_v58, %v1225_v56  ;;  %v1197_v50 = vmul.f32 %v5873_v62, %v7215_v57  ;;  %v7441_v25 = vld [vmem:[#allocation2 + $0x20] sm:$0xff] }
 0x37c   :  { %v1072_v49 = vpop.xlane.xlu0 %1071  ;;  %1116 = vadd.xlane.f32.xlu1 %v1115_v2 }
 0x37d   :  { %5880 = vrsqrt.f32 %v1151_v61  ;;  %v1127_v11 = vmul.f32 0.015625, %v1072_v49  ;;  %v1277_v44 = vpack.c.bf16 %v1254_v42, %v1253_v43  ;;  %v1226_v35 = vmul.f32 %v7384_v53, %v1197_v50  ;;  %v7447_v49 = vld [vmem:[#allocation2 + $0x8] sm:$0xff] }
 0x37e   :  { %v5875_v3 = vpop.eup %5874 }
 0x37f   :  { %v1152_v15 = vadd.f32 1e-05, %v1127_v11  ;;  %5647 = vmatmul.mubr.msk.bf16.gmra.mxu1 %vm891_vm3, %v1277_v44  ;;  %v1198_v39 = vmul.f32 %v5875_v3, %v7229_v30  ;;  %v1255_v31 = vadd.f32 %v7398_v58, %v1226_v35  ;;  %v7450_v3 = vld [vmem:[#allocation2 + $0x28] sm:$0xff] }
 0x380   :  { %v1075_v37 = vpop.xlane.xlu1 %1074  ;;  %5650 = vmatprep.mubr.msk.bf16.mxu1 %vm6555_vm2, %v10587_v40 }
 0x381   :  { %5882 = vrsqrt.f32 %v1152_v15  ;;  %v1128_v33 = vmul.f32 0.015625, %v1075_v37  ;;  %v1227_v57 = vmul.f32 %v7384_v53, %v1198_v39 }
 0x382   :  { %v5877_v22 = vpop.eup %5876 }
 0x383   :  { %v1153_v55 = vadd.f32 1e-05, %v1128_v33  ;;  %v1256_v14 = vadd.f32 %v7398_v58, %v1227_v57  ;;  %v1199_v20 = vmul.f32 %v5877_v22, %v7242_v45  ;;  %v7458_v22 = vld [vmem:[#allocation2 + $0x10] sm:$0xff] }
 0x384   :  { %v1078_v41 = vpop.xlane.xlu0 %1077 }
 0x385   :  { %5884 = vrsqrt.f32 %v1153_v55  ;;  %v1129_v30 = vmul.f32 0.015625, %v1078_v41  ;;  %v1278_v16 = vpack.c.bf16 %v1256_v14, %v1255_v31  ;;  %v1228_v24 = vmul.f32 %v7384_v53, %v1199_v20  ;;  %v7462_v20 = vld [vmem:[#allocation2 + $0x40] sm:$0xff] }
 0x386   :  { %v5879_v51 = vpop.eup %5878  ;;  %125 = vperm.xlu0 %5778, %v7432_v59  }
 0x387   :  { %v1154_v36 = vadd.f32 1e-05, %v1129_v30  ;;  %5651 = vmatmul.mubr.msk.bf16.gmra.mxu1 %vm891_vm3, %v1278_v16  ;;  %v1200_v29 = vmul.f32 %v5879_v51, %v7250_v1  ;;  %v1257_v62 = vadd.f32 %v7398_v58, %v1228_v24 }
 0x388   :  { %v1081_v26 = vpop.xlane.xlu1 %1080  ;;  %5654 = vmatprep.mubr.msk.bf16.mxu1 %vm6555_vm2, %v10587_v40 }
 0x389   :  { %5886 = vrsqrt.f32 %v1154_v36  ;;  %v1130_v45 = vmul.f32 0.015625, %v1081_v26  ;;  %v1229_v13 = vmul.f32 %v7384_v53, %v1200_v29  ;;  %v7468_v29 = vld [vmem:[#allocation2 + $0x18] sm:$0xff] }
 0x38a   :  { %v5881_v63 = vpop.eup %5880  ;;  %145 = vperm.xlu0 %5778, %v7441_v25  }
 0x38b   :  { %v1155_v56 = vadd.f32 1e-05, %v1130_v45  ;;  %v1258_v1 = vadd.f32 %v7398_v58, %v1229_v13  ;;  %v1201_v43 = vmul.f32 %v5881_v63, %v7260_v21  ;;  %v7471_v45 = vld [vmem:[#allocation2 + $0x48] sm:$0xff] }
 0x38c   :  { %v1084_v61 = vpop.xlane.xlu0 %1083  ;;  %v1087_v2 = vpop.xlane.xlu1 %1086 }
 0x38d   :  { %5888 = vrsqrt.f32 %v1155_v56  ;;  %v1131_v42 = vmul.f32 0.015625, %v1084_v61  ;;  %v1132_v50 = vmul.f32 0.015625, %v1087_v2  ;;  %130 = vperm.xlu1 %5779, %v7447_v49   ;;  %v1279_v11 = vpack.c.bf16 %v1258_v1, %v1257_v62  ;;  %v7479_v61 = vld [vmem:[#allocation2 + $0x30] sm:$0xff] }
 0x38e   :  { %v5883_v44 = vpop.eup %5882  ;;  %150 = vperm.xlu0 %5778, %v7450_v3   ;;  %v1230_v15 = vmul.f32 %v7384_v53, %v1201_v43 }
 0x38f   :  { %v1156_v39 = vadd.f32 1e-05, %v1131_v42  ;;  %v1157_v35 = vadd.f32 1e-05, %v1132_v50  ;;  %5655 = vmatmul.mubr.msk.bf16.gmra.mxu1 %vm891_vm3, %v1279_v11  ;;  %v1202_v21 = vmul.f32 %v5883_v44, %v7274_v6  ;;  %v7483_v11 = vld [vmem:[#allocation2 + $0x60] sm:$0xff] }
 0x390   :  { %v1090_v37 = vpop.xlane.xlu0 %1089  ;;  %v1093_v33 = vpop.xlane.xlu1 %1092  ;;  %5658 = vmatprep.mubr.msk.bf16.mxu1 %vm6555_vm2, %v10587_v40  ;;  %v1259_v6 = vadd.f32 %v7398_v58, %v1230_v15 }
 0x391   :  { %5890 = vrsqrt.f32 %v1156_v39  ;;  %v1133_v57 = vmul.f32 0.015625, %v1090_v37  ;;  %135 = vperm.xlu1 %5779, %v7458_v22   ;;  %v1231_v55 = vmul.f32 %v7384_v53, %v1202_v21  ;;  %v1134_v14 = vmul.f32 0.015625, %v1093_v33 }
 0x392   :  { %v5885_v31 = vpop.eup %5884  ;;  %165 = vperm.xlu0 %5778, %v7462_v20   ;;  %5892 = vrsqrt.f32 %v1157_v35  ;;  %v7489_v35 = vld [vmem:[#allocation2 + $0x38] sm:$0xff] }
 0x393   :  { %v1158_v41 = vadd.f32 1e-05, %v1133_v57  ;;  %v1260_v30 = vadd.f32 %v7398_v58, %v1231_v55  ;;  %v1203_v16 = vmul.f32 %v5885_v31, %v7285_v5  ;;  %v1159_v13 = vadd.f32 1e-05, %v1134_v14  ;;  %v7492_v57 = vld [vmem:[#allocation2 + $0x68] sm:$0xff] }
 0x394   :  { %v1096_v51 = vpop.xlane.xlu0 %1095  ;;  %v1099_v56 = vpop.xlane.xlu1 %1098 }
 0x395   :  { %5894 = vrsqrt.f32 %v1158_v41  ;;  %v1135_v36 = vmul.f32 0.015625, %v1096_v51  ;;  %140 = vperm.xlu1 %5779, %v7468_v29   ;;  %v1280_v24 = vpack.c.bf16 %v1260_v30, %v1259_v6  ;;  %v1232_v62 = vmul.f32 %v7384_v53, %v1203_v16  ;;  %v7504_v30 = vld [vmem:[#allocation2 + $0x80] sm:$0xff] }
 0x396   :  { %v5887_v26 = vpop.eup %5886  ;;  %170 = vperm.xlu0 %5778, %v7471_v45   ;;  %v1136_v50 = vmul.f32 0.015625, %v1099_v56  ;;  %v7515_v56 = vld [vmem:[#allocation2 + $0x88] sm:$0xff] }
 0x397   :  { %v1160_v63 = vadd.f32 1e-05, %v1135_v36  ;;  %5659 = vmatmul.mubr.msk.bf16.gmra.mxu1 %vm891_vm3, %v1280_v24  ;;  %v1204_v5 = vmul.f32 %v5887_v26, %v7296_v0  ;;  %v1261_v0 = vadd.f32 %v7398_v58, %v1232_v62  ;;  %v7511_v24 = vld [vmem:[#allocation2 + $0x58] sm:$0xff] }
 0x398   :  { %v1102_v1 = vpop.xlane.xlu0 %1101  ;;  %5662 = vmatprep.mubr.msk.bf16.mxu1 %vm6555_vm2, %v10587_v40  ;;  %v1161_v33 = vadd.f32 1e-05, %v1136_v50 }
 0x399   :  { %5896 = vrsqrt.f32 %v1160_v63  ;;  %v1137_v43 = vmul.f32 0.015625, %v1102_v1  ;;  %155 = vperm.xlu1 %5779, %v7479_v61   ;;  %v1233_v2 = vmul.f32 %v7384_v53, %v1204_v5 }
 0x39a   :  { %v5889_v42 = vpop.eup %5888  ;;  %185 = vperm.xlu0 %5778, %v7483_v11   ;;  %5898 = vrsqrt.f32 %v1159_v13 }
 0x39b   :  { %v1262_v44 = vadd.f32 %v7398_v58, %v1233_v2  ;;  %v1205_v15 = vmul.f32 %v5889_v42, %v7303_v17  ;;  %v1162_v39 = vadd.f32 1e-05, %v1137_v43  ;;  %v7500_v17 = vld [vmem:[#allocation2 + $0x50] sm:$0xff]  ;;  %v7529_v42 = vld [vmem:[#allocation2 + $0x78] sm:$0xff] }
 0x39d   :  { %160 = vperm.xlu1 %5779, %v7489_v35   ;;  %v1281_v21 = vpack.c.bf16 %v1262_v44, %v1261_v0  ;;  %v1234_v31 = vmul.f32 %v7384_v53, %v1205_v15  ;;  %5900 = vrsqrt.f32 %v1162_v39 }
 0x39e   :  { %v5891_v37 = vpop.eup %5890  ;;  %190 = vperm.xlu0 %5778, %v7492_v57   ;;  %5902 = vrsqrt.f32 %v1161_v33 }
 0x39f   :  { %5663 = vmatmul.mubr.msk.bf16.gmra.mxu1 %vm891_vm3, %v1281_v21  ;;  %v1206_v55 = vmul.f32 %v5891_v37, %v7314_v32  ;;  %v5893_v14 = vpop.eup %5892  ;;  %v1263_v32 = vadd.f32 %v7398_v58, %v1234_v31 }
 0x3a0   :  { %5666 = vmatprep.mubr.msk.bf16.mxu1 %vm6555_vm2, %v10587_v40  ;;  %v1207_v51 = vmul.f32 %v5893_v14, %v7310_v27  ;;  %v7522_v27 = vld [vmem:[#allocation2 + $0x70] sm:$0xff] }
 0x3a1   :  { %175 = vperm.xlu1 %5779, %v7500_v17   ;;  %v1235_v6 = vmul.f32 %v7384_v53, %v1206_v55  ;;  %v7544_v55 = vld [vmem:[#allocation2 + $0x98] sm:$0xff] }
 0x3a2   :  { %v5895_v41 = vpop.eup %5894  ;;  %205 = vperm.xlu0 %5778, %v7504_v30   ;;  %v1236_v5 = vmul.f32 %v7384_v53, %v1207_v51 }
 0x3a3   :  { %v1264_v16 = vadd.f32 %v7398_v58, %v1235_v6  ;;  %v1208_v36 = vmul.f32 %v5895_v41, %v7327_v4 }
 0x3a4   :  { %v1265_v43 = vadd.f32 %v7398_v58, %v1236_v5 }
 0x3a5   :  { %180 = vperm.xlu1 %5779, %v7511_v24   ;;  %v1282_v26 = vpack.c.bf16 %v1264_v16, %v1263_v32  ;;  %v1237_v13 = vmul.f32 %v7384_v53, %v1208_v36  ;;  %v5788_v36 = vld [vmem:[#allocation10 + $0x34] ss:$8 sps:$4 sm:$0xff]  }
 0x3a6   :  { %v5897_v63 = vpop.eup %5896  ;;  %210 = vperm.xlu0 %5778, %v7515_v56   ;;  %2076 = vmatprep.subr.bf16.mxu0 %v5788_v36 }
 0x3a7   :  { %5667 = vmatmul.mubr.msk.bf16.gmra.mxu1 %vm891_vm3, %v1282_v26  ;;  %v5899_v62 = vpop.eup %5898  ;;  %v1266_v4 = vadd.f32 %v7398_v58, %v1237_v13  ;;  %v1210_v1 = vmul.f32 %v5897_v63, %v7341_v54  ;;  %v7537_v54 = vld [vmem:[#allocation2 + $0x90] sm:$0xff] }
 0x3a8   :  { %5670 = vmatprep.mubr.msk.bf16.mxu1 %vm6555_vm2, %v10587_v40  ;;  %v1209_v2 = vmul.f32 %v5899_v62, %v7323_v12  ;;  %v5786_v13 = vld [vmem:[#allocation10 + $0x30] ss:$8 sps:$4 sm:$0xff]   ;;  %v5791_v62 = vld [vmem:[#allocation10 + $0x24] ss:$8 sps:$4 sm:$0xff]  }
 0x3a9   :  { %195 = vperm.xlu1 %5779, %v7522_v27   ;;  %v1283_v50 = vpack.c.bf16 %v1266_v4, %v1265_v43  ;;  %v1239_v0 = vmul.f32 %v7384_v53, %v1210_v1  ;;  %2077 = vmatpush1.bf16.msra.mxu0 %v5786_v13  ;;  %v5789_v1 = vld [vmem:[#allocation10 + $0x20] ss:$8 sps:$4 sm:$0xff]  }
 0x3aa   :  { %v5901_v44 = vpop.eup %5900  ;;  %v1238_v39 = vmul.f32 %v7384_v53, %v1209_v2  ;;  %2078 = vmatprep.subr.bf16.mxu0 %v5791_v62 }
 0x3ab   :  { %v5903_v15 = vpop.eup %5902  ;;  %v1268_v12 = vadd.f32 %v7398_v58, %v1239_v0  ;;  %v1212_v21 = vmul.f32 %v5901_v44, %v7351_v48  ;;  %v5792_v44 = vld [vmem:[#allocation10 + $0x10] ss:$8 sps:$4 sm:$0xff]  }
 0x3ac   :  { %v1267_v37 = vadd.f32 %v7398_v58, %v1238_v39  ;;  %v1211_v33 = vmul.f32 %v5903_v15, %v7337_v38 }
 0x3ad   :  { %200 = vperm.xlu1 %5779, %v7529_v42   ;;  %v1241_v14 = vmul.f32 %v7384_v53, %v1212_v21  ;;  %2079 = vmatpush1.bf16.msra.mxu0 %v5789_v1  ;;  %v5795_v21 = vld [vmem:[#allocation10] ss:$8 sps:$4 sm:$0xff]  }
 0x3ae   :  { %v1284_v31 = vpack.c.bf16 %v1268_v12, %v1267_v37  ;;  %v1240_v6 = vmul.f32 %v7384_v53, %v1211_v33  ;;  %v5797_v12 = vld [vmem:[#allocation10 + $0x4] ss:$8 sps:$4 sm:$0xff]  }
 0x3af   :  { %5671 = vmatmul.mubr.msk.bf16.gmra.mxu1 %vm891_vm3, %v1283_v50  ;;  %v1270_v48 = vadd.f32 %v7398_v58, %v1241_v14  ;;  %v5794_v50 = vld [vmem:[#allocation10 + $0x14] ss:$8 sps:$4 sm:$0xff]   ;;  %v10608_v14 = vmov 0  }
 0x3b0   :  { %5674 = vmatprep.mubr.msk.bf16.mxu1 %vm6555_vm2, %v10587_v40  ;;  %v1269_v41 = vadd.f32 %v7398_v58, %v1240_v6  ;;  %2080 = vmatprep.subr.bf16.mxu0 %v5794_v50 }
 0x3b1   :  { %215 = vperm.xlu1 %5779, %v7537_v54   ;;  %2081 = vmatpush1.bf16.msra.mxu0 %v5792_v44 }
 0x3b2   :  { %v1285_v32 = vpack.c.bf16 %v1270_v48, %v1269_v41  ;;  %2082 = vmatprep.subr.bf16.mxu0 %v5797_v12  ;;  %2100 = vmatprep.mubr.bf16.mxu0 %v10608_v14 }
 0x3b5   :  { %220 = vperm.xlu1 %5779, %v7544_v55   ;;  %2083 = vmatpush1.bf16.msra.mxu0 %v5795_v21 }
 0x3b6   :  { %5694 = vmatprep.subr.bf16.mxu0 %v10587_v40 }
 0x3b7   :  { %5675 = vmatmul.mubr.msk.bf16.gmra.mxu1 %vm891_vm3, %v1284_v31 }
 0x3b8   :  { %5678 = vmatprep.mubr.msk.bf16.mxu1 %vm6555_vm2, %v10587_v40 }
 0x3bf   :  { %5679 = vmatmul.mubr.msk.bf16.gmra.mxu1 %vm891_vm3, %v1285_v32 }
 0x3c0   :  { %5682 = vmatprep.mubr.msk.bf16.mxu1 %vm6555_vm2, %v10587_v40 }
 0x3ed   :  { %v1105_v38 = vpop.xlane.xlu1 %1104 }
 0x3ee   :  { %v1138_v16 = vmul.f32 0.015625, %v1105_v38 }
 0x3f0   :  { %v1163_v51 = vadd.f32 1e-05, %v1138_v16 }
 0x3f1   :  { %v1108_v26 = vpop.xlane.xlu0 %1107 }
 0x3f2   :  { %5904 = vrsqrt.f32 %v1163_v51  ;;  %v1139_v63 = vmul.f32 0.015625, %v1108_v26 }
 0x3f4   :  { %v1164_v5 = vadd.f32 1e-05, %v1139_v63 }
 0x3f5   :  { %v1111_v4 = vpop.xlane.xlu1 %1110 }
 0x3f6   :  { %5906 = vrsqrt.f32 %v1164_v5  ;;  %v1140_v43 = vmul.f32 0.015625, %v1111_v4 }
 0x3f8   :  { %v1165_v2 = vadd.f32 1e-05, %v1140_v43 }
 0x3f9   :  { %v1114_v0 = vpop.xlane.xlu0 %1113 }
 0x3fa   :  { %5908 = vrsqrt.f32 %v1165_v2  ;;  %v1141_v15 = vmul.f32 0.015625, %v1114_v0 }
 0x3fc   :  { %v1166_v39 = vadd.f32 1e-05, %v1141_v15 }
 0x3fe   :  { %5910 = vrsqrt.f32 %v1166_v39 }
 0x3ff   :  { %v5905_v37 = vpop.eup %5904 }
 0x400   :  { %v1213_v33 = vmul.f32 %v5905_v37, %v7360_v60  ;;  %v7589_v37 = vld [vmem:[#allocation2 + $0xa0] sm:$0xff] }
 0x401   :  { %v126_v31 = vpop.permute.xlu0 %125 }
 0x402   :  { %v1242_v41 = vmul.f32 %v7384_v53, %v1213_v33  ;;  %v7564_v26 = vmul.f32 %v7432_v59, %v126_v31 }
 0x403   :  { %v5907_v6 = vpop.eup %5906 }
 0x404   :  { %v1214_v48 = vmul.f32 %v5907_v6, %v7366_v10  ;;  %10706 = vst [vmem:[#allocation17_spill] sm:$0xff] %v7564_v26  ;;  %v1271_v13 = vadd.f32 %v7398_v58, %v1242_v41 }
 0x405   :  { %v146_v32 = vpop.permute.xlu0 %145  ;;  %v1117_v38 = vpop.xlane.xlu1 %1116 }
 0x406   :  { %v1142_v16 = vmul.f32 0.015625, %v1117_v38  ;;  %v1243_v51 = vmul.f32 %v7384_v53, %v1214_v48  ;;  %v7593_v31 = vmul.f32 %v7441_v25, %v146_v32 }
 0x407   :  { %v5909_v36 = vpop.eup %5908 }
 0x408   :  { %v1167_v60 = vadd.f32 1e-05, %v1142_v16  ;;  %v1272_v63 = vadd.f32 %v7398_v58, %v1243_v51  ;;  %v1215_v5 = vmul.f32 %v5909_v36, %v7374_v47  ;;  %10710 = vst [vmem:[#allocation21_spill] sm:$0xff] %v7593_v31 }
 0x409   :  { %v151_v62 = vpop.permute.xlu0 %150  ;;  %v131_v10 = vpop.permute.xlu1 %130 }
 0x40a   :  { %5912 = vrsqrt.f32 %v1167_v60  ;;  %v7570_v4 = vmul.f32 %v7447_v49, %v131_v10  ;;  %v1286_v1 = vpack.c.bf16 %v1272_v63, %v1271_v13  ;;  %v1244_v50 = vmul.f32 %v7384_v53, %v1215_v5  ;;  %v7617_v60 = vld [vmem:[#allocation2 + $0xb0] sm:$0xff]  ;;  %v7631_v10 = vld [vmem:[#allocation2 + $0xb8] sm:$0xff] }
 0x40b   :  { %v5911_v43 = vpop.eup %5910  ;;  %v7596_v6 = vmul.f32 %v7450_v3, %v151_v62 }
 0x40c   :  { %10707 = vst [vmem:[#allocation18_spill] sm:$0xff] %v7570_v4  ;;  %v1929_v2 = vpack.c.bf16 %v7570_v4, %v7564_v26  ;;  %5683 = vmatmul.mubr.msk.bf16.gmra.mxu1 %vm891_vm3, %v1286_v1  ;;  %v1216_v59 = vmul.f32 %v5911_v43, %v7390_v28  ;;  %v1273_v49 = vadd.f32 %v7398_v58, %v1244_v50 }
 0x40d   :  { %v166_v0 = vpop.permute.xlu0 %165  ;;  %v136_v44 = vpop.permute.xlu1 %135  ;;  %5686 = vmatprep.mubr.msk.bf16.mxu1 %vm6555_vm2, %v10587_v40  ;;  %10711 = vst [vmem:[#allocation22_spill] sm:$0xff] %v7596_v6  ;;  %v1931_v3 = vpack.c.bf16 %v7596_v6, %v7593_v31 }
 0x40e   :  { %1963 = vrot.lane.b32.xlu0 %v1929_v2, %s6558_s3  ;;  %v1245_v47 = vmul.f32 %v7384_v53, %v1216_v59  ;;  %v7584_v28 = vmul.f32 %v7458_v22, %v136_v44  ;;  %v7614_v36 = vmul.f32 %v7462_v20, %v166_v0 }
 0x410   :  { %v1274_v15 = vadd.f32 %v7398_v58, %v1245_v47  ;;  %10708 = vst [vmem:[#allocation19_spill] sm:$0xff] %v7584_v28  ;;  %10713 = vst [vmem:[#allocation24_spill] sm:$0xff] %v7614_v36 }
 0x411   :  { %v171_v39 = vpop.permute.xlu0 %170  ;;  %v141_v12 = vpop.permute.xlu1 %140 }
 0x412   :  { %v7587_v21 = vmul.f32 %v7468_v29, %v141_v12  ;;  %225 = vperm.xlu0 %5778, %v7589_v37   ;;  %v1287_v33 = vpack.c.bf16 %v1274_v15, %v1273_v49  ;;  %v7603_v29 = vld [vmem:[#allocation2 + $0xa8] sm:$0xff]  ;;  %v7610_v32 = vmul.f32 %v7471_v45, %v171_v39 }
 0x414   :  { %10709 = vst [vmem:[#allocation20_spill] sm:$0xff] %v7587_v21  ;;  %v1930_v48 = vpack.c.bf16 %v7587_v21, %v7584_v28  ;;  %5687 = vmatmul.mubr.msk.bf16.gmra.mxu1 %vm891_vm3, %v1287_v33  ;;  %10712 = vst [vmem:[#allocation23_spill] sm:$0xff] %v7610_v32  ;;  %v1933_v63 = vpack.c.bf16 %v7610_v32, %v7614_v36 }
 0x415   :  { %v186_v22 = vpop.permute.xlu0 %185  ;;  %v156_v41 = vpop.permute.xlu1 %155  ;;  %5690 = vmatprep.mubr.msk.bf16.mxu1 %vm6555_vm2, %v10587_v40 }
 0x416   :  { %230 = vperm.xlu0 %5778, %v7603_v29   ;;  %1965 = vrot.lane.b32.xlu1 %v1930_v48, %s6558_s3  ;;  %v7628_v20 = vmul.f32 %v7479_v61, %v156_v41  ;;  %v7642_v61 = vmul.f32 %v7483_v11, %v186_v22 }
 0x417   :  { %v5913_v25 = vpop.eup %5912 }
 0x418   :  { %v1217_v38 = vmul.f32 %v5913_v25, %v7410_v9  ;;  %10715 = vst [vmem:[#allocation26_spill] sm:$0xff] %v7628_v20  ;;  %10717 = vst [vmem:[#allocation28_spill] sm:$0xff] %v7642_v61 }
 0x419   :  { %v191_v16 = vpop.permute.xlu0 %190  ;;  %v161_v51 = vpop.permute.xlu1 %160 }
 0x41a   :  { %1967 = vrot.lane.b32.xlu0 %v1931_v3, %s6558_s3  ;;  %235 = vperm.xlu1 %5779, %v7617_v60   ;;  %v1246_v13 = vmul.f32 %v7384_v53, %v1217_v38  ;;  %v7624_v45 = vmul.f32 %v7489_v35, %v161_v51  ;;  %v7635_v1 = vmul.f32 %v7492_v57, %v191_v16  ;;  %v7650_v57 = vld [vmem:[#allocation2 + $0xc0] sm:$0xff]  ;;  %v1299_v38 = vsub.s32 5, %v6869_v8 }
 0x41c   :  { %10714 = vst [vmem:[#allocation25_spill] sm:$0xff] %v7624_v45  ;;  %v1275_v9 = vadd.f32 %v7398_v58, %v1246_v13  ;;  %10716 = vst [vmem:[#allocation27_spill] sm:$0xff] %v7635_v1  ;;  %v1932_v35 = vpack.c.bf16 %v7624_v45, %v7628_v20  ;;  %v1935_v50 = vpack.c.bf16 %v7635_v1, %v7642_v61 }
 0x41d   :  { %v206_v5 = vpop.permute.xlu0 %205  ;;  %v176_v62 = vpop.permute.xlu1 %175 }
 0x41e   :  { %1971 = vrot.lane.b32.xlu0 %v1933_v63, %s6558_s3  ;;  %240 = vperm.xlu1 %5779, %v7631_v10   ;;  %v1288_v53 = vpack.c.bf16 %v1275_v9, %v1275_v9  ;;  %v7645_v2 = vmul.f32 %v7500_v17, %v176_v62  ;;  %v7662_v44 = vmul.f32 %v7504_v30, %v206_v5 }
 0x420   :  { %5691 = vmatmul.mubr.msk.bf16.gmra.mxu1 %vm891_vm3, %v1288_v53  ;;  %10718 = vst [vmem:[#allocation29_spill] sm:$0xff] %v7645_v2  ;;  %10721 = vst [vmem:[#allocation32_spill] sm:$0xff] %v7662_v44 }
 0x421   :  { %v211_v58 = vpop.permute.xlu0 %210  ;;  %v181_v43 = vpop.permute.xlu1 %180  ;;  %2340 = vmatprep.mubr.bf16.mxu1 %v10608_v14 }
 0x422   :  { %v7648_v59 = vmul.f32 %v7511_v24, %v181_v43  ;;  %245 = vperm.xlu0 %5778, %v7650_v57   ;;  %1969 = vrot.lane.b32.xlu1 %v1932_v35, %s6558_s3  ;;  %v7657_v0 = vmul.f32 %v7515_v56, %v211_v58 }
 0x424   :  { %10719 = vst [vmem:[#allocation30_spill] sm:$0xff] %v7648_v59  ;;  %10720 = vst [vmem:[#allocation31_spill] sm:$0xff] %v7657_v0  ;;  %v1934_v11 = vpack.c.bf16 %v7648_v59, %v7645_v2  ;;  %v1937_v24 = vpack.c.bf16 %v7657_v0, %v7662_v44 }
 0x425   :  { %v196_v17 = vpop.permute.xlu1 %195 }
 0x426   :  { %1975 = vrot.lane.b32.xlu0 %v1935_v50, %s6558_s3  ;;  %1973 = vrot.lane.b32.xlu1 %v1934_v11, %s6558_s3  ;;  %v7669_v49 = vmul.f32 %v7522_v27, %v196_v17 }
 0x428   :  { %10722 = vst [vmem:[#allocation33_spill] sm:$0xff] %v7669_v49 }
 0x429   :  { %v201_v47 = vpop.permute.xlu1 %200 }
 0x42a   :  { %v7672_v56 = vmul.f32 %v7529_v42, %v201_v47  ;;  %1979 = vrot.lane.b32.xlu0 %v1937_v24, %s6558_s3 }
 0x42c   :  { %10723 = vst [vmem:[#allocation34_spill] sm:$0xff] %v7672_v56  ;;  %v1936_v30 = vpack.c.bf16 %v7672_v56, %v7669_v49 }
 0x42d   :  { %v216_v15 = vpop.permute.xlu1 %215 }
 0x42e   :  { %1977 = vrot.lane.b32.xlu1 %v1936_v30, %s6558_s3  ;;  %v7679_v12 = vmul.f32 %v7537_v54, %v216_v15 }
 0x430   :  { %10724 = vst [vmem:[#allocation35_spill] sm:$0xff] %v7679_v12 }
 0x431   :  { %v221_v39 = vpop.permute.xlu1 %220 }
 0x432   :  { %v7682_v33 = vmul.f32 %v7544_v55, %v221_v39  ;;  %v7693_v55 = vrot.slane %v7379_v46, %v1299_v38 }
 0x434   :  { %10725 = vst [vmem:[#allocation36_spill] sm:$0xff] %v7682_v33  ;;  %v1938_v27 = vpack.c.bf16 %v7682_v33, %v7679_v12 }
 0x436   :  { %1981 = vrot.lane.b32.xlu0 %v1938_v27, %s6558_s3 }
 0x437   :  { %v7687_v42 = vpop.f32.mrf.mxu1 }
 0x439   :  { %v5644_v48 = vpop.f32.mrf.mxu1 }
 0x43b   :  { %v1401_v22 = vpop.f32.mrf.mxu1 }
 0x43c   :  { %v7698_v13 = vadd.f32 %v1401_v22, %v7693_v55 }
 0x43d   :  { %v5645_v41 = vpop.f32.mrf.mxu1 }
 0x43e   :  { %v10607_v5 = vmax.f32 %v7698_v13, 0.0 }
 0x43f   :  { %v7689_v25 = vpop.f32.mrf.mxu1 }
 0x440   :  { %v1528_v50 = vsel %vm891_vm3, %v10607_v5, 0.0 }
 0x441   :  { %v5648_v3 = vpop.f32.mrf.mxu1 }
 0x443   :  { %v1409_v54 = vpop.f32.mrf.mxu1 }
 0x444   :  { %v7702_v62 = vadd.f32 %v1409_v54, %v7693_v55 }
 0x445   :  { %v5649_v16 = vpop.f32.mrf.mxu1 }
 0x446   :  { %v10598_v58 = vmax.f32 %v7702_v62, 0.0 }
 0x447   :  { %v7695_v51 = vpop.f32.mrf.mxu1 }
 0x448   :  { %v1534_v30 = vsel %vm891_vm3, %v10598_v58, 0.0 }
 0x449   :  { %v5652_v63 = vpop.f32.mrf.mxu1 }
 0x44b   :  { %v1417_v9 = vpop.f32.mrf.mxu1 }
 0x44c   :  { %v7708_v46 = vadd.f32 %v1417_v9, %v7693_v55 }
 0x44d   :  { %v5653_v53 = vpop.f32.mrf.mxu1 }
 0x44e   :  { %v10594_v17 = vmax.f32 %v7708_v46, 0.0 }
 0x44f   :  { %v7704_v35 = vpop.f32.mrf.mxu1 }
 0x450   :  { %v1540_v48 = vsel %vm891_vm3, %v10594_v17, 0.0 }
 0x451   :  { %v5656_v43 = vpop.f32.mrf.mxu1 }
 0x452   :  { %1529 = vadd.xlane.f32.xlu1 %v1528_v50 }
 0x453   :  { %v1425_v11 = vpop.f32.mrf.mxu1 }
 0x454   :  { %v7715_v24 = vadd.f32 %v1425_v11, %v7693_v55 }
 0x455   :  { %v5657_v47 = vpop.f32.mrf.mxu1 }
 0x456   :  { %1535 = vadd.xlane.f32.xlu1 %v1534_v30  ;;  %v10590_v39 = vmax.f32 %v7715_v24, 0.0 }
 0x457   :  { %v7720_v15 = vpop.f32.mrf.mxu1 }
 0x458   :  { %v1546_v3 = vsel %vm891_vm3, %v10590_v39, 0.0 }
 0x459   :  { %v5660_v27 = vpop.f32.mrf.mxu1 }
 0x45a   :  { %1541 = vadd.xlane.f32.xlu1 %v1540_v48 }
 0x45b   :  { %v7726_v22 = vpop.f32.mrf.mxu1 }
 0x45d   :  { %v5661_v41 = vpop.f32.mrf.mxu1 }
 0x45e   :  { %1547 = vadd.xlane.f32.xlu1 %v1546_v3 }
 0x45f   :  { %v7731_v38 = vpop.f32.mrf.mxu1 }
 0x461   :  { %v5664_v54 = vpop.f32.mrf.mxu1 }
 0x463   :  { %v7733_v16 = vpop.f32.mrf.mxu1 }
 0x465   :  { %v5665_v63 = vpop.f32.mrf.mxu1 }
 0x467   :  { %v7735_v9 = vpop.f32.mrf.mxu1 }
 0x469   :  { %v5668_v53 = vpop.f32.mrf.mxu1 }
 0x46b   :  { %v7737_v43 = vpop.f32.mrf.mxu1 }
 0x46d   :  { %v5669_v50 = vpop.f32.mrf.mxu1 }
 0x46f   :  { %v7739_v11 = vpop.f32.mrf.mxu1 }
 0x471   :  { %v5672_v47 = vpop.f32.mrf.mxu1 }
 0x473   :  { %v7741_v30 = vpop.f32.mrf.mxu1 }
 0x475   :  { %v5673_v27 = vpop.f32.mrf.mxu1 }
 0x477   :  { %v7743_v48 = vpop.f32.mrf.mxu1 }
 0x479   :  { %v5676_v41 = vpop.f32.mrf.mxu1 }
 0x47b   :  { %v7745_v3 = vpop.f32.mrf.mxu1 }
 0x47d   :  { %v5677_v54 = vpop.f32.mrf.mxu1 }
 0x47f   :  { %v7747_v23 = vpop.f32.mrf.mxu1 }
 0x480   :  { %v1964_v63 = vpop.permute.xlu0 %1963 }
 0x481   :  { %v5680_v52 = vpop.f32.mrf.mxu1  ;;  %5453 = vmatmul.mubr.msk.bf16.vlgmr.msra.gmra.mxu0 %vm891_vm3, %v1964_v63 }
 0x482   :  { %2110 = vmatprep.mubr.bf16.mxu0 %v10608_v14 }
 0x483   :  { %v7751_v53 = vpop.f32.mrf.mxu1 }
 0x485   :  { %v5681_v50 = vpop.f32.mrf.mxu1 }
 0x488   :  { %v1966_v47 = vpop.permute.xlu1 %1965 }
 0x489   :  { %5454 = vmatmul.mubr.msk.bf16.gmra.mxu0 %vm891_vm3, %v1966_v47 }
 0x48a   :  { %2120 = vmatprep.mubr.bf16.mxu0 %v10608_v14 }
 0x48d   :  { %v226_v27 = vpop.permute.xlu0 %225 }
 0x48e   :  { %v7756_v54 = vmul.f32 %v7589_v37, %v226_v27 }
 0x490   :  { %10726 = vst [vmem:[#allocation37_spill] sm:$0xff] %v7756_v54 }
 0x491   :  { %v231_v41 = vpop.permute.xlu0 %230 }
 0x492   :  { %v7759_v18 = vmul.f32 %v7603_v29, %v231_v41 }
 0x494   :  { %10727 = vst [vmem:[#allocation38_spill] sm:$0xff] %v7759_v18  ;;  %v1939_v52 = vpack.c.bf16 %v7759_v18, %v7756_v54 }
 0x495   :  { %v1968_v63 = vpop.permute.xlu0 %1967  ;;  %v236_v34 = vpop.permute.xlu1 %235 }
 0x496   :  { %1983 = vrot.lane.b32.xlu0 %v1939_v52, %s6558_s3  ;;  %5455 = vmatmul.mubr.msk.bf16.gmra.mxu0 %vm891_vm3, %v1968_v63  ;;  %v7767_v47 = vmul.f32 %v7617_v60, %v236_v34  ;;  %v7781_v34 = vadd.f32 %v7687_v42, %v7693_v55  ;;  %v7788_v63 = vadd.f32 %v7689_v25, %v7693_v55 }
 0x497   :  { %2130 = vmatprep.mubr.bf16.mxu0 %v10608_v14  ;;  %v7803_v25 = vadd.f32 %v7704_v35, %v7693_v55  ;;  %v7819_v35 = vadd.f32 %v7733_v16, %v7693_v55 }
 0x498   :  { %10728 = vst [vmem:[#allocation39_spill] sm:$0xff] %v7767_v47  ;;  %v10600_v52 = vmax.f32 %v7781_v34, 0.0  ;;  %v10733_v54 = vmax.f32 %v7781_v34, 0.0 }
 0x499   :  { %v241_v50 = vpop.permute.xlu1 %240  ;;  %v1972_v41 = vpop.permute.xlu0 %1971 }
 0x49a   :  { %v7770_v37 = vmul.f32 %v7631_v10, %v241_v50  ;;  %v10596_v50 = vmax.f32 %v7788_v63, 0.0  ;;  %v1525_v42 = vsel %vm891_vm3, %v10600_v52, 0.0 }
 0x49c   :  { %10729 = vst [vmem:[#allocation40_spill] sm:$0xff] %v7770_v37  ;;  %v1940_v29 = vpack.c.bf16 %v7770_v37, %v7767_v47 }
 0x49d   :  { %v1970_v27 = vpop.permute.xlu1 %1969  ;;  %v246_v10 = vpop.permute.xlu0 %245 }
 0x49e   :  { %1985 = vrot.lane.b32.xlu1 %v1940_v29, %s6558_s3  ;;  %5456 = vmatmul.mubr.msk.bf16.gmra.mxu0 %vm891_vm3, %v1970_v27  ;;  %v7793_v29 = vadd.f32 %v7695_v51, %v7693_v55  ;;  %v1531_v51 = vsel %vm891_vm3, %v10596_v50, 0.0 }
 0x49f   :  { %2140 = vmatprep.mubr.bf16.mxu0 %v10608_v14 }
 0x4a1   :  { %v1974_v60 = vpop.permute.xlu1 %1973  ;;  %v1976_v27 = vpop.permute.xlu0 %1975 }
 0x4a5   :  { %v1978_v40 = vpop.permute.xlu1 %1977  ;;  %v1980_v39 = vpop.permute.xlu0 %1979 }
 0x4a6   :  { %5457 = vmatmul.mubr.msk.bf16.gmra.mxu0 %vm891_vm3, %v1972_v41  ;;  %v10589_v41 = vmax.f32 %v7793_v29, 0.0 }
 0x4a7   :  { %2150 = vmatprep.mubr.bf16.mxu0 %v10608_v14 }
 0x4ae   :  { %5458 = vmatmul.mubr.msk.bf16.gmra.mxu0 %vm891_vm3, %v1974_v60  ;;  %v7810_v60 = vadd.f32 %v7726_v22, %v7693_v55 }
 0x4af   :  { %2160 = vmatprep.mubr.bf16.mxu0 %v10608_v14 }
 0x4b0   :  { %v10592_v7 = vmax.f32 %v7810_v60, 0.0 }
 0x4b2   :  { %v1552_v16 = vsel %vm891_vm3, %v10592_v7, 0.0 }
 0x4b5   :  { %1526 = vadd.xlane.f32.xlu0 %v1525_v42  ;;  %v10591_v42 = vmax.f32 %v7803_v25, 0.0 }
 0x4b6   :  { %5459 = vmatmul.mubr.msk.bf16.gmra.mxu0 %vm891_vm3, %v1976_v27  ;;  %v1537_v27 = vsel %vm891_vm3, %v10589_v41, 0.0  ;;  %v7829_v41 = vadd.f32 %v7735_v9, %v7693_v55 }
 0x4b7   :  { %2170 = vmatprep.mubr.bf16.mxu0 %v10608_v14  ;;  %v1543_v22 = vsel %vm891_vm3, %v10591_v42, 0.0 }
 0x4b9   :  { %1532 = vadd.xlane.f32.xlu0 %v1531_v51  ;;  %v10593_v51 = vmax.f32 %v7819_v35, 0.0 }
 0x4bb   :  { %v1558_v42 = vsel %vm891_vm3, %v10593_v51, 0.0 }
 0x4bd   :  { %1538 = vadd.xlane.f32.xlu0 %v1537_v27  ;;  %v7837_v27 = vadd.f32 %v7739_v11, %v7693_v55 }
 0x4be   :  { %5460 = vmatmul.mubr.msk.bf16.gmra.mxu0 %vm891_vm3, %v1978_v40  ;;  %v10595_v40 = vmax.f32 %v7829_v41, 0.0 }
 0x4bf   :  { %2180 = vmatprep.mubr.bf16.mxu0 %v10608_v14  ;;  %v10597_v9 = vmax.f32 %v7837_v27, 0.0 }
 0x4c0   :  { %v1561_v11 = vsel %vm891_vm3, %v10595_v40, 0.0  ;;  %v7864_v40 = vmul.f32 %v7650_v57, %v246_v10 }
 0x4c1   :  { %1544 = vadd.xlane.f32.xlu0 %v1543_v22  ;;  %v7847_v22 = vadd.f32 %v7745_v3, %v7693_v55  ;;  %v1567_v51 = vsel %vm891_vm3, %v10597_v9, 0.0 }
 0x4c2   :  { %1553 = vadd.xlane.f32.xlu1 %v1552_v16  ;;  %10730 = vst [vmem:[#allocation41_spill] sm:$0xff] %v7864_v40 }
 0x4c3   :  { %v10599_v7 = vmax.f32 %v7847_v22, 0.0 }
 0x4c5   :  { %v1576_v50 = vsel %vm891_vm3, %v10599_v7, 0.0 }
 0x4c6   :  { %1559 = vadd.xlane.f32.xlu1 %v1558_v42  ;;  %5461 = vmatmul.mubr.msk.bf16.gmra.mxu0 %vm891_vm3, %v1980_v39  ;;  %v7855_v42 = vadd.f32 %v7747_v23, %v7693_v55  ;;  %v1982_v39 = vpop.permute.xlu0 %1981 }
 0x4c7   :  { %2190 = vmatprep.mubr.bf16.mxu0 %v10608_v14 }
 0x4ca   :  { %1562 = vadd.xlane.f32.xlu1 %v1561_v11  ;;  %v10601_v11 = vmax.f32 %v7855_v42, 0.0 }
 0x4cc   :  { %v1478_v16 = vpop.f32.mrf.mxu1  ;;  %v1579_v57 = vsel %vm891_vm3, %v10601_v11, 0.0 }
 0x4cd   :  { %v7867_v23 = vadd.f32 %v1478_v16, %v7693_v55 }
 0x4ce   :  { %v5684_v17 = vpop.f32.mrf.mxu1  ;;  %1568 = vadd.xlane.f32.xlu1 %v1567_v51  ;;  %5462 = vmatmul.mubr.msk.bf16.gmra.mxu0 %vm891_vm3, %v1982_v39  ;;  %v1941_v51 = vpack.c.bf16 %v7864_v40, %v7864_v40 }
 0x4cf   :  { %2200 = vmatprep.mubr.bf16.mxu0 %v10608_v14  ;;  %v10604_v39 = vmax.f32 %v7867_v23, 0.0 }
 0x4d0   :  { %v1481_v3 = vpop.f32.mrf.mxu1 }
 0x4d1   :  { %v1585_v7 = vsel %vm891_vm3, %v10604_v39, 0.0  ;;  %v7926_v39 = vadd.f32 %v7743_v48, %v7693_v55  ;;  %v7941_v14 = vadd.f32 %v1481_v3, %v7693_v55 }
 0x4d2   :  { %v5685_v9 = vpop.f32.mrf.mxu1  ;;  %1577 = vadd.xlane.f32.xlu1 %v1576_v50 }
 0x4d3   :  { %v4437_v9 = vand.u32 127, %v600_v19 }
 0x4d4   :  { %v1486_v17 = vpop.f32.mrf.mxu1 }
 0x4d5   :  { %v7876_v58 = vadd.f32 %v1486_v17, %v7693_v55 }
 0x4d6   :  { %v5688_v10 = vpop.f32.mrf.mxu1  ;;  %1580 = vadd.xlane.f32.xlu1 %v1579_v57 }
 0x4d7   :  { %1987 = vrot.lane.b32.xlu0 %v1941_v51, %s6558_s3  ;;  %v10603_v16 = vmax.f32 %v7876_v58, 0.0 }
 0x4d8   :  { %v1489_v50 = vpop.f32.mrf.mxu1 }
 0x4d9   :  { %v1591_v17 = vsel %vm891_vm3, %v10603_v16, 0.0 }
 0x4da   :  { %v5689_v52 = vpop.f32.mrf.mxu1  ;;  %1586 = vadd.xlane.f32.xlu1 %v1585_v7 }
 0x4db   :  { %4463 = vrot.lane.b32.xlu0 %v4437_v9, %s6559_s12  ;;  %v7900_v9 = vadd.f32 %v7720_v15, %v7693_v55 }
 0x4dd   :  { %v10746_v56 = vmax.f32 %v7900_v9, 0.0 }
 0x4de   :  { %1592 = vadd.xlane.f32.xlu1 %v1591_v17  ;;  %v10605_v17 = vmax.f32 %v7900_v9, 0.0 }
 0x4e0   :  { %v1494_v51 = vpop.f32.mrf.mxu1 }
 0x4e1   :  { %v7892_v19 = vadd.f32 %v1494_v51, %v7693_v55  ;;  %v7905_v51 = vadd.f32 %v7731_v38, %v7693_v55 }
 0x4e2   :  { %v5692_v57 = vpop.f32.mrf.mxu1 }
 0x4e3   :  { %v10602_v10 = vmax.f32 %v7892_v19, 0.0  ;;  %v10606_v57 = vmax.f32 %v7905_v51, 0.0 }
 0x4e4   :  { %v1497_v11 = vpop.f32.mrf.mxu1 }
 0x4e5   :  { %v1597_v7 = vsel %vm891_vm3, %v10602_v10, 0.0  ;;  %v7910_v11 = vadd.f32 %v7737_v43, %v7693_v55  ;;  %v7918_v10 = vadd.f32 %v7741_v30, %v7693_v55  ;;  %v1555_v38 = vsel %vm891_vm3, %v10606_v57, 0.0 }
 0x4e6   :  { %v5693_v52 = vpop.f32.mrf.mxu1  ;;  %1598 = vadd.xlane.f32.xlu1 %v1597_v7  ;;  %v1549_v7 = vsel %vm891_vm3, %v10605_v17, 0.0  ;;  %v10614_v30 = vmax.f32 %v7926_v39, 0.0  ;;  %v7934_v17 = vadd.f32 %v7751_v53, %v7693_v55  ;;  %v10731_v53 = vmov 0  }
 0x4e7   :  { %v1530_v52 = vpop.xlane.xlu1 %1529  ;;  %v10610_v15 = vmax.f32 %v7910_v11, 0.0  ;;  %v10611_v43 = vmax.f32 %v7918_v10, 0.0 }
 0x4e8   :  { %v10613_v48 = vmax.f32 %v7934_v17, 0.0 }
 0x4ea   :  { %v1582_v3 = vsel %vm891_vm3, %v10613_v48, 0.0  ;;  %v5800_v48 = vld [vmem:[#allocation8 + $0x34] ss:$8 sps:$4 sm:$0xff]  }
 0x4eb   :  { %v1536_v16 = vpop.xlane.xlu1 %1535  ;;  %2316 = vmatprep.subr.bf16.mxu1 %v5800_v48 }
 0x4ef   :  { %v1542_v57 = vpop.xlane.xlu1 %1541 }
 0x4fa   :  { %1550 = vadd.xlane.f32.xlu0 %v1549_v7  ;;  %v1564_v7 = vsel %vm891_vm3, %v10610_v15, 0.0  ;;  %v1548_v15 = vpop.xlane.xlu1 %1547 }
 0x4fe   :  { %1556 = vadd.xlane.f32.xlu0 %v1555_v38  ;;  %v1570_v38 = vsel %vm891_vm3, %v10611_v43, 0.0  ;;  %v10617_v43 = vmax.f32 %v7941_v14, 0.0 }
 0x502   :  { %1565 = vadd.xlane.f32.xlu0 %v1564_v7  ;;  %v1573_v7 = vsel %vm891_vm3, %v10614_v30, 0.0  ;;  %v5803_v30 = vld [vmem:[#allocation8 + $0x24] ss:$8 sps:$4 sm:$0xff]  }
 0x506   :  { %1571 = vadd.xlane.f32.xlu0 %v1570_v38  ;;  %v7950_v38 = vadd.f32 %v1489_v50, %v7693_v55  ;;  %v5798_v50 = vld [vmem:[#allocation8 + $0x30] ss:$8 sps:$4 sm:$0xff]  }
 0x507   :  { %2317 = vmatpush1.bf16.msra.mxu1 %v5798_v50 }
 0x508   :  { %v1984_v5 = vpop.permute.xlu0 %1983  ;;  %2318 = vmatprep.subr.bf16.mxu1 %v5803_v30  ;;  %v10734_v30 = vmax.f32 %v7702_v62, 0.0  ;;  %v10736_v62 = vmax.f32 %v7708_v46, 0.0 }
 0x509   :  { %5463 = vmatmul.mubr.msk.bf16.gmra.mxu0 %vm891_vm3, %v1984_v5  ;;  %v10620_v5 = vmax.f32 %v7950_v38, 0.0 }
 0x50a   :  { %1574 = vadd.xlane.f32.xlu0 %v1573_v7  ;;  %2210 = vmatprep.mubr.bf16.mxu0 %v10731_v53  ;;  %v1588_v7 = vsel %vm891_vm3, %v10617_v43, 0.0  ;;  %v1603_v43 = vmul.f32 0.015625, %v1536_v16  ;;  %v10735_v16 = vmax.f32 %v7788_v63, 0.0 }
 0x50b   :  { %v1594_v55 = vsel %vm891_vm3, %v10620_v5, 0.0 }
 0x50c   :  { %v7976_v50 = vsub.f32 %v10734_v30, %v1603_v43 }
 0x50e   :  { %1583 = vadd.xlane.f32.xlu0 %v1582_v3  ;;  %v5801_v3 = vld [vmem:[#allocation8 + $0x20] ss:$8 sps:$4 sm:$0xff]   ;;  %v1653_v63 = vmul.f32 %v7976_v50, %v7976_v50 }
 0x50f   :  { %2319 = vmatpush1.bf16.msra.mxu1 %v5801_v3 }
 0x510   :  { %v1986_v40 = vpop.permute.xlu1 %1985 }
 0x511   :  { %5464 = vmatmul.mubr.msk.bf16.gmra.mxu0 %vm891_vm3, %v1986_v40  ;;  %v1601_v40 = vmul.f32 0.015625, %v1530_v52  ;;  %v1605_v52 = vmul.f32 0.015625, %v1542_v57 }
 0x512   :  { %1589 = vadd.xlane.f32.xlu0 %v1588_v7  ;;  %2220 = vmatprep.mubr.bf16.mxu0 %v10731_v53  ;;  %v10732_v7 = vmax.f32 %v7698_v13, 0.0 }
 0x513   :  { %v7989_v43 = vsub.f32 %v10736_v62, %v1605_v52 }
 0x514   :  { %v7966_v18 = vsub.f32 %v10732_v7, %v1601_v40 }
 0x516   :  { %1595 = vadd.xlane.f32.xlu0 %v1594_v55 }
 0x53e   :  { %v1527_v37 = vpop.xlane.xlu0 %1526 }
 0x53f   :  { %v1600_v47 = vmul.f32 0.015625, %v1527_v37  ;;  %v1607_v37 = vmul.f32 0.015625, %v1548_v15  ;;  %v10738_v15 = vmax.f32 %v7793_v29, 0.0  ;;  %v10739_v29 = vmax.f32 %v7803_v25, 0.0 }
 0x540   :  { %v10741_v25 = vmax.f32 %v7810_v60, 0.0 }
 0x541   :  { %v7970_v5 = vsub.f32 %v10733_v54, %v1600_v47  ;;  %v1651_v54 = vmul.f32 %v7966_v18, %v7966_v18 }
 0x542   :  { %v1533_v55 = vpop.xlane.xlu0 %1532 }
 0x543   :  { %v1602_v33 = vmul.f32 0.015625, %v1533_v55  ;;  %v1650_v48 = vmul.f32 %v7970_v5, %v7970_v5 }
 0x545   :  { %v7980_v13 = vsub.f32 %v10735_v16, %v1602_v33  ;;  %v1675_v3 = vsel %vm891_vm3, %v1650_v48, 0.0  ;;  %v10737_v33 = vmax.f32 %v7715_v24, 0.0  ;;  %v1678_v48 = vsel %vm891_vm3, %v1651_v54, 0.0 }
 0x546   :  { %1676 = vadd.xlane.f32.xlu0 %v1675_v3  ;;  %v1539_v47 = vpop.xlane.xlu0 %1538  ;;  %v1684_v24 = vsel %vm891_vm3, %v1653_v63, 0.0 }
 0x547   :  { %v1604_v34 = vmul.f32 0.015625, %v1539_v47  ;;  %v1652_v40 = vmul.f32 %v7980_v13, %v7980_v13  ;;  %v7995_v57 = vsub.f32 %v10737_v33, %v1607_v37  ;;  %v1655_v37 = vmul.f32 %v7989_v43, %v7989_v43 }
 0x548   :  { %v10740_v33 = vmov 0.0  }
 0x549   :  { %v7999_v7 = vsub.f32 %v10738_v15, %v1604_v34  ;;  %v1681_v55 = vsel %vm891_vm3, %v1652_v40, 0.0  ;;  %v1657_v34 = vmul.f32 %v7995_v57, %v7995_v57  ;;  %v1690_v63 = vsel %vm891_vm3, %v1655_v37, 0.0 }
 0x54a   :  { %v1545_v30 = vpop.xlane.xlu0 %1544  ;;  %1682 = vadd.xlane.f32.xlu1 %v1681_v55  ;;  %1679 = vadd.xlane.f32.xlu0 %v1678_v48 }
 0x54b   :  { %v1606_v46 = vmul.f32 0.015625, %v1545_v30  ;;  %v1554_v52 = vpop.xlane.xlu1 %1553  ;;  %v1654_v16 = vmul.f32 %v7999_v7, %v7999_v7  ;;  %v1696_v48 = vsel %vm891_vm3, %v1657_v34, 0.0 }
 0x54c   :  { %v1609_v47 = vmul.f32 0.015625, %v1554_v52  ;;  %v10742_v52 = vmax.f32 %v7819_v35, 0.0 }
 0x54d   :  { %v8010_v3 = vsub.f32 %v10739_v29, %v1606_v46  ;;  %v1687_v54 = vsel %vm891_vm3, %v1654_v16, 0.0  ;;  %v8026_v46 = vpop.f32.mrf.mxu0 }
 0x54e   :  { %v1988_v40 = vpop.permute.xlu0 %1987  ;;  %1688 = vadd.xlane.f32.xlu0 %v1687_v54  ;;  %1685 = vadd.xlane.f32.xlu1 %v1684_v24  ;;  %v8021_v15 = vsub.f32 %v10741_v25, %v1609_v47 }
 0x54f   :  { %5465 = vmatmul.mubr.msk.bf16.gmra.mxu0 %vm891_vm3, %v1988_v40  ;;  %v1560_v62 = vpop.xlane.xlu1 %1559  ;;  %v1656_v30 = vmul.f32 %v8010_v3, %v8010_v3  ;;  %v8035_v37 = vpop.f32.mrf.mxu0 }
 0x550   :  { %5702 = vmatprep.mubr.msk.bf16.mxu0 %vm6555_vm2, %v10740_v33  ;;  %v1611_v55 = vmul.f32 0.015625, %v1560_v62  ;;  %v1659_v60 = vmul.f32 %v8021_v15, %v8021_v15  ;;  %v5806_v62 = vld [vmem:[#allocation8 + $0x14] ss:$8 sps:$4 sm:$0xff]  }
 0x551   :  { %v1693_v24 = vsel %vm891_vm3, %v1656_v30, 0.0  ;;  %v8040_v54 = vpop.f32.mrf.mxu0  ;;  %2320 = vmatprep.subr.bf16.mxu1 %v5806_v62 }
 0x552   :  { %1691 = vadd.xlane.f32.xlu0 %v1690_v63  ;;  %1697 = vadd.xlane.f32.xlu1 %v1696_v48  ;;  %v8030_v16 = vsub.f32 %v10742_v52, %v1611_v55  ;;  %v1702_v29 = vsel %vm891_vm3, %v1659_v60, 0.0  ;;  %v5804_v63 = vld [vmem:[#allocation8 + $0x10] ss:$8 sps:$4 sm:$0xff]   ;;  %v5809_v55 = vld [vmem:[#allocation8 + $0x4] ss:$8 sps:$4 sm:$0xff]   ;;  %v8061_v62 = vpop.permute.xlu0 %4463 }
 0x553   :  { %v8043_v34 = vpop.f32.mrf.mxu0  ;;  %2321 = vmatpush1.bf16.msra.mxu1 %v5804_v63  ;;  %v5807_v48 = vld [vmem:[#allocation8] ss:$8 sps:$4 sm:$0xff]   ;;  %10744 = vst [vmem:[#allocation43_spill] sm:$0xff] %v8061_v62  ;;  %v10747_v62 = vmax.f32 %v7829_v41, 0.0  ;;  %v10750_v41 = vmax.f32 %v7837_v27, 0.0  ;;  %v10752_v27 = vmax.f32 %v7847_v22, 0.0 }
 0x554   :  { %v1661_v47 = vmul.f32 %v8030_v16, %v8030_v16  ;;  %2322 = vmatprep.subr.bf16.mxu1 %v5809_v55 }
 0x555   :  { %v8045_v40 = vpop.f32.mrf.mxu0 }
 0x556   :  { %1694 = vadd.xlane.f32.xlu0 %v1693_v24  ;;  %v1708_v35 = vsel %vm891_vm3, %v1661_v47, 0.0 }
 0x557   :  { %v8047_v25 = vpop.f32.mrf.mxu0  ;;  %2323 = vmatpush1.bf16.msra.mxu1 %v5807_v48 }
 0x559   :  { %v8049_v30 = vpop.f32.mrf.mxu0 }
 0x55a   :  { %1703 = vadd.xlane.f32.xlu0 %v1702_v29  ;;  %v1563_v29 = vpop.xlane.xlu1 %1562 }
 0x55b   :  { %v8051_v52 = vpop.f32.mrf.mxu0  ;;  %v1612_v0 = vmul.f32 0.015625, %v1563_v29  ;;  %v10749_v29 = vmax.f32 %v7905_v51, 0.0 }
 0x55d   :  { %v8053_v24 = vpop.f32.mrf.mxu0  ;;  %v8075_v2 = vsub.f32 %v10747_v62, %v1612_v0 }
 0x55e   :  { %1709 = vadd.xlane.f32.xlu0 %v1708_v35  ;;  %v1569_v63 = vpop.xlane.xlu1 %1568 }
 0x55f   :  { %v8055_v60 = vpop.f32.mrf.mxu0  ;;  %v1614_v32 = vmul.f32 0.015625, %v1569_v63  ;;  %v1662_v0 = vmul.f32 %v8075_v2, %v8075_v2 }
 0x561   :  { %v8057_v47 = vpop.f32.mrf.mxu0  ;;  %v8090_v62 = vsub.f32 %v10750_v41, %v1614_v32  ;;  %v1711_v32 = vsel %vm891_vm3, %v1662_v0, 0.0  ;;  %v10755_v0 = vmax.f32 %v7855_v42, 0.0  ;;  %v10757_v42 = vmax.f32 %v7867_v23, 0.0 }
 0x562   :  { %10743 = vst [vmem:[#allocation42_spill] sm:$0xff] %v8057_v47  ;;  %v1578_v48 = vpop.xlane.xlu1 %1577  ;;  %v1852_v47 = vsub.s32 6, %v6869_v8 }
 0x563   :  { %v8059_v35 = vpop.f32.mrf.mxu0  ;;  %v1617_v63 = vmul.f32 0.015625, %v1578_v48 }
 0x565   :  { %v8063_v33 = vpop.f32.mrf.mxu0  ;;  %v8104_v48 = vsub.f32 %v10752_v27, %v1617_v63 }
 0x566   :  { %10745 = vst [vmem:[#allocation44_spill] sm:$0xff] %v8063_v33 }
 0x567   :  { %v8065_v44 = vpop.f32.mrf.mxu0 }
 0x569   :  { %v8077_v36 = vpop.f32.mrf.mxu0 }
 0x56a   :  { %10748 = vst [vmem:[#allocation45_spill] sm:$0xff] %v8077_v36 }
 0x56b   :  { %v8092_v51 = vpop.f32.mrf.mxu0 }
 0x56d   :  { %v8106_v41 = vpop.f32.mrf.mxu0 }
 0x56e   :  { %10753 = vst [vmem:[#allocation46_spill] sm:$0xff] %v8106_v41 }
 0x583   :  { %v1551_v55 = vpop.xlane.xlu0 %1550 }
 0x584   :  { %v1608_v12 = vmul.f32 0.015625, %v1551_v55 }
 0x586   :  { %v8069_v49 = vsub.f32 %v10746_v56, %v1608_v12  ;;  %v1581_v56 = vpop.xlane.xlu1 %1580 }
 0x587   :  { %v1557_v1 = vpop.xlane.xlu0 %1556  ;;  %v1618_v31 = vmul.f32 0.015625, %v1581_v56 }
 0x588   :  { %v1610_v61 = vmul.f32 0.015625, %v1557_v1  ;;  %v1658_v59 = vmul.f32 %v8069_v49, %v8069_v49 }
 0x589   :  { %v8119_v63 = vsub.f32 %v10755_v0, %v1618_v31  ;;  %v10759_v0 = vmax.f32 %v7934_v17, 0.0  ;;  %v10760_v17 = vmax.f32 %v7876_v58, 0.0 }
 0x58a   :  { %v8081_v55 = vsub.f32 %v10749_v29, %v1610_v61  ;;  %v1699_v9 = vsel %vm891_vm3, %v1658_v59, 0.0  ;;  %v10751_v61 = vmax.f32 %v7910_v11, 0.0  ;;  %v1587_v6 = vpop.xlane.xlu1 %1586  ;;  %v10754_v11 = vmax.f32 %v7918_v10, 0.0  ;;  %v8121_v10 = vpop.f32.mrf.mxu0 }
 0x58b   :  { %v1566_v12 = vpop.xlane.xlu0 %1565  ;;  %1700 = vadd.xlane.f32.xlu1 %v1699_v9 }
 0x58c   :  { %v1613_v1 = vmul.f32 0.015625, %v1566_v12  ;;  %v1660_v45 = vmul.f32 %v8081_v55, %v8081_v55 }
 0x58e   :  { %v8096_v59 = vsub.f32 %v10751_v61, %v1613_v1  ;;  %v1705_v29 = vsel %vm891_vm3, %v1660_v45, 0.0  ;;  %v1664_v61 = vmul.f32 %v8090_v62, %v8090_v62 }
 0x58f   :  { %v1572_v9 = vpop.xlane.xlu0 %1571  ;;  %1706 = vadd.xlane.f32.xlu1 %v1705_v29 }
 0x590   :  { %v1615_v12 = vmul.f32 0.015625, %v1572_v9  ;;  %v1663_v20 = vmul.f32 %v8096_v59, %v8096_v59  ;;  %v1620_v9 = vmul.f32 0.015625, %v1587_v6 }
 0x592   :  { %v8110_v1 = vsub.f32 %v10754_v11, %v1615_v12  ;;  %v1714_v45 = vsel %vm891_vm3, %v1663_v20, 0.0  ;;  %v10756_v12 = vmax.f32 %v7926_v39, 0.0  ;;  %v1717_v11 = vsel %vm891_vm3, %v1664_v61, 0.0  ;;  %v8139_v61 = vpop.f32.mrf.mxu0 }
 0x593   :  { %v1575_v29 = vpop.xlane.xlu0 %1574  ;;  %1715 = vadd.xlane.f32.xlu0 %v1714_v45  ;;  %1712 = vadd.xlane.f32.xlu1 %v1711_v32  ;;  %v1667_v32 = vmul.f32 %v8104_v48, %v8104_v48  ;;  %v1593_v45 = vpop.xlane.xlu1 %1592  ;;  %v8135_v39 = vsub.f32 %v10757_v42, %v1620_v9  ;;  %10758 = vst [vmem:[#allocation47_spill] sm:$0xff] %v8139_v61 }
 0x594   :  { %v1616_v56 = vmul.f32 0.015625, %v1575_v29  ;;  %v1665_v22 = vmul.f32 %v8110_v1, %v8110_v1 }
 0x595   :  { %v1670_v42 = vmul.f32 %v8135_v39, %v8135_v39 }
 0x596   :  { %v8125_v20 = vsub.f32 %v10756_v12, %v1616_v56  ;;  %v1720_v27 = vsel %vm891_vm3, %v1665_v22, 0.0  ;;  %v1668_v56 = vmul.f32 %v8119_v63, %v8119_v63  ;;  %v1622_v22 = vmul.f32 0.015625, %v1593_v45 }
 0x597   :  { %v1584_v29 = vpop.xlane.xlu0 %1583  ;;  %1721 = vadd.xlane.f32.xlu0 %v1720_v27  ;;  %1718 = vadd.xlane.f32.xlu1 %v1717_v11  ;;  %v1726_v11 = vsel %vm891_vm3, %v1667_v32, 0.0  ;;  %v1735_v58 = vsel %vm891_vm3, %v1670_v42, 0.0 }
 0x598   :  { %v1619_v31 = vmul.f32 0.015625, %v1584_v29  ;;  %v1666_v6 = vmul.f32 %v8125_v20, %v8125_v20  ;;  %v1599_v29 = vpop.xlane.xlu1 %1598  ;;  %v1729_v45 = vsel %vm891_vm3, %v1668_v56, 0.0 }
 0x599   :  { %v1624_v32 = vmul.f32 0.015625, %v1599_v29 }
 0x59a   :  { %v8143_v12 = vsub.f32 %v10759_v0, %v1619_v31  ;;  %v1723_v27 = vsel %vm891_vm3, %v1666_v6, 0.0  ;;  %v8154_v31 = vsub.f32 %v10760_v17, %v1622_v22  ;;  %v8156_v6 = vpop.f32.mrf.mxu0  ;;  %v10761_v0 = vmax.f32 %v7941_v14, 0.0 }
 0x59b   :  { %v1590_v28 = vpop.xlane.xlu0 %1589  ;;  %1724 = vadd.xlane.f32.xlu1 %v1723_v27  ;;  %1727 = vadd.xlane.f32.xlu0 %v1726_v11  ;;  %v10763_v17 = vmax.f32 %v7892_v19, 0.0  ;;  %v10764_v14 = vmax.f32 %v7950_v38, 0.0 }
 0x59c   :  { %v1621_v23 = vmul.f32 0.015625, %v1590_v28  ;;  %v1669_v9 = vmul.f32 %v8143_v12, %v8143_v12  ;;  %v8166_v22 = vpop.f32.mrf.mxu0 }
 0x59d   :  { %10762 = vst [vmem:[#allocation48_spill] sm:$0xff] %v8166_v22  ;;  %v8170_v29 = vsub.f32 %v10763_v17, %v1624_v32 }
 0x59e   :  { %v8160_v27 = vsub.f32 %v10761_v0, %v1621_v23  ;;  %v1732_v28 = vsel %vm891_vm3, %v1669_v9, 0.0  ;;  %v8181_v0 = vpop.f32.mrf.mxu0 }
 0x59f   :  { %v1596_v11 = vpop.xlane.xlu0 %1595  ;;  %1733 = vadd.xlane.f32.xlu1 %v1732_v28  ;;  %1730 = vadd.xlane.f32.xlu0 %v1729_v45  ;;  %v1672_v45 = vmul.f32 %v8154_v31, %v8154_v31  ;;  %v1674_v38 = vmul.f32 %v8170_v29, %v8170_v29 }
 0x5a0   :  { %v1623_v56 = vmul.f32 0.015625, %v1596_v11  ;;  %v1671_v21 = vmul.f32 %v8160_v27, %v8160_v27 }
 0x5a1   :  { %v1741_v32 = vsel %vm891_vm3, %v1672_v45, 0.0  ;;  %v1747_v28 = vsel %vm891_vm3, %v1674_v38, 0.0 }
 0x5a2   :  { %v8174_v23 = vsub.f32 %v10764_v14, %v1623_v56  ;;  %v1738_v9 = vsel %vm891_vm3, %v1671_v21, 0.0  ;;  %v8187_v21 = vpop.f32.mrf.mxu0 }
 0x5a3   :  { %1739 = vadd.xlane.f32.xlu0 %v1738_v9  ;;  %1736 = vadd.xlane.f32.xlu1 %v1735_v58  ;;  %10765 = vst [vmem:[#allocation49_spill] sm:$0xff] %v8187_v21 }
 0x5a4   :  { %v1673_v42 = vmul.f32 %v8174_v23, %v8174_v23  ;;  %v8190_v11 = vpop.f32.mrf.mxu0 }
 0x5a6   :  { %v1744_v19 = vsel %vm891_vm3, %v1673_v42, 0.0  ;;  %v8192_v56 = vpop.f32.mrf.mxu0 }
 0x5a7   :  { %1745 = vadd.xlane.f32.xlu1 %v1744_v19  ;;  %1742 = vadd.xlane.f32.xlu0 %v1741_v32  ;;  %10766 = vst [vmem:[#allocation50_spill] sm:$0xff] %v8192_v56 }
 0x5a8   :  { %v8194_v58 = vpop.f32.mrf.mxu0 }
 0x5aa   :  { %v8196_v17 = vpop.f32.mrf.mxu0 }
 0x5ab   :  { %1748 = vadd.xlane.f32.xlu1 %v1747_v28  ;;  %10767 = vst [vmem:[#allocation51_spill] sm:$0xff] %v8196_v17 }
 0x5ac   :  { %v8198_v14 = vpop.f32.mrf.mxu0 }
 0x5ae   :  { %v8200_v9 = vpop.f32.mrf.mxu0 }
 0x5af   :  { %10768 = vst [vmem:[#allocation52_spill] sm:$0xff] %v8200_v9 }
 0x5b0   :  { %v8202_v45 = vpop.f32.mrf.mxu0 }
 0x5b1   :  { %10769 = vst [vmem:[#allocation53_spill] sm:$0xff] %v8202_v45 }
 0x5b2   :  { %v8204_v42 = vpop.f32.mrf.mxu0 }
 0x5b3   :  { %10770 = vst [vmem:[#allocation54_spill] sm:$0xff] %v8204_v42 }
 0x5b4   :  { %v8206_v19 = vpop.f32.mrf.mxu0 }
 0x5b5   :  { %10771 = vst [vmem:[#allocation55_spill] sm:$0xff] %v8206_v19 }
 0x5b6   :  { %v8208_v28 = vpop.f32.mrf.mxu0 }
 0x5b7   :  { %10772 = vst [vmem:[#allocation56_spill] sm:$0xff] %v8208_v28 }
 0x5b8   :  { %v8210_v22 = vpop.f32.mrf.mxu0 }
 0x5b9   :  { %10773 = vst [vmem:[#allocation57_spill] sm:$0xff] %v8210_v22 }
 0x5ba   :  { %v8212_v33 = vpop.f32.mrf.mxu0 }
 0x5bb   :  { %10774 = vst [vmem:[#allocation58_spill] sm:$0xff] %v8212_v33 }
 0x5cf   :  { %v1677_v32 = vpop.xlane.xlu0 %1676 }
 0x5d0   :  { %v1750_v38 = vmul.f32 0.015625, %v1677_v32 }
 0x5d2   :  { %v1775_v26 = vadd.f32 1e-05, %v1750_v38 }
 0x5d3   :  { %v1680_v4 = vpop.xlane.xlu0 %1679  ;;  %v1683_v56 = vpop.xlane.xlu1 %1682 }
 0x5d4   :  { %5914 = vrsqrt.f32 %v1775_v26  ;;  %v1751_v21 = vmul.f32 0.015625, %v1680_v4  ;;  %v1752_v17 = vmul.f32 0.015625, %v1683_v56  ;;  %v8215_v26 = vpop.f32.mrf.mxu0 }
 0x5d5   :  { %10775 = vst [vmem:[#allocation59_spill] sm:$0xff] %v8215_v26 }
 0x5d6   :  { %v1776_v61 = vadd.f32 1e-05, %v1751_v21  ;;  %v1777_v9 = vadd.f32 1e-05, %v1752_v17 }
 0x5d7   :  { %v1689_v41 = vpop.xlane.xlu0 %1688  ;;  %v1686_v36 = vpop.xlane.xlu1 %1685 }
 0x5d8   :  { %5916 = vrsqrt.f32 %v1776_v61  ;;  %v1753_v42 = vmul.f32 0.015625, %v1686_v36  ;;  %v1754_v32 = vmul.f32 0.015625, %v1689_v41  ;;  %v6390_v36 = vld [vmem:[#allocation5] sm:$0xff] }
 0x5d9   :  { %5918 = vrsqrt.f32 %v1777_v9  ;;  %v8217_v45 = vrot.slane %v6390_v36, %v1852_v47 }
 0x5da   :  { %v1778_v19 = vadd.f32 1e-05, %v1753_v42  ;;  %v1779_v4 = vadd.f32 1e-05, %v1754_v32  ;;  %v1881_v42 = vsub.s32 7, %v6869_v8 }
 0x5db   :  { %v1692_v28 = vpop.xlane.xlu0 %1691  ;;  %v1698_v21 = vpop.xlane.xlu1 %1697 }
 0x5dc   :  { %v1755_v38 = vmul.f32 0.015625, %v1692_v28  ;;  %5920 = vrsqrt.f32 %v1778_v19  ;;  %v1757_v9 = vmul.f32 0.015625, %v1698_v21  ;;  %v8221_v28 = vpop.f32.mrf.mxu0 }
 0x5dd   :  { %10776 = vst [vmem:[#allocation60_spill] sm:$0xff] %v8221_v28 }
 0x5de   :  { %v1780_v56 = vadd.f32 1e-05, %v1755_v38  ;;  %v8227_v47 = vpop.f32.mrf.mxu0 }
 0x5df   :  { %v1695_v17 = vpop.xlane.xlu0 %1694 }
 0x5e0   :  { %5922 = vrsqrt.f32 %v1780_v56  ;;  %v1756_v22 = vmul.f32 0.015625, %v1695_v17  ;;  %v1782_v56 = vadd.f32 1e-05, %v1757_v9  ;;  %v8225_v17 = vrot.slane %v6390_v36, %v1881_v42 }
 0x5e1   :  { %v5915_v61 = vpop.eup %5914  ;;  %5924 = vrsqrt.f32 %v1779_v4 }
 0x5e2   :  { %v1825_v41 = vmul.f32 %v5915_v61, %v7970_v5  ;;  %v1781_v19 = vadd.f32 1e-05, %v1756_v22 }
 0x5e4   :  { %v1854_v32 = vmul.f32 %v8217_v45, %v1825_v41  ;;  %5926 = vrsqrt.f32 %v1781_v19  ;;  %v8233_v41 = vpop.f32.mrf.mxu0 }
 0x5e5   :  { %v5917_v33 = vpop.eup %5916  ;;  %5928 = vrsqrt.f32 %v1782_v56  ;;  %10777 = vst [vmem:[#allocation61_spill] sm:$0xff] %v8233_v41 }
 0x5e6   :  { %v1826_v38 = vmul.f32 %v5917_v33, %v7966_v18  ;;  %v5919_v26 = vpop.eup %5918  ;;  %v1883_v21 = vadd.f32 %v8225_v17, %v1854_v32 }
 0x5e7   :  { %v1827_v61 = vmul.f32 %v5919_v26, %v7980_v13 }
 0x5e8   :  { %v1855_v5 = vmul.f32 %v8217_v45, %v1826_v38  ;;  %v8239_v38 = vpop.f32.mrf.mxu0 }
 0x5e9   :  { %v5921_v4 = vpop.eup %5920  ;;  %v1856_v42 = vmul.f32 %v8217_v45, %v1827_v61 }
 0x5ea   :  { %v1884_v22 = vadd.f32 %v8225_v17, %v1855_v5  ;;  %v1828_v18 = vmul.f32 %v5921_v4, %v7976_v50  ;;  %v8244_v26 = vpop.f32.mrf.mxu0 }
 0x5eb   :  { %10778 = vst [vmem:[#allocation62_spill] sm:$0xff] %v8244_v26  ;;  %v1885_v50 = vadd.f32 %v8225_v17, %v1856_v42 }
 0x5ec   :  { %v1908_v33 = vpack.c.bf16 %v1884_v22, %v1883_v21  ;;  %v1857_v9 = vmul.f32 %v8217_v45, %v1828_v18  ;;  %v8249_v22 = vpop.f32.mrf.mxu0 }
 0x5ed   :  { %v5923_v36 = vpop.eup %5922 }
 0x5ee   :  { %5474 = vmatmul.mubr.msk.bf16.vlgmr.msra.gmra.mxu1 %vm891_vm3, %v1908_v33  ;;  %v5925_v19 = vpop.eup %5924  ;;  %v1886_v32 = vadd.f32 %v8225_v17, %v1857_v9  ;;  %v1830_v13 = vmul.f32 %v5923_v36, %v7989_v43  ;;  %v8256_v36 = vpop.f32.mrf.mxu0 }
 0x5ef   :  { %2350 = vmatprep.mubr.bf16.mxu1 %v10731_v53  ;;  %v1829_v56 = vmul.f32 %v5925_v19, %v7999_v7  ;;  %10779 = vst [vmem:[#allocation63_spill] sm:$0xff] %v8256_v36 }
 0x5f0   :  { %v1909_v5 = vpack.c.bf16 %v1886_v32, %v1885_v50  ;;  %v1859_v4 = vmul.f32 %v8217_v45, %v1830_v13  ;;  %v8261_v32 = vpop.f32.mrf.mxu0 }
 0x5f1   :  { %v5927_v21 = vpop.eup %5926  ;;  %v1858_v61 = vmul.f32 %v8217_v45, %v1829_v56 }
 0x5f2   :  { %v5929_v18 = vpop.eup %5928  ;;  %v1888_v43 = vadd.f32 %v8225_v17, %v1859_v4  ;;  %v1831_v33 = vmul.f32 %v5927_v21, %v8010_v3  ;;  %v8267_v3 = vpop.f32.mrf.mxu0 }
 0x5f3   :  { %v1887_v7 = vadd.f32 %v8225_v17, %v1858_v61  ;;  %v1832_v9 = vmul.f32 %v5929_v18, %v7995_v57  ;;  %10780 = vst [vmem:[#allocation64_spill] sm:$0xff] %v8267_v3  ;;  %v1704_v57 = vpop.xlane.xlu0 %1703 }
 0x5f4   :  { %v1860_v19 = vmul.f32 %v8217_v45, %v1831_v33  ;;  %v8270_v4 = vpop.f32.mrf.mxu0  ;;  %v1759_v61 = vmul.f32 0.015625, %v1704_v57 }
 0x5f5   :  { %v1910_v42 = vpack.c.bf16 %v1888_v43, %v1887_v7  ;;  %v1861_v13 = vmul.f32 %v8217_v45, %v1832_v9 }
 0x5f6   :  { %5475 = vmatmul.mubr.msk.bf16.gmra.mxu1 %vm891_vm3, %v1909_v5  ;;  %v1889_v50 = vadd.f32 %v8225_v17, %v1860_v19  ;;  %v8274_v21 = vpop.f32.mrf.mxu0  ;;  %v1784_v43 = vadd.f32 1e-05, %v1759_v61 }
 0x5f7   :  { %2360 = vmatprep.mubr.bf16.mxu1 %v10731_v53  ;;  %v1890_v56 = vadd.f32 %v8225_v17, %v1861_v13  ;;  %10781 = vst [vmem:[#allocation65_spill] sm:$0xff] %v8274_v21  ;;  %v1710_v7 = vpop.xlane.xlu0 %1709 }
 0x5f8   :  { %v8276_v18 = vpop.f32.mrf.mxu0  ;;  %5930 = vrsqrt.f32 %v1784_v43 }
 0x5f9   :  { %v1911_v5 = vpack.c.bf16 %v1890_v56, %v1889_v50 }
 0x5fe   :  { %5476 = vmatmul.mubr.msk.bf16.gmra.mxu1 %vm891_vm3, %v1910_v42  ;;  %v1761_v42 = vmul.f32 0.015625, %v1710_v7 }
 0x5ff   :  { %2370 = vmatprep.mubr.bf16.mxu1 %v10731_v53 }
 0x605   :  { %v5931_v43 = vpop.eup %5930 }
 0x606   :  { %5477 = vmatmul.mubr.msk.bf16.gmra.mxu1 %vm891_vm3, %v1911_v5  ;;  %v1786_v5 = vadd.f32 1e-05, %v1761_v42  ;;  %v1834_v42 = vmul.f32 %v5931_v43, %v8021_v15 }
 0x607   :  { %2380 = vmatprep.mubr.bf16.mxu1 %v10731_v53 }
 0x60f   :  { %v8278_v33 = vpop.f32.mrf.mxu0 }
 0x610   :  { %10782 = vst [vmem:[#allocation66_spill] sm:$0xff] %v8278_v33 }
 0x611   :  { %v8280_v9 = vpop.f32.mrf.mxu0 }
 0x612   :  { %10783 = vst [vmem:[#allocation67_spill] sm:$0xff] %v8280_v9 }
 0x613   :  { %v2226_v19 = vpop.f32.mrf.mxu0 }
 0x614   :  { %v1701_v13 = vpop.xlane.xlu1 %1700 }
 0x615   :  { %v1758_v50 = vmul.f32 0.015625, %v1701_v13  ;;  %v2227_v56 = vpop.f32.mrf.mxu0 }
 0x617   :  { %v1783_v3 = vadd.f32 1e-05, %v1758_v50 }
 0x618   :  { %v1707_v36 = vpop.xlane.xlu1 %1706 }
 0x619   :  { %5932 = vrsqrt.f32 %v1783_v3  ;;  %v1760_v21 = vmul.f32 0.015625, %v1707_v36 }
 0x61a   :  { %5934 = vrsqrt.f32 %v1786_v5 }
 0x61b   :  { %v1785_v57 = vadd.f32 1e-05, %v1760_v21 }
 0x61c   :  { %v1716_v26 = vpop.xlane.xlu0 %1715  ;;  %v1713_v61 = vpop.xlane.xlu1 %1712 }
 0x61d   :  { %5936 = vrsqrt.f32 %v1785_v57  ;;  %v1763_v33 = vmul.f32 0.015625, %v1716_v26  ;;  %v1762_v41 = vmul.f32 0.015625, %v1713_v61  ;;  %v1863_v26 = vmul.f32 %v8217_v45, %v1834_v42 }
 0x61f   :  { %v1788_v28 = vadd.f32 1e-05, %v1763_v33  ;;  %v1787_v9 = vadd.f32 1e-05, %v1762_v41  ;;  %v1892_v15 = vadd.f32 %v8225_v17, %v1863_v26 }
 0x620   :  { %v1722_v7 = vpop.xlane.xlu0 %1721  ;;  %v1719_v19 = vpop.xlane.xlu1 %1718 }
 0x621   :  { %5938 = vrsqrt.f32 %v1788_v28  ;;  %v1765_v13 = vmul.f32 0.015625, %v1722_v7  ;;  %v1764_v56 = vmul.f32 0.015625, %v1719_v19 }
 0x622   :  { %5940 = vrsqrt.f32 %v1787_v9 }
 0x623   :  { %v1790_v3 = vadd.f32 1e-05, %v1765_v13  ;;  %v1789_v36 = vadd.f32 1e-05, %v1764_v56 }
 0x624   :  { %v1728_v50 = vpop.xlane.xlu0 %1727  ;;  %v1725_v5 = vpop.xlane.xlu1 %1724 }
 0x625   :  { %5942 = vrsqrt.f32 %v1790_v3  ;;  %v1767_v41 = vmul.f32 0.015625, %v1728_v50  ;;  %v1766_v61 = vmul.f32 0.015625, %v1725_v5 }
 0x626   :  { %v5933_v21 = vpop.eup %5932  ;;  %5944 = vrsqrt.f32 %v1789_v36 }
 0x627   :  { %v1833_v57 = vmul.f32 %v5933_v21, %v8069_v49  ;;  %v5935_v33 = vpop.eup %5934  ;;  %v1792_v13 = vadd.f32 1e-05, %v1767_v41  ;;  %v1791_v56 = vadd.f32 1e-05, %v1766_v61 }
 0x628   :  { %v1836_v19 = vmul.f32 %v5935_v33, %v8030_v16  ;;  %v1731_v49 = vpop.xlane.xlu0 %1730  ;;  %v1734_v42 = vpop.xlane.xlu1 %1733 }
 0x629   :  { %v1862_v28 = vmul.f32 %v8217_v45, %v1833_v57  ;;  %v1768_v5 = vmul.f32 0.015625, %v1731_v49  ;;  %5946 = vrsqrt.f32 %v1792_v13  ;;  %v1769_v26 = vmul.f32 0.015625, %v1734_v42 }
 0x62a   :  { %v5937_v7 = vpop.eup %5936  ;;  %v1865_v57 = vmul.f32 %v8217_v45, %v1836_v19  ;;  %5948 = vrsqrt.f32 %v1791_v56 }
 0x62b   :  { %v1891_v9 = vadd.f32 %v8225_v17, %v1862_v28  ;;  %v1835_v43 = vmul.f32 %v5937_v7, %v8081_v55  ;;  %v1793_v41 = vadd.f32 1e-05, %v1768_v5  ;;  %v1794_v28 = vadd.f32 1e-05, %v1769_v26 }
 0x62c   :  { %v1894_v61 = vadd.f32 %v8225_v17, %v1865_v57  ;;  %v1740_v7 = vpop.xlane.xlu0 %1739 }
 0x62d   :  { %v1912_v21 = vpack.c.bf16 %v1892_v15, %v1891_v9  ;;  %v1864_v36 = vmul.f32 %v8217_v45, %v1835_v43  ;;  %v1737_v15 = vpop.xlane.xlu1 %1736  ;;  %5950 = vrsqrt.f32 %v1793_v41  ;;  %v1771_v56 = vmul.f32 0.015625, %v1740_v7 }
 0x62e   :  { %v5939_v3 = vpop.eup %5938  ;;  %5952 = vrsqrt.f32 %v1794_v28 }
 0x62f   :  { %v5941_v50 = vpop.eup %5940  ;;  %5478 = vmatmul.mubr.msk.bf16.gmra.mxu1 %vm891_vm3, %v1912_v21  ;;  %v1893_v16 = vadd.f32 %v8225_v17, %v1864_v36  ;;  %v1838_v33 = vmul.f32 %v5939_v3, %v8096_v59  ;;  %v1796_v36 = vadd.f32 1e-05, %v1771_v56 }
 0x630   :  { %2390 = vmatprep.mubr.bf16.mxu1 %v10731_v53  ;;  %v1837_v55 = vmul.f32 %v5941_v50, %v8075_v2  ;;  %v1770_v2 = vmul.f32 0.015625, %v1737_v15  ;;  %v1743_v5 = vpop.xlane.xlu0 %1742 }
 0x631   :  { %v1913_v43 = vpack.c.bf16 %v1894_v61, %v1893_v16  ;;  %v1867_v13 = vmul.f32 %v8217_v45, %v1838_v33  ;;  %v1746_v26 = vpop.xlane.xlu1 %1745  ;;  %5954 = vrsqrt.f32 %v1796_v36  ;;  %v1772_v61 = vmul.f32 0.015625, %v1743_v5 }
 0x632   :  { %v5943_v9 = vpop.eup %5942  ;;  %v1866_v19 = vmul.f32 %v8217_v45, %v1837_v55  ;;  %v1795_v50 = vadd.f32 1e-05, %v1770_v2  ;;  %v1773_v28 = vmul.f32 0.015625, %v1746_v26 }
 0x633   :  { %v5945_v49 = vpop.eup %5944  ;;  %v1896_v42 = vadd.f32 %v8225_v17, %v1867_v13  ;;  %v1840_v3 = vmul.f32 %v5943_v9, %v8110_v1  ;;  %v1797_v15 = vadd.f32 1e-05, %v1772_v61 }
 0x634   :  { %v1895_v59 = vadd.f32 %v8225_v17, %v1866_v19  ;;  %v1839_v21 = vmul.f32 %v5945_v49, %v8090_v62  ;;  %5956 = vrsqrt.f32 %v1795_v50  ;;  %v1798_v19 = vadd.f32 1e-05, %v1773_v28 }
 0x635   :  { %v1869_v33 = vmul.f32 %v8217_v45, %v1840_v3  ;;  %v1749_v49 = vpop.xlane.xlu1 %1748  ;;  %5958 = vrsqrt.f32 %v1797_v15 }
 0x636   :  { %v5947_v57 = vpop.eup %5946  ;;  %v1914_v16 = vpack.c.bf16 %v1896_v42, %v1895_v59  ;;  %v1868_v55 = vmul.f32 %v8217_v45, %v1839_v21  ;;  %5960 = vrsqrt.f32 %v1798_v19  ;;  %v1774_v42 = vmul.f32 0.015625, %v1749_v49 }
 0x637   :  { %5479 = vmatmul.mubr.msk.bf16.gmra.mxu1 %vm891_vm3, %v1913_v43  ;;  %v5949_v41 = vpop.eup %5948  ;;  %v1898_v1 = vadd.f32 %v8225_v17, %v1869_v33  ;;  %v1842_v9 = vmul.f32 %v5947_v57, %v8104_v48 }
 0x638   :  { %2400 = vmatprep.mubr.bf16.mxu1 %v10731_v53  ;;  %v1897_v62 = vadd.f32 %v8225_v17, %v1868_v55  ;;  %v1841_v7 = vmul.f32 %v5949_v41, %v8125_v20  ;;  %v1799_v50 = vadd.f32 1e-05, %v1774_v42 }
 0x639   :  { %v1871_v59 = vmul.f32 %v8217_v45, %v1842_v9 }
 0x63a   :  { %v5951_v43 = vpop.eup %5950  ;;  %v1915_v56 = vpack.c.bf16 %v1898_v1, %v1897_v62  ;;  %v1870_v2 = vmul.f32 %v8217_v45, %v1841_v7  ;;  %5962 = vrsqrt.f32 %v1799_v50 }
 0x63b   :  { %v5953_v13 = vpop.eup %5952  ;;  %v1843_v20 = vmul.f32 %v5951_v43, %v8119_v63  ;;  %v1900_v3 = vadd.f32 %v8225_v17, %v1871_v59 }
 0x63c   :  { %v1844_v48 = vmul.f32 %v5953_v13, %v8143_v12  ;;  %v1899_v21 = vadd.f32 %v8225_v17, %v1870_v2 }
 0x63d   :  { %v1872_v26 = vmul.f32 %v8217_v45, %v1843_v20  ;;  %v97_v20 = vld [vmem:[#allocation5 + $0x8] sm:$0xff] }
 0x63e   :  { %v5955_v36 = vpop.eup %5954  ;;  %v1916_v57 = vpack.c.bf16 %v1900_v3, %v1899_v21  ;;  %v10784_v21 = vsub.s32 1, %v6869_v8 }
 0x63f   :  { %5480 = vmatmul.mubr.msk.bf16.gmra.mxu1 %vm891_vm3, %v1914_v16  ;;  %v1873_v16 = vmul.f32 %v8217_v45, %v1844_v48  ;;  %v1846_v63 = vmul.f32 %v5955_v36, %v8160_v27  ;;  %v1901_v55 = vadd.f32 %v8225_v17, %v1872_v26 }
 0x640   :  { %2410 = vmatprep.mubr.bf16.mxu1 %v10731_v53  ;;  %v8352_v3 = vrot.slane %v97_v20, %v10784_v21  ;;  %v10785_v21 = vsub.s32 0, %v6869_v8 }
 0x641   :  { %v5957_v5 = vpop.eup %5956  ;;  %v1902_v33 = vadd.f32 %v8225_v17, %v1873_v16  ;;  %v1875_v1 = vmul.f32 %v8217_v45, %v1846_v63 }
 0x642   :  { %v1845_v12 = vmul.f32 %v5957_v5, %v8135_v39  ;;  %v5959_v41 = vpop.eup %5958 }
 0x643   :  { %v5961_v61 = vpop.eup %5960  ;;  %v1917_v28 = vpack.c.bf16 %v1902_v33, %v1901_v55  ;;  %v1847_v7 = vmul.f32 %v5959_v41, %v8154_v31  ;;  %v1904_v9 = vadd.f32 %v8225_v17, %v1875_v1 }
 0x644   :  { %v1874_v62 = vmul.f32 %v8217_v45, %v1845_v12  ;;  %v1848_v27 = vmul.f32 %v5961_v61, %v8174_v23 }
 0x645   :  { %v1876_v19 = vmul.f32 %v8217_v45, %v1847_v7 }
 0x646   :  { %v1903_v39 = vadd.f32 %v8225_v17, %v1874_v62  ;;  %v1877_v13 = vmul.f32 %v8217_v45, %v1848_v27 }
 0x647   :  { %5481 = vmatmul.mubr.msk.bf16.gmra.mxu1 %vm891_vm3, %v1915_v56  ;;  %v5963_v15 = vpop.eup %5962  ;;  %v1905_v49 = vadd.f32 %v8225_v17, %v1876_v19 }
 0x648   :  { %2420 = vmatprep.mubr.bf16.mxu1 %v10731_v53  ;;  %v1918_v43 = vpack.c.bf16 %v1904_v9, %v1903_v39  ;;  %v1906_v31 = vadd.f32 %v8225_v17, %v1877_v13  ;;  %v1849_v23 = vmul.f32 %v5963_v15, %v8170_v29 }
 0x64a   :  { %v1919_v56 = vpack.c.bf16 %v1906_v31, %v1905_v49  ;;  %v1878_v2 = vmul.f32 %v8217_v45, %v1849_v23 }
 0x64c   :  { %v1907_v59 = vadd.f32 %v8225_v17, %v1878_v2 }
 0x64e   :  { %v1920_v42 = vpack.c.bf16 %v1907_v59, %v1907_v59 }
 0x64f   :  { %5482 = vmatmul.mubr.msk.bf16.gmra.mxu1 %vm891_vm3, %v1916_v57 }
 0x650   :  { %2430 = vmatprep.mubr.bf16.mxu1 %v10731_v53 }
 0x657   :  { %5483 = vmatmul.mubr.msk.bf16.gmra.mxu1 %vm891_vm3, %v1917_v28 }
 0x658   :  { %2440 = vmatprep.mubr.bf16.mxu1 %v10731_v53 }
 0x65f   :  { %5484 = vmatmul.mubr.msk.bf16.gmra.mxu1 %vm891_vm3, %v1918_v43 }
 0x660   :  { %2450 = vmatprep.mubr.bf16.mxu1 %v10731_v53 }
 0x667   :  { %5485 = vmatmul.mubr.msk.bf16.gmra.mxu1 %vm891_vm3, %v1919_v56 }
 0x668   :  { %2460 = vmatprep.mubr.bf16.mxu1 %v10731_v53 }
 0x66f   :  { %5486 = vmatmul.mubr.msk.bf16.gmra.mxu1 %vm891_vm3, %v1920_v42 }
 0x6ae   :  { %v2342_v48 = vpop.f32.mrf.mxu1 }
 0x6b0   :  { %v2344_v36 = vpop.f32.mrf.mxu1 }
 0x6b1   :  { %v2345_v29 = vadd.f32 %v2344_v36, %v8035_v37  ;;  %v8432_v36 = vrot.slane %v97_v20, %v10785_v21 }
 0x6b2   :  { %v2346_v50 = vpop.f32.mrf.mxu1 }
 0x6b3   :  { %v8356_v45 = vadd.f32 %v8352_v3, %v2345_v29 }
 0x6b4   :  { %v2348_v5 = vpop.f32.mrf.mxu1 }
 0x6b5   :  { %v2349_v53 = vadd.f32 %v2348_v5, %v8043_v34  ;;  %2702 = vrot.lane.b32.xlu0 %v8356_v45, %s6551_s19 }
 0x6b6   :  { %v2352_v17 = vpop.f32.mrf.mxu1 }
 0x6b7   :  { %v8362_v57 = vadd.f32 %v8352_v3, %v2349_v53 }
 0x6b8   :  { %v2354_v26 = vpop.f32.mrf.mxu1 }
 0x6b9   :  { %v2355_v16 = vadd.f32 %v2354_v26, %v8047_v25  ;;  %2704 = vrot.lane.b32.xlu0 %v8362_v57, %s6551_s19  ;;  %v2347_v26 = vadd.f32 %v2346_v50, %v8040_v54 }
 0x6ba   :  { %v2356_v37 = vpop.f32.mrf.mxu1 }
 0x6bb   :  { %v8368_v63 = vadd.f32 %v8352_v3, %v2355_v16 }
 0x6bc   :  { %v2358_v12 = vpop.f32.mrf.mxu1 }
 0x6bd   :  { %v2359_v34 = vadd.f32 %v2358_v12, %v8051_v52  ;;  %2706 = vrot.lane.b32.xlu0 %v8368_v63, %s6551_s19 }
 0x6be   :  { %v8373_v55 = vpop.f32.mrf.mxu1 }
 0x6bf   :  { %v8376_v33 = vadd.f32 %v8352_v3, %v2359_v34  ;;  %v2353_v34 = vadd.f32 %v2352_v17, %v8045_v40  ;;  %v2363_v17 = vadd.f32 %v8373_v55, %v8053_v24  ;;  %v10787_v24 = vld [vmem:[#allocation42_spill] sm:$0xff] }
 0x6c0   :  { %v2364_v41 = vpop.f32.mrf.mxu1 }
 0x6c1   :  { %v2365_v25 = vadd.f32 %v2364_v41, %v8055_v60  ;;  %2708 = vrot.lane.b32.xlu1 %v8376_v33, %s6551_s19 }
 0x6c2   :  { %v8381_v61 = vpop.f32.mrf.mxu1 }
 0x6c3   :  { %v8384_v28 = vadd.f32 %v8352_v3, %v2365_v25  ;;  %v2357_v25 = vadd.f32 %v2356_v37, %v8049_v30  ;;  %v10786_v37 = vld [vmem:[#allocation53_spill] sm:$0xff]  ;;  %v2367_v55 = vadd.f32 %v8381_v61, %v10787_v24 }
 0x6c4   :  { %v2368_v52 = vpop.f32.mrf.mxu1  ;;  %v10790_v61 = vld [vmem:[#allocation57_spill] sm:$0xff] }
 0x6c5   :  { %v2369_v62 = vadd.f32 %v2368_v52, %v8059_v35  ;;  %2710 = vrot.lane.b32.xlu0 %v8384_v28, %s6551_s19  ;;  %v2476_v30 = vadd.f32 %v8432_v36, %v2357_v25 }
 0x6c6   :  { %v8389_v1 = vpop.f32.mrf.mxu1 }
 0x6c7   :  { %v8392_v7 = vadd.f32 %v8352_v3, %v2369_v62  ;;  %v2475_v62 = vadd.f32 %v8432_v36, %v2353_v34 }
 0x6c8   :  { %v2374_v60 = vpop.f32.mrf.mxu1 }
 0x6c9   :  { %v2375_v27 = vadd.f32 %v2374_v60, %v8065_v44  ;;  %2712 = vrot.lane.b32.xlu1 %v8392_v7, %s6551_s19 }
 0x6ca   :  { %v8397_v39 = vpop.f32.mrf.mxu1 }
 0x6cb   :  { %v8400_v9 = vadd.f32 %v8352_v3, %v2375_v27 }
 0x6cc   :  { %v2378_v35 = vpop.f32.mrf.mxu1 }
 0x6cd   :  { %v2379_v15 = vadd.f32 %v2378_v35, %v8092_v51  ;;  %2714 = vrot.lane.b32.xlu0 %v8400_v9, %s6551_s19  ;;  %v5489_v35 = vmul.f32 -1.442695, %v2475_v62 }
 0x6cf   :  { %v8406_v43 = vadd.f32 %v8352_v3, %v2379_v15 }
 0x6d1   :  { %2716 = vrot.lane.b32.xlu1 %v8406_v43, %s6551_s19 }
 0x6ef   :  { %v8410_v44 = vpop.f32.mrf.mxu1 }
 0x6f1   :  { %v2384_v19 = vpop.f32.mrf.mxu1 }
 0x6f2   :  { %v2385_v13 = vadd.f32 %v2384_v19, %v8121_v10  ;;  %v2343_v10 = vadd.f32 %v2342_v48, %v8026_v46 }
 0x6f3   :  { %v8413_v49 = vpop.f32.mrf.mxu1 }
 0x6f4   :  { %v8416_v31 = vadd.f32 %v8352_v3, %v2385_v13  ;;  %v2477_v13 = vadd.f32 %v8432_v36, %v2363_v17 }
 0x6f5   :  { %v2388_v51 = vpop.f32.mrf.mxu1 }
 0x6f6   :  { %v2389_v23 = vadd.f32 %v2388_v51, %v8156_v6  ;;  %2718 = vrot.lane.b32.xlu0 %v8416_v31, %s6551_s19 }
 0x6f7   :  { %v8421_v56 = vpop.f32.mrf.mxu1 }
 0x6f8   :  { %v8424_v2 = vadd.f32 %v8352_v3, %v2389_v23  ;;  %v5490_v23 = vmul.f32 -1.442695, %v2476_v30 }
 0x6f9   :  { %v2394_v59 = vpop.f32.mrf.mxu1 }
 0x6fa   :  { %v2395_v42 = vadd.f32 %v2394_v59, %v8181_v0  ;;  %2720 = vrot.lane.b32.xlu1 %v8424_v2, %s6551_s19  ;;  %v2473_v0 = vadd.f32 %v8432_v36, %v2343_v10  ;;  %v10788_v59 = vld [vmem:[#allocation55_spill] sm:$0xff] }
 0x6fb   :  { %v8434_v6 = vpop.f32.mrf.mxu1 }
 0x6fc   :  { %v8437_v29 = vadd.f32 %v8352_v3, %v2395_v42  ;;  %v5487_v12 = vmul.f32 -1.442695, %v2473_v0  ;;  %v2478_v0 = vadd.f32 %v8432_v36, %v2367_v55 }
 0x6fd   :  { %v2398_v5 = vpop.f32.mrf.mxu1 }
 0x6fe   :  { %v2399_v53 = vadd.f32 %v2398_v5, %v8190_v11  ;;  %2722 = vrot.lane.b32.xlu0 %v8437_v29, %s6551_s19  ;;  %v2474_v11 = vadd.f32 %v8432_v36, %v2347_v26  ;;  %5964 = vpow2.f32 %v5487_v12  ;;  %v5491_v5 = vmul.f32 -1.442695, %v2477_v13  ;;  %v10789_v26 = vld [vmem:[#allocation44_spill] sm:$0xff] }
 0x6ff   :  { %v8444_v46 = vpop.f32.mrf.mxu1  ;;  %v5492_v25 = vmul.f32 -1.442695, %v2478_v0 }
 0x700   :  { %v8447_v20 = vadd.f32 %v8352_v3, %v2399_v53 }
 0x701   :  { %v2404_v48 = vpop.f32.mrf.mxu1 }
 0x702   :  { %v2405_v16 = vadd.f32 %v2404_v48, %v8194_v58  ;;  %2724 = vrot.lane.b32.xlu1 %v8447_v20, %s6551_s19  ;;  %v5488_v58 = vmul.f32 -1.442695, %v2474_v11  ;;  %v2373_v48 = vadd.f32 %v8389_v1, %v10789_v26  ;;  %v10792_v1 = vld [vmem:[#allocation59_spill] sm:$0xff] }
 0x703   :  { %v8454_v41 = vpop.f32.mrf.mxu1 }
 0x704   :  { %v8457_v54 = vadd.f32 %v8352_v3, %v2405_v16  ;;  %5966 = vpow2.f32 %v5488_v58  ;;  %v10791_v58 = vld [vmem:[#allocation45_spill] sm:$0xff] }
 0x705   :  { %v2408_v50 = vpop.f32.mrf.mxu1  ;;  %5968 = vpow2.f32 %v5489_v35  ;;  %v2377_v62 = vadd.f32 %v8397_v39, %v10791_v58 }
 0x706   :  { %v2409_v52 = vadd.f32 %v2408_v50, %v8198_v14  ;;  %2726 = vrot.lane.b32.xlu0 %v8457_v54, %s6551_s19  ;;  %5970 = vpow2.f32 %v5490_v23 }
 0x707   :  { %v8464_v60 = vpop.f32.mrf.mxu1  ;;  %5972 = vpow2.f32 %v5491_v5 }
 0x708   :  { %v8467_v40 = vadd.f32 %v8352_v3, %v2409_v52  ;;  %v2479_v52 = vadd.f32 %v8432_v36, %v2373_v48  ;;  %5974 = vpow2.f32 %v5492_v25 }
 0x709   :  { %v2414_v27 = vpop.f32.mrf.mxu1 }
 0x70a   :  { %v2415_v14 = vadd.f32 %v2414_v27, %v10786_v37  ;;  %2728 = vrot.lane.b32.xlu1 %v8467_v40, %s6551_s19  ;;  %v5493_v13 = vmul.f32 -1.442695, %v2479_v52 }
 0x70b   :  { %v8475_v15 = vpop.f32.mrf.mxu1  ;;  %v5965_v11 = vpop.eup %5964 }
 0x70c   :  { %v8478_v19 = vadd.f32 %v8352_v3, %v2415_v14  ;;  %v2573_v27 = vadd.f32 1.0, %v5965_v11 }
 0x70d   :  { %v2418_v51 = vpop.f32.mrf.mxu1 }
 0x70e   :  { %v2419_v42 = vadd.f32 %v2418_v51, %v10788_v59  ;;  %2730 = vrot.lane.b32.xlu0 %v8478_v19, %s6551_s19  ;;  %v2480_v51 = vadd.f32 %v8432_v36, %v2377_v62  ;;  %5976 = vrcp.f32 %v2573_v27 }
 0x70f   :  { %v8486_v10 = vpop.f32.mrf.mxu1  ;;  %5978 = vpow2.f32 %v5493_v13 }
 0x710   :  { %v8489_v21 = vadd.f32 %v8352_v3, %v2419_v42  ;;  %v5494_v5 = vmul.f32 -1.442695, %v2480_v51 }
 0x711   :  { %v2424_v53 = vpop.f32.mrf.mxu1  ;;  %v5967_v37 = vpop.eup %5966 }
 0x712   :  { %v2425_v16 = vadd.f32 %v2424_v53, %v10790_v61  ;;  %2732 = vrot.lane.b32.xlu1 %v8489_v21, %s6551_s19  ;;  %v2574_v39 = vadd.f32 1.0, %v5967_v37  ;;  %v5969_v55 = vpop.eup %5968 }
 0x713   :  { %v8497_v12 = vpop.f32.mrf.mxu1  ;;  %v2575_v0 = vadd.f32 1.0, %v5969_v55 }
 0x714   :  { %v8500_v34 = vadd.f32 %v8352_v3, %v2425_v16  ;;  %5980 = vrcp.f32 %v2574_v39 }
 0x715   :  { %v2428_v50 = vpop.f32.mrf.mxu1  ;;  %5982 = vpow2.f32 %v5494_v5 }
 0x716   :  { %v2429_v17 = vadd.f32 %v2428_v50, %v10792_v1  ;;  %2734 = vrot.lane.b32.xlu0 %v8500_v34, %s6551_s19  ;;  %5984 = vrcp.f32 %v2575_v0 }
 0x717   :  { %v8508_v30 = vpop.f32.mrf.mxu1 }
 0x718   :  { %v8511_v14 = vadd.f32 %v8352_v3, %v2429_v17 }
 0x719   :  { %v2434_v35 = vpop.f32.mrf.mxu1 }
 0x71a   :  { %v2435_v23 = vadd.f32 %v2434_v35, %v8227_v47  ;;  %2736 = vrot.lane.b32.xlu1 %v8511_v14, %s6551_s19  ;;  %v5971_v47 = vpop.eup %5970 }
 0x71b   :  { %v8517_v24 = vpop.f32.mrf.mxu1  ;;  %v5973_v16 = vpop.eup %5972  ;;  %v2576_v11 = vadd.f32 1.0, %v5971_v47 }
 0x71c   :  { %v8520_v59 = vadd.f32 %v8352_v3, %v2435_v23  ;;  %v2577_v58 = vadd.f32 1.0, %v5973_v16  ;;  %v5975_v1 = vpop.eup %5974 }
 0x71d   :  { %v2438_v42 = vpop.f32.mrf.mxu1  ;;  %5986 = vrcp.f32 %v2576_v11  ;;  %v8543_v27 = vpop.eup %5976  ;;  %v2578_v51 = vadd.f32 1.0, %v5975_v1 }
 0x71e   :  { %v2439_v53 = vadd.f32 %v2438_v42, %v8239_v38  ;;  %2738 = vrot.lane.b32.xlu0 %v8520_v59, %s6551_s19  ;;  %5988 = vrcp.f32 %v2577_v58 }
 0x71f   :  { %v8525_v26 = vpop.f32.mrf.mxu1 }
 0x720   :  { %v8528_v48 = vadd.f32 %v8352_v3, %v2439_v53 }
 0x721   :  { %v2444_v61 = vpop.f32.mrf.mxu1 }
 0x722   :  { %v2445_v50 = vadd.f32 %v2444_v61, %v8249_v22  ;;  %2740 = vrot.lane.b32.xlu1 %v8528_v48, %s6551_s19 }
 0x723   :  { %v8533_v38 = vpop.f32.mrf.mxu1 }
 0x724   :  { %v8536_v25 = vadd.f32 %v8352_v3, %v2445_v50 }
 0x725   :  { %v2448_v52 = vpop.f32.mrf.mxu1 }
 0x726   :  { %v2449_v62 = vadd.f32 %v2448_v52, %v8261_v32  ;;  %2742 = vrot.lane.b32.xlu0 %v8536_v25, %s6551_s19  ;;  %v5979_v32 = vpop.eup %5978 }
 0x727   :  { %v8541_v17 = vpop.f32.mrf.mxu1  ;;  %v2703_v22 = vpop.permute.xlu0 %2702 }
 0x728   :  { %v8546_v37 = vadd.f32 %v8352_v3, %v2449_v62  ;;  %v2777_v35 = vmul.f32 %v8543_v27, %v2703_v22  ;;  %v8555_v5 = vpop.eup %5980  ;;  %v10793_v22 = vld [vmem:[#allocation67_spill] sm:$0xff] }
 0x729   :  { %v2454_v13 = vpop.f32.mrf.mxu1 }
 0x72a   :  { %v2455_v23 = vadd.f32 %v2454_v13, %v8270_v4  ;;  %2744 = vrot.lane.b32.xlu1 %v8546_v37, %s6551_s19  ;;  %v2802_v39 = vadd.f32 %v2777_v35, %v8356_v45  ;;  %v2579_v4 = vadd.f32 1.0, %v5979_v32  ;;  %v5983_v45 = vpop.eup %5982 }
 0x72b   :  { %v8553_v55 = vpop.f32.mrf.mxu1  ;;  %v2705_v42 = vpop.permute.xlu0 %2704 }
 0x72c   :  { %v8558_v53 = vadd.f32 %v8352_v3, %v2455_v23  ;;  %5990 = vtanh.f32 %v2802_v39  ;;  %v2778_v47 = vmul.f32 %v8555_v5, %v2705_v42  ;;  %v8567_v52 = vpop.eup %5984 }
 0x72d   :  { %v2458_v0 = vpop.f32.mrf.mxu1  ;;  %5992 = vrcp.f32 %v2578_v51 }
 0x72e   :  { %v2459_v61 = vadd.f32 %v2458_v0, %v8276_v18  ;;  %2746 = vrot.lane.b32.xlu0 %v8558_v53, %s6551_s19  ;;  %v2803_v16 = vadd.f32 %v2778_v47, %v8362_v57  ;;  %v2580_v18 = vadd.f32 1.0, %v5983_v45  ;;  %v8576_v57 = vpop.eup %5986 }
 0x72f   :  { %v8565_v11 = vpop.f32.mrf.mxu1  ;;  %v2707_v50 = vpop.permute.xlu0 %2706 }
 0x730   :  { %v8570_v58 = vadd.f32 %v8352_v3, %v2459_v61  ;;  %5994 = vtanh.f32 %v2803_v16  ;;  %v2779_v62 = vmul.f32 %v8567_v52, %v2707_v50  ;;  %v8586_v0 = vpop.eup %5988 }
 0x731   :  { %v2464_v1 = vpop.f32.mrf.mxu1  ;;  %5996 = vrcp.f32 %v2579_v4 }
 0x732   :  { %v2465_v35 = vadd.f32 %v2464_v1, %v10793_v22  ;;  %2748 = vrot.lane.b32.xlu1 %v8570_v58, %s6551_s19  ;;  %v2804_v13 = vadd.f32 %v2779_v62, %v8368_v63  ;;  %v10795_v22 = vld [vmem:[#allocation47_spill] sm:$0xff] }
 0x733   :  { %v2466_v51 = vpop.f32.mrf.mxu1  ;;  %v2709_v23 = vpop.permute.xlu1 %2708 }
 0x734   :  { %v8580_v32 = vadd.f32 %v8352_v3, %v2465_v35  ;;  %v2780_v39 = vmul.f32 %v8576_v57, %v2709_v23  ;;  %5998 = vtanh.f32 %v2804_v13  ;;  %v10794_v3 = vld [vmem:[#allocation46_spill] sm:$0xff]  ;;  %v2387_v35 = vadd.f32 %v8413_v49, %v10795_v22  ;;  %v10796_v49 = vld [vmem:[#allocation48_spill] sm:$0xff] }
 0x735   :  { %v2467_v42 = vpop.f32.mrf.mxu1  ;;  %6000 = vrcp.f32 %v2580_v18  ;;  %v2383_v45 = vadd.f32 %v8410_v44, %v10794_v3 }
 0x736   :  { %v2805_v47 = vadd.f32 %v2780_v39, %v8376_v33  ;;  %2750 = vrot.lane.b32.xlu0 %v8580_v32, %s6551_s19  ;;  %v2482_v42 = vadd.f32 %v8432_v36, %v2387_v35 }
 0x737   :  { %v2711_v4 = vpop.permute.xlu0 %2710  ;;  %v2481_v18 = vadd.f32 %v8432_v36, %v2383_v45 }
 0x738   :  { %6002 = vtanh.f32 %v2805_v47  ;;  %v2781_v63 = vmul.f32 %v8586_v0, %v2711_v4 }
 0x739   :  { %v8589_v61 = vpop.eup %5990  ;;  %v5495_v39 = vmul.f32 -1.442695, %v2481_v18 }
 0x73a   :  { %v2806_v16 = vadd.f32 %v2781_v63, %v8384_v28  ;;  %v8594_v50 = vpop.eup %5992  ;;  %2877 = vrot.lane.b32.xlu0 %v8589_v61, %s6560_s13 }
 0x73b   :  { %v2713_v33 = vpop.permute.xlu1 %2712 }
 0x73c   :  { %6004 = vtanh.f32 %v2806_v16  ;;  %v2782_v62 = vmul.f32 %v8594_v50, %v2713_v33  ;;  %v5496_v16 = vmul.f32 -1.442695, %v2482_v42 }
 0x73d   :  { %v8599_v1 = vpop.eup %5994 }
 0x73e   :  { %v2807_v44 = vadd.f32 %v2782_v62, %v8392_v7  ;;  %v8605_v28 = vpop.eup %5996  ;;  %2879 = vrot.lane.b32.xlu1 %v8599_v1, %s6560_s13  ;;  %v2393_v7 = vadd.f32 %v8421_v56, %v10796_v49  ;;  %v10797_v62 = vld [vmem:[#allocation49_spill] sm:$0xff] }
 0x73f   :  { %v2715_v13 = vpop.permute.xlu0 %2714  ;;  %v2397_v56 = vadd.f32 %v8434_v6, %v10797_v62 }
 0x740   :  { %6006 = vtanh.f32 %v2807_v44  ;;  %v2783_v51 = vmul.f32 %v8605_v28, %v2715_v13  ;;  %v10798_v44 = vld [vmem:[#allocation50_spill] sm:$0xff] }
 0x741   :  { %v8610_v23 = vpop.eup %5998  ;;  %v2484_v35 = vadd.f32 %v8432_v36, %v2397_v56 }
 0x742   :  { %v2808_v47 = vadd.f32 %v2783_v51, %v8400_v9  ;;  %v8614_v4 = vpop.eup %6000  ;;  %2881 = vrot.lane.b32.xlu0 %v8610_v23, %s6560_s13  ;;  %v2483_v9 = vadd.f32 %v8432_v36, %v2393_v7 }
 0x743   :  { %v2717_v63 = vpop.permute.xlu1 %2716  ;;  %v5498_v6 = vmul.f32 -1.442695, %v2484_v35  ;;  %v10802_v35 = vld [vmem:[#allocation56_spill] sm:$0xff] }
 0x744   :  { %6008 = vtanh.f32 %v2808_v47  ;;  %v2784_v3 = vmul.f32 %v8614_v4, %v2717_v63  ;;  %v5497_v22 = vmul.f32 -1.442695, %v2483_v9  ;;  %v10800_v63 = vld [vmem:[#allocation52_spill] sm:$0xff]  ;;  %v10801_v9 = vld [vmem:[#allocation54_spill] sm:$0xff] }
 0x745   :  { %v8621_v45 = vpop.eup %6002  ;;  %6010 = vpow2.f32 %v5495_v39  ;;  %v10799_v39 = vld [vmem:[#allocation51_spill] sm:$0xff]  ;;  %v2417_v62 = vadd.f32 %v8475_v15, %v10801_v9 }
 0x746   :  { %v2809_v33 = vadd.f32 %v2784_v3, %v8406_v43  ;;  %2883 = vrot.lane.b32.xlu1 %v8621_v45, %s6560_s13  ;;  %v2403_v43 = vadd.f32 %v8444_v46, %v10798_v44  ;;  %v2407_v42 = vadd.f32 %v8454_v41, %v10799_v39  ;;  %v2413_v3 = vadd.f32 %v8464_v60, %v10800_v63 }
 0x747   :  { %v2423_v44 = vadd.f32 %v8486_v10, %v10802_v35  ;;  %v2488_v60 = vadd.f32 %v8432_v36, %v2417_v62 }
 0x748   :  { %6012 = vtanh.f32 %v2809_v33  ;;  %v2485_v51 = vadd.f32 %v8432_v36, %v2403_v43  ;;  %v2486_v7 = vadd.f32 %v8432_v36, %v2407_v42  ;;  %v10803_v42 = vld [vmem:[#allocation58_spill] sm:$0xff] }
 0x749   :  { %v8629_v18 = vpop.eup %6004  ;;  %6014 = vpow2.f32 %v5496_v16  ;;  %v2489_v15 = vadd.f32 %v8432_v36, %v2423_v44  ;;  %v5502_v39 = vmul.f32 -1.442695, %v2488_v60 }
 0x74a   :  { %2885 = vrot.lane.b32.xlu0 %v8629_v18, %s6560_s13  ;;  %6016 = vpow2.f32 %v5497_v22  ;;  %v5499_v46 = vmul.f32 -1.442695, %v2485_v51  ;;  %v5500_v56 = vmul.f32 -1.442695, %v2486_v7  ;;  %v2487_v22 = vadd.f32 %v8432_v36, %v2413_v3  ;;  %v10804_v3 = vld [vmem:[#allocation60_spill] sm:$0xff] }
 0x74b   :  { %6018 = vpow2.f32 %v5498_v6  ;;  %v5503_v63 = vmul.f32 -1.442695, %v2489_v15 }
 0x74c   :  { %6020 = vpow2.f32 %v5499_v46  ;;  %v5501_v6 = vmul.f32 -1.442695, %v2487_v22  ;;  %v10805_v22 = vld [vmem:[#allocation61_spill] sm:$0xff] }
 0x74d   :  { %v8636_v13 = vpop.eup %6006 }
 0x74e   :  { %2887 = vrot.lane.b32.xlu1 %v8636_v13, %s6560_s13 }
 0x751   :  { %v8643_v47 = vpop.eup %6008 }
 0x752   :  { %2889 = vrot.lane.b32.xlu1 %v8643_v47, %s6560_s13  ;;  %v6011_v49 = vpop.eup %6010 }
 0x753   :  { %v2581_v33 = vadd.f32 1.0, %v6011_v49  ;;  %v2427_v49 = vadd.f32 %v8497_v12, %v10803_v42  ;;  %v2437_v12 = vadd.f32 %v8517_v24, %v10805_v22  ;;  %v10806_v42 = vld [vmem:[#allocation62_spill] sm:$0xff] }
 0x755   :  { %v8650_v16 = vpop.eup %6012  ;;  %6022 = vrcp.f32 %v2581_v33  ;;  %v2490_v10 = vadd.f32 %v8432_v36, %v2427_v49  ;;  %v2433_v33 = vadd.f32 %v8508_v30, %v10804_v3  ;;  %v2443_v49 = vadd.f32 %v8525_v26, %v10806_v42  ;;  %v10807_v3 = vld [vmem:[#allocation63_spill] sm:$0xff] }
 0x756   :  { %2891 = vrot.lane.b32.xlu0 %v8650_v16, %s6560_s13  ;;  %v6015_v41 = vpop.eup %6014  ;;  %6024 = vpow2.f32 %v5500_v56 }
 0x757   :  { %v2582_v43 = vadd.f32 1.0, %v6015_v41  ;;  %v6017_v51 = vpop.eup %6016  ;;  %v5504_v41 = vmul.f32 -1.442695, %v2490_v10  ;;  %v2491_v56 = vadd.f32 %v8432_v36, %v2433_v33  ;;  %v2447_v33 = vadd.f32 %v8533_v38, %v10807_v3 }
 0x758   :  { %v2583_v46 = vadd.f32 1.0, %v6017_v51  ;;  %v6019_v7 = vpop.eup %6018  ;;  %v2492_v51 = vadd.f32 %v8432_v36, %v2437_v12 }
 0x759   :  { %6026 = vrcp.f32 %v2582_v43  ;;  %v2584_v9 = vadd.f32 1.0, %v6019_v7  ;;  %v6021_v62 = vpop.eup %6020  ;;  %v5505_v30 = vmul.f32 -1.442695, %v2491_v56 }
 0x75a   :  { %6028 = vpow2.f32 %v5501_v6  ;;  %v2585_v44 = vadd.f32 1.0, %v6021_v62  ;;  %v5506_v10 = vmul.f32 -1.442695, %v2492_v51 }
 0x75b   :  { %6030 = vpow2.f32 %v5502_v39 }
 0x75c   :  { %6032 = vrcp.f32 %v2583_v46 }
 0x75d   :  { %6034 = vpow2.f32 %v5503_v63 }
 0x75e   :  { %6036 = vrcp.f32 %v2584_v9 }
 0x75f   :  { %6038 = vpow2.f32 %v5504_v41  ;;  %v2493_v41 = vadd.f32 %v8432_v36, %v2443_v49 }
 0x760   :  { %6040 = vrcp.f32 %v2585_v44 }
 0x761   :  { %v5507_v38 = vmul.f32 -1.442695, %v2493_v41 }
 0x762   :  { %v8669_v35 = vpop.eup %6022 }
 0x763   :  { %v6025_v43 = vpop.eup %6024 }
 0x764   :  { %v2586_v39 = vadd.f32 1.0, %v6025_v43  ;;  %v2494_v43 = vadd.f32 %v8432_v36, %v2447_v33 }
 0x766   :  { %v8673_v15 = vpop.eup %6026  ;;  %v5508_v49 = vmul.f32 -1.442695, %v2494_v43 }
 0x767   :  { %v6029_v46 = vpop.eup %6028 }
 0x768   :  { %v2719_v60 = vpop.permute.xlu0 %2718  ;;  %v6031_v9 = vpop.eup %6030  ;;  %v2587_v62 = vadd.f32 1.0, %v6029_v46 }
 0x769   :  { %v2785_v6 = vmul.f32 %v8669_v35, %v2719_v60  ;;  %v8683_v26 = vpop.eup %6032  ;;  %v2588_v44 = vadd.f32 1.0, %v6031_v9  ;;  %v10808_v60 = vld [vmem:[#allocation64_spill] sm:$0xff] }
 0x76a   :  { %v6035_v22 = vpop.eup %6034 }
 0x76b   :  { %v2810_v24 = vadd.f32 %v2785_v6, %v8416_v31  ;;  %v2453_v6 = vadd.f32 %v8541_v17, %v10808_v60  ;;  %v8690_v51 = vpop.eup %6036 }
 0x76c   :  { %v2721_v7 = vpop.permute.xlu1 %2720 }
 0x76d   :  { %6042 = vtanh.f32 %v2810_v24  ;;  %v2786_v63 = vmul.f32 %v8673_v15, %v2721_v7  ;;  %v6039_v24 = vpop.eup %6038  ;;  %v2495_v46 = vadd.f32 %v8432_v36, %v2453_v6  ;;  %v10809_v7 = vld [vmem:[#allocation65_spill] sm:$0xff] }
 0x76e   :  { %6044 = vpow2.f32 %v5505_v30  ;;  %v2590_v9 = vadd.f32 1.0, %v6039_v24 }
 0x76f   :  { %6046 = vrcp.f32 %v2586_v39  ;;  %v2811_v56 = vadd.f32 %v2786_v63, %v8424_v2  ;;  %v2589_v2 = vadd.f32 1.0, %v6035_v22  ;;  %v2457_v63 = vadd.f32 %v8553_v55, %v10809_v7 }
 0x770   :  { %v2723_v31 = vpop.permute.xlu0 %2722  ;;  %v5509_v41 = vmul.f32 -1.442695, %v2495_v46 }
 0x771   :  { %6048 = vtanh.f32 %v2811_v56  ;;  %v2787_v12 = vmul.f32 %v8683_v26, %v2723_v31  ;;  %v2496_v56 = vadd.f32 %v8432_v36, %v2457_v63  ;;  %v10810_v31 = vld [vmem:[#allocation66_spill] sm:$0xff] }
 0x772   :  { %6050 = vpow2.f32 %v5506_v10  ;;  %v8697_v10 = vpop.eup %6040  ;;  %v2463_v55 = vadd.f32 %v8565_v11, %v10810_v31 }
 0x773   :  { %6052 = vrcp.f32 %v2587_v62  ;;  %v2812_v30 = vadd.f32 %v2787_v12, %v8437_v29  ;;  %v5510_v6 = vmul.f32 -1.442695, %v2496_v56 }
 0x774   :  { %v2725_v39 = vpop.permute.xlu1 %2724  ;;  %v2497_v11 = vadd.f32 %v8432_v36, %v2463_v55 }
 0x775   :  { %6054 = vtanh.f32 %v2812_v30  ;;  %v2788_v42 = vmul.f32 %v8690_v51, %v2725_v39 }
 0x776   :  { %6056 = vrcp.f32 %v2588_v44  ;;  %v5511_v46 = vmul.f32 -1.442695, %v2497_v11 }
 0x777   :  { %6058 = vpow2.f32 %v5507_v38  ;;  %v2813_v17 = vadd.f32 %v2788_v42, %v8447_v20 }
 0x778   :  { %6060 = vrcp.f32 %v2589_v2  ;;  %v2727_v29 = vpop.permute.xlu0 %2726 }
 0x779   :  { %6062 = vtanh.f32 %v2813_v17  ;;  %v2789_v3 = vmul.f32 %v8697_v10, %v2727_v29 }
 0x77a   :  { %v8700_v33 = vpop.eup %6042  ;;  %6064 = vpow2.f32 %v5508_v49 }
 0x77b   :  { %v6045_v62 = vpop.eup %6044  ;;  %v2814_v20 = vadd.f32 %v2789_v3, %v8457_v54  ;;  %2893 = vrot.lane.b32.xlu1 %v8700_v33, %s6560_s13 }
 0x77c   :  { %v8708_v22 = vpop.eup %6046  ;;  %v2729_v12 = vpop.permute.xlu1 %2728  ;;  %v2591_v38 = vadd.f32 1.0, %v6045_v62 }
 0x77d   :  { %6066 = vtanh.f32 %v2814_v20  ;;  %v2790_v44 = vmul.f32 %v8708_v22, %v2729_v12 }
 0x77e   :  { %v8711_v43 = vpop.eup %6048  ;;  %6068 = vrcp.f32 %v2590_v9 }
 0x77f   :  { %v6051_v60 = vpop.eup %6050  ;;  %6070 = vpow2.f32 %v5509_v41  ;;  %v2815_v54 = vadd.f32 %v2790_v44, %v8467_v40  ;;  %2895 = vrot.lane.b32.xlu0 %v8711_v43, %s6560_s13 }
 0x780   :  { %v8717_v30 = vpop.eup %6052  ;;  %v2731_v2 = vpop.permute.xlu0 %2730  ;;  %v2592_v49 = vadd.f32 1.0, %v6051_v60 }
 0x781   :  { %6072 = vtanh.f32 %v2815_v54  ;;  %v2791_v39 = vmul.f32 %v8717_v30, %v2731_v2 }
 0x782   :  { %v8720_v42 = vpop.eup %6054  ;;  %6074 = vrcp.f32 %v2591_v38 }
 0x783   :  { %v8722_v24 = vpop.eup %6056  ;;  %6076 = vpow2.f32 %v5510_v6  ;;  %v2816_v36 = vadd.f32 %v2791_v39, %v8478_v19  ;;  %2897 = vrot.lane.b32.xlu1 %v8720_v42, %s6560_s13 }
 0x784   :  { %v6059_v40 = vpop.eup %6058  ;;  %v2733_v7 = vpop.permute.xlu1 %2732 }
 0x785   :  { %v8727_v63 = vpop.eup %6060  ;;  %6078 = vtanh.f32 %v2816_v36  ;;  %v2792_v17 = vmul.f32 %v8722_v24, %v2733_v7  ;;  %v2593_v9 = vadd.f32 1.0, %v6059_v40 }
 0x786   :  { %v8730_v29 = vpop.eup %6062  ;;  %6080 = vrcp.f32 %v2592_v49 }
 0x787   :  { %v6065_v3 = vpop.eup %6064  ;;  %6082 = vpow2.f32 %v5511_v46  ;;  %v2817_v62 = vadd.f32 %v2792_v17, %v8489_v21  ;;  %2899 = vrot.lane.b32.xlu0 %v8730_v29, %s6560_s13 }
 0x788   :  { %v2735_v19 = vpop.permute.xlu0 %2734  ;;  %v2594_v55 = vadd.f32 1.0, %v6065_v3 }
 0x789   :  { %6084 = vtanh.f32 %v2817_v62  ;;  %v2793_v41 = vmul.f32 %v8727_v63, %v2735_v19 }
 0x78a   :  { %v8736_v56 = vpop.eup %6066  ;;  %6086 = vrcp.f32 %v2593_v9 }
 0x78b   :  { %v8738_v31 = vpop.eup %6068  ;;  %v2818_v20 = vadd.f32 %v2793_v41, %v8500_v34  ;;  %2901 = vrot.lane.b32.xlu1 %v8736_v56, %s6560_s13 }
 0x78c   :  { %v6071_v12 = vpop.eup %6070  ;;  %v2737_v21 = vpop.permute.xlu1 %2736 }
 0x78d   :  { %6088 = vtanh.f32 %v2818_v20  ;;  %v2794_v44 = vmul.f32 %v8738_v31, %v2737_v21  ;;  %v2595_v6 = vadd.f32 1.0, %v6071_v12 }
 0x78e   :  { %v8744_v38 = vpop.eup %6072  ;;  %6090 = vrcp.f32 %v2594_v55 }
 0x78f   :  { %v8746_v60 = vpop.eup %6074  ;;  %v2819_v11 = vadd.f32 %v2794_v44, %v8511_v14  ;;  %2903 = vrot.lane.b32.xlu0 %v8744_v38, %s6560_s13 }
 0x790   :  { %v6077_v34 = vpop.eup %6076  ;;  %v2739_v54 = vpop.permute.xlu0 %2738 }
 0x791   :  { %6092 = vtanh.f32 %v2819_v11  ;;  %v2795_v2 = vmul.f32 %v8746_v60, %v2739_v54  ;;  %v2596_v46 = vadd.f32 1.0, %v6077_v34 }
 0x792   :  { %v8752_v39 = vpop.eup %6078  ;;  %6094 = vrcp.f32 %v2595_v6 }
 0x793   :  { %v8754_v49 = vpop.eup %6080  ;;  %v2820_v36 = vadd.f32 %v2795_v2, %v8520_v59  ;;  %2905 = vrot.lane.b32.xlu1 %v8752_v39, %s6560_s13 }
 0x794   :  { %v6083_v14 = vpop.eup %6082  ;;  %v2741_v40 = vpop.permute.xlu1 %2740 }
 0x795   :  { %6096 = vtanh.f32 %v2820_v36  ;;  %v2796_v7 = vmul.f32 %v8754_v49, %v2741_v40  ;;  %v2597_v3 = vadd.f32 1.0, %v6083_v14 }
 0x796   :  { %v8760_v17 = vpop.eup %6084  ;;  %6098 = vrcp.f32 %v2596_v46 }
 0x797   :  { %v2821_v9 = vadd.f32 %v2796_v7, %v8528_v48  ;;  %2907 = vrot.lane.b32.xlu0 %v8760_v17, %s6560_s13  ;;  %v8765_v62 = vpop.eup %6086 }
 0x798   :  { %v2743_v59 = vpop.permute.xlu0 %2742 }
 0x799   :  { %6100 = vtanh.f32 %v2821_v9  ;;  %v2797_v19 = vmul.f32 %v8765_v62, %v2743_v59 }
 0x79a   :  { %v8768_v41 = vpop.eup %6088  ;;  %6102 = vrcp.f32 %v2597_v3 }
 0x79b   :  { %v2822_v55 = vadd.f32 %v2797_v19, %v8536_v25  ;;  %2909 = vrot.lane.b32.xlu1 %v8768_v41, %s6560_s13  ;;  %v8773_v20 = vpop.eup %6090 }
 0x79c   :  { %v2745_v48 = vpop.permute.xlu1 %2744 }
 0x79d   :  { %6104 = vtanh.f32 %v2822_v55  ;;  %v2798_v12 = vmul.f32 %v8773_v20, %v2745_v48 }
 0x79e   :  { %v8776_v21 = vpop.eup %6092 }
 0x79f   :  { %v2823_v44 = vadd.f32 %v2798_v12, %v8546_v37  ;;  %2911 = vrot.lane.b32.xlu0 %v8776_v21, %s6560_s13  ;;  %v8781_v6 = vpop.eup %6094 }
 0x7a0   :  { %v2747_v11 = vpop.permute.xlu0 %2746 }
 0x7a1   :  { %6106 = vtanh.f32 %v2823_v44  ;;  %v2799_v25 = vmul.f32 %v8781_v6, %v2747_v11 }
 0x7a2   :  { %v8784_v34 = vpop.eup %6096 }
 0x7a3   :  { %v2824_v54 = vadd.f32 %v2799_v25, %v8558_v53  ;;  %2913 = vrot.lane.b32.xlu1 %v8784_v34, %s6560_s13  ;;  %v8789_v2 = vpop.eup %6098  ;;  %v10813_v25 = vld [vmem:[#allocation17_spill] sm:$0xff] }
 0x7a4   :  { %v2749_v46 = vpop.permute.xlu1 %2748 }
 0x7a5   :  { %6108 = vtanh.f32 %v2824_v54  ;;  %v2800_v37 = vmul.f32 %v8789_v2, %v2749_v46  ;;  %v10814_v46 = vld [vmem:[#allocation20_spill] sm:$0xff] }
 0x7a6   :  { %v8792_v36 = vpop.eup %6100 }
 0x7a7   :  { %v2825_v14 = vadd.f32 %v2800_v37, %v8570_v58  ;;  %2915 = vrot.lane.b32.xlu0 %v8792_v36, %s6560_s13  ;;  %v8797_v40 = vpop.eup %6102 }
 0x7a8   :  { %v2751_v7 = vpop.permute.xlu0 %2750 }
 0x7a9   :  { %6110 = vtanh.f32 %v2825_v14  ;;  %v2801_v53 = vmul.f32 %v8797_v40, %v2751_v7 }
 0x7aa   :  { %v8800_v3 = vpop.eup %6104 }
 0x7ab   :  { %v2826_v9 = vadd.f32 %v2801_v53, %v8580_v32  ;;  %2917 = vrot.lane.b32.xlu1 %v8800_v3, %s6560_s13  ;;  %v10811_v32 = vld [vmem:[#allocation18_spill] sm:$0xff]  ;;  %v10815_v53 = vld [vmem:[#allocation19_spill] sm:$0xff] }
 0x7ac   :  { %v2878_v44 = vpop.permute.xlu0 %2877 }
 0x7ad   :  { %6112 = vtanh.f32 %v2826_v9  ;;  %v2952_v54 = vsub.f32 %v10813_v25, %v2878_v44  ;;  %v10818_v25 = vld [vmem:[#allocation26_spill] sm:$0xff] }
 0x7ae   :  { %v8805_v59 = vpop.eup %6106 }
 0x7af   :  { %2919 = vrot.lane.b32.xlu0 %v8805_v59, %s6560_s13 }
 0x7b0   :  { %v2880_v55 = vpop.permute.xlu1 %2879 }
 0x7b1   :  { %v2953_v48 = vsub.f32 %v10811_v32, %v2880_v55  ;;  %v10816_v55 = vld [vmem:[#allocation22_spill] sm:$0xff] }
 0x7b2   :  { %v8809_v58 = vpop.eup %6108 }
 0x7b3   :  { %2921 = vrot.lane.b32.xlu1 %v8809_v58, %s6560_s13 }
 0x7b4   :  { %v2882_v14 = vpop.permute.xlu0 %2881 }
 0x7b5   :  { %v2954_v9 = vsub.f32 %v10815_v53, %v2882_v14 }
 0x7b6   :  { %v8813_v19 = vpop.eup %6110 }
 0x7b7   :  { %2923 = vrot.lane.b32.xlu0 %v8813_v19, %s6560_s13 }
 0x7b8   :  { %v2884_v11 = vpop.permute.xlu1 %2883 }
 0x7b9   :  { %v2955_v37 = vsub.f32 %v10814_v46, %v2884_v11 }
 0x7ba   :  { %v8818_v12 = vpop.eup %6112 }
 0x7bb   :  { %10812 = vst [vmem:[#allocation53_spill] sm:$0xff] %v8818_v12  ;;  %3004 = vrot.lane.b32.xlu0 %v2953_v48, %s6561_s14  ;;  %2925 = vrot.lane.b32.xlu1 %v8818_v12, %s6560_s13  ;;  %v10817_v48 = vld [vmem:[#allocation21_spill] sm:$0xff] }
 0x7bc   :  { %v2886_v8 = vpop.permute.xlu0 %2885 }
 0x7bd   :  { %v2956_v12 = vsub.f32 %v10817_v48, %v2886_v8 }
 0x7bf   :  { %3008 = vrot.lane.b32.xlu0 %v2955_v37, %s6561_s14  ;;  %3002 = vrot.lane.b32.xlu1 %v2952_v54, %s6561_s14  ;;  %v10819_v37 = vld [vmem:[#allocation25_spill] sm:$0xff] }
 0x7c0   :  { %v2888_v7 = vpop.permute.xlu1 %2887 }
 0x7c1   :  { %v2957_v32 = vsub.f32 %v10816_v55, %v2888_v7  ;;  %v10820_v7 = vld [vmem:[#allocation24_spill] sm:$0xff]  ;;  %v10821_v55 = vld [vmem:[#allocation23_spill] sm:$0xff] }
 0x7c3   :  { %3012 = vrot.lane.b32.xlu0 %v2957_v32, %s6561_s14  ;;  %3006 = vrot.lane.b32.xlu1 %v2954_v9, %s6561_s14  ;;  %v10822_v32 = vld [vmem:[#allocation29_spill] sm:$0xff] }
 0x7c4   :  { %v2890_v44 = vpop.permute.xlu1 %2889 }
 0x7c5   :  { %v2958_v46 = vsub.f32 %v10818_v25, %v2890_v44 }
 0x7c7   :  { %3010 = vrot.lane.b32.xlu1 %v2956_v12, %s6561_s14 }
 0x7c8   :  { %v2892_v11 = vpop.permute.xlu0 %2891 }
 0x7c9   :  { %v2959_v54 = vsub.f32 %v10819_v37, %v2892_v11  ;;  %v10823_v11 = vld [vmem:[#allocation30_spill] sm:$0xff]  ;;  %v10824_v37 = vld [vmem:[#allocation28_spill] sm:$0xff] }
 0x7cb   :  { %3014 = vrot.lane.b32.xlu1 %v2958_v46, %s6561_s14  ;;  %3016 = vrot.lane.b32.xlu0 %v2959_v54, %s6561_s14 }
 0x7ed   :  { %v2894_v14 = vpop.permute.xlu1 %2893 }
 0x7ee   :  { %v2960_v53 = vsub.f32 %v10820_v7, %v2894_v14  ;;  %v10825_v7 = vld [vmem:[#allocation27_spill] sm:$0xff] }
 0x7f0   :  { %3018 = vrot.lane.b32.xlu1 %v2960_v53, %s6561_s14 }
 0x7f1   :  { %v2896_v9 = vpop.permute.xlu0 %2895 }
 0x7f2   :  { %v2961_v8 = vsub.f32 %v10821_v55, %v2896_v9  ;;  %v10826_v55 = vld [vmem:[#allocation33_spill] sm:$0xff] }
 0x7f4   :  { %3020 = vrot.lane.b32.xlu0 %v2961_v8, %s6561_s14 }
 0x7f5   :  { %v2898_v12 = vpop.permute.xlu1 %2897 }
 0x7f6   :  { %v2962_v48 = vsub.f32 %v10822_v32, %v2898_v12  ;;  %v10827_v32 = vld [vmem:[#allocation34_spill] sm:$0xff] }
 0x7f8   :  { %3022 = vrot.lane.b32.xlu0 %v2962_v48, %s6561_s14 }
 0x7f9   :  { %v2900_v44 = vpop.permute.xlu0 %2899 }
 0x7fa   :  { %v2963_v25 = vsub.f32 %v10823_v11, %v2900_v44  ;;  %v10828_v11 = vld [vmem:[#allocation32_spill] sm:$0xff] }
 0x7fc   :  { %3024 = vrot.lane.b32.xlu1 %v2963_v25, %s6561_s14 }
 0x7fd   :  { %v2902_v46 = vpop.permute.xlu1 %2901 }
 0x7fe   :  { %v2964_v54 = vsub.f32 %v10824_v37, %v2902_v46  ;;  %v10829_v37 = vld [vmem:[#allocation31_spill] sm:$0xff] }
 0x800   :  { %3026 = vrot.lane.b32.xlu0 %v2964_v54, %s6561_s14 }
 0x801   :  { %v2904_v14 = vpop.permute.xlu0 %2903 }
 0x802   :  { %v2965_v53 = vsub.f32 %v10825_v7, %v2904_v14  ;;  %v10830_v7 = vld [vmem:[#allocation35_spill] sm:$0xff] }
 0x804   :  { %3028 = vrot.lane.b32.xlu1 %v2965_v53, %s6561_s14 }
 0x805   :  { %v2906_v9 = vpop.permute.xlu1 %2905 }
 0x806   :  { %v2966_v8 = vsub.f32 %v10826_v55, %v2906_v9  ;;  %v10831_v55 = vld [vmem:[#allocation36_spill] sm:$0xff] }
 0x808   :  { %3030 = vrot.lane.b32.xlu0 %v2966_v8, %s6561_s14 }
 0x809   :  { %v2908_v12 = vpop.permute.xlu0 %2907 }
 0x80a   :  { %v2967_v48 = vsub.f32 %v10827_v32, %v2908_v12  ;;  %v10832_v32 = vld [vmem:[#allocation37_spill] sm:$0xff] }
 0x80c   :  { %3032 = vrot.lane.b32.xlu1 %v2967_v48, %s6561_s14 }
 0x80d   :  { %v2910_v44 = vpop.permute.xlu1 %2909 }
 0x80e   :  { %v2968_v25 = vsub.f32 %v10828_v11, %v2910_v44  ;;  %v10833_v11 = vld [vmem:[#allocation38_spill] sm:$0xff] }
 0x810   :  { %3034 = vrot.lane.b32.xlu0 %v2968_v25, %s6561_s14 }
 0x811   :  { %v2912_v46 = vpop.permute.xlu0 %2911 }
 0x812   :  { %v2969_v54 = vsub.f32 %v10829_v37, %v2912_v46  ;;  %v10834_v37 = vld [vmem:[#allocation39_spill] sm:$0xff] }
 0x814   :  { %3036 = vrot.lane.b32.xlu1 %v2969_v54, %s6561_s14 }
 0x815   :  { %v2914_v14 = vpop.permute.xlu1 %2913 }
 0x816   :  { %v2970_v53 = vsub.f32 %v10830_v7, %v2914_v14  ;;  %v10835_v7 = vld [vmem:[#allocation40_spill] sm:$0xff] }
 0x818   :  { %3038 = vrot.lane.b32.xlu0 %v2970_v53, %s6561_s14 }
 0x819   :  { %v2916_v9 = vpop.permute.xlu0 %2915 }
 0x81a   :  { %v2971_v8 = vsub.f32 %v10831_v55, %v2916_v9 }
 0x81c   :  { %3040 = vrot.lane.b32.xlu1 %v2971_v8, %s6561_s14  ;;  %v10836_v8 = vld [vmem:[#allocation41_spill] sm:$0xff] }
 0x81d   :  { %v2918_v12 = vpop.permute.xlu1 %2917 }
 0x81e   :  { %v2972_v48 = vsub.f32 %v10832_v32, %v2918_v12 }
 0x820   :  { %3042 = vrot.lane.b32.xlu0 %v2972_v48, %s6561_s14 }
 0x821   :  { %v2920_v44 = vpop.permute.xlu0 %2919 }
 0x822   :  { %v2973_v25 = vsub.f32 %v10833_v11, %v2920_v44 }
 0x824   :  { %3044 = vrot.lane.b32.xlu1 %v2973_v25, %s6561_s14 }
 0x825   :  { %v2922_v46 = vpop.permute.xlu1 %2921 }
 0x826   :  { %v2974_v54 = vsub.f32 %v10834_v37, %v2922_v46 }
 0x828   :  { %3046 = vrot.lane.b32.xlu0 %v2974_v54, %s6561_s14 }
 0x829   :  { %v2924_v14 = vpop.permute.xlu0 %2923 }
 0x82a   :  { %v2975_v53 = vsub.f32 %v10835_v7, %v2924_v14 }
 0x82c   :  { %3048 = vrot.lane.b32.xlu1 %v2975_v53, %s6561_s14 }
 0x82d   :  { %v2926_v9 = vpop.permute.xlu1 %2925  ;;  %v3005_v55 = vpop.permute.xlu0 %3004 }
 0x82e   :  { %v2976_v12 = vsub.f32 %v10836_v8, %v2926_v9  ;;  %v3078_v32 = vmul.f32 %v8555_v5, %v3005_v55 }
 0x830   :  { %3050 = vrot.lane.b32.xlu0 %v2976_v12, %s6561_s14  ;;  %3129 = vrot.lane.b32.xlu1 %v3078_v32, %s6551_s19 }
 0x831   :  { %v3003_v48 = vpop.permute.xlu1 %3002  ;;  %v3009_v44 = vpop.permute.xlu0 %3008 }
 0x832   :  { %v3077_v11 = vmul.f32 %v8543_v27, %v3003_v48  ;;  %v3080_v25 = vmul.f32 %v8576_v57, %v3009_v44 }
 0x834   :  { %3127 = vrot.lane.b32.xlu0 %v3077_v11, %s6551_s19  ;;  %3133 = vrot.lane.b32.xlu1 %v3080_v25, %s6551_s19 }
 0x835   :  { %v3007_v46 = vpop.permute.xlu1 %3006  ;;  %v3013_v37 = vpop.permute.xlu0 %3012 }
 0x836   :  { %v3079_v54 = vmul.f32 %v8567_v52, %v3007_v46  ;;  %v3082_v5 = vmul.f32 %v8594_v50, %v3013_v37 }
 0x838   :  { %3131 = vrot.lane.b32.xlu0 %v3079_v54, %s6551_s19  ;;  %3137 = vrot.lane.b32.xlu1 %v3082_v5, %s6551_s19 }
 0x839   :  { %v3011_v14 = vpop.permute.xlu1 %3010 }
 0x83a   :  { %v3081_v7 = vmul.f32 %v8586_v0, %v3011_v14 }
 0x83c   :  { %3135 = vrot.lane.b32.xlu0 %v3081_v7, %s6551_s19 }
 0x83d   :  { %v3015_v27 = vpop.permute.xlu1 %3014  ;;  %v3017_v57 = vpop.permute.xlu0 %3016 }
 0x83e   :  { %v3083_v53 = vmul.f32 %v8605_v28, %v3015_v27  ;;  %v3084_v9 = vmul.f32 %v8614_v4, %v3017_v57 }
 0x840   :  { %3139 = vrot.lane.b32.xlu0 %v3083_v53, %s6551_s19  ;;  %3141 = vrot.lane.b32.xlu1 %v3084_v9, %s6551_s19 }
 0x862   :  { %v3019_v52 = vpop.permute.xlu1 %3018 }
 0x863   :  { %v3085_v50 = vmul.f32 %v8669_v35, %v3019_v52 }
 0x865   :  { %3143 = vrot.lane.b32.xlu0 %v3085_v50, %s6551_s19 }
 0x866   :  { %v3021_v55 = vpop.permute.xlu0 %3020 }
 0x867   :  { %v3086_v0 = vmul.f32 %v8673_v15, %v3021_v55 }
 0x869   :  { %3145 = vrot.lane.b32.xlu1 %v3086_v0, %s6551_s19 }
 0x86a   :  { %v3023_v8 = vpop.permute.xlu0 %3022 }
 0x86b   :  { %v3087_v12 = vmul.f32 %v8683_v26, %v3023_v8 }
 0x86d   :  { %3147 = vrot.lane.b32.xlu1 %v3087_v12, %s6551_s19 }
 0x86e   :  { %v3025_v28 = vpop.permute.xlu1 %3024 }
 0x86f   :  { %v3088_v4 = vmul.f32 %v8690_v51, %v3025_v28 }
 0x871   :  { %3149 = vrot.lane.b32.xlu0 %v3088_v4, %s6551_s19 }
 0x872   :  { %v3027_v32 = vpop.permute.xlu0 %3026 }
 0x873   :  { %v3089_v35 = vmul.f32 %v8697_v10, %v3027_v32 }
 0x875   :  { %3151 = vrot.lane.b32.xlu1 %v3089_v35, %s6551_s19 }
 0x876   :  { %v3029_v48 = vpop.permute.xlu1 %3028 }
 0x877   :  { %v3090_v15 = vmul.f32 %v8708_v22, %v3029_v48 }
 0x879   :  { %3153 = vrot.lane.b32.xlu0 %v3090_v15, %s6551_s19 }
 0x87a   :  { %v3031_v44 = vpop.permute.xlu0 %3030 }
 0x87b   :  { %v3091_v26 = vmul.f32 %v8717_v30, %v3031_v44 }
 0x87d   :  { %3155 = vrot.lane.b32.xlu1 %v3091_v26, %s6551_s19 }
 0x87e   :  { %v3033_v11 = vpop.permute.xlu1 %3032 }
 0x87f   :  { %v3092_v51 = vmul.f32 %v8722_v24, %v3033_v11 }
 0x881   :  { %3157 = vrot.lane.b32.xlu0 %v3092_v51, %s6551_s19 }
 0x882   :  { %v3035_v25 = vpop.permute.xlu0 %3034 }
 0x883   :  { %v3093_v10 = vmul.f32 %v8727_v63, %v3035_v25 }
 0x885   :  { %3159 = vrot.lane.b32.xlu0 %v3093_v10, %s6551_s19 }
 0x886   :  { %v3037_v46 = vpop.permute.xlu1 %3036 }
 0x887   :  { %v3094_v22 = vmul.f32 %v8738_v31, %v3037_v46 }
 0x889   :  { %3161 = vrot.lane.b32.xlu1 %v3094_v22, %s6551_s19 }
 0x88a   :  { %v3039_v37 = vpop.permute.xlu0 %3038 }
 0x88b   :  { %v3095_v30 = vmul.f32 %v8746_v60, %v3039_v37 }
 0x88d   :  { %3163 = vrot.lane.b32.xlu0 %v3095_v30, %s6551_s19 }
 0x88e   :  { %v3041_v54 = vpop.permute.xlu1 %3040 }
 0x88f   :  { %v3096_v24 = vmul.f32 %v8754_v49, %v3041_v54 }
 0x891   :  { %3165 = vrot.lane.b32.xlu1 %v3096_v24, %s6551_s19 }
 0x892   :  { %v3043_v5 = vpop.permute.xlu0 %3042 }
 0x893   :  { %v3097_v63 = vmul.f32 %v8765_v62, %v3043_v5 }
 0x895   :  { %3167 = vrot.lane.b32.xlu0 %v3097_v63, %s6551_s19 }
 0x896   :  { %v3045_v14 = vpop.permute.xlu1 %3044 }
 0x897   :  { %v3098_v31 = vmul.f32 %v8773_v20, %v3045_v14 }
 0x899   :  { %3169 = vrot.lane.b32.xlu1 %v3098_v31, %s6551_s19 }
 0x89a   :  { %v3047_v7 = vpop.permute.xlu0 %3046 }
 0x89b   :  { %v3099_v60 = vmul.f32 %v8781_v6, %v3047_v7 }
 0x89d   :  { %3171 = vrot.lane.b32.xlu0 %v3099_v60, %s6551_s19 }
 0x89e   :  { %v3049_v27 = vpop.permute.xlu1 %3048 }
 0x89f   :  { %v3100_v49 = vmul.f32 %v8789_v2, %v3049_v27 }
 0x8a1   :  { %3173 = vrot.lane.b32.xlu1 %v3100_v49, %s6551_s19 }
 0x8a2   :  { %v3130_v57 = vpop.permute.xlu1 %3129  ;;  %v3051_v53 = vpop.permute.xlu0 %3050 }
 0x8a3   :  { %v8920_v62 = vadd.f32 %v8599_v1, %v3130_v57  ;;  %v3101_v9 = vmul.f32 %v8797_v40, %v3051_v53 }
 0x8a5   :  { %5166 = vst.msk [vmem:[#allocation11 + $0x8] sm:$0xff] %vm891_vm3, %v8920_v62  ;;  %3175 = vrot.lane.b32.xlu0 %v3101_v9, %s6551_s19 }
 0x8a6   :  { %v3134_v20 = vpop.permute.xlu1 %3133  ;;  %v3128_v6 = vpop.permute.xlu0 %3127 }
 0x8a7   :  { %v8927_v52 = vadd.f32 %v8621_v45, %v3134_v20  ;;  %v8930_v2 = vadd.f32 %v8589_v61, %v3128_v6 }
 0x8a9   :  { %5168 = vst.msk [vmem:[#allocation11 + $0x18] sm:$0xff] %vm891_vm3, %v8927_v52  ;;  %5165 = vst.msk [vmem:[#allocation11] sm:$0xff] %vm891_vm3, %v8930_v2  ;;  %v3227_v12 = vsel %vm891_vm3, %v8930_v2, 0.0 }
 0x8aa   :  { %v3138_v1 = vpop.permute.xlu1 %3137  ;;  %v3132_v40 = vpop.permute.xlu0 %3131 }
 0x8ab   :  { %v8937_v50 = vadd.f32 %v8636_v13, %v3138_v1  ;;  %v8940_v55 = vadd.f32 %v8610_v23, %v3132_v40 }
 0x8ad   :  { %5170 = vst.msk [vmem:[#allocation11 + $0x28] sm:$0xff] %vm891_vm3, %v8937_v50  ;;  %5167 = vst.msk [vmem:[#allocation11 + $0x10] sm:$0xff] %vm891_vm3, %v8940_v55  ;;  %v3242_v28 = vsel %vm891_vm3, %v8937_v50, 0.0 }
 0x8ae   :  { %v3136_v61 = vpop.permute.xlu0 %3135 }
 0x8af   :  { %v8947_v45 = vadd.f32 %v8629_v18, %v3136_v61  ;;  %v3230_v18 = vsel %vm891_vm3, %v8920_v62, 0.0 }
 0x8b1   :  { %5169 = vst.msk [vmem:[#allocation11 + $0x20] sm:$0xff] %vm891_vm3, %v8947_v45  ;;  %v3239_v4 = vsel %vm891_vm3, %v8947_v45, 0.0 }
 0x8b2   :  { %v3142_v0 = vpop.permute.xlu1 %3141  ;;  %v3140_v8 = vpop.permute.xlu0 %3139 }
 0x8b3   :  { %v8952_v13 = vadd.f32 %v8650_v16, %v3142_v0  ;;  %v8955_v23 = vadd.f32 %v8643_v47, %v3140_v8  ;;  %v3236_v16 = vsel %vm891_vm3, %v8927_v52, 0.0  ;;  %v3233_v47 = vsel %vm891_vm3, %v8940_v55, 0.0 }
 0x8b5   :  { %5172 = vst.msk [vmem:[#allocation11 + $0x38] sm:$0xff] %vm891_vm3, %v8952_v13  ;;  %5171 = vst.msk [vmem:[#allocation11 + $0x30] sm:$0xff] %vm891_vm3, %v8955_v23  ;;  %v3248_v32 = vsel %vm891_vm3, %v8952_v13, 0.0  ;;  %v3245_v35 = vsel %vm891_vm3, %v8955_v23, 0.0 }
 0x8c4   :  { %3231 = vadd.xlane.f32.xlu0 %v3230_v18 }
 0x8c5   :  { %3228 = vadd.xlane.f32.xlu1 %v3227_v12 }
 0x8c8   :  { %3237 = vadd.xlane.f32.xlu0 %v3236_v16  ;;  %v5810_v16 = vld [vmem:[%s10580_s6 + $0x18] sm:$0xff]  }
 0x8c9   :  { %3234 = vadd.xlane.f32.xlu1 %v3233_v47  ;;  %v10837_v47 = vld [vmem:[#allocation53_spill] sm:$0xff]  ;;  %5695 = vmatpush3.bf16.msra.mxu0 %v5810_v16 }
 0x8cc   :  { %3243 = vadd.xlane.f32.xlu0 %v3242_v28 }
 0x8cd   :  { %3240 = vadd.xlane.f32.xlu1 %v3239_v4  ;;  %v10838_v4 = vmov 0.0  }
 0x8ce   :  { %5696 = vmatprep.subr.bf16.mxu0 %v10838_v4 }
 0x8d0   :  { %3249 = vadd.xlane.f32.xlu0 %v3248_v32  ;;  %v5811_v32 = vld [vmem:[%s10580_s6 + $0x10] sm:$0xff]  }
 0x8d1   :  { %3246 = vadd.xlane.f32.xlu1 %v3245_v35  ;;  %5697 = vmatpush3.bf16.msra.mxu0 %v5811_v32  ;;  %v5812_v35 = vld [vmem:[%s10580_s6 + $0x8] sm:$0xff]  }
 0x8d2   :  { %5698 = vmatprep.subr.bf16.mxu0 %v10838_v4 }
 0x8d5   :  { %5699 = vmatpush3.bf16.msra.mxu0 %v5812_v35 }
 0x8d6   :  { %5700 = vmatprep.subr.bf16.mxu0 %v10838_v4 }
 0x8d7   :  { %v3144_v48 = vpop.permute.xlu0 %3143 }
 0x8d8   :  { %v8978_v15 = vadd.f32 %v8700_v33, %v3144_v48 }
 0x8da   :  { %5173 = vst.msk [vmem:[#allocation11 + $0x40] sm:$0xff] %vm891_vm3, %v8978_v15  ;;  %v3251_v44 = vsel %vm891_vm3, %v8978_v15, 0.0 }
 0x8db   :  { %v3146_v26 = vpop.permute.xlu1 %3145  ;;  %3252 = vadd.xlane.f32.xlu1 %v3251_v44 }
 0x8dc   :  { %v8985_v11 = vadd.f32 %v8711_v43, %v3146_v26 }
 0x8de   :  { %5174 = vst.msk [vmem:[#allocation11 + $0x48] sm:$0xff] %vm891_vm3, %v8985_v11  ;;  %v3254_v51 = vsel %vm891_vm3, %v8985_v11, 0.0 }
 0x8df   :  { %v3148_v25 = vpop.permute.xlu1 %3147  ;;  %3255 = vadd.xlane.f32.xlu0 %v3254_v51 }
 0x8e0   :  { %v8992_v33 = vadd.f32 %v8720_v42, %v3148_v25 }
 0x8e2   :  { %5175 = vst.msk [vmem:[#allocation11 + $0x50] sm:$0xff] %vm891_vm3, %v8992_v33  ;;  %v3257_v10 = vsel %vm891_vm3, %v8992_v33, 0.0 }
 0x8e3   :  { %3258 = vadd.xlane.f32.xlu1 %v3257_v10  ;;  %v3150_v43 = vpop.permute.xlu0 %3149 }
 0x8e4   :  { %v8999_v46 = vadd.f32 %v8730_v29, %v3150_v43 }
 0x8e6   :  { %5176 = vst.msk [vmem:[#allocation11 + $0x58] sm:$0xff] %vm891_vm3, %v8999_v46  ;;  %v3260_v22 = vsel %vm891_vm3, %v8999_v46, 0.0 }
 0x8e7   :  { %v3152_v37 = vpop.permute.xlu1 %3151  ;;  %3261 = vadd.xlane.f32.xlu1 %v3260_v22 }
 0x8e8   :  { %v9006_v42 = vadd.f32 %v8736_v56, %v3152_v37 }
 0x8ea   :  { %5177 = vst.msk [vmem:[#allocation11 + $0x60] sm:$0xff] %vm891_vm3, %v9006_v42  ;;  %v3263_v30 = vsel %vm891_vm3, %v9006_v42, 0.0 }
 0x8eb   :  { %3264 = vadd.xlane.f32.xlu1 %v3263_v30  ;;  %v3154_v29 = vpop.permute.xlu0 %3153 }
 0x8ec   :  { %v9013_v54 = vadd.f32 %v8744_v38, %v3154_v29 }
 0x8ee   :  { %5178 = vst.msk [vmem:[#allocation11 + $0x68] sm:$0xff] %vm891_vm3, %v9013_v54  ;;  %v3266_v24 = vsel %vm891_vm3, %v9013_v54, 0.0 }
 0x8ef   :  { %v3156_v5 = vpop.permute.xlu1 %3155  ;;  %3267 = vadd.xlane.f32.xlu1 %v3266_v24 }
 0x8f0   :  { %v9020_v56 = vadd.f32 %v8752_v39, %v3156_v5 }
 0x8f2   :  { %5179 = vst.msk [vmem:[#allocation11 + $0x70] sm:$0xff] %vm891_vm3, %v9020_v56  ;;  %v3269_v63 = vsel %vm891_vm3, %v9020_v56, 0.0 }
 0x8f3   :  { %3270 = vadd.xlane.f32.xlu1 %v3269_v63  ;;  %v3158_v38 = vpop.permute.xlu0 %3157 }
 0x8f4   :  { %v9027_v14 = vadd.f32 %v8760_v17, %v3158_v38 }
 0x8f6   :  { %5180 = vst.msk [vmem:[#allocation11 + $0x78] sm:$0xff] %vm891_vm3, %v9027_v14  ;;  %v3272_v31 = vsel %vm891_vm3, %v9027_v14, 0.0 }
 0x8f7   :  { %3273 = vadd.xlane.f32.xlu0 %v3272_v31  ;;  %v3160_v39 = vpop.permute.xlu0 %3159 }
 0x8f8   :  { %v9034_v7 = vadd.f32 %v8768_v41, %v3160_v39 }
 0x8fa   :  { %5181 = vst.msk [vmem:[#allocation11 + $0x80] sm:$0xff] %vm891_vm3, %v9034_v7  ;;  %v3275_v60 = vsel %vm891_vm3, %v9034_v7, 0.0 }
 0x8fb   :  { %v3162_v27 = vpop.permute.xlu1 %3161  ;;  %3276 = vadd.xlane.f32.xlu1 %v3275_v60 }
 0x8fc   :  { %v9041_v17 = vadd.f32 %v8776_v21, %v3162_v27 }
 0x8fe   :  { %5182 = vst.msk [vmem:[#allocation11 + $0x88] sm:$0xff] %vm891_vm3, %v9041_v17  ;;  %v3278_v49 = vsel %vm891_vm3, %v9041_v17, 0.0 }
 0x8ff   :  { %3279 = vadd.xlane.f32.xlu1 %v3278_v49  ;;  %v3164_v41 = vpop.permute.xlu0 %3163 }
 0x900   :  { %v9048_v57 = vadd.f32 %v8784_v34, %v3164_v41 }
 0x902   :  { %5183 = vst.msk [vmem:[#allocation11 + $0x90] sm:$0xff] %vm891_vm3, %v9048_v57  ;;  %v3281_v53 = vsel %vm891_vm3, %v9048_v57, 0.0 }
 0x903   :  { %v3166_v9 = vpop.permute.xlu1 %3165  ;;  %3282 = vadd.xlane.f32.xlu1 %v3281_v53 }
 0x904   :  { %v9055_v21 = vadd.f32 %v8792_v36, %v3166_v9 }
 0x906   :  { %5184 = vst.msk [vmem:[#allocation11 + $0x98] sm:$0xff] %vm891_vm3, %v9055_v21  ;;  %v3284_v20 = vsel %vm891_vm3, %v9055_v21, 0.0 }
 0x907   :  { %3285 = vadd.xlane.f32.xlu1 %v3284_v20  ;;  %v3168_v34 = vpop.permute.xlu0 %3167 }
 0x908   :  { %v9062_v6 = vadd.f32 %v8800_v3, %v3168_v34 }
 0x90a   :  { %5185 = vst.msk [vmem:[#allocation11 + $0xa0] sm:$0xff] %vm891_vm3, %v9062_v6  ;;  %v3287_v1 = vsel %vm891_vm3, %v9062_v6, 0.0 }
 0x90b   :  { %v3170_v40 = vpop.permute.xlu1 %3169  ;;  %3288 = vadd.xlane.f32.xlu1 %v3287_v1 }
 0x90c   :  { %v9069_v36 = vadd.f32 %v8805_v59, %v3170_v40 }
 0x90e   :  { %5186 = vst.msk [vmem:[#allocation11 + $0xa8] sm:$0xff] %vm891_vm3, %v9069_v36  ;;  %v3290_v61 = vsel %vm891_vm3, %v9069_v36, 0.0 }
 0x90f   :  { %3291 = vadd.xlane.f32.xlu1 %v3290_v61  ;;  %v3172_v3 = vpop.permute.xlu0 %3171 }
 0x910   :  { %v9076_v0 = vadd.f32 %v8809_v58, %v3172_v3 }
 0x912   :  { %5187 = vst.msk [vmem:[#allocation11 + $0xb0] sm:$0xff] %vm891_vm3, %v9076_v0  ;;  %v3293_v8 = vsel %vm891_vm3, %v9076_v0, 0.0 }
 0x913   :  { %v3174_v18 = vpop.permute.xlu1 %3173  ;;  %3294 = vadd.xlane.f32.xlu0 %v3293_v8 }
 0x914   :  { %v9083_v59 = vadd.f32 %v8813_v19, %v3174_v18 }
 0x916   :  { %5188 = vst.msk [vmem:[#allocation11 + $0xb8] sm:$0xff] %vm891_vm3, %v9083_v59  ;;  %v3296_v12 = vsel %vm891_vm3, %v9083_v59, 0.0 }
 0x917   :  { %3297 = vadd.xlane.f32.xlu1 %v3296_v12  ;;  %v3176_v58 = vpop.permute.xlu0 %3175 }
 0x918   :  { %v9093_v28 = vadd.f32 %v10837_v47, %v3176_v58 }
 0x91a   :  { %5189 = vst.msk [vmem:[#allocation11 + $0xc0] sm:$0xff] %vm891_vm3, %v9093_v28  ;;  %v3299_v19 = vsel %vm891_vm3, %v9093_v28, 0.0 }
 0x91b   :  { %3300 = vadd.xlane.f32.xlu0 %v3299_v19 }
 0x94d   :  { %v3232_v48 = vpop.xlane.xlu0 %3231 }
 0x94e   :  { %v3303_v44 = vmul.f32 0.015625, %v3232_v48  ;;  %v3229_v26 = vpop.xlane.xlu1 %3228 }
 0x94f   :  { %v3302_v51 = vmul.f32 0.015625, %v3229_v26 }
 0x950   :  { %v9109_v25 = vsub.f32 %v8920_v62, %v3303_v44 }
 0x951   :  { %v9112_v10 = vsub.f32 %v8930_v2, %v3302_v51  ;;  %v3238_v43 = vpop.xlane.xlu0 %3237 }
 0x952   :  { %v3305_v22 = vmul.f32 0.015625, %v3238_v43  ;;  %v3235_v37 = vpop.xlane.xlu1 %3234  ;;  %v3353_v24 = vmul.f32 %v9109_v25, %v9109_v25 }
 0x953   :  { %v3304_v30 = vmul.f32 0.015625, %v3235_v37  ;;  %v3352_v29 = vmul.f32 %v9112_v10, %v9112_v10 }
 0x954   :  { %v9119_v5 = vsub.f32 %v8927_v52, %v3305_v22  ;;  %v3380_v27 = vsel %vm891_vm3, %v3353_v24, 0.0 }
 0x955   :  { %v9122_v63 = vsub.f32 %v8940_v55, %v3304_v30  ;;  %v3244_v62 = vpop.xlane.xlu0 %3243  ;;  %v3377_v2 = vsel %vm891_vm3, %v3352_v29, 0.0 }
 0x956   :  { %v3307_v38 = vmul.f32 0.015625, %v3244_v62  ;;  %v3241_v31 = vpop.xlane.xlu1 %3240  ;;  %3378 = vadd.xlane.f32.xlu1 %v3377_v2  ;;  %v3355_v53 = vmul.f32 %v9119_v5, %v9119_v5 }
 0x957   :  { %v3306_v39 = vmul.f32 0.015625, %v3241_v31  ;;  %v3354_v60 = vmul.f32 %v9122_v63, %v9122_v63 }
 0x958   :  { %v9129_v49 = vsub.f32 %v8937_v50, %v3307_v38  ;;  %v3386_v61 = vsel %vm891_vm3, %v3355_v53, 0.0 }
 0x959   :  { %v9132_v52 = vsub.f32 %v8947_v45, %v3306_v39  ;;  %v3250_v55 = vpop.xlane.xlu0 %3249  ;;  %v3383_v41 = vsel %vm891_vm3, %v3354_v60, 0.0 }
 0x95a   :  { %v3309_v9 = vmul.f32 0.015625, %v3250_v55  ;;  %v3247_v20 = vpop.xlane.xlu1 %3246  ;;  %3384 = vadd.xlane.f32.xlu0 %v3383_v41  ;;  %3381 = vadd.xlane.f32.xlu1 %v3380_v27  ;;  %v3357_v3 = vmul.f32 %v9129_v49, %v9129_v49 }
 0x95b   :  { %v3308_v34 = vmul.f32 0.015625, %v3247_v20  ;;  %v3356_v1 = vmul.f32 %v9132_v52, %v9132_v52 }
 0x95c   :  { %v9140_v50 = vsub.f32 %v8952_v13, %v3309_v9  ;;  %v3392_v13 = vsel %vm891_vm3, %v3357_v3, 0.0 }
 0x95d   :  { %v9143_v45 = vsub.f32 %v8955_v23, %v3308_v34  ;;  %v3389_v40 = vsel %vm891_vm3, %v3356_v1, 0.0 }
 0x95e   :  { %3390 = vadd.xlane.f32.xlu0 %v3389_v40  ;;  %3387 = vadd.xlane.f32.xlu1 %v3386_v61  ;;  %v3359_v8 = vmul.f32 %v9140_v50, %v9140_v50 }
 0x95f   :  { %v3358_v23 = vmul.f32 %v9143_v45, %v9143_v45 }
 0x960   :  { %v3398_v18 = vsel %vm891_vm3, %v3359_v8, 0.0 }
 0x961   :  { %v3395_v16 = vsel %vm891_vm3, %v3358_v23, 0.0 }
 0x962   :  { %3393 = vadd.xlane.f32.xlu1 %v3392_v13  ;;  %3399 = vadd.xlane.f32.xlu0 %v3398_v18 }
 0x964   :  { %v3253_v12 = vpop.xlane.xlu1 %3252 }
 0x965   :  { %v3310_v58 = vmul.f32 0.015625, %v3253_v12 }
 0x966   :  { %3396 = vadd.xlane.f32.xlu1 %v3395_v16 }
 0x967   :  { %v9157_v47 = vsub.f32 %v8978_v15, %v3310_v58 }
 0x968   :  { %v3256_v19 = vpop.xlane.xlu0 %3255 }
 0x969   :  { %v3311_v32 = vmul.f32 0.015625, %v3256_v19  ;;  %v3360_v35 = vmul.f32 %v9157_v47, %v9157_v47 }
 0x96b   :  { %v9162_v48 = vsub.f32 %v8985_v11, %v3311_v32  ;;  %v3401_v44 = vsel %vm891_vm3, %v3360_v35, 0.0 }
 0x96c   :  { %v3259_v26 = vpop.xlane.xlu1 %3258  ;;  %3402 = vadd.xlane.f32.xlu1 %v3401_v44 }
 0x96d   :  { %v3312_v51 = vmul.f32 0.015625, %v3259_v26  ;;  %v3361_v43 = vmul.f32 %v9162_v48, %v9162_v48 }
 0x96f   :  { %v9168_v22 = vsub.f32 %v8992_v33, %v3312_v51  ;;  %v3404_v15 = vsel %vm891_vm3, %v3361_v43, 0.0 }
 0x970   :  { %v3262_v37 = vpop.xlane.xlu1 %3261  ;;  %3405 = vadd.xlane.f32.xlu0 %v3404_v15 }
 0x971   :  { %v3313_v30 = vmul.f32 0.015625, %v3262_v37  ;;  %v3362_v11 = vmul.f32 %v9168_v22, %v9168_v22 }
 0x973   :  { %v9174_v29 = vsub.f32 %v8999_v46, %v3313_v30  ;;  %v3407_v24 = vsel %vm891_vm3, %v3362_v11, 0.0  ;;  %v5813_v46 = vld [vmem:[%s10580_s6] sm:$0xff]   ;;  %s6562_s6 = smov 39  }
 0x974   :  { %v3265_v62 = vpop.xlane.xlu1 %3264  ;;  %3408 = vadd.xlane.f32.xlu1 %v3407_v24  ;;  %5701 = vmatpush3.bf16.msra.mxu0 %v5813_v46 }
 0x975   :  { %v3314_v2 = vmul.f32 0.015625, %v3265_v62  ;;  %v3363_v33 = vmul.f32 %v9174_v29, %v9174_v29 }
 0x977   :  { %v9180_v38 = vsub.f32 %v9006_v42, %v3314_v2  ;;  %v3410_v31 = vsel %vm891_vm3, %v3363_v33, 0.0 }
 0x978   :  { %v3268_v39 = vpop.xlane.xlu1 %3267  ;;  %3411 = vadd.xlane.f32.xlu0 %v3410_v31 }
 0x979   :  { %v3315_v60 = vmul.f32 0.015625, %v3268_v39  ;;  %v3364_v27 = vmul.f32 %v9180_v38, %v9180_v38 }
 0x97b   :  { %v9189_v55 = vsub.f32 %v9013_v54, %v3315_v60  ;;  %v3413_v41 = vsel %vm891_vm3, %v3364_v27, 0.0 }
 0x97c   :  { %v3271_v42 = vpop.xlane.xlu1 %3270  ;;  %3414 = vadd.xlane.f32.xlu1 %v3413_v41 }
 0x97d   :  { %v3316_v53 = vmul.f32 0.015625, %v3271_v42  ;;  %v3365_v9 = vmul.f32 %v9189_v55, %v9189_v55 }
 0x97f   :  { %v9195_v20 = vsub.f32 %v9020_v56, %v3316_v53  ;;  %v3416_v34 = vsel %vm891_vm3, %v3365_v9, 0.0 }
 0x980   :  { %3417 = vadd.xlane.f32.xlu0 %v3416_v34  ;;  %v3274_v1 = vpop.xlane.xlu0 %3273 }
 0x981   :  { %v3317_v40 = vmul.f32 0.015625, %v3274_v1  ;;  %v3366_v54 = vmul.f32 %v9195_v20, %v9195_v20 }
 0x983   :  { %v9201_v61 = vsub.f32 %v9027_v14, %v3317_v40  ;;  %v3419_v3 = vsel %vm891_vm3, %v3366_v54, 0.0 }
 0x984   :  { %v3277_v8 = vpop.xlane.xlu1 %3276  ;;  %3420 = vadd.xlane.f32.xlu1 %v3419_v3 }
 0x985   :  { %v3318_v18 = vmul.f32 0.015625, %v3277_v8  ;;  %v3367_v56 = vmul.f32 %v9201_v61, %v9201_v61 }
 0x987   :  { %v9207_v13 = vsub.f32 %v9034_v7, %v3318_v18  ;;  %v3422_v23 = vsel %vm891_vm3, %v3367_v56, 0.0 }
 0x988   :  { %v3280_v12 = vpop.xlane.xlu1 %3279  ;;  %3423 = vadd.xlane.f32.xlu0 %v3422_v23 }
 0x989   :  { %v3319_v58 = vmul.f32 0.015625, %v3280_v12  ;;  %v3368_v14 = vmul.f32 %v9207_v13, %v9207_v13 }
 0x98b   :  { %v9213_v16 = vsub.f32 %v9041_v17, %v3319_v58  ;;  %v3425_v19 = vsel %vm891_vm3, %v3368_v14, 0.0 }
 0x98c   :  { %v3283_v32 = vpop.xlane.xlu1 %3282  ;;  %3426 = vadd.xlane.f32.xlu1 %v3425_v19 }
 0x98d   :  { %v3320_v35 = vmul.f32 0.015625, %v3283_v32  ;;  %v3369_v7 = vmul.f32 %v9213_v16, %v9213_v16 }
 0x98f   :  { %v9219_v44 = vsub.f32 %v9048_v57, %v3320_v35  ;;  %v3428_v26 = vsel %vm891_vm3, %v3369_v7, 0.0 }
 0x990   :  { %v3286_v51 = vpop.xlane.xlu1 %3285  ;;  %3429 = vadd.xlane.f32.xlu0 %v3428_v26 }
 0x991   :  { %v3321_v43 = vmul.f32 0.015625, %v3286_v51  ;;  %v3370_v17 = vmul.f32 %v9219_v44, %v9219_v44 }
 0x993   :  { %v9225_v15 = vsub.f32 %v9055_v21, %v3321_v43  ;;  %v3431_v37 = vsel %vm891_vm3, %v3370_v17, 0.0 }
 0x994   :  { %v3289_v30 = vpop.xlane.xlu1 %3288  ;;  %3432 = vadd.xlane.f32.xlu1 %v3431_v37 }
 0x995   :  { %v3322_v11 = vmul.f32 0.015625, %v3289_v30  ;;  %v3371_v57 = vmul.f32 %v9225_v15, %v9225_v15 }
 0x997   :  { %v9231_v24 = vsub.f32 %v9062_v6, %v3322_v11  ;;  %v3434_v62 = vsel %vm891_vm3, %v3371_v57, 0.0 }
 0x998   :  { %v3292_v2 = vpop.xlane.xlu1 %3291  ;;  %3435 = vadd.xlane.f32.xlu0 %v3434_v62 }
 0x999   :  { %v3323_v33 = vmul.f32 0.015625, %v3292_v2  ;;  %v3372_v21 = vmul.f32 %v9231_v24, %v9231_v24 }
 0x99b   :  { %v9237_v31 = vsub.f32 %v9069_v36, %v3323_v33  ;;  %v3437_v39 = vsel %vm891_vm3, %v3372_v21, 0.0  ;;  %v9261_v21 = vld [vmem:[#allocation5 + $0x8] sm:$0xff] }
 0x99c   :  { %3438 = vadd.xlane.f32.xlu1 %v3437_v39  ;;  %v3295_v46 = vpop.xlane.xlu0 %3294  ;;  %v10839_v39 = vld [vmem:[#allocation16_spill] sm:$0xff] }
 0x99d   :  { %v3324_v60 = vmul.f32 0.015625, %v3295_v46  ;;  %v3373_v6 = vmul.f32 %v9237_v31, %v9237_v31  ;;  %v10840_v46 = vsub.s32 2, %v10839_v39 }
 0x99f   :  { %v9243_v27 = vsub.f32 %v9076_v0, %v3324_v60  ;;  %v3440_v41 = vsel %vm891_vm3, %v3373_v6, 0.0  ;;  %v9266_v60 = vrot.slane %v9261_v21, %v10840_v46 }
 0x9a0   :  { %v3298_v42 = vpop.xlane.xlu1 %3297  ;;  %3441 = vadd.xlane.f32.xlu0 %v3440_v41 }
 0x9a1   :  { %v3325_v53 = vmul.f32 0.015625, %v3298_v42  ;;  %v3374_v36 = vmul.f32 %v9243_v27, %v9243_v27 }
 0x9a3   :  { %v9249_v9 = vsub.f32 %v9083_v59, %v3325_v53  ;;  %v3443_v34 = vsel %vm891_vm3, %v3374_v36, 0.0 }
 0x9a4   :  { %3444 = vadd.xlane.f32.xlu1 %v3443_v34  ;;  %v3301_v1 = vpop.xlane.xlu0 %3300 }
 0x9a5   :  { %v3326_v40 = vmul.f32 0.015625, %v3301_v1  ;;  %v3375_v0 = vmul.f32 %v9249_v9, %v9249_v9  ;;  %v10841_v1 = vsub.s32 3, %v10839_v39 }
 0x9a7   :  { %v9255_v54 = vsub.f32 %v9093_v28, %v3326_v40  ;;  %v3446_v3 = vsel %vm891_vm3, %v3375_v0, 0.0  ;;  %v9273_v40 = vrot.slane %v9261_v21, %v10841_v1 }
 0x9a8   :  { %3447 = vadd.xlane.f32.xlu0 %v3446_v3 }
 0x9a9   :  { %v3376_v8 = vmul.f32 %v9255_v54, %v9255_v54 }
 0x9ab   :  { %v3449_v59 = vsel %vm891_vm3, %v3376_v8, 0.0 }
 0x9ac   :  { %3450 = vadd.xlane.f32.xlu1 %v3449_v59 }
 0x9df   :  { %v3379_v18 = vpop.xlane.xlu1 %3378 }
 0x9e0   :  { %v3452_v56 = vmul.f32 0.015625, %v3379_v18 }
 0x9e2   :  { %v3477_v23 = vadd.f32 1e-05, %v3452_v56 }
 0x9e3   :  { %v3382_v12 = vpop.xlane.xlu1 %3381  ;;  %v3385_v58 = vpop.xlane.xlu0 %3384 }
 0x9e4   :  { %6114 = vrsqrt.f32 %v3477_v23  ;;  %v3453_v14 = vmul.f32 0.015625, %v3382_v12  ;;  %v3454_v19 = vmul.f32 0.015625, %v3385_v58 }
 0x9e6   :  { %v3478_v32 = vadd.f32 1e-05, %v3453_v14  ;;  %v3479_v28 = vadd.f32 1e-05, %v3454_v19 }
 0x9e7   :  { %v3388_v35 = vpop.xlane.xlu1 %3387  ;;  %v3391_v7 = vpop.xlane.xlu0 %3390 }
 0x9e8   :  { %6116 = vrsqrt.f32 %v3478_v32  ;;  %v3455_v26 = vmul.f32 0.015625, %v3388_v35  ;;  %v3456_v43 = vmul.f32 0.015625, %v3391_v7 }
 0x9e9   :  { %6118 = vrsqrt.f32 %v3479_v28 }
 0x9ea   :  { %v3480_v51 = vadd.f32 1e-05, %v3455_v26  ;;  %v3481_v30 = vadd.f32 1e-05, %v3456_v43 }
 0x9eb   :  { %v3394_v17 = vpop.xlane.xlu1 %3393  ;;  %v3400_v57 = vpop.xlane.xlu0 %3399 }
 0x9ec   :  { %6120 = vrsqrt.f32 %v3480_v51  ;;  %v3457_v37 = vmul.f32 0.015625, %v3394_v17  ;;  %v3459_v6 = vmul.f32 0.015625, %v3400_v57 }
 0x9ee   :  { %v3482_v11 = vadd.f32 1e-05, %v3457_v37  ;;  %v3484_v34 = vadd.f32 1e-05, %v3459_v6 }
 0x9ef   :  { %v3397_v62 = vpop.xlane.xlu1 %3396 }
 0x9f0   :  { %6122 = vrsqrt.f32 %v3482_v11  ;;  %v3458_v2 = vmul.f32 0.015625, %v3397_v62 }
 0x9f1   :  { %v6115_v33 = vpop.eup %6114  ;;  %6124 = vrsqrt.f32 %v3481_v30 }
 0x9f2   :  { %v3527_v41 = vmul.f32 %v6115_v33, %v9112_v10  ;;  %v3483_v42 = vadd.f32 1e-05, %v3458_v2 }
 0x9f4   :  { %v3556_v36 = vmul.f32 %v9266_v60, %v3527_v41  ;;  %6126 = vrsqrt.f32 %v3483_v42 }
 0x9f5   :  { %v6117_v53 = vpop.eup %6116  ;;  %v3403_v3 = vpop.xlane.xlu1 %3402  ;;  %6128 = vrsqrt.f32 %v3484_v34 }
 0x9f6   :  { %v3528_v0 = vmul.f32 %v6117_v53, %v9109_v25  ;;  %v6119_v8 = vpop.eup %6118  ;;  %v3460_v10 = vmul.f32 0.015625, %v3403_v3  ;;  %v3585_v23 = vadd.f32 %v9273_v40, %v3556_v36 }
 0x9f7   :  { %v3529_v14 = vmul.f32 %v6119_v8, %v9122_v63 }
 0x9f8   :  { %v3557_v59 = vmul.f32 %v9266_v60, %v3528_v0  ;;  %v3485_v7 = vadd.f32 1e-05, %v3460_v10 }
 0x9f9   :  { %v6121_v18 = vpop.eup %6120  ;;  %v3406_v56 = vpop.xlane.xlu0 %3405  ;;  %v3558_v51 = vmul.f32 %v9266_v60, %v3529_v14 }
 0x9fa   :  { %v3461_v12 = vmul.f32 0.015625, %v3406_v56  ;;  %v3586_v58 = vadd.f32 %v9273_v40, %v3557_v59  ;;  %v3530_v19 = vmul.f32 %v6121_v18, %v9119_v5 }
 0x9fb   :  { %v3587_v11 = vadd.f32 %v9273_v40, %v3558_v51 }
 0x9fc   :  { %v3486_v32 = vadd.f32 1e-05, %v3461_v12  ;;  %v3610_v25 = vpack.c.bf16 %v3586_v58, %v3585_v23  ;;  %v3559_v28 = vmul.f32 %v9266_v60, %v3530_v19 }
 0x9fd   :  { %v6123_v35 = vpop.eup %6122  ;;  %v3409_v26 = vpop.xlane.xlu1 %3408 }
 0x9fe   :  { %5703 = vmatmul.mubr.msk.bf16.vlgmr.msra.gmra.mxu0 %vm891_vm3, %v3610_v25  ;;  %v6125_v43 = vpop.eup %6124  ;;  %6130 = vrsqrt.f32 %v3486_v32  ;;  %v3588_v63 = vadd.f32 %v9273_v40, %v3559_v28  ;;  %v3532_v5 = vmul.f32 %v6123_v35, %v9129_v49  ;;  %v3462_v17 = vmul.f32 0.015625, %v3409_v26 }
 0x9ff   :  { %5706 = vmatprep.mubr.msk.bf16.mxu0 %vm6555_vm2, %v10838_v4  ;;  %6132 = vrsqrt.f32 %v3485_v7  ;;  %v3531_v57 = vmul.f32 %v6125_v43, %v9132_v52 }
 0xa00   :  { %v3611_v2 = vpack.c.bf16 %v3588_v63, %v3587_v11  ;;  %v3561_v33 = vmul.f32 %v9266_v60, %v3532_v5  ;;  %v3487_v6 = vadd.f32 1e-05, %v3462_v17 }
 0xa01   :  { %v3412_v37 = vpop.xlane.xlu0 %3411  ;;  %v6127_v46 = vpop.eup %6126  ;;  %v3560_v42 = vmul.f32 %v9266_v60, %v3531_v57 }
 0xa02   :  { %v3463_v30 = vmul.f32 0.015625, %v3412_v37  ;;  %v6129_v41 = vpop.eup %6128  ;;  %v3590_v53 = vadd.f32 %v9273_v40, %v3561_v33  ;;  %v3533_v52 = vmul.f32 %v6127_v46, %v9143_v45 }
 0xa03   :  { %v3589_v0 = vadd.f32 %v9273_v40, %v3560_v42  ;;  %v3534_v3 = vmul.f32 %v6129_v41, %v9140_v50 }
 0xa04   :  { %v3488_v62 = vadd.f32 1e-05, %v3463_v30  ;;  %v3562_v18 = vmul.f32 %v9266_v60, %v3533_v52 }
 0xa05   :  { %v3415_v49 = vpop.xlane.xlu1 %3414  ;;  %v3612_v59 = vpack.c.bf16 %v3590_v53, %v3589_v0  ;;  %v3563_v12 = vmul.f32 %v9266_v60, %v3534_v3 }
 0xa06   :  { %5707 = vmatmul.mubr.msk.bf16.gmra.mxu0 %vm891_vm3, %v3611_v2  ;;  %6134 = vrsqrt.f32 %v3488_v62  ;;  %v3464_v34 = vmul.f32 0.015625, %v3415_v49  ;;  %v3591_v58 = vadd.f32 %v9273_v40, %v3562_v18 }
 0xa07   :  { %5710 = vmatprep.mubr.msk.bf16.mxu0 %vm6555_vm2, %v10838_v4  ;;  %6136 = vrsqrt.f32 %v3487_v6  ;;  %v3592_v25 = vadd.f32 %v9273_v40, %v3563_v12 }
 0xa08   :  { %v3489_v56 = vadd.f32 1e-05, %v3464_v34 }
 0xa09   :  { %v3418_v36 = vpop.xlane.xlu0 %3417  ;;  %v3613_v7 = vpack.c.bf16 %v3592_v25, %v3591_v58 }
 0xa0a   :  { %v3465_v1 = vmul.f32 0.015625, %v3418_v36 }
 0xa0b   :  { %v6131_v10 = vpop.eup %6130 }
 0xa0c   :  { %v3490_v8 = vadd.f32 1e-05, %v3465_v1  ;;  %v6133_v45 = vpop.eup %6132  ;;  %v3536_v50 = vmul.f32 %v6131_v10, %v9162_v48 }
 0xa0d   :  { %v3421_v23 = vpop.xlane.xlu1 %3420  ;;  %v3535_v28 = vmul.f32 %v6133_v45, %v9157_v47 }
 0xa0e   :  { %5711 = vmatmul.mubr.msk.bf16.gmra.mxu0 %vm891_vm3, %v3612_v59  ;;  %6138 = vrsqrt.f32 %v3490_v8  ;;  %v3466_v14 = vmul.f32 0.015625, %v3421_v23  ;;  %v3565_v26 = vmul.f32 %v9266_v60, %v3536_v50 }
 0xa0f   :  { %5714 = vmatprep.mubr.msk.bf16.mxu0 %vm6555_vm2, %v10838_v4  ;;  %6140 = vrsqrt.f32 %v3489_v56  ;;  %v3564_v5 = vmul.f32 %v9266_v60, %v3535_v28 }
 0xa10   :  { %v3491_v43 = vadd.f32 1e-05, %v3466_v14  ;;  %v3594_v17 = vadd.f32 %v9273_v40, %v3565_v26 }
 0xa11   :  { %v3424_v19 = vpop.xlane.xlu0 %3423  ;;  %v3593_v62 = vadd.f32 %v9273_v40, %v3564_v5 }
 0xa12   :  { %v3467_v32 = vmul.f32 0.015625, %v3424_v19 }
 0xa13   :  { %v6135_v51 = vpop.eup %6134  ;;  %v3614_v33 = vpack.c.bf16 %v3594_v17, %v3593_v62 }
 0xa14   :  { %v3492_v35 = vadd.f32 1e-05, %v3467_v32  ;;  %v6137_v63 = vpop.eup %6136  ;;  %v3538_v47 = vmul.f32 %v6135_v51, %v9174_v29 }
 0xa15   :  { %v3427_v48 = vpop.xlane.xlu1 %3426  ;;  %v3537_v30 = vmul.f32 %v6137_v63, %v9168_v22 }
 0xa16   :  { %5715 = vmatmul.mubr.msk.bf16.gmra.mxu0 %vm891_vm3, %v3613_v7  ;;  %6142 = vrsqrt.f32 %v3492_v35  ;;  %v3468_v11 = vmul.f32 0.015625, %v3427_v48  ;;  %v3567_v46 = vmul.f32 %v9266_v60, %v3538_v47 }
 0xa17   :  { %5718 = vmatprep.mubr.msk.bf16.mxu0 %vm6555_vm2, %v10838_v4  ;;  %6144 = vrsqrt.f32 %v3491_v43  ;;  %v3566_v41 = vmul.f32 %v9266_v60, %v3537_v30 }
 0xa18   :  { %v3493_v42 = vadd.f32 1e-05, %v3468_v11  ;;  %v3596_v22 = vadd.f32 %v9273_v40, %v3567_v46 }
 0xa19   :  { %v3430_v37 = vpop.xlane.xlu0 %3429  ;;  %v3595_v36 = vadd.f32 %v9273_v40, %v3566_v41 }
 0xa1a   :  { %v3469_v57 = vmul.f32 0.015625, %v3430_v37 }
 0xa1b   :  { %v6139_v6 = vpop.eup %6138  ;;  %v3615_v8 = vpack.c.bf16 %v3596_v22, %v3595_v36 }
 0xa1c   :  { %v3494_v2 = vadd.f32 1e-05, %v3469_v57  ;;  %v6141_v49 = vpop.eup %6140  ;;  %v3540_v53 = vmul.f32 %v6139_v6, %v9189_v55 }
 0xa1d   :  { %v3433_v29 = vpop.xlane.xlu1 %3432  ;;  %v3539_v0 = vmul.f32 %v6141_v49, %v9180_v38 }
 0xa1e   :  { %5719 = vmatmul.mubr.msk.bf16.gmra.mxu0 %vm891_vm3, %v3614_v33  ;;  %6146 = vrsqrt.f32 %v3494_v2  ;;  %v3470_v34 = vmul.f32 0.015625, %v3433_v29  ;;  %v3569_v59 = vmul.f32 %v9266_v60, %v3540_v53 }
 0xa1f   :  { %5722 = vmatprep.mubr.msk.bf16.mxu0 %vm6555_vm2, %v10838_v4  ;;  %6148 = vrsqrt.f32 %v3493_v42  ;;  %v3568_v23 = vmul.f32 %v9266_v60, %v3539_v0 }
 0xa20   :  { %v3495_v56 = vadd.f32 1e-05, %v3470_v34  ;;  %v3598_v12 = vadd.f32 %v9273_v40, %v3569_v59 }
 0xa21   :  { %v3436_v52 = vpop.xlane.xlu0 %3435  ;;  %v3597_v19 = vadd.f32 %v9273_v40, %v3568_v23 }
 0xa22   :  { %v3471_v1 = vmul.f32 0.015625, %v3436_v52 }
 0xa23   :  { %v6143_v18 = vpop.eup %6142  ;;  %v3616_v25 = vpack.c.bf16 %v3598_v12, %v3597_v19 }
 0xa24   :  { %v3496_v3 = vadd.f32 1e-05, %v3471_v1  ;;  %v6145_v10 = vpop.eup %6144  ;;  %v3542_v38 = vmul.f32 %v6143_v18, %v9201_v61 }
 0xa25   :  { %v3439_v55 = vpop.xlane.xlu1 %3438  ;;  %v3541_v58 = vmul.f32 %v6145_v10, %v9195_v20 }
 0xa26   :  { %5723 = vmatmul.mubr.msk.bf16.gmra.mxu0 %vm891_vm3, %v3615_v8  ;;  %6150 = vrsqrt.f32 %v3496_v3  ;;  %v3472_v50 = vmul.f32 0.015625, %v3439_v55  ;;  %v3571_v28 = vmul.f32 %v9266_v60, %v3542_v38 }
 0xa27   :  { %5726 = vmatprep.mubr.msk.bf16.mxu0 %vm6555_vm2, %v10838_v4  ;;  %6152 = vrsqrt.f32 %v3495_v56  ;;  %v3570_v7 = vmul.f32 %v9266_v60, %v3541_v58 }
 0xa28   :  { %v3497_v26 = vadd.f32 1e-05, %v3472_v50  ;;  %v3600_v43 = vadd.f32 %v9273_v40, %v3571_v28 }
 0xa29   :  { %v3442_v45 = vpop.xlane.xlu0 %3441  ;;  %v3599_v5 = vadd.f32 %v9273_v40, %v3570_v7 }
 0xa2a   :  { %v3473_v14 = vmul.f32 0.015625, %v3442_v45 }
 0xa2b   :  { %v6147_v35 = vpop.eup %6146  ;;  %v3617_v30 = vpack.c.bf16 %v3600_v43, %v3599_v5 }
 0xa2c   :  { %v3498_v32 = vadd.f32 1e-05, %v3473_v14  ;;  %v6149_v51 = vpop.eup %6148  ;;  %v3544_v20 = vmul.f32 %v6147_v35, %v9213_v16 }
 0xa2d   :  { %v3445_v61 = vpop.xlane.xlu1 %3444  ;;  %v3543_v48 = vmul.f32 %v6149_v51, %v9207_v13 }
 0xa2e   :  { %5727 = vmatmul.mubr.msk.bf16.gmra.mxu0 %vm891_vm3, %v3616_v25  ;;  %6154 = vrsqrt.f32 %v3498_v32  ;;  %v3474_v17 = vmul.f32 0.015625, %v3445_v61  ;;  %v3573_v11 = vmul.f32 %v9266_v60, %v3544_v20  ;;  %v10842_v32 = vsub.s32 4, %v10839_v39 }
 0xa2f   :  { %5730 = vmatprep.mubr.msk.bf16.mxu0 %vm6555_vm2, %v10838_v4  ;;  %6156 = vrsqrt.f32 %v3497_v26  ;;  %v3572_v16 = vmul.f32 %v9266_v60, %v3543_v48 }
 0xa30   :  { %v3499_v2 = vadd.f32 1e-05, %v3474_v17  ;;  %v3602_v6 = vadd.f32 %v9273_v40, %v3573_v11  ;;  %v9388_v25 = vrot.slane %v9261_v21, %v10842_v32 }
 0xa31   :  { %v3448_v63 = vpop.xlane.xlu0 %3447  ;;  %v3601_v42 = vadd.f32 %v9273_v40, %v3572_v16 }
 0xa32   :  { %v3475_v47 = vmul.f32 0.015625, %v3448_v63 }
 0xa33   :  { %v6151_v57 = vpop.eup %6150  ;;  %v3618_v29 = vpack.c.bf16 %v3602_v6, %v3601_v42 }
 0xa34   :  { %v3500_v37 = vadd.f32 1e-05, %v3475_v47  ;;  %v6153_v33 = vpop.eup %6152  ;;  %v3546_v13 = vmul.f32 %v6151_v57, %v9225_v15 }
 0xa35   :  { %v3451_v62 = vpop.xlane.xlu1 %3450  ;;  %v3545_v41 = vmul.f32 %v6153_v33, %v9219_v44 }
 0xa36   :  { %5731 = vmatmul.mubr.msk.bf16.gmra.mxu0 %vm891_vm3, %v3617_v30  ;;  %6158 = vrsqrt.f32 %v3500_v37  ;;  %v3476_v46 = vmul.f32 0.015625, %v3451_v62  ;;  %v3575_v22 = vmul.f32 %v9266_v60, %v3546_v13 }
 0xa37   :  { %5734 = vmatprep.mubr.msk.bf16.mxu0 %vm6555_vm2, %v10838_v4  ;;  %6160 = vrsqrt.f32 %v3499_v2  ;;  %v3574_v52 = vmul.f32 %v9266_v60, %v3545_v41 }
 0xa38   :  { %v3501_v49 = vadd.f32 1e-05, %v3476_v46  ;;  %v3604_v44 = vadd.f32 %v9273_v40, %v3575_v22 }
 0xa39   :  { %v3603_v1 = vadd.f32 %v9273_v40, %v3574_v52 }
 0xa3a   :  { %6162 = vrsqrt.f32 %v3501_v49 }
 0xa3b   :  { %v6155_v53 = vpop.eup %6154  ;;  %v3619_v0 = vpack.c.bf16 %v3604_v44, %v3603_v1 }
 0xa3c   :  { %v6157_v36 = vpop.eup %6156  ;;  %v3548_v15 = vmul.f32 %v6155_v53, %v9237_v31 }
 0xa3d   :  { %v3547_v34 = vmul.f32 %v6157_v36, %v9231_v24 }
 0xa3e   :  { %5735 = vmatmul.mubr.msk.bf16.gmra.mxu0 %vm891_vm3, %v3618_v29  ;;  %v3577_v3 = vmul.f32 %v9266_v60, %v3548_v15 }
 0xa3f   :  { %5738 = vmatprep.mubr.msk.bf16.mxu0 %vm6555_vm2, %v10838_v4  ;;  %v3576_v59 = vmul.f32 %v9266_v60, %v3547_v34 }
 0xa40   :  { %v3606_v10 = vadd.f32 %v9273_v40, %v3577_v3 }
 0xa41   :  { %v3605_v56 = vadd.f32 %v9273_v40, %v3576_v59 }
 0xa43   :  { %v6159_v8 = vpop.eup %6158  ;;  %v3620_v23 = vpack.c.bf16 %v3606_v10, %v3605_v56 }
 0xa44   :  { %v6161_v18 = vpop.eup %6160  ;;  %v3550_v31 = vmul.f32 %v6159_v8, %v9249_v9 }
 0xa45   :  { %v3549_v24 = vmul.f32 %v6161_v18, %v9243_v27 }
 0xa46   :  { %5739 = vmatmul.mubr.msk.bf16.gmra.mxu0 %vm891_vm3, %v3619_v0  ;;  %v3579_v55 = vmul.f32 %v9266_v60, %v3550_v31 }
 0xa47   :  { %5742 = vmatprep.mubr.msk.bf16.mxu0 %vm6555_vm2, %v10838_v4  ;;  %v6163_v12 = vpop.eup %6162  ;;  %v3578_v38 = vmul.f32 %v9266_v60, %v3549_v24 }
 0xa48   :  { %v3608_v45 = vadd.f32 %v9273_v40, %v3579_v55  ;;  %v3551_v9 = vmul.f32 %v6163_v12, %v9255_v54 }
 0xa49   :  { %v3607_v58 = vadd.f32 %v9273_v40, %v3578_v38 }
 0xa4a   :  { %v3580_v50 = vmul.f32 %v9266_v60, %v3551_v9 }
 0xa4b   :  { %v3621_v27 = vpack.c.bf16 %v3608_v45, %v3607_v58 }
 0xa4c   :  { %v3609_v14 = vadd.f32 %v9273_v40, %v3580_v50 }
 0xa4e   :  { %5743 = vmatmul.mubr.msk.bf16.gmra.mxu0 %vm891_vm3, %v3620_v23  ;;  %v3622_v19 = vpack.c.bf16 %v3609_v14, %v3609_v14 }
 0xa4f   :  { %5746 = vmatprep.mubr.msk.bf16.mxu0 %vm6555_vm2, %v10838_v4 }
 0xa56   :  { %5747 = vmatmul.mubr.msk.bf16.gmra.mxu0 %vm891_vm3, %v3621_v27 }
 0xa57   :  { %5750 = vmatprep.mubr.msk.bf16.mxu0 %vm6555_vm2, %v10838_v4 }
 0xa5e   :  { %5751 = vmatmul.mubr.msk.bf16.gmra.mxu0 %vm891_vm3, %v3622_v19 }
 0xabe   :  { %v3732_v54 = vpop.f32.mrf.mxu0 }
 0xabf   :  { %v3733_v28 = vadd.f32 %v3732_v54, %v9388_v25 }
 0xac0   :  { %v5704_v35 = vpop.f32.mrf.mxu0 }
 0xac1   :  { %3884 = vrot.lane.b32.xlu0 %v3733_v28, %s6559_s12 }
 0xac2   :  { %v3735_v60 = vpop.f32.mrf.mxu0 }
 0xac3   :  { %v3736_v7 = vadd.f32 %v3735_v60, %v9388_v25 }
 0xac4   :  { %v5705_v26 = vpop.f32.mrf.mxu0 }
 0xac5   :  { %3886 = vrot.lane.b32.xlu1 %v3736_v7, %s6559_s12 }
 0xac6   :  { %v3740_v40 = vpop.f32.mrf.mxu0 }
 0xac7   :  { %v3741_v51 = vadd.f32 %v3740_v40, %v9388_v25 }
 0xac8   :  { %v5708_v61 = vpop.f32.mrf.mxu0 }
 0xac9   :  { %3888 = vrot.lane.b32.xlu1 %v3741_v51, %s6559_s12 }
 0xaca   :  { %v3743_v21 = vpop.f32.mrf.mxu0 }
 0xacb   :  { %v3744_v39 = vadd.f32 %v3743_v21, %v9388_v25 }
 0xacc   :  { %v5709_v20 = vpop.f32.mrf.mxu0 }
 0xacd   :  { %3890 = vrot.lane.b32.xlu0 %v3744_v39, %s6559_s12 }
 0xace   :  { %v3748_v43 = vpop.f32.mrf.mxu0 }
 0xacf   :  { %v3749_v63 = vadd.f32 %v3748_v43, %v9388_v25 }
 0xad0   :  { %v5712_v5 = vpop.f32.mrf.mxu0 }
 0xad1   :  { %3892 = vrot.lane.b32.xlu1 %v3749_v63, %s6559_s12 }
 0xad2   :  { %v3751_v48 = vpop.f32.mrf.mxu0 }
 0xad3   :  { %v3752_v17 = vadd.f32 %v3751_v48, %v9388_v25  ;;  %v6392_v48 = vld [vmem:[#allocation2] sm:$0xff] }
 0xad4   :  { %v5713_v47 = vpop.f32.mrf.mxu0  ;;  %vm3834_vm4 = vcmp.gt.f32.partialorder %v6392_v48, 0.0 }
 0xad5   :  { %3894 = vrot.lane.b32.xlu0 %v3752_v17, %s6559_s12 }
 0xad6   :  { %v3756_v37 = vpop.f32.mrf.mxu0 }
 0xad7   :  { %v3757_v30 = vadd.f32 %v3756_v37, %v9388_v25 }
 0xad8   :  { %v5716_v11 = vpop.f32.mrf.mxu0 }
 0xad9   :  { %3896 = vrot.lane.b32.xlu1 %v3757_v30, %s6559_s12  ;;  %v6393_v30 = vld [vmem:[#allocation2 + $0x10] sm:$0xff] }
 0xada   :  { %v3759_v57 = vpop.f32.mrf.mxu0  ;;  %vm3836_vm6 = vcmp.gt.f32.partialorder %v6393_v30, 0.0 }
 0xadb   :  { %v3760_v62 = vadd.f32 %v3759_v57, %v9388_v25 }
 0xadc   :  { %v5717_v2 = vpop.f32.mrf.mxu0 }
 0xadd   :  { %3898 = vrot.lane.b32.xlu0 %v3760_v62, %s6559_s12  ;;  %v6395_v2 = vld [vmem:[#allocation2 + $0x8] sm:$0xff] }
 0xade   :  { %v3764_v16 = vpop.f32.mrf.mxu0  ;;  %vm3835_vm8 = vcmp.gt.f32.partialorder %v6395_v2, 0.0 }
 0xadf   :  { %v3765_v33 = vadd.f32 %v3764_v16, %v9388_v25 }
 0xae0   :  { %v5720_v13 = vpop.f32.mrf.mxu0 }
 0xae1   :  { %3900 = vrot.lane.b32.xlu1 %v3765_v33, %s6559_s12 }
 0xae2   :  { %v3767_v46 = vpop.f32.mrf.mxu0 }
 0xae3   :  { %v3768_v6 = vadd.f32 %v3767_v46, %v9388_v25 }
 0xae4   :  { %v5721_v41 = vpop.f32.mrf.mxu0 }
 0xae5   :  { %3902 = vrot.lane.b32.xlu0 %v3768_v6, %s6559_s12  ;;  %v6396_v6 = vld [vmem:[#allocation2 + $0x20] sm:$0xff] }
 0xae6   :  { %v3772_v42 = vpop.f32.mrf.mxu0  ;;  %vm3838_vm9 = vcmp.gt.f32.partialorder %v6396_v6, 0.0 }
 0xae7   :  { %v3773_v49 = vadd.f32 %v3772_v42, %v9388_v25 }
 0xae8   :  { %v5724_v29 = vpop.f32.mrf.mxu0 }
 0xae9   :  { %3904 = vrot.lane.b32.xlu1 %v3773_v49, %s6559_s12 }
 0xaea   :  { %v3775_v22 = vpop.f32.mrf.mxu0 }
 0xaeb   :  { %v3776_v53 = vadd.f32 %v3775_v22, %v9388_v25  ;;  %v6397_v22 = vld [vmem:[#allocation2 + $0x28] sm:$0xff] }
 0xaec   :  { %v5725_v52 = vpop.f32.mrf.mxu0  ;;  %vm3839_vm10 = vcmp.gt.f32.partialorder %v6397_v22, 0.0 }
 0xaed   :  { %3906 = vrot.lane.b32.xlu0 %v3776_v53, %s6559_s12 }
 0xaee   :  { %v3780_v36 = vpop.f32.mrf.mxu0 }
 0xaef   :  { %v3781_v15 = vadd.f32 %v3780_v36, %v9388_v25 }
 0xaf0   :  { %v5728_v44 = vpop.f32.mrf.mxu0 }
 0xaf1   :  { %3908 = vrot.lane.b32.xlu1 %v3781_v15, %s6559_s12  ;;  %v6398_v44 = vld [vmem:[#allocation2 + $0x30] sm:$0xff] }
 0xaf2   :  { %v3783_v34 = vpop.f32.mrf.mxu0  ;;  %vm3840_vm11 = vcmp.gt.f32.partialorder %v6398_v44, 0.0 }
 0xaf3   :  { %v3784_v1 = vadd.f32 %v3783_v34, %v9388_v25 }
 0xaf4   :  { %v5729_v0 = vpop.f32.mrf.mxu0 }
 0xaf5   :  { %3910 = vrot.lane.b32.xlu0 %v3784_v1, %s6559_s12 }
 0xaf6   :  { %v3788_v3 = vpop.f32.mrf.mxu0 }
 0xaf7   :  { %v3789_v8 = vadd.f32 %v3788_v3, %v9388_v25  ;;  %v6399_v3 = vld [vmem:[#allocation2 + $0x38] sm:$0xff] }
 0xaf8   :  { %v5732_v59 = vpop.f32.mrf.mxu0  ;;  %vm3841_vm12 = vcmp.gt.f32.partialorder %v6399_v3, 0.0  ;;  %v6413_v3 = vld [vmem:[#allocation2 + $0xa8] sm:$0xff] }
 0xaf9   :  { %3912 = vrot.lane.b32.xlu1 %v3789_v8, %s6559_s12 }
 0xafa   :  { %v3791_v18 = vpop.f32.mrf.mxu0 }
 0xafb   :  { %v3792_v31 = vadd.f32 %v3791_v18, %v9388_v25 }
 0xafc   :  { %v5733_v10 = vpop.f32.mrf.mxu0 }
 0xafd   :  { %3914 = vrot.lane.b32.xlu0 %v3792_v31, %s6559_s12  ;;  %v6400_v31 = vld [vmem:[#allocation2 + $0x40] sm:$0xff] }
 0xafe   :  { %v3796_v24 = vpop.f32.mrf.mxu0  ;;  %vm3842_vm13 = vcmp.gt.f32.partialorder %v6400_v31, 0.0 }
 0xaff   :  { %v3797_v56 = vadd.f32 %v3796_v24, %v9388_v25 }
 0xb00   :  { %v5736_v23 = vpop.f32.mrf.mxu0 }
 0xb01   :  { %3916 = vrot.lane.b32.xlu1 %v3797_v56, %s6559_s12  ;;  %v6401_v23 = vld [vmem:[#allocation2 + $0x48] sm:$0xff] }
 0xb02   :  { %v3799_v55 = vpop.f32.mrf.mxu0  ;;  %vm3843_vm14 = vcmp.gt.f32.partialorder %v6401_v23, 0.0 }
 0xb03   :  { %v3800_v12 = vadd.f32 %v3799_v55, %v9388_v25 }
 0xb04   :  { %v5737_v38 = vpop.f32.mrf.mxu0 }
 0xb05   :  { %3918 = vrot.lane.b32.xlu0 %v3800_v12, %s6559_s12 }
 0xb06   :  { %v3804_v45 = vpop.f32.mrf.mxu0 }
 0xb07   :  { %v3805_v9 = vadd.f32 %v3804_v45, %v9388_v25  ;;  %v6402_v45 = vld [vmem:[#allocation2 + $0x50] sm:$0xff] }
 0xb08   :  { %v5740_v58 = vpop.f32.mrf.mxu0  ;;  %vm3844_vm15 = vcmp.gt.f32.partialorder %v6402_v45, 0.0 }
 0xb09   :  { %3920 = vrot.lane.b32.xlu1 %v3805_v9, %s6559_s12 }
 0xb0a   :  { %v3807_v27 = vpop.f32.mrf.mxu0 }
 0xb0b   :  { %v3808_v50 = vadd.f32 %v3807_v27, %v9388_v25 }
 0xb0c   :  { %v5741_v14 = vpop.f32.mrf.mxu0 }
 0xb0d   :  { %3922 = vrot.lane.b32.xlu0 %v3808_v50, %s6559_s12  ;;  %v6403_v50 = vld [vmem:[#allocation2 + $0x58] sm:$0xff] }
 0xb0e   :  { %v3812_v19 = vpop.f32.mrf.mxu0  ;;  %vm3845_vm0 = vcmp.gt.f32.partialorder %v6403_v50, 0.0  ;;  %v6416_v50 = vld [vmem:[#allocation2 + $0xc0] sm:$0xff] }
 0xb0f   :  { %v3813_v32 = vadd.f32 %v3812_v19, %v9388_v25 }
 0xb10   :  { %v5744_v54 = vpop.f32.mrf.mxu0 }
 0xb11   :  { %3924 = vrot.lane.b32.xlu1 %v3813_v32, %s6559_s12  ;;  %v6404_v54 = vld [vmem:[#allocation2 + $0x60] sm:$0xff] }
 0xb12   :  { %v3815_v28 = vpop.f32.mrf.mxu0  ;;  %vm3846_vm1 = vcmp.gt.f32.partialorder %v6404_v54, 0.0 }
 0xb13   :  { %v3816_v35 = vadd.f32 %v3815_v28, %v9388_v25 }
 0xb14   :  { %v5745_v60 = vpop.f32.mrf.mxu0 }
 0xb15   :  { %3926 = vrot.lane.b32.xlu0 %v3816_v35, %s6559_s12 }
 0xb16   :  { %v3820_v7 = vpop.f32.mrf.mxu0 }
 0xb17   :  { %v3821_v26 = vadd.f32 %v3820_v7, %v9388_v25  ;;  %v6405_v7 = vld [vmem:[#allocation2 + $0x68] sm:$0xff] }
 0xb18   :  { %v5748_v40 = vpop.f32.mrf.mxu0  ;;  %vm3847_vm2 = vcmp.gt.f32.partialorder %v6405_v7, 0.0 }
 0xb19   :  { %3928 = vrot.lane.b32.xlu1 %v3821_v26, %s6559_s12 }
 0xb1a   :  { %v3823_v51 = vpop.f32.mrf.mxu0 }
 0xb1b   :  { %v3824_v61 = vadd.f32 %v3823_v51, %v9388_v25 }
 0xb1c   :  { %v5749_v21 = vpop.f32.mrf.mxu0 }
 0xb1d   :  { %3930 = vrot.lane.b32.xlu0 %v3824_v61, %s6559_s12  ;;  %v6406_v61 = vld [vmem:[#allocation2 + $0x70] sm:$0xff] }
 0xb1e   :  { %v3828_v39 = vpop.f32.mrf.mxu0  ;;  %vm3848_vm3 = vcmp.gt.f32.partialorder %v6406_v61, 0.0 }
 0xb1f   :  { %v3829_v20 = vadd.f32 %v3828_v39, %v9388_v25  ;;  %v6394_v25 = vld [vmem:[#allocation2 + $0x18] sm:$0xff] }
 0xb20   :  { %v5752_v43 = vpop.f32.mrf.mxu0  ;;  %vm3837_vm7 = vcmp.gt.f32.partialorder %v6394_v25, 0.0 }
 0xb21   :  { %3932 = vrot.lane.b32.xlu1 %v3829_v20, %s6559_s12  ;;  %v6407_v43 = vld [vmem:[#allocation2 + $0x78] sm:$0xff] }
 0xb22   :  { %v3831_v63 = vpop.f32.mrf.mxu0 }
 0xb24   :  { %v5753_v5 = vpop.f32.mrf.mxu0 }
 0xb33   :  { %v3885_v17 = vpop.permute.xlu0 %3884 }
 0xb34   :  { %v9440_v37 = vsel %vm3834_vm4, %v3885_v17, -1e+10  ;;  %vm3849_vm4 = vcmp.gt.f32.partialorder %v6407_v43, 0.0  ;;  %v6408_v17 = vld [vmem:[#allocation2 + $0x80] sm:$0xff] }
 0xb35   :  { %v3985_v57 = vsel %vm3984_vm5, %v9440_v37, -inf }
 0xb37   :  { %v3887_v47 = vpop.permute.xlu1 %3886 }
 0xb38   :  { %v9450_v46 = vsel %vm3835_vm8, %v3887_v47, -1e+10 }
 0xb39   :  { %v3988_v49 = vsel %vm3984_vm5, %v9450_v46, -inf }
 0xb3b   :  { %v3889_v11 = vpop.permute.xlu1 %3888 }
 0xb3c   :  { %v9444_v62 = vsel %vm3836_vm6, %v3889_v11, -1e+10  ;;  %3986 = vmax.xlane.f32.xlu0 %v3985_v57  ;;  %vm3850_vm6 = vcmp.gt.f32.partialorder %v6408_v17, 0.0  ;;  %v6409_v57 = vld [vmem:[#allocation2 + $0x88] sm:$0xff] }
 0xb3d   :  { %v3991_v33 = vsel %vm3984_vm5, %v9444_v62, -inf }
 0xb3f   :  { %v3891_v16 = vpop.permute.xlu0 %3890 }
 0xb40   :  { %v9448_v13 = vsel %vm3837_vm7, %v3891_v16, -1e+10  ;;  %3992 = vmax.xlane.f32.xlu0 %v3991_v33  ;;  %vm3851_vm7 = vcmp.gt.f32.partialorder %v6409_v57, 0.0  ;;  %v6410_v33 = vld [vmem:[#allocation2 + $0x90] sm:$0xff] }
 0xb41   :  { %v3994_v42 = vsel %vm3984_vm5, %v9448_v13, -inf  ;;  %vm3852_vm8 = vcmp.gt.f32.partialorder %v6410_v33, 0.0 }
 0xb43   :  { %v3893_v41 = vpop.permute.xlu1 %3892 }
 0xb44   :  { %3995 = vmax.xlane.f32.xlu0 %v3994_v42  ;;  %v9456_v29 = vsel %vm3838_vm9, %v3893_v41, -1e+10 }
 0xb45   :  { %3989 = vmax.xlane.f32.xlu1 %v3988_v49  ;;  %v3997_v36 = vsel %vm3984_vm5, %v9456_v29, -inf  ;;  %v6411_v49 = vld [vmem:[#allocation2 + $0x98] sm:$0xff] }
 0xb46   :  { %vm3853_vm9 = vcmp.gt.f32.partialorder %v6411_v49, 0.0 }
 0xb47   :  { %v3895_v53 = vpop.permute.xlu0 %3894 }
 0xb48   :  { %v9458_v52 = vsel %vm3839_vm10, %v3895_v53, -1e+10 }
 0xb49   :  { %3998 = vmax.xlane.f32.xlu1 %v3997_v36  ;;  %v4000_v15 = vsel %vm3984_vm5, %v9458_v52, -inf }
 0xb4a   :  { %4001 = vmax.xlane.f32.xlu0 %v4000_v15  ;;  %v6412_v15 = vld [vmem:[#allocation2 + $0xa0] sm:$0xff] }
 0xb4b   :  { %v3897_v34 = vpop.permute.xlu1 %3896  ;;  %vm3854_vm10 = vcmp.gt.f32.partialorder %v6412_v15, 0.0 }
 0xb4c   :  { %v9464_v1 = vsel %vm3840_vm11, %v3897_v34, -1e+10  ;;  %vm3855_vm11 = vcmp.gt.f32.partialorder %v6413_v3, 0.0 }
 0xb4d   :  { %v4003_v0 = vsel %vm3984_vm5, %v9464_v1, -inf }
 0xb4e   :  { %4004 = vmax.xlane.f32.xlu1 %v4003_v0 }
 0xb4f   :  { %v3899_v8 = vpop.permute.xlu0 %3898 }
 0xb50   :  { %v9468_v59 = vsel %vm3841_vm12, %v3899_v8, -1e+10 }
 0xb51   :  { %v4006_v18 = vsel %vm3984_vm5, %v9468_v59, -inf }
 0xb52   :  { %4007 = vmax.xlane.f32.xlu0 %v4006_v18 }
 0xb53   :  { %v3901_v10 = vpop.permute.xlu1 %3900 }
 0xb54   :  { %v9472_v24 = vsel %vm3842_vm13, %v3901_v10, -1e+10  ;;  %v6414_v10 = vld [vmem:[#allocation2 + $0xb0] sm:$0xff] }
 0xb55   :  { %v4009_v56 = vsel %vm3984_vm5, %v9472_v24, -inf  ;;  %vm3856_vm12 = vcmp.gt.f32.partialorder %v6414_v10, 0.0 }
 0xb56   :  { %4010 = vmax.xlane.f32.xlu1 %v4009_v56 }
 0xb57   :  { %v3903_v55 = vpop.permute.xlu0 %3902 }
 0xb58   :  { %v9476_v12 = vsel %vm3843_vm14, %v3903_v55, -1e+10  ;;  %vm3858_vm14 = vcmp.gt.f32.partialorder %v6416_v50, 0.0 }
 0xb59   :  { %v4012_v38 = vsel %vm3984_vm5, %v9476_v12, -inf }
 0xb5a   :  { %4013 = vmax.xlane.f32.xlu0 %v4012_v38  ;;  %v6415_v38 = vld [vmem:[#allocation2 + $0xb8] sm:$0xff] }
 0xb5b   :  { %v3905_v9 = vpop.permute.xlu1 %3904  ;;  %vm3857_vm13 = vcmp.gt.f32.partialorder %v6415_v38, 0.0 }
 0xb5c   :  { %v9480_v58 = vsel %vm3844_vm15, %v3905_v9, -1e+10 }
 0xb5d   :  { %v4015_v27 = vsel %vm3984_vm5, %v9480_v58, -inf }
 0xb5e   :  { %4016 = vmax.xlane.f32.xlu1 %v4015_v27 }
 0xb5f   :  { %v3907_v14 = vpop.permute.xlu0 %3906 }
 0xb60   :  { %v9484_v19 = vsel %vm3845_vm0, %v3907_v14, -1e+10 }
 0xb61   :  { %v4018_v32 = vsel %vm3984_vm5, %v9484_v19, -inf }
 0xb62   :  { %4019 = vmax.xlane.f32.xlu0 %v4018_v32 }
 0xb63   :  { %v3909_v28 = vpop.permute.xlu1 %3908 }
 0xb64   :  { %v9488_v35 = vsel %vm3846_vm1, %v3909_v28, -1e+10 }
 0xb65   :  { %v4021_v60 = vsel %vm3984_vm5, %v9488_v35, -inf }
 0xb66   :  { %4022 = vmax.xlane.f32.xlu1 %v4021_v60  ;;  %v10843_v60 = vld [vmem:[#allocation43_spill] sm:$0xff] }
 0xb67   :  { %v3911_v26 = vpop.permute.xlu0 %3910 }
 0xb68   :  { %v9492_v40 = vsel %vm3847_vm2, %v3911_v26, -1e+10 }
 0xb69   :  { %v4024_v51 = vsel %vm3984_vm5, %v9492_v40, -inf }
 0xb6a   :  { %4025 = vmax.xlane.f32.xlu0 %v4024_v51 }
 0xb6b   :  { %v3913_v21 = vpop.permute.xlu1 %3912 }
 0xb6c   :  { %v9496_v39 = vsel %vm3848_vm3, %v3913_v21, -1e+10 }
 0xb6d   :  { %v4027_v20 = vsel %vm3984_vm5, %v9496_v39, -inf }
 0xb6e   :  { %4028 = vmax.xlane.f32.xlu1 %v4027_v20 }
 0xb6f   :  { %v3915_v63 = vpop.permute.xlu0 %3914 }
 0xb70   :  { %v9500_v5 = vsel %vm3849_vm4, %v3915_v63, -1e+10 }
 0xb71   :  { %v4030_v48 = vsel %vm3984_vm5, %v9500_v5, -inf }
 0xb72   :  { %4031 = vmax.xlane.f32.xlu0 %v4030_v48 }
 0xb73   :  { %v3917_v47 = vpop.permute.xlu1 %3916 }
 0xb74   :  { %v9504_v30 = vsel %vm3850_vm6, %v3917_v47, -1e+10 }
 0xb75   :  { %v4033_v11 = vsel %vm3984_vm5, %v9504_v30, -inf }
 0xb76   :  { %4034 = vmax.xlane.f32.xlu1 %v4033_v11 }
 0xb77   :  { %v3919_v25 = vpop.permute.xlu0 %3918 }
 0xb78   :  { %v9508_v2 = vsel %vm3851_vm7, %v3919_v25, -1e+10 }
 0xb79   :  { %v4036_v16 = vsel %vm3984_vm5, %v9508_v2, -inf }
 0xb7a   :  { %4037 = vmax.xlane.f32.xlu0 %v4036_v16 }
 0xb7b   :  { %v3921_v6 = vpop.permute.xlu1 %3920 }
 0xb7c   :  { %v9512_v41 = vsel %vm3852_vm8, %v3921_v6, -1e+10 }
 0xb7d   :  { %v4039_v42 = vsel %vm3984_vm5, %v9512_v41, -inf }
 0xb7e   :  { %4040 = vmax.xlane.f32.xlu1 %v4039_v42 }
 0xb7f   :  { %v3923_v22 = vpop.permute.xlu0 %3922 }
 0xb80   :  { %v9516_v53 = vsel %vm3853_vm9, %v3923_v22, -1e+10 }
 0xb81   :  { %v4042_v36 = vsel %vm3984_vm5, %v9516_v53, -inf }
 0xb82   :  { %4043 = vmax.xlane.f32.xlu0 %v4042_v36 }
 0xb83   :  { %v3925_v44 = vpop.permute.xlu1 %3924 }
 0xb84   :  { %v9520_v34 = vsel %vm3854_vm10, %v3925_v44, -1e+10 }
 0xb85   :  { %v4045_v0 = vsel %vm3984_vm5, %v9520_v34, -inf }
 0xb86   :  { %4046 = vmax.xlane.f32.xlu1 %v4045_v0 }
 0xb87   :  { %v3927_v8 = vpop.permute.xlu0 %3926 }
 0xb88   :  { %v9524_v18 = vsel %vm3855_vm11, %v3927_v8, -1e+10 }
 0xb89   :  { %v4048_v31 = vsel %vm3984_vm5, %v9524_v18, -inf }
 0xb8a   :  { %4049 = vmax.xlane.f32.xlu0 %v4048_v31 }
 0xb8b   :  { %v3929_v56 = vpop.permute.xlu1 %3928 }
 0xb8c   :  { %v9528_v23 = vsel %vm3856_vm12, %v3929_v56, -1e+10 }
 0xb8d   :  { %v4051_v55 = vsel %vm3984_vm5, %v9528_v23, -inf }
 0xb8e   :  { %4052 = vmax.xlane.f32.xlu1 %v4051_v55 }
 0xb8f   :  { %v3931_v45 = vpop.permute.xlu0 %3930 }
 0xb90   :  { %v9532_v9 = vsel %vm3857_vm13, %v3931_v45, -1e+10 }
 0xb91   :  { %v4054_v27 = vsel %vm3984_vm5, %v9532_v9, -inf }
 0xb92   :  { %4055 = vmax.xlane.f32.xlu0 %v4054_v27 }
 0xb93   :  { %v3933_v14 = vpop.permute.xlu1 %3932 }
 0xb94   :  { %v9536_v32 = vsel %vm3858_vm14, %v3933_v14, -1e+10 }
 0xb95   :  { %v4057_v54 = vsel %vm3984_vm5, %v9536_v32, -inf }
 0xb96   :  { %4058 = vmax.xlane.f32.xlu1 %v4057_v54 }
 0xbc5   :  { %v3987_v28 = vpop.xlane.xlu0 %3986 }
 0xbc6   :  { %vm4438_vm15 = vcmp.ge.f32.partialorder %v9440_v37, %v3987_v28  ;;  %v4060_v44 = vsub.f32 %v9440_v37, %v3987_v28 }
 0xbc7   :  { %v4465_v7 = vsel %vm4438_vm15, %v10843_v60, 6 }
 0xbc8   :  { %v9543_v26 = vsel %vm3984_vm5, %v4465_v7, 2147483647  ;;  %v4085_v0 = vmul.f32 1.442695, %v4060_v44 }
 0xbc9   :  { %v3993_v51 = vpop.xlane.xlu0 %3992  ;;  %v4492_v61 = vshra.s32 %v9543_v26, 16 }
 0xbca   :  { %vm4440_vm0 = vcmp.ge.f32.partialorder %v9444_v62, %v3993_v51  ;;  %v4062_v42 = vsub.f32 %v9444_v62, %v3993_v51 }
 0xbcb   :  { %v9547_v21 = vcvt.s32.f32 %v4492_v61  ;;  %v4467_v43 = vsel %vm4440_vm0, %v10843_v60, 6 }
 0xbcc   :  { %v9564_v16 = vsel %vm3984_vm5, %v4467_v43, 2147483647  ;;  %v4089_v36 = vmul.f32 1.442695, %v4062_v42 }
 0xbcd   :  { %v3996_v20 = vpop.xlane.xlu0 %3995  ;;  %4495 = vmin.xlane.f32.xlu1 %v9547_v21  ;;  %v4522_v22 = vshra.s32 %v9564_v16, 16 }
 0xbce   :  { %vm4441_vm1 = vcmp.ge.f32.partialorder %v9448_v13, %v3996_v20  ;;  %v3990_v63 = vpop.xlane.xlu1 %3989  ;;  %v4063_v7 = vsub.f32 %v9448_v13, %v3996_v20 }
 0xbcf   :  { %v4468_v48 = vsel %vm4441_vm1, %v10843_v60, 6  ;;  %vm4439_vm2 = vcmp.ge.f32.partialorder %v9450_v46, %v3990_v63  ;;  %v4061_v17 = vsub.f32 %v9450_v46, %v3990_v63  ;;  %v9575_v15 = vcvt.s32.f32 %v4522_v22 }
 0xbd0   :  { %v4466_v47 = vsel %vm4439_vm2, %v10843_v60, 6  ;;  %v9557_v11 = vsel %vm3984_vm5, %v4468_v48, 2147483647  ;;  %v4091_v51 = vmul.f32 1.442695, %v4063_v7 }
 0xbd1   :  { %v4537_v57 = vshra.s32 %v9557_v11, 16  ;;  %v9561_v25 = vsel %vm3984_vm5, %v4466_v47, 2147483647  ;;  %v4087_v46 = vmul.f32 1.442695, %v4061_v17 }
 0xbd2   :  { %v4507_v33 = vshra.s32 %v9561_v25, 16  ;;  %v3999_v31 = vpop.xlane.xlu1 %3998 }
 0xbd3   :  { %v9567_v6 = vcvt.s32.f32 %v4537_v57  ;;  %6164 = vpow2.f32 %v4087_v46  ;;  %v4002_v37 = vpop.xlane.xlu0 %4001  ;;  %vm4442_vm4 = vcmp.ge.f32.partialorder %v9456_v29, %v3999_v31  ;;  %v4064_v27 = vsub.f32 %v9456_v29, %v3999_v31 }
 0xbd4   :  { %v9570_v49 = vcvt.s32.f32 %v4507_v33  ;;  %6166 = vpow2.f32 %v4089_v36  ;;  %vm4443_vm3 = vcmp.ge.f32.partialorder %v9458_v52, %v4002_v37  ;;  %v4469_v56 = vsel %vm4442_vm4, %v10843_v60, 6 }
 0xbd5   :  { %4540 = vmin.xlane.f32.xlu1 %v9567_v6  ;;  %6168 = vpow2.f32 %v4085_v0  ;;  %v4470_v10 = vsel %vm4443_vm3, %v10843_v60, 6  ;;  %v9599_v38 = vsel %vm3984_vm5, %v4469_v56, 2147483647  ;;  %v4093_v54 = vmul.f32 1.442695, %v4064_v27 }
 0xbd6   :  { %4510 = vmin.xlane.f32.xlu0 %v9570_v49  ;;  %v9596_v55 = vsel %vm3984_vm5, %v4470_v10, 2147483647  ;;  %v4552_v50 = vshra.s32 %v9599_v38, 16  ;;  %v4065_v36 = vsub.f32 %v9458_v52, %v4002_v37 }
 0xbd7   :  { %v4567_v45 = vshra.s32 %v9596_v55, 16  ;;  %6170 = vpow2.f32 %v4093_v54  ;;  %v4005_v63 = vpop.xlane.xlu1 %4004 }
 0xbd8   :  { %v9606_v28 = vcvt.s32.f32 %v4552_v50  ;;  %6172 = vpow2.f32 %v4091_v51  ;;  %vm4444_vm7 = vcmp.ge.f32.partialorder %v9464_v1, %v4005_v63  ;;  %v4066_v57 = vsub.f32 %v9464_v1, %v4005_v63 }
 0xbd9   :  { %v9604_v14 = vcvt.s32.f32 %v4567_v45  ;;  %v4471_v20 = vsel %vm4444_vm7, %v10843_v60, 6  ;;  %v4095_v44 = vmul.f32 1.442695, %v4065_v36 }
 0xbda   :  { %4525 = vmin.xlane.f32.xlu0 %v9575_v15  ;;  %v9627_v17 = vsel %vm3984_vm5, %v4471_v20, 2147483647  ;;  %v4097_v46 = vmul.f32 1.442695, %v4066_v57 }
 0xbdb   :  { %v4008_v43 = vpop.xlane.xlu0 %4007  ;;  %v4582_v33 = vshra.s32 %v9627_v17, 16 }
 0xbdc   :  { %vm4445_vm6 = vcmp.ge.f32.partialorder %v9468_v59, %v4008_v43  ;;  %6174 = vpow2.f32 %v4097_v46 }
 0xbdd   :  { %v4472_v13 = vsel %vm4445_vm6, %v10843_v60, 6  ;;  %v9634_v22 = vcvt.s32.f32 %v4582_v33  ;;  %6176 = vpow2.f32 %v4095_v44 }
 0xbde   :  { %v9624_v48 = vsel %vm3984_vm5, %v4472_v13, 2147483647  ;;  %v4067_v13 = vsub.f32 %v9468_v59, %v4008_v43 }
 0xbdf   :  { %v4597_v47 = vshra.s32 %v9624_v48, 16  ;;  %v4011_v10 = vpop.xlane.xlu1 %4010 }
 0xbe0   :  { %v9579_v62 = vpop.eup %6164  ;;  %vm4446_vm9 = vcmp.ge.f32.partialorder %v9472_v24, %v4011_v10  ;;  %v4068_v50 = vsub.f32 %v9472_v24, %v4011_v10  ;;  %v4099_v20 = vmul.f32 1.442695, %v4067_v13 }
 0xbe1   :  { %v9583_v3 = vpop.eup %6166  ;;  %v9632_v42 = vcvt.s32.f32 %v4597_v47  ;;  %v4473_v37 = vsel %vm4446_vm9, %v10843_v60, 6 }
 0xbe2   :  { %10844 = vst [vmem:[#allocation42_spill] sm:$0xff] %v9583_v3  ;;  %v9587_v8 = vpop.eup %6168  ;;  %v9655_v45 = vsel %vm3984_vm5, %v4473_v37, 2147483647  ;;  %v4101_v51 = vmul.f32 1.442695, %v4068_v50 }
 0xbe3   :  { %v4014_v31 = vpop.xlane.xlu0 %4013  ;;  %v4612_v54 = vshra.s32 %v9655_v45, 16 }
 0xbe4   :  { %v9611_v61 = vpop.eup %6170  ;;  %vm4447_vm8 = vcmp.ge.f32.partialorder %v9476_v12, %v4014_v31  ;;  %6178 = vpow2.f32 %v4101_v51 }
 0xbe5   :  { %v9615_v29 = vpop.eup %6172  ;;  %v4474_v52 = vsel %vm4447_vm8, %v10843_v60, 6  ;;  %v9662_v63 = vcvt.s32.f32 %v4612_v54  ;;  %6180 = vpow2.f32 %v4099_v20  ;;  %v4069_v54 = vsub.f32 %v9476_v12, %v4014_v31 }
 0xbe6   :  { %4162 = vrot.lane.b32.xlu1 %v9579_v62, %s6562_s6  ;;  %10845 = vst [vmem:[#allocation55_spill] sm:$0xff] %v9615_v29  ;;  %v9652_v56 = vsel %vm3984_vm5, %v4474_v52, 2147483647 }
 0xbe7   :  { %v4627_v27 = vshra.s32 %v9652_v56, 16  ;;  %v4017_v33 = vpop.xlane.xlu1 %4016  ;;  %v4103_v51 = vmul.f32 1.442695, %v4069_v54 }
 0xbe8   :  { %vm4448_vm11 = vcmp.ge.f32.partialorder %v9480_v58, %v4017_v33  ;;  %v4070_v10 = vsub.f32 %v9480_v58, %v4017_v33 }
 0xbe9   :  { %v9639_v0 = vpop.eup %6174  ;;  %v9660_v7 = vcvt.s32.f32 %v4627_v27  ;;  %v4475_v43 = vsel %vm4448_vm11, %v10843_v60, 6 }
 0xbea   :  { %4164 = vrot.lane.b32.xlu1 %v9583_v3, %s6562_s6  ;;  %10846 = vst [vmem:[#allocation44_spill] sm:$0xff] %v9639_v0  ;;  %v9643_v1 = vpop.eup %6176  ;;  %v9683_v36 = vsel %vm3984_vm5, %v4475_v43, 2147483647  ;;  %v4105_v27 = vmul.f32 1.442695, %v4070_v10 }
 0xbeb   :  { %10847 = vst [vmem:[#allocation57_spill] sm:$0xff] %v9643_v1  ;;  %v4020_v57 = vpop.xlane.xlu0 %4019  ;;  %v4642_v52 = vshra.s32 %v9683_v36, 16 }
 0xbec   :  { %vm4449_vm10 = vcmp.ge.f32.partialorder %v9484_v19, %v4020_v57  ;;  %6182 = vpow2.f32 %v4105_v27  ;;  %v4071_v4 = vsub.f32 %v9484_v19, %v4020_v57 }
 0xbed   :  { %v4476_v59 = vsel %vm4449_vm10, %v10843_v60, 6  ;;  %v9690_v50 = vcvt.s32.f32 %v4642_v52  ;;  %6184 = vpow2.f32 %v4103_v51  ;;  %vm4235_vm10 = vcmask 48128  }
 0xbee   :  { %v9680_v46 = vsel %vm3984_vm5, %v4476_v59, 2147483647 }
 0xbef   :  { %v4657_v44 = vshra.s32 %v9680_v46, 16  ;;  %v4023_v33 = vpop.xlane.xlu1 %4022 }
 0xbf0   :  { %4160 = vrot.lane.b32.xlu0 %v9587_v8, %s6562_s6  ;;  %vm4450_vm13 = vcmp.ge.f32.partialorder %v9488_v35, %v4023_v33  ;;  %v4072_v10 = vsub.f32 %v9488_v35, %v4023_v33 }
 0xbf1   :  { %v9667_v47 = vpop.eup %6178  ;;  %v9688_v37 = vcvt.s32.f32 %v4657_v44  ;;  %v4477_v31 = vsel %vm4450_vm13, %v10843_v60, 6 }
 0xbf2   :  { %10848 = vst [vmem:[#allocation45_spill] sm:$0xff] %v9667_v47  ;;  %v9671_v24 = vpop.eup %6180  ;;  %v9711_v43 = vsel %vm3984_vm5, %v4477_v31, 2147483647  ;;  %v4109_v54 = vmul.f32 1.442695, %v4072_v10 }
 0xbf3   :  { %10849 = vst [vmem:[#allocation59_spill] sm:$0xff] %v9671_v24  ;;  %v4026_v20 = vpop.xlane.xlu0 %4025  ;;  %v4672_v52 = vshra.s32 %v9711_v43, 16 }
 0xbf4   :  { %vm4451_vm12 = vcmp.ge.f32.partialorder %v9492_v40, %v4026_v20  ;;  %6186 = vpow2.f32 %v4109_v54 }
 0xbf5   :  { %v4478_v12 = vsel %vm4451_vm12, %v10843_v60, 6  ;;  %v9718_v51 = vcvt.s32.f32 %v4672_v52 }
 0xbf6   :  { %v9708_v59 = vsel %vm3984_vm5, %v4478_v12, 2147483647  ;;  %v4107_v12 = vmul.f32 1.442695, %v4071_v4 }
 0xbf7   :  { %v4687_v44 = vshra.s32 %v9708_v59, 16 }
 0xbf8   :  { %6188 = vpow2.f32 %v4107_v12 }
 0xbf9   :  { %v9695_v13 = vpop.eup %6182  ;;  %v9716_v27 = vcvt.s32.f32 %v4687_v44  ;;  %v4029_v44 = vpop.xlane.xlu1 %4028 }
 0xbfa   :  { %10850 = vst [vmem:[#allocation67_spill] sm:$0xff] %v9695_v13  ;;  %v9699_v58 = vpop.eup %6184  ;;  %vm4452_vm15 = vcmp.ge.f32.partialorder %v9496_v39, %v4029_v44  ;;  %v4074_v54 = vsub.f32 %v9496_v39, %v4029_v44 }
 0xbfb   :  { %10851 = vst [vmem:[#allocation46_spill] sm:$0xff] %v9699_v58  ;;  %v4032_v33 = vpop.xlane.xlu0 %4031  ;;  %v4479_v4 = vsel %vm4452_vm15, %v10843_v60, 6 }
 0xbfc   :  { %vm4453_vm14 = vcmp.ge.f32.partialorder %v9500_v5, %v4032_v33  ;;  %v9739_v10 = vsel %vm3984_vm5, %v4479_v4, 2147483647 }
 0xbfd   :  { %v4480_v19 = vsel %vm4453_vm14, %v10843_v60, 6  ;;  %v4702_v12 = vshra.s32 %v9739_v10, 16 }
 0xbfe   :  { %v9736_v57 = vsel %vm3984_vm5, %v4480_v19, 2147483647 }
 0xbff   :  { %v4717_v52 = vshra.s32 %v9736_v57, 16 }
 0xc01   :  { %v9723_v31 = vpop.eup %6186 }
 0xc02   :  { %10852 = vst [vmem:[#allocation47_spill] sm:$0xff] %v9723_v31 }
 0xc03   :  { %v4038_v44 = vpop.xlane.xlu0 %4037 }
 0xc04   :  { %vm4455_vm0 = vcmp.ge.f32.partialorder %v9508_v2, %v4038_v44 }
 0xc05   :  { %v9727_v35 = vpop.eup %6188 }
 0xc06   :  { %10853 = vst [vmem:[#allocation48_spill] sm:$0xff] %v9727_v35 }
 0xc0e   :  { %4570 = vmin.xlane.f32.xlu1 %v9604_v14 }
 0xc0f   :  { %4555 = vmin.xlane.f32.xlu0 %v9606_v28 }
 0xc1f   :  { %4168 = vrot.lane.b32.xlu1 %v9611_v61, %s6562_s6 }
 0xc25   :  { %4166 = vrot.lane.b32.xlu0 %v9615_v29, %s6562_s6 }
 0xc43   :  { %4600 = vmin.xlane.f32.xlu1 %v9632_v42 }
 0xc44   :  { %4585 = vmin.xlane.f32.xlu0 %v9634_v22 }
 0xc54   :  { %4172 = vrot.lane.b32.xlu1 %v9639_v0, %s6562_s6  ;;  %v4077_v0 = vsub.f32 %v9508_v2, %v4038_v44 }
 0xc5a   :  { %4170 = vrot.lane.b32.xlu0 %v9643_v1, %s6562_s6 }
 0xc78   :  { %4630 = vmin.xlane.f32.xlu1 %v9660_v7 }
 0xc79   :  { %4615 = vmin.xlane.f32.xlu0 %v9662_v63 }
 0xc89   :  { %4176 = vrot.lane.b32.xlu1 %v9667_v47, %s6562_s6 }
 0xc8f   :  { %4174 = vrot.lane.b32.xlu0 %v9671_v24, %s6562_s6  ;;  %v9746_v24 = vcvt.s32.f32 %v4702_v12 }
 0xcad   :  { %4660 = vmin.xlane.f32.xlu1 %v9688_v37 }
 0xcae   :  { %4645 = vmin.xlane.f32.xlu0 %v9690_v50 }
 0xcbe   :  { %4180 = vrot.lane.b32.xlu1 %v9695_v13, %s6562_s6  ;;  %v4075_v13 = vsub.f32 %v9500_v5, %v4032_v33 }
 0xcc4   :  { %4178 = vrot.lane.b32.xlu0 %v9699_v58, %s6562_s6  ;;  %v4113_v58 = vmul.f32 1.442695, %v4074_v54 }
 0xcc6   :  { %6190 = vpow2.f32 %v4113_v58 }
 0xcd3   :  { %v9751_v4 = vpop.eup %6190 }
 0xcd4   :  { %10854 = vst [vmem:[#allocation49_spill] sm:$0xff] %v9751_v4 }
 0xce2   :  { %4690 = vmin.xlane.f32.xlu1 %v9716_v27 }
 0xce3   :  { %4675 = vmin.xlane.f32.xlu0 %v9718_v51 }
 0xcf3   :  { %4184 = vrot.lane.b32.xlu1 %v9723_v31, %s6562_s6  ;;  %v4073_v31 = vsub.f32 %v9492_v40, %v4026_v20  ;;  %v4482_v40 = vsel %vm4455_vm0, %v10843_v60, 6 }
 0xcf4   :  { %v9764_v20 = vsel %vm3984_vm5, %v4482_v40, 2147483647  ;;  %v4115_v40 = vmul.f32 1.442695, %v4075_v13 }
 0xcf5   :  { %v4111_v19 = vmul.f32 1.442695, %v4073_v31  ;;  %v4747_v54 = vshra.s32 %v9764_v20, 16 }
 0xcf7   :  { %6192 = vpow2.f32 %v4111_v19 }
 0xcf9   :  { %4182 = vrot.lane.b32.xlu0 %v9727_v35, %s6562_s6  ;;  %v9744_v35 = vcvt.s32.f32 %v4717_v52  ;;  %v4035_v52 = vpop.xlane.xlu1 %4034 }
 0xcfa   :  { %vm4454_vm1 = vcmp.ge.f32.partialorder %v9504_v30, %v4035_v52  ;;  %v4076_v12 = vsub.f32 %v9504_v30, %v4035_v52  ;;  %v4044_v52 = vpop.xlane.xlu0 %4043 }
 0xcfb   :  { %v4481_v58 = vsel %vm4454_vm1, %v10843_v60, 6  ;;  %vm4457_vm2 = vcmp.ge.f32.partialorder %v9516_v53, %v4044_v52  ;;  %v4079_v3 = vsub.f32 %v9516_v53, %v4044_v52 }
 0xcfc   :  { %v9767_v31 = vsel %vm3984_vm5, %v4481_v58, 2147483647  ;;  %v4484_v5 = vsel %vm4457_vm2, %v10843_v60, 6 }
 0xcfd   :  { %v4732_v19 = vshra.s32 %v9767_v31, 16  ;;  %v9792_v33 = vsel %vm3984_vm5, %v4484_v5, 2147483647  ;;  %v4119_v5 = vmul.f32 1.442695, %v4077_v0 }
 0xcff   :  { %v9774_v1 = vcvt.s32.f32 %v4732_v19 }
 0xd04   :  { %v9755_v39 = vpop.eup %6192 }
 0xd05   :  { %10855 = vst [vmem:[#allocation50_spill] sm:$0xff] %v9755_v39 }
 0xd17   :  { %4720 = vmin.xlane.f32.xlu1 %v9744_v35 }
 0xd18   :  { %4705 = vmin.xlane.f32.xlu0 %v9746_v24 }
 0xd28   :  { %4188 = vrot.lane.b32.xlu1 %v9751_v4, %s6562_s6  ;;  %v4117_v4 = vmul.f32 1.442695, %v4076_v12  ;;  %v4777_v12 = vshra.s32 %v9792_v33, 16 }
 0xd2a   :  { %6194 = vpow2.f32 %v4117_v4 }
 0xd2b   :  { %6196 = vpow2.f32 %v4115_v40 }
 0xd2e   :  { %4186 = vrot.lane.b32.xlu0 %v9755_v39, %s6562_s6  ;;  %v9772_v39 = vcvt.s32.f32 %v4747_v54  ;;  %v4041_v54 = vpop.xlane.xlu1 %4040 }
 0xd2f   :  { %vm4456_vm3 = vcmp.ge.f32.partialorder %v9512_v41, %v4041_v54  ;;  %v4078_v19 = vsub.f32 %v9512_v41, %v4041_v54  ;;  %v4050_v54 = vpop.xlane.xlu0 %4049 }
 0xd30   :  { %v4483_v13 = vsel %vm4456_vm3, %v10843_v60, 6  ;;  %vm4459_vm4 = vcmp.ge.f32.partialorder %v9524_v18, %v4050_v54 }
 0xd31   :  { %v9795_v4 = vsel %vm3984_vm5, %v4483_v13, 2147483647  ;;  %v4486_v2 = vsel %vm4459_vm4, %v10843_v60, 6 }
 0xd32   :  { %v4762_v40 = vshra.s32 %v9795_v4, 16  ;;  %v9820_v44 = vsel %vm3984_vm5, %v4486_v2, 2147483647  ;;  %v4123_v2 = vmul.f32 1.442695, %v4079_v3 }
 0xd33   :  { %10860 = vst [vmem:[#allocation58_spill] sm:$0xff] %v9820_v44 }
 0xd34   :  { %v9802_v47 = vcvt.s32.f32 %v4762_v40 }
 0xd37   :  { %v9779_v58 = vpop.eup %6194 }
 0xd38   :  { %10856 = vst [vmem:[#allocation51_spill] sm:$0xff] %v9779_v58  ;;  %v9783_v30 = vpop.eup %6196 }
 0xd39   :  { %10857 = vst [vmem:[#allocation52_spill] sm:$0xff] %v9783_v30 }
 0xd4c   :  { %4750 = vmin.xlane.f32.xlu1 %v9772_v39 }
 0xd4d   :  { %4735 = vmin.xlane.f32.xlu0 %v9774_v1 }
 0xd5d   :  { %4192 = vrot.lane.b32.xlu1 %v9779_v58, %s6562_s6  ;;  %v4121_v58 = vmul.f32 1.442695, %v4078_v19  ;;  %v4807_v19 = vshra.s32 %v9820_v44, 16 }
 0xd5f   :  { %6198 = vpow2.f32 %v4121_v58 }
 0xd60   :  { %6200 = vpow2.f32 %v4119_v5 }
 0xd63   :  { %4190 = vrot.lane.b32.xlu0 %v9783_v30, %s6562_s6  ;;  %v9800_v30 = vcvt.s32.f32 %v4777_v12  ;;  %v4047_v12 = vpop.xlane.xlu1 %4046 }
 0xd64   :  { %vm4458_vm6 = vcmp.ge.f32.partialorder %v9520_v34, %v4047_v12  ;;  %v4080_v40 = vsub.f32 %v9520_v34, %v4047_v12  ;;  %v4056_v12 = vpop.xlane.xlu0 %4055 }
 0xd65   :  { %v4485_v0 = vsel %vm4458_vm6, %v10843_v60, 6  ;;  %vm4461_vm7 = vcmp.ge.f32.partialorder %v9532_v9, %v4056_v12 }
 0xd66   :  { %v9823_v58 = vsel %vm3984_vm5, %v4485_v0, 2147483647  ;;  %v4488_v53 = vsel %vm4461_vm7, %v10843_v60, 6 }
 0xd67   :  { %10861 = vst [vmem:[#allocation60_spill] sm:$0xff] %v9823_v58  ;;  %v4792_v5 = vshra.s32 %v9823_v58, 16  ;;  %v9848_v52 = vsel %vm3984_vm5, %v4488_v53, 2147483647  ;;  %v4081_v53 = vsub.f32 %v9524_v18, %v4050_v54 }
 0xd68   :  { %10865 = vst [vmem:[#allocation64_spill] sm:$0xff] %v9848_v52 }
 0xd69   :  { %v9830_v29 = vcvt.s32.f32 %v4792_v5 }
 0xd6b   :  { %10863 = vst [vmem:[#allocation62_spill] sm:$0xff] %v9830_v29 }
 0xd6c   :  { %v9807_v13 = vpop.eup %6198 }
 0xd6d   :  { %10858 = vst [vmem:[#allocation54_spill] sm:$0xff] %v9807_v13  ;;  %v9811_v41 = vpop.eup %6200 }
 0xd6e   :  { %10859 = vst [vmem:[#allocation56_spill] sm:$0xff] %v9811_v41 }
 0xd81   :  { %4780 = vmin.xlane.f32.xlu1 %v9800_v30 }
 0xd82   :  { %4765 = vmin.xlane.f32.xlu0 %v9802_v47 }
 0xd92   :  { %4196 = vrot.lane.b32.xlu1 %v9807_v13, %s6562_s6  ;;  %v4125_v13 = vmul.f32 1.442695, %v4080_v40  ;;  %v4837_v40 = vshra.s32 %v9848_v52, 16  ;;  %v4127_v52 = vmul.f32 1.442695, %v4081_v53 }
 0xd94   :  { %6202 = vpow2.f32 %v4125_v13  ;;  %v9856_v58 = vcvt.s32.f32 %v4837_v40 }
 0xd95   :  { %6204 = vpow2.f32 %v4123_v2 }
 0xd96   :  { %10867 = vst [vmem:[#allocation66_spill] sm:$0xff] %v9856_v58 }
 0xd98   :  { %4194 = vrot.lane.b32.xlu0 %v9811_v41, %s6562_s6  ;;  %v9828_v41 = vcvt.s32.f32 %v4807_v19  ;;  %v4053_v19 = vpop.xlane.xlu1 %4052 }
 0xd99   :  { %vm4460_vm8 = vcmp.ge.f32.partialorder %v9528_v23, %v4053_v19  ;;  %v4082_v5 = vsub.f32 %v9528_v23, %v4053_v19 }
 0xd9a   :  { %10862 = vst [vmem:[#allocation61_spill] sm:$0xff] %v9828_v41  ;;  %v4487_v3 = vsel %vm4460_vm8, %v10843_v60, 6 }
 0xd9b   :  { %v9851_v13 = vsel %vm3984_vm5, %v4487_v3, 2147483647 }
 0xd9c   :  { %10866 = vst [vmem:[#allocation65_spill] sm:$0xff] %v9851_v13  ;;  %v4822_v2 = vshra.s32 %v9851_v13, 16 }
 0xda1   :  { %v9835_v0 = vpop.eup %6202 }
 0xda2   :  { %v9839_v34 = vpop.eup %6204 }
 0xda3   :  { %10864 = vst [vmem:[#allocation63_spill] sm:$0xff] %v9839_v34 }
 0xdb6   :  { %4810 = vmin.xlane.f32.xlu1 %v9828_v41  ;;  %v4129_v41 = vmul.f32 1.442695, %v4082_v5 }
 0xdb7   :  { %4795 = vmin.xlane.f32.xlu0 %v9830_v29  ;;  %v4059_v29 = vpop.xlane.xlu1 %4058 }
 0xdb8   :  { %v4084_v44 = vsub.f32 %v9536_v32, %v4059_v29  ;;  %6206 = vpow2.f32 %v4129_v41  ;;  %vm4462_vm9 = vcmp.ge.f32.partialorder %v9536_v32, %v4059_v29  ;;  %v9899_v29 = vpop.xlane.xlu0 %4510 }
 0xdba   :  { %v4133_v3 = vmul.f32 1.442695, %v4084_v44 }
 0xdbb   :  { %v9864_v23 = vpop.xlane.xlu1 %4495 }
 0xdbc   :  { %6208 = vpow2.f32 %v4133_v3  ;;  %vm4497_vm1 = vcmp.eq.f32.partialorder %v9547_v21, %v9864_v23 }
 0xdbd   :  { %6210 = vpow2.f32 %v4127_v52 }
 0xdbf   :  { %v9870_v40 = vpop.xlane.xlu1 %4540 }
 0xdc0   :  { %vm4542_vm11 = vcmp.eq.f32.partialorder %v9567_v6, %v9870_v40 }
 0xdc3   :  { %v4163_v41 = vpop.permute.xlu1 %4162 }
 0xdc4   :  { %v4239_v32 = vsel %vm4235_vm10, %v4163_v41, 0.0  ;;  %v4536_v41 = vand.u32 65535, %v9557_v11 }
 0xdc5   :  { %v9866_v19 = vpop.eup %6206 }
 0xdc6   :  { %10869 = vst [vmem:[#allocation17_spill] sm:$0xff] %v9866_v19 }
 0xdc7   :  { %4200 = vrot.lane.b32.xlu1 %v9835_v0, %s6562_s6  ;;  %v9880_v54 = vpop.permute.xlu1 %4164 }
 0xdc9   :  { %v9872_v5 = vpop.eup %6208 }
 0xdca   :  { %10870 = vst [vmem:[#allocation20_spill] sm:$0xff] %v9872_v5  ;;  %v9876_v18 = vpop.eup %6210 }
 0xdcb   :  { %10871 = vst [vmem:[#allocation19_spill] sm:$0xff] %v9876_v18  ;;  %v9882_v44 = vpop.xlane.xlu1 %4570 }
 0xdcc   :  { %vm4572_vm12 = vcmp.eq.f32.partialorder %v9604_v14, %v9882_v44 }
 0xdcd   :  { %4198 = vrot.lane.b32.xlu0 %v9839_v34, %s6562_s6  ;;  %v9859_v34 = vcvt.s32.f32 %v4822_v2  ;;  %v4489_v2 = vsel %vm4462_vm9, %v10843_v60, 6 }
 0xdce   :  { %v9889_v3 = vsel %vm3984_vm5, %v4489_v2, 2147483647  ;;  %v4506_v2 = vand.u32 65535, %v9561_v25  ;;  %vm4512_vm5 = vcmp.eq.f32.partialorder %v9570_v49, %v9899_v29  ;;  %v4538_v25 = vcvt.s32.f32 %v4536_v41 }
 0xdcf   :  { %10868 = vst [vmem:[#allocation18_spill] sm:$0xff] %v9859_v34  ;;  %v4169_v52 = vpop.permute.xlu1 %4168  ;;  %10873 = vst [vmem:[#allocation21_spill] sm:$0xff] %v9889_v3  ;;  %v4566_v49 = vand.u32 65535, %v9596_v55  ;;  %v4596_v55 = vand.u32 65535, %v9624_v48 }
 0xdd1   :  { %v4568_v6 = vcvt.s32.f32 %v4566_v49  ;;  %v4626_v49 = vand.u32 65535, %v9652_v56 }
 0xdd3   :  { %v9886_v53 = vpop.xlane.xlu1 %4600 }
 0xdd4   :  { %10872 = vst [vmem:[#allocation22_spill] sm:$0xff] %v9886_v53  ;;  %vm4602_vm13 = vcmp.eq.f32.partialorder %v9632_v42, %v9886_v53  ;;  %v4656_v42 = vand.u32 65535, %v9680_v46 }
 0xdd7   :  { %v4173_v13 = vpop.permute.xlu1 %4172 }
 0xdeb   :  { %4840 = vmin.xlane.f32.xlu1 %v9856_v58 }
 0xdec   :  { %4825 = vmin.xlane.f32.xlu0 %v9859_v34  ;;  %v4852_v34 = vshra.s32 %v9889_v3, 16  ;;  %v4248_v3 = vsel %vm4235_vm10, %v4169_v52, 0.0 }
 0xdee   :  { %v9892_v58 = vcvt.s32.f32 %v4852_v34 }
 0xdfc   :  { %4204 = vrot.lane.b32.xlu1 %v9866_v19, %s6562_s6 }
 0xe00   :  { %4208 = vrot.lane.b32.xlu1 %v9872_v5, %s6562_s6  ;;  %v9896_v5 = vpop.xlane.xlu1 %4630 }
 0xe01   :  { %10874 = vst [vmem:[#allocation26_spill] sm:$0xff] %v9896_v5  ;;  %vm4632_vm14 = vcmp.eq.f32.partialorder %v9660_v7, %v9896_v5 }
 0xe02   :  { %4202 = vrot.lane.b32.xlu0 %v9876_v18, %s6562_s6  ;;  %v4083_v18 = vsub.f32 %v9532_v9, %v4056_v12  ;;  %v4508_v9 = vcvt.s32.f32 %v4506_v2 }
 0xe04   :  { %v4131_v60 = vmul.f32 1.442695, %v4083_v18  ;;  %v4177_v19 = vpop.permute.xlu1 %4176  ;;  %v4513_v34 = vsel %vm4512_vm5, %v4508_v9, inf  ;;  %v4254_v18 = vsel %vm4235_vm10, %v4173_v13, 0.0  ;;  %v4573_v9 = vsel %vm4572_vm12, %v4568_v6, inf }
 0xe05   :  { %v4260_v11 = vsel %vm4235_vm10, %v4177_v19, 0.0  ;;  %v4598_v19 = vcvt.s32.f32 %v4596_v55 }
 0xe06   :  { %6212 = vpow2.f32 %v4131_v60 }
 0xe08   :  { %v9905_v12 = vpop.xlane.xlu1 %4660 }
 0xe09   :  { %10875 = vst [vmem:[#allocation25_spill] sm:$0xff] %v9905_v12  ;;  %vm4662_vm15 = vcmp.eq.f32.partialorder %v9688_v37, %v9905_v12  ;;  %v4242_v37 = vsel %vm4235_vm10, %v9880_v54, 0.0 }
 0xe0c   :  { %v4181_v52 = vpop.permute.xlu1 %4180 }
 0xe10   :  { %v9916_v2 = vpop.xlane.xlu1 %4690 }
 0xe11   :  { %10876 = vst [vmem:[#allocation24_spill] sm:$0xff] %v9916_v2  ;;  %vm4692_vm0 = vcmp.eq.f32.partialorder %v9716_v27, %v9916_v2 }
 0xe13   :  { %v9914_v60 = vpop.eup %6212 }
 0xe21   :  { %4855 = vmin.xlane.f32.xlu0 %v9892_v58 }
 0xe24   :  { %4240 = vadd.xlane.f32.xlu1 %v4239_v32  ;;  %v9911_v32 = vpop.xlane.xlu0 %4525 }
 0xe25   :  { %vm4527_vm3 = vcmp.eq.f32.partialorder %v9575_v15, %v9911_v32  ;;  %v4581_v15 = vand.u32 65535, %v9627_v17 }
 0xe28   :  { %4249 = vadd.xlane.f32.xlu1 %v4248_v3  ;;  %v4543_v3 = vsel %vm4542_vm11, %v4538_v25, inf  ;;  %v4161_v13 = vpop.permute.xlu0 %4160 }
 0xe2c   :  { %4514 = vmin.xlane.f32.xlu1 %v4513_v34  ;;  %v4185_v34 = vpop.permute.xlu1 %4184  ;;  %v9924_v41 = vpop.xlane.xlu0 %4555 }
 0xe2d   :  { %v4272_v6 = vsel %vm4235_vm10, %v4185_v34, 0.0  ;;  %v4658_v34 = vcvt.s32.f32 %v4656_v42  ;;  %vm4557_vm4 = vcmp.eq.f32.partialorder %v9606_v28, %v9924_v41 }
 0xe30   :  { %4255 = vadd.xlane.f32.xlu1 %v4254_v18  ;;  %v4266_v18 = vsel %vm4235_vm10, %v4181_v52, 0.0  ;;  %v9927_v25 = vpop.xlane.xlu1 %4720  ;;  %v4167_v14 = vpop.permute.xlu0 %4166  ;;  %v4628_v52 = vcvt.s32.f32 %v4626_v49  ;;  %v4236_v49 = vsel %vm4235_vm10, %v4161_v13, 0.0 }
 0xe31   :  { %10877 = vst [vmem:[#allocation23_spill] sm:$0xff] %v9927_v25  ;;  %vm4722_vm2 = vcmp.eq.f32.partialorder %v9744_v35, %v9927_v25 }
 0xe34   :  { %4544 = vmin.xlane.f32.xlu1 %v4543_v3  ;;  %v4603_v3 = vsel %vm4602_vm13, %v4598_v19, inf  ;;  %v9933_v48 = vpop.xlane.xlu0 %4585 }
 0xe35   :  { %10878 = vst [vmem:[#allocation29_spill] sm:$0xff] %v9933_v48  ;;  %vm4587_vm6 = vcmp.eq.f32.partialorder %v9634_v22, %v9933_v48 }
 0xe37   :  { %4206 = vrot.lane.b32.xlu0 %v9914_v60, %s6562_s6 }
 0xe38   :  { %4261 = vadd.xlane.f32.xlu1 %v4260_v11  ;;  %v4189_v11 = vpop.permute.xlu1 %4188  ;;  %v4171_v55 = vpop.permute.xlu0 %4170 }
 0xe39   :  { %v4278_v19 = vsel %vm4235_vm10, %v4189_v11, 0.0 }
 0xe3c   :  { %4574 = vmin.xlane.f32.xlu1 %v4573_v9  ;;  %v9937_v9 = vpop.xlane.xlu1 %4750 }
 0xe3d   :  { %10879 = vst [vmem:[#allocation30_spill] sm:$0xff] %v9937_v9  ;;  %vm4752_vm7 = vcmp.eq.f32.partialorder %v9772_v39, %v9937_v9 }
 0xe40   :  { %4267 = vadd.xlane.f32.xlu1 %v4266_v18  ;;  %v4633_v18 = vsel %vm4632_vm14, %v4628_v52, inf  ;;  %v4193_v56 = vpop.permute.xlu1 %4192  ;;  %v4686_v52 = vand.u32 65535, %v9708_v59  ;;  %v4245_v59 = vsel %vm4235_vm10, %v4167_v14, 0.0 }
 0xe41   :  { %v4284_v46 = vsel %vm4235_vm10, %v4193_v56, 0.0  ;;  %v4716_v56 = vand.u32 65535, %v9736_v57  ;;  %v4521_v57 = vand.u32 65535, %v9564_v16 }
 0xe43   :  { %v4523_v35 = vcvt.s32.f32 %v4521_v57 }
 0xe44   :  { %4604 = vmin.xlane.f32.xlu1 %v4603_v3  ;;  %v9943_v3 = vpop.xlane.xlu0 %4615  ;;  %v9945_v7 = vpop.xlane.xlu1 %4780 }
 0xe45   :  { %10880 = vst [vmem:[#allocation28_spill] sm:$0xff] %v9943_v3  ;;  %10881 = vst [vmem:[#allocation27_spill] sm:$0xff] %v9945_v7  ;;  %vm4617_vm8 = vcmp.eq.f32.partialorder %v9662_v63, %v9943_v3  ;;  %vm4782_vm9 = vcmp.eq.f32.partialorder %v9800_v30, %v9945_v7 }
 0xe48   :  { %4273 = vadd.xlane.f32.xlu1 %v4272_v6  ;;  %v4663_v6 = vsel %vm4662_vm15, %v4658_v34, inf  ;;  %v4175_v11 = vpop.permute.xlu0 %4174  ;;  %v4197_v42 = vpop.permute.xlu1 %4196  ;;  %v4491_v34 = vand.u32 65535, %v9543_v26 }
 0xe49   :  { %v4290_v27 = vsel %vm4235_vm10, %v4197_v42, 0.0  ;;  %v4528_v42 = vsel %vm4527_vm3, %v4523_v35, inf  ;;  %v4257_v16 = vsel %vm4235_vm10, %v4175_v11, 0.0  ;;  %v4746_v11 = vand.u32 65535, %v9764_v20 }
 0xe4a   :  { %v4493_v54 = vcvt.s32.f32 %v4491_v34  ;;  %vm5290_vm3 = vcmask 572928  }
 0xe4b   :  { %v4748_v17 = vcvt.s32.f32 %v4746_v11 }
 0xe4c   :  { %4634 = vmin.xlane.f32.xlu1 %v4633_v18  ;;  %v4688_v18 = vcvt.s32.f32 %v4686_v52  ;;  %v9955_v13 = vpop.xlane.xlu0 %4645  ;;  %v4498_v26 = vsel %vm4497_vm1, %v4493_v54, inf }
 0xe4d   :  { %10882 = vst [vmem:[#allocation33_spill] sm:$0xff] %v9955_v13  ;;  %vm4647_vm5 = vcmp.eq.f32.partialorder %v9690_v50, %v9955_v13 }
 0xe50   :  { %4279 = vadd.xlane.f32.xlu1 %v4278_v19  ;;  %v4693_v19 = vsel %vm4692_vm0, %v4688_v18, inf  ;;  %v4179_v52 = vpop.permute.xlu0 %4178 }
 0xe51   :  { %v4263_v54 = vsel %vm4235_vm10, %v4179_v52, 0.0  ;;  %v4611_v52 = vand.u32 65535, %v9655_v45  ;;  %v4641_v45 = vand.u32 65535, %v9683_v36 }
 0xe53   :  { %v4613_v20 = vcvt.s32.f32 %v4611_v52  ;;  %v4643_v63 = vcvt.s32.f32 %v4641_v45 }
 0xe54   :  { %4664 = vmin.xlane.f32.xlu1 %v4663_v6  ;;  %v9959_v6 = vpop.xlane.xlu1 %4810  ;;  %v9968_v18 = vpop.xlane.xlu0 %4675 }
 0xe55   :  { %10883 = vst [vmem:[#allocation34_spill] sm:$0xff] %v9968_v18  ;;  %v4618_v39 = vsel %vm4617_vm8, %v4613_v20, inf  ;;  %v4648_v30 = vsel %vm4647_vm5, %v4643_v63, inf  ;;  %vm4677_vm11 = vcmp.eq.f32.partialorder %v9718_v51, %v9968_v18 }
 0xe56   :  { %4237 = vadd.xlane.f32.xlu0 %v4236_v49  ;;  %v4718_v49 = vcvt.s32.f32 %v4716_v56 }
 0xe58   :  { %4285 = vadd.xlane.f32.xlu1 %v4284_v46  ;;  %v4723_v14 = vsel %vm4722_vm2, %v4718_v49, inf  ;;  %v4201_v46 = vpop.permute.xlu1 %4200  ;;  %v4183_v34 = vpop.permute.xlu0 %4182 }
 0xe59   :  { %v4296_v21 = vsel %vm4235_vm10, %v4201_v46, 0.0  ;;  %v4776_v46 = vand.u32 65535, %v9792_v33  ;;  %v4269_v22 = vsel %vm4235_vm10, %v4183_v34, 0.0 }
 0xe5a   :  { %4243 = vadd.xlane.f32.xlu0 %v4242_v37  ;;  %v4251_v37 = vsel %vm4235_vm10, %v4171_v55, 0.0 }
 0xe5c   :  { %4694 = vmin.xlane.f32.xlu1 %v4693_v19  ;;  %v4551_v19 = vand.u32 65535, %v9599_v38  ;;  %v4583_v38 = vcvt.s32.f32 %v4581_v15 }
 0xe5e   :  { %4246 = vadd.xlane.f32.xlu0 %v4245_v59  ;;  %v4553_v55 = vcvt.s32.f32 %v4551_v19  ;;  %v9977_v59 = vpop.xlane.xlu0 %4705  ;;  %v4588_v49 = vsel %vm4587_vm6, %v4583_v38, inf  ;;  %v4701_v38 = vand.u32 65535, %v9739_v10  ;;  %vm5342_vm6 = vcmask 589368  }
 0xe5f   :  { %10884 = vst [vmem:[#allocation32_spill] sm:$0xff] %v9977_v59  ;;  %vm4707_vm12 = vcmp.eq.f32.partialorder %v9746_v24, %v9977_v59 }
 0xe60   :  { %4291 = vadd.xlane.f32.xlu1 %v4290_v27  ;;  %v4558_v56 = vsel %vm4557_vm4, %v4553_v55, inf  ;;  %vm5316_vm4 = vcmask 581168  }
 0xe62   :  { %4499 = vmin.xlane.f32.xlu0 %v4498_v26  ;;  %v4187_v26 = vpop.permute.xlu0 %4186 }
 0xe63   :  { %v4275_v34 = vsel %vm4235_vm10, %v4187_v26, 0.0 }
 0xe64   :  { %4724 = vmin.xlane.f32.xlu1 %v4723_v14 }
 0xe66   :  { %4252 = vadd.xlane.f32.xlu0 %v4251_v37  ;;  %v9987_v57 = vpop.xlane.xlu0 %4735  ;;  %v4753_v37 = vsel %vm4752_vm7, %v4748_v17, inf  ;;  %vm5368_vm7 = vcmask 1048128  }
 0xe67   :  { %10885 = vst [vmem:[#allocation31_spill] sm:$0xff] %v9987_v57  ;;  %vm4737_vm13 = vcmp.eq.f32.partialorder %v9774_v1, %v9987_v57 }
 0xe68   :  { %4297 = vadd.xlane.f32.xlu1 %v4296_v21  ;;  %v4778_v21 = vcvt.s32.f32 %v4776_v46  ;;  %v4731_v46 = vand.u32 65535, %v9767_v31 }
 0xe6a   :  { %4529 = vmin.xlane.f32.xlu0 %v4528_v42  ;;  %v4191_v35 = vpop.permute.xlu0 %4190  ;;  %v4783_v42 = vsel %vm4782_vm9, %v4778_v21, inf  ;;  %v4733_v20 = vcvt.s32.f32 %v4731_v46  ;;  %v4761_v21 = vand.u32 65535, %v9795_v4 }
 0xe6b   :  { %v4281_v15 = vsel %vm4235_vm10, %v4191_v35, 0.0 }
 0xe6c   :  { %v4738_v35 = vsel %vm4737_vm13, %v4733_v20, inf  ;;  %v4763_v31 = vcvt.s32.f32 %v4761_v21 }
 0xe6e   :  { %4258 = vadd.xlane.f32.xlu0 %v4257_v16  ;;  %v9999_v33 = vpop.xlane.xlu0 %4765 }
 0xe6f   :  { %10886 = vst [vmem:[#allocation35_spill] sm:$0xff] %v9999_v33  ;;  %vm4767_vm14 = vcmp.eq.f32.partialorder %v9802_v47, %v9999_v33 }
 0xe72   :  { %4559 = vmin.xlane.f32.xlu0 %v4558_v56  ;;  %v4195_v55 = vpop.permute.xlu0 %4194  ;;  %v4671_v56 = vand.u32 65535, %v9711_v43  ;;  %v4703_v43 = vcvt.s32.f32 %v4701_v38 }
 0xe73   :  { %v4287_v11 = vsel %vm4235_vm10, %v4195_v55, 0.0 }
 0xe74   :  { %v9980_v27 = vpop.xlane.xlu1 %4840 }
 0xe76   :  { %4264 = vadd.xlane.f32.xlu0 %v4263_v54  ;;  %v10007_v36 = vpop.xlane.xlu0 %4795  ;;  %v4673_v54 = vcvt.s32.f32 %v4671_v56 }
 0xe78   :  { %v4205_v28 = vpop.permute.xlu1 %4204  ;;  %v4678_v26 = vsel %vm4677_vm11, %v4673_v54, inf }
 0xe79   :  { %v4302_v14 = vsel %vm4235_vm10, %v4205_v28, 0.0 }
 0xe7a   :  { %4589 = vmin.xlane.f32.xlu0 %v4588_v49  ;;  %4303 = vadd.xlane.f32.xlu1 %v4302_v14  ;;  %v4199_v50 = vpop.permute.xlu0 %4198  ;;  %v4708_v49 = vsel %vm4707_vm12, %v4703_v43, inf }
 0xe7b   :  { %v4293_v14 = vsel %vm4235_vm10, %v4199_v50, 0.0 }
 0xe7c   :  { %v4209_v19 = vpop.permute.xlu1 %4208 }
 0xe7d   :  { %v4308_v16 = vsel %vm4235_vm10, %v4209_v19, 0.0 }
 0xe7e   :  { %4270 = vadd.xlane.f32.xlu0 %v4269_v22  ;;  %4754 = vmin.xlane.f32.xlu1 %v4753_v37  ;;  %v10015_v28 = vpop.xlane.xlu0 %4825 }
 0xe82   :  { %4619 = vmin.xlane.f32.xlu0 %v4618_v39  ;;  %4784 = vmin.xlane.f32.xlu1 %v4783_v42  ;;  %v4203_v51 = vpop.permute.xlu0 %4202  ;;  %v4768_v42 = vsel %vm4767_vm14, %v4763_v31, inf }
 0xe83   :  { %v4299_v17 = vsel %vm4235_vm10, %v4203_v51, 0.0 }
 0xe86   :  { %4276 = vadd.xlane.f32.xlu0 %v4275_v34  ;;  %4309 = vadd.xlane.f32.xlu1 %v4308_v16 }
 0xe8a   :  { %4649 = vmin.xlane.f32.xlu0 %v4648_v30 }
 0xe8e   :  { %4282 = vadd.xlane.f32.xlu0 %v4281_v15 }
 0xe92   :  { %4679 = vmin.xlane.f32.xlu0 %v4678_v26 }
 0xe96   :  { %4288 = vadd.xlane.f32.xlu0 %v4287_v11 }
 0xe9a   :  { %4709 = vmin.xlane.f32.xlu0 %v4708_v49 }
 0xe9e   :  { %4294 = vadd.xlane.f32.xlu0 %v4293_v14 }
 0xea2   :  { %4300 = vadd.xlane.f32.xlu0 %v4299_v17 }
 0xeaa   :  { %v10019_v10 = vpop.xlane.xlu0 %4855 }
 0xead   :  { %v10021_v52 = vpop.xlane.xlu1 %4240 }
 0xeae   :  { %v4207_v22 = vpop.permute.xlu0 %4206  ;;  %6214 = vrcp.f32 %v10021_v52 }
 0xeaf   :  { %v4305_v24 = vsel %vm4235_vm10, %v4207_v22, 0.0 }
 0xeb0   :  { %4306 = vadd.xlane.f32.xlu0 %v4305_v24 }
 0xeb1   :  { %v10027_v37 = vpop.xlane.xlu1 %4249 }
 0xeb4   :  { %4739 = vmin.xlane.f32.xlu0 %v4738_v35  ;;  %v10896_v35 = vld [vmem:[#allocation42_spill] sm:$0xff] }
 0xeb5   :  { %v10032_v39 = vpop.xlane.xlu1 %4514 }
 0xeb8   :  { %4769 = vmin.xlane.f32.xlu0 %v4768_v42 }
 0xeb9   :  { %v10034_v19 = vpop.xlane.xlu1 %4255 }
 0xebb   :  { %v6215_v38 = vpop.eup %6214 }
 0xebc   :  { %v4337_v49 = vmul.f32 %v6215_v38, %v9579_v62 }
 0xebd   :  { %v10036_v45 = vpop.xlane.xlu1 %4544 }
 0xebe   :  { %v4891_v24 = vmax.f32 %v4337_v49, 0.0001 }
 0xec1   :  { %v10038_v1 = vpop.xlane.xlu1 %4261 }
 0xec5   :  { %v10040_v34 = vpop.xlane.xlu1 %4574 }
 0xec6   :  { %10887 = vst [vmem:[#allocation36_spill] sm:$0xff] %v10040_v34 }
 0xec9   :  { %v10042_v16 = vpop.xlane.xlu1 %4267 }
 0xeca   :  { %10888 = vst [vmem:[#allocation37_spill] sm:$0xff] %v10042_v16 }
 0xecd   :  { %v10044_v4 = vpop.xlane.xlu1 %4604 }
 0xece   :  { %10889 = vst [vmem:[#allocation38_spill] sm:$0xff] %v10044_v4 }
 0xed1   :  { %v10046_v63 = vpop.xlane.xlu1 %4273 }
 0xed2   :  { %10890 = vst [vmem:[#allocation39_spill] sm:$0xff] %v10046_v63 }
 0xed5   :  { %v10048_v47 = vpop.xlane.xlu1 %4634 }
 0xed6   :  { %10891 = vst [vmem:[#allocation40_spill] sm:$0xff] %v10048_v47 }
 0xed9   :  { %v10050_v30 = vpop.xlane.xlu1 %4279 }
 0xeda   :  { %10892 = vst [vmem:[#allocation41_spill] sm:$0xff] %v10050_v30 }
 0xedd   :  { %v10057_v56 = vpop.xlane.xlu1 %4664 }
 0xede   :  { %10893 = vst [vmem:[#allocation53_spill] sm:$0xff] %v10057_v56 }
 0xedf   :  { %v10053_v55 = vpop.xlane.xlu0 %4237 }
 0xee0   :  { %6216 = vrcp.f32 %v10053_v55 }
 0xee1   :  { %6218 = vrcp.f32 %v10027_v37  ;;  %v10063_v54 = vpop.xlane.xlu1 %4285 }
 0xee2   :  { %10894 = vst [vmem:[#allocation16_spill] sm:$0xff] %v10063_v54 }
 0xee3   :  { %v10059_v15 = vpop.xlane.xlu0 %4243 }
 0xee4   :  { %6220 = vrcp.f32 %v10059_v15 }
 0xee5   :  { %6222 = vrcp.f32 %v10034_v19  ;;  %v10072_v43 = vpop.xlane.xlu1 %4694 }
 0xee6   :  { %10895 = vst [vmem:[#allocation43_spill] sm:$0xff] %v10072_v43  ;;  %v10903_v43 = vld [vmem:[#allocation67_spill] sm:$0xff] }
 0xee7   :  { %v10065_v26 = vpop.xlane.xlu0 %4246 }
 0xee8   :  { %6224 = vrcp.f32 %v10065_v26 }
 0xee9   :  { %6226 = vrcp.f32 %v10038_v1  ;;  %v10084_v62 = vpop.xlane.xlu1 %4291 }
 0xeea   :  { %6228 = vrcp.f32 %v10042_v16  ;;  %10897 = vst [vmem:[#allocation42_spill] sm:$0xff] %v10084_v62 }
 0xeeb   :  { %v10069_v50 = vpop.xlane.xlu0 %4499 }
 0xeed   :  { %v6217_v11 = vpop.eup %6216 }
 0xeee   :  { %v6219_v14 = vpop.eup %6218  ;;  %v4336_v51 = vmul.f32 %v6217_v11, %v9587_v8 }
 0xeef   :  { %v10076_v17 = vpop.xlane.xlu0 %4252  ;;  %v4340_v20 = vmul.f32 %v6219_v14, %v9611_v61  ;;  %v10898_v14 = vld [vmem:[#allocation55_spill] sm:$0xff] }
 0xef0   :  { %6230 = vrcp.f32 %v10076_v17  ;;  %v4890_v46 = vmax.f32 %v4336_v51, 0.0001  ;;  %v10090_v51 = vmin.f32 %v4891_v24, 0.9999 }
 0xef1   :  { %v6221_v22 = vpop.eup %6220  ;;  %6232 = vrcp.f32 %v10046_v63  ;;  %v4894_v49 = vmax.f32 %v4340_v20, 0.0001  ;;  %v10105_v20 = vpop.xlane.xlu1 %4724 }
 0xef2   :  { %v10081_v21 = vmin.f32 %v4890_v46, 0.9999  ;;  %v4338_v31 = vmul.f32 %v6221_v22, %v10896_v35  ;;  %v6223_v42 = vpop.eup %6222  ;;  %6234 = vrcp.f32 %v10050_v30  ;;  %v10899_v22 = vld [vmem:[#allocation44_spill] sm:$0xff]  ;;  %10900 = vst [vmem:[#allocation55_spill] sm:$0xff] %v10105_v20 }
 0xef3   :  { %v10086_v38 = vpop.xlane.xlu0 %4529  ;;  %v4342_v35 = vmul.f32 %v6223_v42, %v10899_v22  ;;  %v10109_v42 = vmin.f32 %v4894_v49, 0.9999  ;;  %v10904_v49 = vld [vmem:[#allocation57_spill] sm:$0xff] }
 0xef4   :  { %4965 = vrot.lane.b32.xlu1 %v10081_v21, %s6562_s6  ;;  %v4892_v8 = vmax.f32 %v4338_v31, 0.0001 }
 0xef5   :  { %v6225_v11 = vpop.eup %6224 }
 0xef6   :  { %v10093_v61 = vmin.f32 %v4892_v8, 0.9999  ;;  %v4339_v46 = vmul.f32 %v6225_v11, %v10898_v14  ;;  %v6227_v7 = vpop.eup %6226  ;;  %v4896_v11 = vmax.f32 %v4342_v35, 0.0001  ;;  %v10901_v14 = vld [vmem:[#allocation45_spill] sm:$0xff] }
 0xef7   :  { %v10097_v9 = vpop.xlane.xlu0 %4258  ;;  %v6229_v31 = vpop.eup %6228  ;;  %v4344_v22 = vmul.f32 %v6227_v7, %v10901_v14 }
 0xef8   :  { %6236 = vrcp.f32 %v10097_v9  ;;  %4969 = vrot.lane.b32.xlu0 %v10093_v61, %s6562_s6  ;;  %4967 = vrot.lane.b32.xlu1 %v10090_v51, %s6562_s6  ;;  %v4893_v24 = vmax.f32 %v4339_v46, 0.0001  ;;  %v4346_v2 = vmul.f32 %v6229_v31, %v10903_v43  ;;  %v10123_v7 = vpop.xlane.xlu1 %4297 }
 0xef9   :  { %6238 = vrcp.f32 %v10063_v54  ;;  %v4898_v35 = vmax.f32 %v4344_v22, 0.0001  ;;  %10905 = vst [vmem:[#allocation45_spill] sm:$0xff] %v10123_v7 }
 0xefa   :  { %v10107_v8 = vmin.f32 %v4893_v24, 0.9999  ;;  %6240 = vrcp.f32 %v10084_v62  ;;  %v10120_v24 = vmin.f32 %v4896_v11, 0.9999  ;;  %v4900_v57 = vmax.f32 %v4346_v2, 0.0001 }
 0xefb   :  { %v10112_v25 = vpop.xlane.xlu0 %4559  ;;  %v10133_v31 = vmin.f32 %v4898_v35, 0.9999  ;;  %v10907_v11 = vld [vmem:[#allocation47_spill] sm:$0xff] }
 0xefc   :  { %10902 = vst [vmem:[#allocation44_spill] sm:$0xff] %v10112_v25  ;;  %4971 = vrot.lane.b32.xlu1 %v10107_v8, %s6562_s6  ;;  %4973 = vrot.lane.b32.xlu0 %v10109_v42, %s6562_s6  ;;  %v10910_v35 = vld [vmem:[#allocation59_spill] sm:$0xff] }
 0xefd   :  { %v6231_v46 = vpop.eup %6230 }
 0xefe   :  { %v4341_v20 = vmul.f32 %v6231_v46, %v10904_v49  ;;  %v6233_v33 = vpop.eup %6232 }
 0xeff   :  { %v10125_v14 = vpop.xlane.xlu0 %4264  ;;  %v4348_v22 = vmul.f32 %v6233_v33, %v10907_v11  ;;  %v6235_v46 = vpop.eup %6234  ;;  %v10911_v11 = vld [vmem:[#allocation49_spill] sm:$0xff] }
 0xf00   :  { %10906 = vst [vmem:[#allocation67_spill] sm:$0xff] %v10125_v14  ;;  %6242 = vrcp.f32 %v10125_v14  ;;  %4977 = vrot.lane.b32.xlu0 %v10120_v24, %s6562_s6  ;;  %v4895_v56 = vmax.f32 %v4341_v20, 0.0001  ;;  %v10144_v20 = vmin.f32 %v4900_v57, 0.9999  ;;  %v4350_v59 = vmul.f32 %v6235_v46, %v10911_v11  ;;  %v10914_v57 = vld [vmem:[#allocation51_spill] sm:$0xff] }
 0xf01   :  { %6244 = vrcp.f32 %v10123_v7  ;;  %v4902_v33 = vmax.f32 %v4348_v22, 0.0001  ;;  %v10936_v14 = vld [vmem:[#allocation19_spill] sm:$0xff] }
 0xf02   :  { %v10131_v43 = vmin.f32 %v4895_v56, 0.9999 }
 0xf03   :  { %v10136_v49 = vpop.xlane.xlu0 %4589  ;;  %v10138_v12 = vpop.xlane.xlu1 %4303 }
 0xf04   :  { %10908 = vst [vmem:[#allocation57_spill] sm:$0xff] %v10136_v49  ;;  %10909 = vst [vmem:[#allocation47_spill] sm:$0xff] %v10138_v12  ;;  %4975 = vrot.lane.b32.xlu1 %v10131_v43, %s6562_s6  ;;  %4981 = vrot.lane.b32.xlu0 %v10133_v31, %s6562_s6  ;;  %6246 = vrcp.f32 %v10138_v12  ;;  %v10159_v12 = vmin.f32 %v4902_v33, 0.9999  ;;  %v10918_v33 = vld [vmem:[#allocation54_spill] sm:$0xff] }
 0xf05   :  { %v6237_v2 = vpop.eup %6236 }
 0xf06   :  { %v6239_v56 = vpop.eup %6238  ;;  %v4343_v7 = vmul.f32 %v6237_v2, %v10910_v35  ;;  %v4904_v2 = vmax.f32 %v4350_v59, 0.0001 }
 0xf07   :  { %v10149_v62 = vpop.xlane.xlu0 %4270  ;;  %v10151_v47 = vpop.xlane.xlu1 %4754  ;;  %v4352_v54 = vmul.f32 %v6239_v56, %v10914_v57 }
 0xf08   :  { %10912 = vst [vmem:[#allocation59_spill] sm:$0xff] %v10149_v62  ;;  %10913 = vst [vmem:[#allocation49_spill] sm:$0xff] %v10151_v47  ;;  %6248 = vrcp.f32 %v10149_v62  ;;  %4985 = vrot.lane.b32.xlu0 %v10144_v20, %s6562_s6  ;;  %v4897_v18 = vmax.f32 %v4343_v7, 0.0001  ;;  %v6241_v22 = vpop.eup %6240  ;;  %v10169_v47 = vmin.f32 %v4904_v2, 0.9999 }
 0xf09   :  { %v4906_v7 = vmax.f32 %v4352_v54, 0.0001  ;;  %v4354_v57 = vmul.f32 %v6241_v22, %v10918_v33 }
 0xf0a   :  { %v10157_v5 = vmin.f32 %v4897_v18, 0.9999  ;;  %v10917_v18 = vld [vmem:[#allocation46_spill] sm:$0xff] }
 0xf0b   :  { %v10161_v35 = vpop.xlane.xlu0 %4619  ;;  %v10163_v46 = vpop.xlane.xlu1 %4784  ;;  %v10180_v30 = vmin.f32 %v4906_v7, 0.9999  ;;  %v4908_v2 = vmax.f32 %v4354_v57, 0.0001  ;;  %v10922_v7 = vld [vmem:[#allocation48_spill] sm:$0xff] }
 0xf0c   :  { %10915 = vst [vmem:[#allocation51_spill] sm:$0xff] %v10161_v35  ;;  %10916 = vst [vmem:[#allocation68_spill] sm:$0xff] %v10163_v46  ;;  %4979 = vrot.lane.b32.xlu1 %v10157_v5, %s6562_s6  ;;  %4989 = vrot.lane.b32.xlu0 %v10159_v12, %s6562_s6 }
 0xf0d   :  { %v6243_v11 = vpop.eup %6242 }
 0xf0e   :  { %v4345_v56 = vmul.f32 %v6243_v11, %v10917_v18  ;;  %v6245_v59 = vpop.eup %6244 }
 0xf0f   :  { %v10173_v62 = vpop.xlane.xlu0 %4276  ;;  %v10175_v13 = vpop.xlane.xlu1 %4309  ;;  %v4356_v22 = vmul.f32 %v6245_v59, %v9835_v0 }
 0xf10   :  { %10919 = vst [vmem:[#allocation46_spill] sm:$0xff] %v10173_v62  ;;  %10920 = vst [vmem:[#allocation54_spill] sm:$0xff] %v10175_v13  ;;  %6250 = vrcp.f32 %v10173_v62  ;;  %4993 = vrot.lane.b32.xlu0 %v10169_v47, %s6562_s6  ;;  %v4899_v46 = vmax.f32 %v4345_v56, 0.0001  ;;  %v10192_v56 = vmin.f32 %v4908_v2, 0.9999 }
 0xf11   :  { %6252 = vrcp.f32 %v10175_v13  ;;  %v6247_v11 = vpop.eup %6246  ;;  %v4910_v13 = vmax.f32 %v4356_v22, 0.0001 }
 0xf12   :  { %v10183_v54 = vmin.f32 %v4899_v46, 0.9999  ;;  %v10923_v46 = vld [vmem:[#allocation17_spill] sm:$0xff] }
 0xf13   :  { %v10186_v18 = vpop.xlane.xlu0 %4649  ;;  %v4358_v35 = vmul.f32 %v6247_v11, %v10923_v46 }
 0xf14   :  { %10921 = vst [vmem:[#allocation69_spill] sm:$0xff] %v10186_v18  ;;  %4983 = vrot.lane.b32.xlu1 %v10183_v54, %s6562_s6  ;;  %4997 = vrot.lane.b32.xlu0 %v10180_v30, %s6562_s6  ;;  %v10203_v18 = vmin.f32 %v4910_v13, 0.9999 }
 0xf15   :  { %v6249_v33 = vpop.eup %6248  ;;  %v4912_v4 = vmax.f32 %v4358_v35, 0.0001  ;;  %v10928_v35 = vld [vmem:[#allocation20_spill] sm:$0xff] }
 0xf16   :  { %v4347_v62 = vmul.f32 %v6249_v33, %v10922_v7  ;;  %v10926_v33 = vld [vmem:[#allocation50_spill] sm:$0xff] }
 0xf17   :  { %v10196_v57 = vpop.xlane.xlu0 %4282  ;;  %v10211_v11 = vmin.f32 %v4912_v4, 0.9999 }
 0xf18   :  { %10924 = vst [vmem:[#allocation48_spill] sm:$0xff] %v10196_v57  ;;  %6254 = vrcp.f32 %v10196_v57  ;;  %5001 = vrot.lane.b32.xlu0 %v10192_v56, %s6562_s6  ;;  %v4901_v0 = vmax.f32 %v4347_v62, 0.0001 }
 0xf1a   :  { %v10201_v59 = vmin.f32 %v4901_v0, 0.9999 }
 0xf1b   :  { %v10205_v2 = vpop.xlane.xlu0 %4679 }
 0xf1c   :  { %10925 = vst [vmem:[#allocation17_spill] sm:$0xff] %v10205_v2  ;;  %4987 = vrot.lane.b32.xlu1 %v10201_v59, %s6562_s6  ;;  %5005 = vrot.lane.b32.xlu0 %v10203_v18, %s6562_s6 }
 0xf1d   :  { %v6251_v22 = vpop.eup %6250 }
 0xf1e   :  { %v4349_v7 = vmul.f32 %v6251_v22, %v10926_v33  ;;  %v6253_v46 = vpop.eup %6252  ;;  %v10930_v33 = vld [vmem:[#allocation52_spill] sm:$0xff] }
 0xf1f   :  { %v10214_v62 = vpop.xlane.xlu0 %4288  ;;  %v4360_v0 = vmul.f32 %v6253_v46, %v10928_v35  ;;  %v10933_v35 = vld [vmem:[#allocation56_spill] sm:$0xff] }
 0xf20   :  { %10927 = vst [vmem:[#allocation50_spill] sm:$0xff] %v10214_v62  ;;  %6256 = vrcp.f32 %v10214_v62  ;;  %5009 = vrot.lane.b32.xlu0 %v10211_v11, %s6562_s6  ;;  %v4903_v13 = vmax.f32 %v4349_v7, 0.0001 }
 0xf21   :  { %v4914_v2 = vmax.f32 %v4360_v0, 0.0001 }
 0xf22   :  { %v10220_v57 = vmin.f32 %v4903_v13, 0.9999 }
 0xf23   :  { %v10222_v3 = vpop.xlane.xlu0 %4709  ;;  %v10226_v4 = vmin.f32 %v4914_v2, 0.9999 }
 0xf24   :  { %10929 = vst [vmem:[#allocation20_spill] sm:$0xff] %v10222_v3  ;;  %4991 = vrot.lane.b32.xlu1 %v10220_v57, %s6562_s6 }
 0xf25   :  { %v6255_v22 = vpop.eup %6254  ;;  %5013 = vrot.lane.b32.xlu0 %v10226_v4, %s6562_s6 }
 0xf26   :  { %v4351_v62 = vmul.f32 %v6255_v22, %v10930_v33 }
 0xf27   :  { %v10231_v53 = vpop.xlane.xlu0 %4294 }
 0xf28   :  { %10931 = vst [vmem:[#allocation52_spill] sm:$0xff] %v10231_v53  ;;  %6258 = vrcp.f32 %v10231_v53  ;;  %v4905_v7 = vmax.f32 %v4351_v62, 0.0001  ;;  %v10934_v62 = vld [vmem:[#allocation63_spill] sm:$0xff] }
 0xf2a   :  { %v10234_v46 = vmin.f32 %v4905_v7, 0.9999 }
 0xf2b   :  { %v10236_v13 = vpop.xlane.xlu0 %4300 }
 0xf2c   :  { %10932 = vst [vmem:[#allocation70_spill] sm:$0xff] %v10236_v13  ;;  %6260 = vrcp.f32 %v10236_v13  ;;  %4995 = vrot.lane.b32.xlu1 %v10234_v46, %s6562_s6 }
 0xf2d   :  { %v6257_v2 = vpop.eup %6256 }
 0xf2e   :  { %v4353_v0 = vmul.f32 %v6257_v2, %v10933_v35 }
 0xf30   :  { %v4907_v3 = vmax.f32 %v4353_v0, 0.0001 }
 0xf32   :  { %v10242_v63 = vmin.f32 %v4907_v3, 0.9999 }
 0xf34   :  { %4999 = vrot.lane.b32.xlu1 %v10242_v63, %s6562_s6 }
 0xf35   :  { %v6259_v22 = vpop.eup %6258 }
 0xf36   :  { %v4355_v33 = vmul.f32 %v6259_v22, %v10934_v62 }
 0xf38   :  { %v4909_v7 = vmax.f32 %v4355_v33, 0.0001 }
 0xf39   :  { %v6261_v53 = vpop.eup %6260  ;;  %v10247_v49 = vpop.xlane.xlu0 %4306 }
 0xf3a   :  { %10935 = vst [vmem:[#allocation56_spill] sm:$0xff] %v10247_v49  ;;  %6262 = vrcp.f32 %v10247_v49  ;;  %v10250_v13 = vmin.f32 %v4909_v7, 0.9999  ;;  %v4357_v34 = vmul.f32 %v6261_v53, %v10936_v14 }
 0xf3c   :  { %5003 = vrot.lane.b32.xlu1 %v10250_v13, %s6562_s6  ;;  %v4911_v3 = vmax.f32 %v4357_v34, 0.0001 }
 0xf3d   :  { %v10264_v33 = vpop.xlane.xlu0 %4739 }
 0xf3e   :  { %v10255_v2 = vmin.f32 %v4911_v3, 0.9999  ;;  %10937 = vst [vmem:[#allocation63_spill] sm:$0xff] %v10264_v33 }
 0xf40   :  { %5007 = vrot.lane.b32.xlu1 %v10255_v2, %s6562_s6 }
 0xf41   :  { %v10266_v53 = vpop.xlane.xlu0 %4769 }
 0xf42   :  { %10938 = vst [vmem:[#allocation19_spill] sm:$0xff] %v10266_v53 }
 0xf47   :  { %v6263_v35 = vpop.eup %6262 }
 0xf48   :  { %v4359_v0 = vmul.f32 %v6263_v35, %v9914_v60 }
 0xf4a   :  { %v4913_v22 = vmax.f32 %v4359_v0, 0.0001 }
 0xf4c   :  { %v10260_v62 = vmin.f32 %v4913_v22, 0.9999 }
 0xf4e   :  { %5011 = vrot.lane.b32.xlu1 %v10260_v62, %s6562_s6 }
 0xf66   :  { %v4966_v14 = vpop.permute.xlu1 %4965 }
 0xf67   :  { %v5040_v35 = vsel %vm4235_vm10, %v4966_v14, 0.0 }
 0xf6a   :  { %v4970_v34 = vpop.permute.xlu0 %4969  ;;  %v4968_v7 = vpop.permute.xlu1 %4967 }
 0xf6b   :  { %v5043_v3 = vsel %vm4235_vm10, %v4968_v7, 0.0  ;;  %v5046_v22 = vsel %vm4235_vm10, %v4970_v34, 0.0 }
 0xf6c   :  { %5044 = vadd.xlane.f32.xlu0 %v5043_v3 }
 0xf6e   :  { %v4974_v49 = vpop.permute.xlu0 %4973  ;;  %v4972_v48 = vpop.permute.xlu1 %4971 }
 0xf6f   :  { %v5049_v60 = vsel %vm4235_vm10, %v4972_v48, 0.0  ;;  %v5052_v7 = vsel %vm4235_vm10, %v4974_v49, 0.0 }
 0xf70   :  { %5050 = vadd.xlane.f32.xlu0 %v5049_v60 }
 0xf72   :  { %v4978_v0 = vpop.permute.xlu0 %4977  ;;  %5041 = vadd.xlane.f32.xlu1 %v5040_v35 }
 0xf73   :  { %v5058_v25 = vsel %vm4235_vm10, %v4978_v0, 0.0 }
 0xf76   :  { %v4982_v33 = vpop.permute.xlu0 %4981  ;;  %5047 = vadd.xlane.f32.xlu1 %v5046_v22  ;;  %v4976_v53 = vpop.permute.xlu1 %4975 }
 0xf77   :  { %v5055_v16 = vsel %vm4235_vm10, %v4976_v53, 0.0  ;;  %v5064_v34 = vsel %vm4235_vm10, %v4982_v33, 0.0 }
 0xf78   :  { %5056 = vadd.xlane.f32.xlu0 %v5055_v16 }
 0xf7a   :  { %v4986_v3 = vpop.permute.xlu0 %4985  ;;  %5053 = vadd.xlane.f32.xlu1 %v5052_v7 }
 0xf7b   :  { %v5070_v22 = vsel %vm4235_vm10, %v4986_v3, 0.0 }
 0xf7e   :  { %v4990_v48 = vpop.permute.xlu0 %4989  ;;  %5059 = vadd.xlane.f32.xlu1 %v5058_v25  ;;  %v4980_v60 = vpop.permute.xlu1 %4979 }
 0xf7f   :  { %v5061_v14 = vsel %vm4235_vm10, %v4980_v60, 0.0  ;;  %v5076_v0 = vsel %vm4235_vm10, %v4990_v48, 0.0 }
 0xf80   :  { %5062 = vadd.xlane.f32.xlu0 %v5061_v14 }
 0xf82   :  { %v4994_v35 = vpop.permute.xlu0 %4993  ;;  %5065 = vadd.xlane.f32.xlu1 %v5064_v34 }
 0xf83   :  { %v5082_v25 = vsel %vm4235_vm10, %v4994_v35, 0.0 }
 0xf86   :  { %5071 = vadd.xlane.f32.xlu1 %v5070_v22  ;;  %v4984_v16 = vpop.permute.xlu1 %4983  ;;  %v4998_v53 = vpop.permute.xlu0 %4997 }
 0xf87   :  { %v5067_v49 = vsel %vm4235_vm10, %v4984_v16, 0.0  ;;  %v5088_v14 = vsel %vm4235_vm10, %v4998_v53, 0.0  ;;  %v10940_v53 = vld [vmem:[#allocation61_spill] sm:$0xff] }
 0xf88   :  { %5068 = vadd.xlane.f32.xlu0 %v5067_v49  ;;  %v10939_v49 = vld [vmem:[#allocation58_spill] sm:$0xff]  ;;  %vm4812_vm15 = vcmp.eq.f32.partialorder %v10940_v53, %v9959_v6 }
 0xf8a   :  { %5077 = vadd.xlane.f32.xlu1 %v5076_v0  ;;  %v5002_v7 = vpop.permute.xlu0 %5001  ;;  %v4806_v0 = vand.u32 65535, %v10939_v49 }
 0xf8b   :  { %v5094_v34 = vsel %vm4235_vm10, %v5002_v7, 0.0 }
 0xf8e   :  { %5083 = vadd.xlane.f32.xlu1 %v5082_v25  ;;  %v4988_v60 = vpop.permute.xlu1 %4987  ;;  %v5006_v3 = vpop.permute.xlu0 %5005 }
 0xf8f   :  { %v5073_v33 = vsel %vm4235_vm10, %v4988_v60, 0.0  ;;  %v5100_v48 = vsel %vm4235_vm10, %v5006_v3, 0.0 }
 0xf90   :  { %5074 = vadd.xlane.f32.xlu0 %v5073_v33  ;;  %v4808_v33 = vcvt.s32.f32 %v4806_v0 }
 0xf92   :  { %5089 = vadd.xlane.f32.xlu1 %v5088_v14  ;;  %v5010_v35 = vpop.permute.xlu0 %5009  ;;  %v4813_v14 = vsel %vm4812_vm15, %v4808_v33, inf }
 0xf93   :  { %v5106_v25 = vsel %vm4235_vm10, %v5010_v35, 0.0  ;;  %v10942_v35 = vld [vmem:[#allocation66_spill] sm:$0xff] }
 0xf94   :  { %vm4842_vm0 = vcmp.eq.f32.partialorder %v10942_v35, %v9980_v27  ;;  %v10945_v35 = vld [vmem:[#allocation65_spill] sm:$0xff] }
 0xf96   :  { %5095 = vadd.xlane.f32.xlu1 %v5094_v34  ;;  %v4992_v22 = vpop.permute.xlu1 %4991 }
 0xf97   :  { %v5079_v16 = vsel %vm4235_vm10, %v4992_v22, 0.0  ;;  %v5014_v34 = vpop.permute.xlu0 %5013  ;;  %v10941_v22 = vld [vmem:[#allocation64_spill] sm:$0xff] }
 0xf98   :  { %5080 = vadd.xlane.f32.xlu0 %v5079_v16  ;;  %v4836_v3 = vand.u32 65535, %v10941_v22  ;;  %v5112_v16 = vsel %vm4235_vm10, %v5014_v34, 0.0 }
 0xf9a   :  { %5101 = vadd.xlane.f32.xlu1 %v5100_v48 }
 0xf9e   :  { %5107 = vadd.xlane.f32.xlu1 %v5106_v25  ;;  %v4996_v60 = vpop.permute.xlu1 %4995  ;;  %v4838_v25 = vcvt.s32.f32 %v4836_v3 }
 0xf9f   :  { %v5085_v7 = vsel %vm4235_vm10, %v4996_v60, 0.0 }
 0xfa0   :  { %5086 = vadd.xlane.f32.xlu0 %v5085_v7  ;;  %v4843_v53 = vsel %vm4842_vm0, %v4838_v25, inf }
 0xfa2   :  { %4814 = vmin.xlane.f32.xlu1 %v4813_v14  ;;  %v10943_v14 = vld [vmem:[#allocation60_spill] sm:$0xff] }
 0xfa3   :  { %v4791_v34 = vand.u32 65535, %v10943_v14 }
 0xfa5   :  { %v4793_v3 = vcvt.s32.f32 %v4791_v34 }
 0xfa6   :  { %5113 = vadd.xlane.f32.xlu1 %v5112_v16  ;;  %v5000_v48 = vpop.permute.xlu1 %4999 }
 0xfa7   :  { %v5091_v49 = vsel %vm4235_vm10, %v5000_v48, 0.0  ;;  %v10944_v48 = vld [vmem:[#allocation62_spill] sm:$0xff] }
 0xfa8   :  { %5092 = vadd.xlane.f32.xlu0 %v5091_v49  ;;  %vm4797_vm1 = vcmp.eq.f32.partialorder %v10944_v48, %v10007_v36  ;;  %v4821_v49 = vand.u32 65535, %v10945_v35 }
 0xfa9   :  { %v4798_v25 = vsel %vm4797_vm1, %v4793_v3, inf }
 0xfaa   :  { %4844 = vmin.xlane.f32.xlu1 %v4843_v53  ;;  %v10946_v53 = vld [vmem:[#allocation18_spill] sm:$0xff] }
 0xfab   :  { %vm4827_vm2 = vcmp.eq.f32.partialorder %v10946_v53, %v10015_v28 }
 0xfae   :  { %v5004_v0 = vpop.permute.xlu1 %5003 }
 0xfaf   :  { %v5097_v60 = vsel %vm4235_vm10, %v5004_v0, 0.0  ;;  %v4823_v0 = vcvt.s32.f32 %v4821_v49 }
 0xfb0   :  { %5098 = vadd.xlane.f32.xlu0 %v5097_v60  ;;  %v10947_v60 = vld [vmem:[#allocation21_spill] sm:$0xff] }
 0xfb2   :  { %v5008_v7 = vpop.permute.xlu1 %5007 }
 0xfb3   :  { %v5103_v33 = vsel %vm4235_vm10, %v5008_v7, 0.0  ;;  %v4851_v7 = vand.u32 65535, %v10947_v60 }
 0xfb4   :  { %5104 = vadd.xlane.f32.xlu0 %v5103_v33  ;;  %v4828_v33 = vsel %vm4827_vm2, %v4823_v0, inf }
 0xfb5   :  { %v4853_v14 = vcvt.s32.f32 %v4851_v7 }
 0xfc0   :  { %v5012_v22 = vpop.permute.xlu1 %5011 }
 0xfc1   :  { %v5109_v16 = vsel %vm4235_vm10, %v5012_v22, 0.0  ;;  %vm4857_vm10 = vcmp.eq.f32.partialorder %v9892_v58, %v10019_v10 }
 0xfc2   :  { %5110 = vadd.xlane.f32.xlu0 %v5109_v16  ;;  %v4858_v22 = vsel %vm4857_vm10, %v4853_v14, inf }
 0xfc6   :  { %4799 = vmin.xlane.f32.xlu0 %v4798_v25 }
 0xfca   :  { %4829 = vmin.xlane.f32.xlu0 %v4828_v33 }
 0xfce   :  { %4859 = vmin.xlane.f32.xlu0 %v4858_v22 }
 0xff5   :  { %v5045_v16 = vpop.xlane.xlu0 %5044 }
 0xff6   :  { %6264 = vrcp.f32 %v5045_v16 }
 0xff9   :  { %v5051_v48 = vpop.xlane.xlu0 %5050 }
 0xffb   :  { %v5042_v34 = vpop.xlane.xlu1 %5041 }
 0xffc   :  { %6266 = vrcp.f32 %v5042_v34 }
 0xfff   :  { %v5048_v3 = vpop.xlane.xlu1 %5047 }
0x1000   :  { %6268 = vrcp.f32 %v5048_v3 }
0x1001   :  { %6270 = vrcp.f32 %v5051_v48  ;;  %v5057_v49 = vpop.xlane.xlu0 %5056 }
0x1003   :  { %v6265_v35 = vpop.eup %6264  ;;  %v5054_v25 = vpop.xlane.xlu1 %5053 }
0x1004   :  { %6272 = vrcp.f32 %v5054_v25  ;;  %v5118_v53 = vmul.f32 %v6265_v35, %v10090_v51 }
0x1005   :  { %6274 = vrcp.f32 %v5057_v49 }
0x1006   :  { %5217 = vrot.lane.b32.xlu0 %v5118_v53, %s6563_s21 }
0x1007   :  { %v5060_v58 = vpop.xlane.xlu1 %5059 }
0x1008   :  { %6276 = vrcp.f32 %v5060_v58 }
0x1009   :  { %v6267_v0 = vpop.eup %6266  ;;  %v5063_v60 = vpop.xlane.xlu0 %5062 }
0x100a   :  { %6278 = vrcp.f32 %v5063_v60  ;;  %v5116_v7 = vmul.f32 %v6267_v0, %v10081_v21 }
0x100b   :  { %v5066_v33 = vpop.xlane.xlu1 %5065 }
0x100c   :  { %6280 = vrcp.f32 %v5066_v33  ;;  %5215 = vrot.lane.b32.xlu1 %v5116_v7, %s6563_s21 }
0x100d   :  { %v6269_v14 = vpop.eup %6268 }
0x100e   :  { %v5120_v22 = vmul.f32 %v6269_v14, %v10093_v61  ;;  %v6271_v16 = vpop.eup %6270 }
0x100f   :  { %v5072_v51 = vpop.xlane.xlu1 %5071  ;;  %v5122_v3 = vmul.f32 %v6271_v16, %v10107_v8 }
0x1010   :  { %6282 = vrcp.f32 %v5072_v51  ;;  %5219 = vrot.lane.b32.xlu1 %v5120_v22, %s6563_s21 }
0x1011   :  { %v6273_v34 = vpop.eup %6272  ;;  %v5069_v48 = vpop.xlane.xlu0 %5068 }
0x1012   :  { %6284 = vrcp.f32 %v5069_v48  ;;  %v5124_v35 = vmul.f32 %v6273_v34, %v10109_v42  ;;  %v6275_v21 = vpop.eup %6274 }
0x1013   :  { %v5078_v49 = vpop.xlane.xlu1 %5077  ;;  %v5126_v25 = vmul.f32 %v6275_v21, %v10131_v43 }
0x1014   :  { %6286 = vrcp.f32 %v5078_v49  ;;  %5221 = vrot.lane.b32.xlu1 %v5122_v3, %s6563_s21  ;;  %5223 = vrot.lane.b32.xlu0 %v5124_v35, %s6563_s21 }
0x1015   :  { %v6277_v61 = vpop.eup %6276 }
0x1016   :  { %v5128_v53 = vmul.f32 %v6277_v61, %v10120_v24 }
0x1017   :  { %v6279_v58 = vpop.eup %6278  ;;  %v5084_v0 = vpop.xlane.xlu1 %5083 }
0x1018   :  { %6288 = vrcp.f32 %v5084_v0  ;;  %5225 = vrot.lane.b32.xlu1 %v5126_v25, %s6563_s21  ;;  %5227 = vrot.lane.b32.xlu0 %v5128_v53, %s6563_s21  ;;  %v5130_v60 = vmul.f32 %v6279_v58, %v10157_v5 }
0x1019   :  { %v6281_v8 = vpop.eup %6280  ;;  %v5075_v42 = vpop.xlane.xlu0 %5074 }
0x101a   :  { %6290 = vrcp.f32 %v5075_v42  ;;  %v5132_v7 = vmul.f32 %v6281_v8, %v10133_v31 }
0x101b   :  { %v5090_v33 = vpop.xlane.xlu1 %5089 }
0x101c   :  { %6292 = vrcp.f32 %v5090_v33  ;;  %5229 = vrot.lane.b32.xlu1 %v5130_v60, %s6563_s21  ;;  %5231 = vrot.lane.b32.xlu0 %v5132_v7, %s6563_s21 }
0x101d   :  { %v6283_v24 = vpop.eup %6282 }
0x101e   :  { %v5136_v43 = vmul.f32 %v6283_v24, %v10144_v20 }
0x101f   :  { %v6285_v14 = vpop.eup %6284  ;;  %v5096_v22 = vpop.xlane.xlu1 %5095 }
0x1020   :  { %6294 = vrcp.f32 %v5096_v22  ;;  %5235 = vrot.lane.b32.xlu0 %v5136_v43, %s6563_s21  ;;  %v5134_v16 = vmul.f32 %v6285_v14, %v10183_v54 }
0x1021   :  { %v6287_v51 = vpop.eup %6286  ;;  %v5081_v5 = vpop.xlane.xlu0 %5080 }
0x1022   :  { %6296 = vrcp.f32 %v5081_v5  ;;  %5233 = vrot.lane.b32.xlu1 %v5134_v16, %s6563_s21  ;;  %v5140_v31 = vmul.f32 %v6287_v51, %v10159_v12 }
0x1023   :  { %v5102_v34 = vpop.xlane.xlu1 %5101 }
0x1024   :  { %6298 = vrcp.f32 %v5102_v34  ;;  %5239 = vrot.lane.b32.xlu0 %v5140_v31, %s6563_s21 }
0x1025   :  { %v6289_v48 = vpop.eup %6288 }
0x1026   :  { %v5144_v20 = vmul.f32 %v6289_v48, %v10169_v47 }
0x1027   :  { %v6291_v3 = vpop.eup %6290  ;;  %v5108_v35 = vpop.xlane.xlu1 %5107 }
0x1028   :  { %6300 = vrcp.f32 %v5108_v35  ;;  %5243 = vrot.lane.b32.xlu0 %v5144_v20, %s6563_s21  ;;  %v5138_v54 = vmul.f32 %v6291_v3, %v10201_v59 }
0x1029   :  { %v6293_v21 = vpop.eup %6292  ;;  %v5087_v49 = vpop.xlane.xlu0 %5086 }
0x102a   :  { %6302 = vrcp.f32 %v5087_v49  ;;  %5237 = vrot.lane.b32.xlu1 %v5138_v54, %s6563_s21  ;;  %v5148_v12 = vmul.f32 %v6293_v21, %v10180_v30  ;;  %v4562_v49 = vcvt.f32.s32 %v9924_v41 }
0x102b   :  { %v10337_v61 = vpop.xlane.xlu1 %4814 }
0x102c   :  { %5247 = vrot.lane.b32.xlu0 %v5148_v12, %s6563_s21  ;;  %v10948_v12 = vmov 0.0  }
0x102d   :  { %v6295_v25 = vpop.eup %6294 }
0x102e   :  { %v5152_v47 = vmul.f32 %v6295_v25, %v10192_v56 }
0x102f   :  { %v6297_v53 = vpop.eup %6296  ;;  %v5114_v58 = vpop.xlane.xlu1 %5113 }
0x1030   :  { %6304 = vrcp.f32 %v5114_v58  ;;  %5251 = vrot.lane.b32.xlu0 %v5152_v47, %s6563_s21  ;;  %v5142_v59 = vmul.f32 %v6297_v53, %v10220_v57  ;;  %v10949_v53 = vld [vmem:[#allocation44_spill] sm:$0xff] }
0x1031   :  { %v6299_v0 = vpop.eup %6298  ;;  %v5093_v8 = vpop.xlane.xlu0 %5092 }
0x1032   :  { %6306 = vrcp.f32 %v5093_v8  ;;  %5241 = vrot.lane.b32.xlu1 %v5142_v59, %s6563_s21  ;;  %v5156_v30 = vmul.f32 %v6299_v0, %v10203_v18  ;;  %v10950_v0 = vld [vmem:[#allocation37_spill] sm:$0xff] }
0x1033   :  { %v10381_v35 = vpop.xlane.xlu1 %4844 }
0x1034   :  { %5255 = vrot.lane.b32.xlu0 %v5156_v30, %s6563_s21 }
0x1035   :  { %v6301_v42 = vpop.eup %6300 }
0x1036   :  { %v5160_v60 = vmul.f32 %v6301_v42, %v10211_v11  ;;  %v4563_v42 = vshll.u32 %v4562_v49, 16 }
0x1037   :  { %v6303_v56 = vpop.eup %6302 }
0x1038   :  { %5259 = vrot.lane.b32.xlu0 %v5160_v60, %s6563_s21  ;;  %v5146_v7 = vmul.f32 %v6303_v56, %v10234_v46  ;;  %v10951_v60 = vld [vmem:[#allocation29_spill] sm:$0xff] }
0x1039   :  { %v5099_v33 = vpop.xlane.xlu0 %5098  ;;  %v4592_v56 = vcvt.f32.s32 %v10951_v60 }
0x103a   :  { %6308 = vrcp.f32 %v5099_v33  ;;  %5245 = vrot.lane.b32.xlu1 %v5146_v7, %s6563_s21  ;;  %v10953_v33 = vld [vmem:[#allocation67_spill] sm:$0xff] }
0x103d   :  { %v6305_v57 = vpop.eup %6304  ;;  %v5105_v24 = vpop.xlane.xlu0 %5104 }
0x103e   :  { %6310 = vrcp.f32 %v5105_v24  ;;  %v5164_v43 = vmul.f32 %v6305_v57, %v10226_v4 }
0x103f   :  { %v6307_v18 = vpop.eup %6306 }
0x1040   :  { %5263 = vrot.lane.b32.xlu0 %v5164_v43, %s6563_s21  ;;  %v5150_v14 = vmul.f32 %v6307_v18, %v10242_v63 }
0x1042   :  { %5249 = vrot.lane.b32.xlu1 %v5150_v14, %s6563_s21  ;;  %v10954_v14 = vld [vmem:[#allocation57_spill] sm:$0xff] }
0x1047   :  { %v6309_v11 = vpop.eup %6308 }
0x1048   :  { %v5154_v22 = vmul.f32 %v6309_v11, %v10250_v13  ;;  %v4517_v13 = vcvt.f32.s32 %v9899_v29  ;;  %v4501_v29 = vcvt.f32.s32 %v10069_v50  ;;  %v4531_v50 = vcvt.f32.s32 %v10086_v38 }
0x1049   :  { %v4577_v38 = vcvt.f32.s32 %v9882_v44  ;;  %v4591_v11 = vcvt.f32.s32 %v10954_v14 }
0x104a   :  { %5253 = vrot.lane.b32.xlu1 %v5154_v22, %s6563_s21  ;;  %v4518_v48 = vshll.u32 %v4517_v13, 16  ;;  %v10956_v13 = vld [vmem:[#allocation22_spill] sm:$0xff] }
0x104b   :  { %v6311_v46 = vpop.eup %6310  ;;  %v5111_v16 = vpop.xlane.xlu0 %5110  ;;  %v4578_v24 = vshll.u32 %v4577_v38, 16 }
0x104c   :  { %6312 = vrcp.f32 %v5111_v16  ;;  %v5158_v51 = vmul.f32 %v6311_v46, %v10255_v2  ;;  %v4516_v2 = vcvt.f32.s32 %v10032_v39  ;;  %v10955_v16 = vld [vmem:[#allocation39_spill] sm:$0xff] }
0x104d   :  { %6314 = vlog2.f32 %v10021_v52  ;;  %v4502_v52 = vcvt.f32.s32 %v9864_v23 }
0x104e   :  { %5257 = vrot.lane.b32.xlu1 %v5158_v51, %s6563_s21  ;;  %6316 = vlog2.f32 %v10053_v55 }
0x104f   :  { %v10361_v63 = vpop.xlane.xlu0 %4799  ;;  %6318 = vlog2.f32 %v10059_v15  ;;  %v4503_v15 = vshll.u32 %v4502_v52, 16 }
0x1050   :  { %6320 = vlog2.f32 %v10027_v37  ;;  %v4532_v37 = vcvt.f32.s32 %v9911_v32 }
0x1051   :  { %6322 = vlog2.f32 %v10065_v26 }
0x1052   :  { %6324 = vlog2.f32 %v10034_v19  ;;  %v4504_v19 = vadd.s32 %v4503_v15, %v4501_v29  ;;  %v4533_v21 = vshll.u32 %v4532_v37, 16 }
0x1053   :  { %v10365_v31 = vpop.xlane.xlu0 %4829  ;;  %6326 = vlog2.f32 %v10076_v17  ;;  %v4547_v17 = vcvt.f32.s32 %v9870_v40  ;;  %v4561_v40 = vcvt.f32.s32 %v10949_v53 }
0x1054   :  { %6328 = vlog2.f32 %v10038_v1  ;;  %v4546_v1 = vcvt.f32.s32 %v10036_v45  ;;  %v4865_v25 = vcvt.s32.f32 %v4504_v19  ;;  %v4534_v47 = vadd.s32 %v4533_v21, %v4531_v50  ;;  %v10952_v45 = vld [vmem:[#allocation36_spill] sm:$0xff] }
0x1055   :  { %6330 = vlog2.f32 %v10097_v9  ;;  %v4548_v9 = vshll.u32 %v4547_v17, 16  ;;  %v4576_v7 = vcvt.f32.s32 %v10952_v45  ;;  %v4564_v18 = vadd.s32 %v4563_v42, %v4561_v40  ;;  %v10962_v40 = vld [vmem:[#allocation26_spill] sm:$0xff]  ;;  %v10964_v42 = vld [vmem:[#allocation69_spill] sm:$0xff] }
0x1056   :  { %6332 = vlog2.f32 %v10950_v0  ;;  %v4867_v43 = vcvt.s32.f32 %v4534_v47  ;;  %v10961_v47 = vld [vmem:[#allocation33_spill] sm:$0xff]  ;;  %v10963_v0 = vld [vmem:[#allocation59_spill] sm:$0xff]  ;;  %v4651_v60 = vcvt.f32.s32 %v10964_v42 }
0x1057   :  { %v10372_v20 = vpop.xlane.xlu0 %4859  ;;  %v4549_v44 = vadd.s32 %v4548_v9, %v4546_v1  ;;  %6334 = vlog2.f32 %v10953_v33  ;;  %v4579_v29 = vadd.s32 %v4578_v24, %v4576_v7  ;;  %v4869_v37 = vcvt.s32.f32 %v4564_v18  ;;  %v10965_v7 = vld [vmem:[#allocation16_spill] sm:$0xff]  ;;  %v10966_v18 = vld [vmem:[#allocation34_spill] sm:$0xff] }
0x1058   :  { %6336 = vlog2.f32 %v10955_v16  ;;  %v4652_v53 = vcvt.f32.s32 %v10961_v47  ;;  %v4682_v14 = vcvt.f32.s32 %v10966_v18  ;;  %v10974_v47 = vld [vmem:[#allocation45_spill] sm:$0xff] }
0x1059   :  { %v6313_v4 = vpop.eup %6312  ;;  %v4870_v9 = vcvt.s32.f32 %v4579_v29 }
0x105a   :  { %v5162_v5 = vmul.f32 %v6313_v4, %v10260_v62  ;;  %v6315_v34 = vpop.eup %6314  ;;  %v4519_v62 = vadd.s32 %v4518_v48, %v4516_v2  ;;  %v4607_v2 = vcvt.f32.s32 %v10956_v13  ;;  %v10957_v48 = vld [vmem:[#allocation28_spill] sm:$0xff]  ;;  %v10968_v13 = vld [vmem:[#allocation17_spill] sm:$0xff] }
0x105b   :  { %v4364_v55 = vmul.f32 0.6931472, %v6315_v34  ;;  %v6317_v39 = vpop.eup %6316  ;;  %v4593_v34 = vshll.u32 %v4592_v56, 16  ;;  %v4622_v52 = vcvt.f32.s32 %v10957_v48 }
0x105c   :  { %5261 = vrot.lane.b32.xlu1 %v5162_v5, %s6563_s21  ;;  %v4866_v3 = vcvt.s32.f32 %v4519_v62  ;;  %v4362_v54 = vmul.f32 0.6931472, %v6317_v39  ;;  %v6319_v32 = vpop.eup %6318  ;;  %v10958_v39 = vld [vmem:[#allocation38_spill] sm:$0xff]  ;;  %v4608_v38 = vshll.u32 %v4607_v2, 16  ;;  %v4681_v2 = vcvt.f32.s32 %v10968_v13 }
0x105d   :  { %v4412_v23 = vsub.f32 0.0, %v4364_v55  ;;  %v6321_v59 = vpop.eup %6320  ;;  %v4366_v30 = vmul.f32 0.6931472, %v6319_v32  ;;  %v4868_v55 = vcvt.s32.f32 %v4549_v44  ;;  %v4606_v15 = vcvt.f32.s32 %v10958_v39  ;;  %v10960_v32 = vld [vmem:[#allocation41_spill] sm:$0xff] }
0x105e   :  { %v4411_v8 = vsub.f32 0.0, %v4362_v54  ;;  %v6323_v41 = vpop.eup %6322  ;;  %v4370_v46 = vmul.f32 0.6931472, %v6321_v59  ;;  %6338 = vlog2.f32 %v10960_v32 }
0x105f   :  { %v6325_v57 = vpop.eup %6324  ;;  %v4413_v51 = vsub.f32 0.0, %v4366_v30  ;;  %v4368_v4 = vmul.f32 0.6931472, %v6323_v41  ;;  %6340 = vlog2.f32 %v10963_v0  ;;  %v10976_v0 = vld [vmem:[#allocation53_spill] sm:$0xff] }
0x1060   :  { %v6327_v5 = vpop.eup %6326  ;;  %v4374_v62 = vmul.f32 0.6931472, %v6325_v57  ;;  %v4415_v54 = vsub.f32 0.0, %v4370_v46  ;;  %6342 = vlog2.f32 %v10965_v7 }
0x1061   :  { %v6329_v17 = vpop.eup %6328  ;;  %v4414_v21 = vsub.f32 0.0, %v4368_v4  ;;  %v4372_v49 = vmul.f32 0.6931472, %v6327_v5 }
0x1062   :  { %v6331_v1 = vpop.eup %6330  ;;  %v4417_v59 = vsub.f32 0.0, %v4374_v62  ;;  %v4378_v45 = vmul.f32 0.6931472, %v6329_v17 }
0x1063   :  { %v4416_v33 = vsub.f32 0.0, %v4372_v49  ;;  %v4376_v57 = vmul.f32 0.6931472, %v6331_v1  ;;  %v6333_v24 = vpop.eup %6332 }
0x1064   :  { %v6335_v16 = vpop.eup %6334  ;;  %v4382_v62 = vmul.f32 0.6931472, %v6333_v24 }
0x1065   :  { %v4418_v29 = vsub.f32 0.0, %v4376_v57  ;;  %v6337_v39 = vpop.eup %6336 }
0x1078   :  { %v5218_v26 = vpop.permute.xlu0 %5217 }
0x1079   :  { %5292 = vst.msk [vmem:[#allocation11 + $0x8] sm:$0xff] %vm5290_vm3, %v5218_v26  ;;  %v10959_v26 = vld [vmem:[#allocation51_spill] sm:$0xff] }
0x107a   :  { %5318 = vst.msk [vmem:[#allocation11 + $0x8] sm:$0xff] %vm5316_vm4, %v4866_v3  ;;  %v4594_v3 = vadd.s32 %v4593_v34, %v4591_v11  ;;  %v10967_v11 = vld [vmem:[#allocation40_spill] sm:$0xff] }
0x107b   :  { %5344 = vst.msk [vmem:[#allocation11 + $0x8] sm:$0xff] %vm5342_vm6, %v4412_v23  ;;  %v4621_v23 = vcvt.f32.s32 %v10959_v26 }
0x107c   :  { %5370 = vst.msk [vmem:[#allocation11 + $0x8] sm:$0xff] %vm5368_vm7, %v10948_v12  ;;  %v4871_v30 = vcvt.s32.f32 %v4594_v3 }
0x107e   :  { %v5216_v58 = vpop.permute.xlu1 %5215 }
0x107f   :  { %5291 = vst.msk [vmem:[#allocation11] sm:$0xff] %vm5290_vm3, %v5216_v58  ;;  %v4637_v58 = vcvt.f32.s32 %v10962_v40 }
0x1080   :  { %5317 = vst.msk [vmem:[#allocation11] sm:$0xff] %vm5316_vm4, %v4865_v25  ;;  %v4623_v25 = vshll.u32 %v4622_v52, 16  ;;  %v4419_v52 = vsub.f32 0.0, %v4378_v45  ;;  %v10977_v45 = vld [vmem:[#allocation63_spill] sm:$0xff] }
0x1081   :  { %5343 = vst.msk [vmem:[#allocation11] sm:$0xff] %vm5342_vm6, %v4411_v8  ;;  %v4609_v8 = vadd.s32 %v4608_v38, %v4606_v15  ;;  %v4638_v46 = vshll.u32 %v4637_v58, 16  ;;  %v4683_v15 = vshll.u32 %v4682_v14, 16  ;;  %v4421_v38 = vsub.f32 0.0, %v4382_v62  ;;  %v10975_v58 = vld [vmem:[#allocation31_spill] sm:$0xff] }
0x1082   :  { %5369 = vst.msk [vmem:[#allocation11] sm:$0xff] %vm5368_vm7, %v10948_v12  ;;  %v5220_v22 = vpop.permute.xlu1 %5219  ;;  %v4624_v41 = vadd.s32 %v4623_v25, %v4621_v23  ;;  %v4380_v23 = vmul.f32 0.6931472, %v6335_v16  ;;  %v4386_v25 = vmul.f32 0.6931472, %v6337_v39  ;;  %v4741_v7 = vcvt.f32.s32 %v10977_v45  ;;  %v10987_v45 = vld [vmem:[#allocation55_spill] sm:$0xff] }
0x1083   :  { %5293 = vst.msk [vmem:[#allocation11 + $0x10] sm:$0xff] %vm5290_vm3, %v5220_v22  ;;  %v4636_v22 = vcvt.f32.s32 %v10967_v11  ;;  %v4684_v32 = vadd.s32 %v4683_v15, %v4681_v2  ;;  %v10979_v11 = vld [vmem:[#allocation35_spill] sm:$0xff]  ;;  %v4802_v15 = vcvt.f32.s32 %v10007_v36 }
0x1084   :  { %5319 = vst.msk [vmem:[#allocation11 + $0x10] sm:$0xff] %vm5316_vm4, %v4867_v43  ;;  %v4653_v43 = vshll.u32 %v4652_v53, 16  ;;  %v4873_v4 = vcvt.s32.f32 %v4624_v41  ;;  %v6339_v53 = vpop.eup %6338  ;;  %v4420_v41 = vsub.f32 0.0, %v4380_v23  ;;  %v4423_v57 = vsub.f32 0.0, %v4386_v25 }
0x1085   :  { %5345 = vst.msk [vmem:[#allocation11 + $0x10] sm:$0xff] %vm5342_vm6, %v4413_v51  ;;  %v4872_v51 = vcvt.s32.f32 %v4609_v8  ;;  %v4639_v26 = vadd.s32 %v4638_v46, %v4636_v22  ;;  %v4666_v8 = vcvt.f32.s32 %v10976_v0  ;;  %v6341_v42 = vpop.eup %6340  ;;  %v4390_v24 = vmul.f32 0.6931472, %v6339_v53 }
0x1086   :  { %5371 = vst.msk [vmem:[#allocation11 + $0x10] sm:$0xff] %vm5368_vm7, %v10948_v12  ;;  %v5224_v19 = vpop.permute.xlu0 %5223  ;;  %v5222_v50 = vpop.permute.xlu1 %5221  ;;  %v4654_v5 = vadd.s32 %v4653_v43, %v4651_v60  ;;  %v10978_v43 = vld [vmem:[#allocation47_spill] sm:$0xff]  ;;  %v4772_v22 = vcvt.f32.s32 %v10979_v11  ;;  %v4384_v16 = vmul.f32 0.6931472, %v6341_v42  ;;  %v4832_v53 = vcvt.f32.s32 %v10015_v28 }
0x1087   :  { %5295 = vst.msk [vmem:[#allocation11 + $0x20] sm:$0xff] %vm5290_vm3, %v5224_v19  ;;  %5294 = vst.msk [vmem:[#allocation11 + $0x18] sm:$0xff] %vm5290_vm3, %v5222_v50  ;;  %v10971_v19 = vld [vmem:[#allocation46_spill] sm:$0xff]  ;;  %v10972_v50 = vld [vmem:[#allocation25_spill] sm:$0xff]  ;;  %v6343_v18 = vpop.eup %6342  ;;  %v4425_v62 = vsub.f32 0.0, %v4390_v24 }
0x1088   :  { %5321 = vst.msk [vmem:[#allocation11 + $0x20] sm:$0xff] %vm5316_vm4, %v4869_v37  ;;  %5320 = vst.msk [vmem:[#allocation11 + $0x18] sm:$0xff] %vm5316_vm4, %v4868_v55  ;;  %v10969_v55 = vld [vmem:[#allocation42_spill] sm:$0xff]  ;;  %v10970_v37 = vld [vmem:[#allocation32_spill] sm:$0xff]  ;;  %v4667_v17 = vcvt.f32.s32 %v10972_v50  ;;  %v4773_v39 = vshll.u32 %v4772_v22, 16 }
0x1089   :  { %5347 = vst.msk [vmem:[#allocation11 + $0x20] sm:$0xff] %vm5342_vm6, %v4415_v54  ;;  %5346 = vst.msk [vmem:[#allocation11 + $0x18] sm:$0xff] %vm5342_vm6, %v4414_v21  ;;  %6344 = vlog2.f32 %v10969_v55  ;;  %v4712_v3 = vcvt.f32.s32 %v10970_v37  ;;  %v4875_v54 = vcvt.s32.f32 %v4654_v5  ;;  %v10973_v21 = vld [vmem:[#allocation20_spill] sm:$0xff]  ;;  %v4394_v55 = vmul.f32 0.6931472, %v6343_v18 }
0x108a   :  { %5373 = vst.msk [vmem:[#allocation11 + $0x20] sm:$0xff] %vm5368_vm7, %v10948_v12  ;;  %5372 = vst.msk [vmem:[#allocation11 + $0x18] sm:$0xff] %vm5368_vm7, %v10948_v12  ;;  %v5228_v56 = vpop.permute.xlu0 %5227  ;;  %v5226_v44 = vpop.permute.xlu1 %5225  ;;  %6346 = vlog2.f32 %v10971_v19  ;;  %v4711_v49 = vcvt.f32.s32 %v10973_v21  ;;  %v4668_v60 = vshll.u32 %v4667_v17, 16  ;;  %v4422_v19 = vsub.f32 0.0, %v4384_v16 }
0x108b   :  { %5297 = vst.msk [vmem:[#allocation11 + $0x30] sm:$0xff] %vm5290_vm3, %v5228_v56  ;;  %5296 = vst.msk [vmem:[#allocation11 + $0x28] sm:$0xff] %vm5290_vm3, %v5226_v44  ;;  %6348 = vlog2.f32 %v10974_v47  ;;  %v4713_v40 = vshll.u32 %v4712_v3, 16  ;;  %v4877_v56 = vcvt.s32.f32 %v4684_v32  ;;  %v10983_v3 = vld [vmem:[#allocation43_spill] sm:$0xff]  ;;  %v4801_v21 = vcvt.f32.s32 %v10361_v63 }
0x108c   :  { %5323 = vst.msk [vmem:[#allocation11 + $0x30] sm:$0xff] %vm5316_vm4, %v4871_v30  ;;  %5322 = vst.msk [vmem:[#allocation11 + $0x28] sm:$0xff] %vm5316_vm4, %v4870_v9  ;;  %v4874_v9 = vcvt.s32.f32 %v4639_v26  ;;  %6350 = vlog2.f32 %v10978_v43  ;;  %v4669_v46 = vadd.s32 %v4668_v60, %v4666_v8  ;;  %v4696_v26 = vcvt.f32.s32 %v10983_v3  ;;  %v10991_v3 = vld [vmem:[#allocation70_spill] sm:$0xff] }
0x108d   :  { %5349 = vst.msk [vmem:[#allocation11 + $0x30] sm:$0xff] %vm5342_vm6, %v4417_v59  ;;  %5348 = vst.msk [vmem:[#allocation11 + $0x28] sm:$0xff] %vm5342_vm6, %v4416_v33  ;;  %v4742_v59 = vcvt.f32.s32 %v10975_v58  ;;  %v4714_v44 = vadd.s32 %v4713_v40, %v4711_v49  ;;  %v4427_v49 = vsub.f32 0.0, %v4394_v55  ;;  %v4803_v47 = vshll.u32 %v4802_v15, 16  ;;  %v10985_v58 = vld [vmem:[#allocation50_spill] sm:$0xff] }
0x108e   :  { %5375 = vst.msk [vmem:[#allocation11 + $0x30] sm:$0xff] %vm5368_vm7, %v10948_v12  ;;  %5374 = vst.msk [vmem:[#allocation11 + $0x28] sm:$0xff] %vm5368_vm7, %v10948_v12  ;;  %v5232_v34 = vpop.permute.xlu0 %5231  ;;  %v5230_v48 = vpop.permute.xlu1 %5229  ;;  %v4876_v37 = vcvt.s32.f32 %v4669_v46  ;;  %v4862_v46 = vcvt.f32.s32 %v10019_v10 }
0x108f   :  { %5299 = vst.msk [vmem:[#allocation11 + $0x40] sm:$0xff] %vm5290_vm3, %v5232_v34  ;;  %5298 = vst.msk [vmem:[#allocation11 + $0x38] sm:$0xff] %vm5290_vm3, %v5230_v48  ;;  %v4743_v14 = vshll.u32 %v4742_v59, 16  ;;  %v4879_v13 = vcvt.s32.f32 %v4714_v44  ;;  %v10982_v34 = vld [vmem:[#allocation19_spill] sm:$0xff]  ;;  %v4804_v8 = vadd.s32 %v4803_v47, %v4801_v21 }
0x1090   :  { %5325 = vst.msk [vmem:[#allocation11 + $0x40] sm:$0xff] %vm5316_vm4, %v4873_v4  ;;  %5324 = vst.msk [vmem:[#allocation11 + $0x38] sm:$0xff] %vm5316_vm4, %v4872_v51  ;;  %v10980_v51 = vld [vmem:[#allocation48_spill] sm:$0xff]  ;;  %v4771_v48 = vcvt.f32.s32 %v10982_v34  ;;  %v10986_v59 = vld [vmem:[#allocation23_spill] sm:$0xff]  ;;  %v4861_v34 = vcvt.f32.s32 %v10372_v20 }
0x1091   :  { %5351 = vst.msk [vmem:[#allocation11 + $0x40] sm:$0xff] %vm5342_vm6, %v4419_v52  ;;  %5350 = vst.msk [vmem:[#allocation11 + $0x38] sm:$0xff] %vm5342_vm6, %v4418_v29  ;;  %6352 = vlog2.f32 %v10980_v51  ;;  %v10981_v4 = vld [vmem:[#allocation24_spill] sm:$0xff]  ;;  %v4744_v2 = vadd.s32 %v4743_v14, %v4741_v7  ;;  %v4726_v7 = vcvt.f32.s32 %v10987_v45  ;;  %v4885_v43 = vcvt.s32.f32 %v4804_v8 }
0x1092   :  { %5377 = vst.msk [vmem:[#allocation11 + $0x40] sm:$0xff] %vm5368_vm7, %v10948_v12  ;;  %5376 = vst.msk [vmem:[#allocation11 + $0x38] sm:$0xff] %vm5368_vm7, %v10948_v12  ;;  %v5236_v1 = vpop.permute.xlu0 %5235  ;;  %v4697_v5 = vcvt.f32.s32 %v10981_v4  ;;  %v4774_v32 = vadd.s32 %v4773_v39, %v4771_v48  ;;  %v10988_v4 = vld [vmem:[#allocation52_spill] sm:$0xff] }
0x1093   :  { %5301 = vst.msk [vmem:[#allocation11 + $0x50] sm:$0xff] %vm5290_vm3, %v5236_v1 }
0x1094   :  { %5327 = vst.msk [vmem:[#allocation11 + $0x50] sm:$0xff] %vm5316_vm4, %v4875_v54  ;;  %v5234_v30 = vpop.permute.xlu1 %5233  ;;  %v4698_v17 = vshll.u32 %v4697_v5, 16  ;;  %v4881_v54 = vcvt.s32.f32 %v4744_v2  ;;  %v4883_v0 = vcvt.s32.f32 %v4774_v32  ;;  %v10989_v5 = vld [vmem:[#allocation30_spill] sm:$0xff] }
0x1095   :  { %5353 = vst.msk [vmem:[#allocation11 + $0x50] sm:$0xff] %vm5342_vm6, %v4421_v38  ;;  %v10984_v38 = vld [vmem:[#allocation54_spill] sm:$0xff] }
0x1096   :  { %5300 = vst.msk [vmem:[#allocation11 + $0x48] sm:$0xff] %vm5290_vm3, %v5234_v30  ;;  %v5240_v33 = vpop.permute.xlu0 %5239  ;;  %v6345_v29 = vpop.eup %6344  ;;  %6354 = vlog2.f32 %v10984_v38  ;;  %v4699_v40 = vadd.s32 %v4698_v17, %v4696_v26  ;;  %v4831_v30 = vcvt.f32.s32 %v10365_v31  ;;  %v10993_v38 = vld [vmem:[#allocation68_spill] sm:$0xff] }
0x1097   :  { %5379 = vst.msk [vmem:[#allocation11 + $0x50] sm:$0xff] %vm5368_vm7, %v10948_v12  ;;  %v6347_v50 = vpop.eup %6346  ;;  %v4398_v1 = vmul.f32 0.6931472, %v6345_v29  ;;  %6356 = vlog2.f32 %v10985_v58  ;;  %v10990_v29 = vld [vmem:[#allocation49_spill] sm:$0xff]  ;;  %v4817_v58 = vcvt.f32.s32 %v9959_v6 }
0x1098   :  { %5326 = vst.msk [vmem:[#allocation11 + $0x48] sm:$0xff] %vm5316_vm4, %v4874_v9  ;;  %v6349_v25 = vpop.eup %6348  ;;  %v4388_v63 = vmul.f32 0.6931472, %v6347_v50  ;;  %v4727_v9 = vcvt.f32.s32 %v10986_v59  ;;  %v4878_v44 = vcvt.s32.f32 %v4699_v40  ;;  %6358 = vlog2.f32 %v10988_v4 }
0x1099   :  { %5352 = vst.msk [vmem:[#allocation11 + $0x48] sm:$0xff] %vm5342_vm6, %v4420_v41  ;;  %v4429_v41 = vsub.f32 0.0, %v4398_v1  ;;  %v4402_v42 = vmul.f32 0.6931472, %v6349_v25  ;;  %v6351_v60 = vpop.eup %6350  ;;  %v4756_v39 = vcvt.f32.s32 %v10990_v29  ;;  %6360 = vlog2.f32 %v10991_v3 }
0x109a   :  { %5303 = vst.msk [vmem:[#allocation11 + $0x60] sm:$0xff] %vm5290_vm3, %v5240_v33  ;;  %v5244_v52 = vpop.permute.xlu0 %5243  ;;  %v4728_v24 = vshll.u32 %v4727_v9, 16  ;;  %v4406_v22 = vmul.f32 0.6931472, %v6351_v60  ;;  %v4786_v25 = vcvt.f32.s32 %v10993_v38  ;;  %v4816_v9 = vcvt.f32.s32 %v10337_v61 }
0x109b   :  { %5378 = vst.msk [vmem:[#allocation11 + $0x48] sm:$0xff] %vm5368_vm7, %v10948_v12  ;;  %v4431_v11 = vsub.f32 0.0, %v4402_v42 }
0x109c   :  { %5329 = vst.msk [vmem:[#allocation11 + $0x60] sm:$0xff] %vm5316_vm4, %v4877_v56  ;;  %v5238_v23 = vpop.permute.xlu1 %5237  ;;  %v4833_v56 = vshll.u32 %v4832_v53, 16  ;;  %v4729_v16 = vadd.s32 %v4728_v24, %v4726_v7  ;;  %v4433_v48 = vsub.f32 0.0, %v4406_v22  ;;  %v4847_v7 = vcvt.f32.s32 %v9980_v27 }
0x109d   :  { %5355 = vst.msk [vmem:[#allocation11 + $0x60] sm:$0xff] %vm5342_vm6, %v4423_v57  ;;  %v4424_v57 = vsub.f32 0.0, %v4388_v63 }
0x109e   :  { %5381 = vst.msk [vmem:[#allocation11 + $0x60] sm:$0xff] %vm5368_vm7, %v10948_v12  ;;  %v5248_v36 = vpop.permute.xlu0 %5247  ;;  %v6353_v31 = vpop.eup %6352  ;;  %v4834_v18 = vadd.s32 %v4833_v56, %v4831_v30  ;;  %v4880_v55 = vcvt.s32.f32 %v4729_v16  ;;  %v4818_v30 = vshll.u32 %v4817_v58, 16 }
0x109f   :  { %5305 = vst.msk [vmem:[#allocation11 + $0x70] sm:$0xff] %vm5290_vm3, %v5244_v52  ;;  %5302 = vst.msk [vmem:[#allocation11 + $0x58] sm:$0xff] %vm5290_vm3, %v5238_v23  ;;  %v4392_v51 = vmul.f32 0.6931472, %v6353_v31  ;;  %v4848_v31 = vshll.u32 %v4847_v7, 16 }
0x10a0   :  { %5331 = vst.msk [vmem:[#allocation11 + $0x70] sm:$0xff] %vm5316_vm4, %v4879_v13  ;;  %5328 = vst.msk [vmem:[#allocation11 + $0x58] sm:$0xff] %vm5316_vm4, %v4876_v37  ;;  %v4757_v13 = vcvt.f32.s32 %v10989_v5  ;;  %v4887_v2 = vcvt.s32.f32 %v4834_v18  ;;  %v4819_v6 = vadd.s32 %v4818_v30, %v4816_v9 }
0x10a1   :  { %5357 = vst.msk [vmem:[#allocation11 + $0x70] sm:$0xff] %vm5342_vm6, %v4425_v62  ;;  %5354 = vst.msk [vmem:[#allocation11 + $0x58] sm:$0xff] %vm5342_vm6, %v4422_v19  ;;  %v4863_v62 = vshll.u32 %v4862_v46, 16  ;;  %v4426_v37 = vsub.f32 0.0, %v4392_v51 }
0x10a2   :  { %5383 = vst.msk [vmem:[#allocation11 + $0x70] sm:$0xff] %vm5368_vm7, %v10948_v12  ;;  %5380 = vst.msk [vmem:[#allocation11 + $0x58] sm:$0xff] %vm5368_vm7, %v10948_v12  ;;  %v5252_v28 = vpop.permute.xlu0 %5251  ;;  %v4758_v26 = vshll.u32 %v4757_v13, 16  ;;  %v4886_v61 = vcvt.s32.f32 %v4819_v6 }
0x10a3   :  { %5307 = vst.msk [vmem:[#allocation11 + $0x80] sm:$0xff] %vm5290_vm3, %v5248_v36  ;;  %5309 = vst.msk [vmem:[#allocation11 + $0x90] sm:$0xff] %vm5290_vm3, %v5252_v28  ;;  %v6355_v52 = vpop.eup %6354  ;;  %v4864_v23 = vadd.s32 %v4863_v62, %v4861_v34  ;;  %v10994_v28 = vld [vmem:[#allocation56_spill] sm:$0xff] }
0x10a4   :  { %5333 = vst.msk [vmem:[#allocation11 + $0x80] sm:$0xff] %vm5316_vm4, %v4881_v54  ;;  %5335 = vst.msk [vmem:[#allocation11 + $0x90] sm:$0xff] %vm5316_vm4, %v4883_v0  ;;  %v5242_v33 = vpop.permute.xlu1 %5241  ;;  %v6357_v20 = vpop.eup %6356  ;;  %v4410_v19 = vmul.f32 0.6931472, %v6355_v52  ;;  %v4759_v50 = vadd.s32 %v4758_v26, %v4756_v39  ;;  %v10992_v54 = vld [vmem:[#allocation27_spill] sm:$0xff]  ;;  %6362 = vlog2.f32 %v10994_v28 }
0x10a5   :  { %5359 = vst.msk [vmem:[#allocation11 + $0x80] sm:$0xff] %vm5342_vm6, %v4427_v49  ;;  %5361 = vst.msk [vmem:[#allocation11 + $0x90] sm:$0xff] %vm5342_vm6, %v4429_v41  ;;  %v4396_v17 = vmul.f32 0.6931472, %v6357_v20  ;;  %v4787_v32 = vcvt.f32.s32 %v10992_v54  ;;  %v4889_v21 = vcvt.s32.f32 %v4864_v23  ;;  %v6359_v40 = vpop.eup %6358 }
0x10a6   :  { %5385 = vst.msk [vmem:[#allocation11 + $0x80] sm:$0xff] %vm5368_vm7, %v10948_v12  ;;  %5387 = vst.msk [vmem:[#allocation11 + $0x90] sm:$0xff] %vm5368_vm7, %v10948_v12  ;;  %v5256_v14 = vpop.permute.xlu0 %5255  ;;  %v4435_v49 = vsub.f32 0.0, %v4410_v19  ;;  %v4882_v1 = vcvt.s32.f32 %v4759_v50  ;;  %v4400_v0 = vmul.f32 0.6931472, %v6359_v40  ;;  %v6361_v8 = vpop.eup %6360 }
0x10a7   :  { %5304 = vst.msk [vmem:[#allocation11 + $0x68] sm:$0xff] %vm5290_vm3, %v5242_v33  ;;  %5311 = vst.msk [vmem:[#allocation11 + $0xa0] sm:$0xff] %vm5290_vm3, %v5256_v14  ;;  %v4428_v53 = vsub.f32 0.0, %v4396_v17  ;;  %v4788_v63 = vshll.u32 %v4787_v32, 16  ;;  %v4404_v56 = vmul.f32 0.6931472, %v6361_v8  ;;  %v4846_v33 = vcvt.f32.s32 %v10381_v35 }
0x10a8   :  { %5330 = vst.msk [vmem:[#allocation11 + $0x68] sm:$0xff] %vm5316_vm4, %v4878_v44  ;;  %5337 = vst.msk [vmem:[#allocation11 + $0xa0] sm:$0xff] %vm5316_vm4, %v4885_v43  ;;  %v4430_v60 = vsub.f32 0.0, %v4400_v0 }
0x10a9   :  { %5356 = vst.msk [vmem:[#allocation11 + $0x68] sm:$0xff] %vm5342_vm6, %v4424_v57  ;;  %5363 = vst.msk [vmem:[#allocation11 + $0xa0] sm:$0xff] %vm5342_vm6, %v4431_v11  ;;  %v4789_v59 = vadd.s32 %v4788_v63, %v4786_v25  ;;  %v4432_v45 = vsub.f32 0.0, %v4404_v56  ;;  %v4849_v24 = vadd.s32 %v4848_v31, %v4846_v33 }
0x10aa   :  { %5382 = vst.msk [vmem:[#allocation11 + $0x68] sm:$0xff] %vm5368_vm7, %v10948_v12  ;;  %5389 = vst.msk [vmem:[#allocation11 + $0xa0] sm:$0xff] %vm5368_vm7, %v10948_v12  ;;  %v5260_v10 = vpop.permute.xlu0 %5259 }
0x10ab   :  { %5313 = vst.msk [vmem:[#allocation11 + $0xb0] sm:$0xff] %vm5290_vm3, %v5260_v10  ;;  %v4884_v41 = vcvt.s32.f32 %v4789_v59  ;;  %v4888_v18 = vcvt.s32.f32 %v4849_v24 }
0x10ac   :  { %5339 = vst.msk [vmem:[#allocation11 + $0xb0] sm:$0xff] %vm5316_vm4, %v4887_v2  ;;  %v5246_v15 = vpop.permute.xlu1 %5245 }
0x10ad   :  { %5365 = vst.msk [vmem:[#allocation11 + $0xb0] sm:$0xff] %vm5342_vm6, %v4433_v48 }
0x10ae   :  { %5306 = vst.msk [vmem:[#allocation11 + $0x78] sm:$0xff] %vm5290_vm3, %v5246_v15 }
0x10af   :  { %5391 = vst.msk [vmem:[#allocation11 + $0xb0] sm:$0xff] %vm5368_vm7, %v10948_v12 }
0x10b0   :  { %5332 = vst.msk [vmem:[#allocation11 + $0x78] sm:$0xff] %vm5316_vm4, %v4880_v55 }
0x10b1   :  { %5358 = vst.msk [vmem:[#allocation11 + $0x78] sm:$0xff] %vm5342_vm6, %v4426_v37  ;;  %v6363_v57 = vpop.eup %6362 }
0x10b2   :  { %5384 = vst.msk [vmem:[#allocation11 + $0x78] sm:$0xff] %vm5368_vm7, %v10948_v12  ;;  %v5264_v36 = vpop.permute.xlu0 %5263  ;;  %v4408_v43 = vmul.f32 0.6931472, %v6363_v57 }
0x10b3   :  { %5315 = vst.msk [vmem:[#allocation11 + $0xc0] sm:$0xff] %vm5290_vm3, %v5264_v36 }
0x10b4   :  { %5341 = vst.msk [vmem:[#allocation11 + $0xc0] sm:$0xff] %vm5316_vm4, %v4889_v21  ;;  %v5250_v47 = vpop.permute.xlu1 %5249  ;;  %v4434_v11 = vsub.f32 0.0, %v4408_v43 }
0x10b5   :  { %5367 = vst.msk [vmem:[#allocation11 + $0xc0] sm:$0xff] %vm5342_vm6, %v4435_v49 }
0x10b6   :  { %5308 = vst.msk [vmem:[#allocation11 + $0x88] sm:$0xff] %vm5290_vm3, %v5250_v47 }
0x10b7   :  { %5393 = vst.msk [vmem:[#allocation11 + $0xc0] sm:$0xff] %vm5368_vm7, %v10948_v12 }
0x10b8   :  { %5334 = vst.msk [vmem:[#allocation11 + $0x88] sm:$0xff] %vm5316_vm4, %v4882_v1 }
0x10b9   :  { %5360 = vst.msk [vmem:[#allocation11 + $0x88] sm:$0xff] %vm5342_vm6, %v4428_v53 }
0x10ba   :  { %5386 = vst.msk [vmem:[#allocation11 + $0x88] sm:$0xff] %vm5368_vm7, %v10948_v12 }
0x10bc   :  { %v5254_v42 = vpop.permute.xlu1 %5253 }
0x10bd   :  { %5310 = vst.msk [vmem:[#allocation11 + $0x98] sm:$0xff] %vm5290_vm3, %v5254_v42 }
0x10be   :  { %5336 = vst.msk [vmem:[#allocation11 + $0x98] sm:$0xff] %vm5316_vm4, %v4884_v41 }
0x10bf   :  { %5362 = vst.msk [vmem:[#allocation11 + $0x98] sm:$0xff] %vm5342_vm6, %v4430_v60 }
0x10c0   :  { %5388 = vst.msk [vmem:[#allocation11 + $0x98] sm:$0xff] %vm5368_vm7, %v10948_v12  ;;  %v5258_v44 = vpop.permute.xlu1 %5257 }
0x10c1   :  { %5312 = vst.msk [vmem:[#allocation11 + $0xa8] sm:$0xff] %vm5290_vm3, %v5258_v44 }
0x10c2   :  { %5338 = vst.msk [vmem:[#allocation11 + $0xa8] sm:$0xff] %vm5316_vm4, %v4886_v61 }
0x10c3   :  { %5364 = vst.msk [vmem:[#allocation11 + $0xa8] sm:$0xff] %vm5342_vm6, %v4432_v45 }
0x10c4   :  { %5390 = vst.msk [vmem:[#allocation11 + $0xa8] sm:$0xff] %vm5368_vm7, %v10948_v12 }
0x10ce   :  { %v5262_v14 = vpop.permute.xlu1 %5261 }
0x10cf   :  { %5314 = vst.msk [vmem:[#allocation11 + $0xb8] sm:$0xff] %vm5290_vm3, %v5262_v14 }
0x10d0   :  { %5340 = vst.msk [vmem:[#allocation11 + $0xb8] sm:$0xff] %vm5316_vm4, %v4888_v18 }
0x10d1   :  { %5366 = vst.msk [vmem:[#allocation11 + $0xb8] sm:$0xff] %vm5342_vm6, %v4434_v11 }
0x10d2   :  { %5392 = vst.msk [vmem:[#allocation11 + $0xb8] sm:$0xff] %vm5368_vm7, %v10948_v12 }
0x10d3   :  { %6528 = shalt.err (!%p6525_p1)
}
0x10d4   :  { %5405 = dma.vmem_to_hbm [thread:$0]  %s5400_s23, 3200, %s10581_s7, [#allocation4], %s6547_s29, %s6547_s29, %s6548_s30  }
0x10d5   :  { %6543 = dma.done.wait [#allocation4], 3200  }
0x10d6   :  { %6544 = vsyncadd [#allocation4], 4294964096 }
0x10d7   :  { %5409 = vsyncpa [#allocation3], 1 }
0x10d8   :  { %5410 = vsyncpa [#allocation6], 1 }
0x10d9   :  { %5411 = vsyncpa [#allocation9], 1 }
0x10da   :  { %5412 = vsyncpa [#allocation4], 1 }

</bundles_post_ra>
